<compile_context>
chip_gen: v5e
topology: v5e:2x2
jax: 0.10.0
libtpu: 0.0.40
codegen_flags: <defaults>
</compile_context>

<pallas_src>
import jax
import jax.numpy as jnp
from jax import lax
from jax.experimental import pallas as pl
from jax.experimental.pallas import tpu as pltpu

LANE = 128
SUBLANE = 8


def _round_up(n, m=LANE):
    return ((n + m - 1) // m) * m


def _pad_gate_cols(w_t, h, p):
    """w_t: (rows, 4h), PyTorch gate order [i, f, g, o].
    Returns (rows, 4p): gate g's columns at [g*p : g*p + h], zeros elsewhere."""
    rows = w_t.shape[0]
    out = jnp.zeros((rows, 4 * p), dtype=w_t.dtype)
    for g in range(4):
        out = out.at[:, g * p:g * p + h].set(w_t[:, g * h:(g + 1) * h])
    return out


def _pad_rows(w, total):
    out = jnp.zeros((total, w.shape[1]), dtype=w.dtype)
    return out.at[:w.shape[0], :].set(w)


def _sigmoid(x):
    # One EUP push (tanh) instead of exp + reciprocal.
    return 0.5 * jnp.tanh(0.5 * x) + 0.5


def _encoder_kernel(x_ref, wih1_ref, b1_ref, w1cat_ref, whh2_ref, b2_ref,
                    out_ref, cN_ref, gx1_ref):
    """Fused, skewed 2-layer LSTM.

    x_ref     : (T*Bp, Dp)        bf16  time-major, batch/lane padded input
    wih1_ref  : (Dp, 4*P1)        bf16
    b1_ref    : (1, 4*P1)         f32
    w1cat_ref : (P1, 4*P1+4*P2)   bf16  [W_hh1 | W_ih2]
    whh2_ref  : (P2, 4*P2)        bf16
    b2_ref    : (1, 4*P2)         f32
    out_ref   : (T, Bp, P2)       f32   per-step layer-2 hidden state
    cN_ref    : (Bp, P2)          f32   final layer-2 cell state
    gx1_ref   : (T*Bp, 4*P1)      f32   VMEM scratch (layer-1 input proj)

    Padded gate lanes carry exact zeros through the recurrence because the
    padded weight rows/cols and biases are zero and the initial h/c are zero.
    """
    P1 = w1cat_ref.shape[0]
    P2 = cN_ref.shape[1]
    Bp = cN_ref.shape[0]
    T = out_ref.shape[0]
    G1 = 4 * P1
    G2 = 4 * P2
    f32 = jnp.float32

    # --- layer-1 input projection for ALL timesteps: one big MXU pass -------
    gx1_ref[...] = (
        jnp.dot(x_ref[...], wih1_ref[...], preferred_element_type=f32)
        + b1_ref[...])

    # Small loop-invariant broadcast hoisted (JAX does not CSE broadcasts).
    b2 = jnp.broadcast_to(b2_ref[...], (Bp, G2))

    h1 = jnp.zeros((Bp, P1), f32)
    c1 = jnp.zeros((Bp, P1), f32)
    h2 = jnp.zeros((Bp, P2), f32)
    c2 = jnp.zeros((Bp, P2), f32)
    hproj1 = jnp.zeros((Bp, G1), f32)           # == h1_0 @ W_hh1 (h1_0 = 0)

    for t in range(T):                          # T small & static -> unrolled
        # ---------------- layer 1 gates for step t ---------------------------
        g1 = gx1_ref[pl.ds(t * Bp, Bp), :] + hproj1
        i1 = _sigmoid(g1[:, 0 * P1:1 * P1])
        f1 = _sigmoid(g1[:, 1 * P1:2 * P1])
        u1 = jnp.tanh(g1[:, 2 * P1:3 * P1])
        o1 = _sigmoid(g1[:, 3 * P1:4 * P1])
        c1 = f1 * c1 + i1 * u1
        h1 = o1 * jnp.tanh(c1)

        # ------ shared-LHS matmul: h1_t @ [W_hh1 | W_ih2] (one MXU pass) -----
        # Left half  -> layer-1 hidden projection consumed at step t+1.
        # Right half -> layer-2 input projection consumed right now.
        comb = jnp.dot(h1.astype(w1cat_ref.dtype), w1cat_ref[...],
                       preferred_element_type=f32)          # (Bp, G1+G2)
        hproj1 = comb[:, :G1]

        # ---------------- layer 2 gates for step t ---------------------------
        g2 = (comb[:, G1:]
              + jnp.dot(h2.astype(whh2_ref.dtype), whh2_ref[...],
                        preferred_element_type=f32)
              + b2)
        i2 = _sigmoid(g2[:, 0 * P2:1 * P2])
        f2 = _sigmoid(g2[:, 1 * P2:2 * P2])
        u2 = jnp.tanh(g2[:, 2 * P2:3 * P2])
        o2 = _sigmoid(g2[:, 3 * P2:4 * P2])
        c2 = f2 * c2 + i2 * u2
        h2 = o2 * jnp.tanh(c2)

        out_ref[t] = h2                         # lane-dense (Bp, 128) store

    cN_ref[...] = c2


def prepare_encoder_params(params1, params2, input_size):
    """ONE-TIME weight prep: transpose / gate-pad / concat / bf16 cast.
    Not called per forward — `make_encoder` closes over the result."""
    f32, bf16 = jnp.float32, jnp.bfloat16
    H1 = params1["w_hh"].shape[1]
    H2 = params2["w_hh"].shape[1]
    P1, P2, Dp = _round_up(H1), _round_up(H2), _round_up(input_size)

    wih1 = _pad_rows(_pad_gate_cols(params1["w_ih"].T.astype(f32), H1, P1), Dp)
    whh1 = _pad_rows(_pad_gate_cols(params1["w_hh"].T.astype(f32), H1, P1), P1)
    b1 = _pad_gate_cols(
        (params1["b_ih"] + params1["b_hh"]).astype(f32).reshape(1, -1), H1, P1)

    wih2 = _pad_rows(_pad_gate_cols(params2["w_ih"].T.astype(f32), H2, P2), P1)
    whh2 = _pad_rows(_pad_gate_cols(params2["w_hh"].T.astype(f32), H2, P2), P2)
    b2 = _pad_gate_cols(
        (params2["b_ih"] + params2["b_hh"]).astype(f32).reshape(1, -1), H2, P2)

    return {
        "wih1": wih1.astype(bf16),                               # (Dp, 4P1)
        "b1": b1,                                                # (1, 4P1) f32
        "w1cat": jnp.concatenate([whh1, wih2], 1).astype(bf16),  # (P1, 4P1+4P2)
        "whh2": whh2.astype(bf16),                               # (P2, 4P2)
        "b2": b2,                                                # (1, 4P2) f32
    }


def make_encoder(params1, params2, input_size):
    """Returns jitted forward(w) mirroring Encoder.forward:
        out_1, _ = lstm_1(w);  return lstm_2(out_1)
    w: (B, T, input_size) batch_first.  Returns (output, (h_n, c_n))."""
    H2 = params2["w_hh"].shape[1]
    prep = jax.tree_util.tree_map(
        jnp.asarray, prepare_encoder_params(params1, params2, input_size))
    Dp = prep["wih1"].shape[0]
    P1 = prep["w1cat"].shape[0]
    P2 = prep["whh2"].shape[0]

    @jax.jit
    def forward(w_btd):
        B, T, D = w_btd.shape
        Bp = _round_up(B, SUBLANE)

        # Tiny per-call input plumbing: time-major, batch/lane pad, bf16.
        x = jnp.transpose(w_btd, (1, 0, 2)).astype(jnp.bfloat16)      # (T,B,D)
        x = jnp.pad(x, ((0, 0), (0, Bp - B), (0, Dp - D)))            # (T,Bp,Dp)
        x = x.reshape(T * Bp, Dp)

        grid_spec = pltpu.PrefetchScalarGridSpec(
            num_scalar_prefetch=0,
            grid=(1,),                       # recurrence lives inside the kernel
            in_specs=[
                pl.BlockSpec((T * Bp, Dp), lambda i: (0, 0)),
                pl.BlockSpec((Dp, 4 * P1), lambda i: (0, 0)),
                pl.BlockSpec((1, 4 * P1), lambda i: (0, 0)),
                pl.BlockSpec((P1, 4 * (P1 + P2)), lambda i: (0, 0)),
                pl.BlockSpec((P2, 4 * P2), lambda i: (0, 0)),
                pl.BlockSpec((1, 4 * P2), lambda i: (0, 0)),
            ],
            out_specs=[
                pl.BlockSpec((T, Bp, P2), lambda i: (0, 0, 0)),
                pl.BlockSpec((Bp, P2), lambda i: (0, 0)),
            ],
            scratch_shapes=[pltpu.VMEM((T * Bp, 4 * P1), jnp.float32)],
        )

        out_pad, cN_pad = pl.pallas_call(
            _encoder_kernel,
            out_shape=(jax.ShapeDtypeStruct((T, Bp, P2), jnp.float32),
                       jax.ShapeDtypeStruct((Bp, P2), jnp.float32)),
            grid_spec=grid_spec,
            compiler_params=pltpu.CompilerParams(
                dimension_semantics=("arbitrary",)),
        )(x, prep["wih1"], prep["b1"], prep["w1cat"], prep["whh2"], prep["b2"])

        out_tbh = out_pad[:, :B, :H2]                 # padded lanes are exact 0
        output = jnp.transpose(out_tbh, (1, 0, 2))    # (B, T, H2)
        h_n = out_tbh[T - 1][None]                    # (1, B, H2)
        c_n = cN_pad[:B, :H2][None]                   # (1, B, H2)
        return output, (h_n, c_n)

    return forward


def init_lstm_params(key, input_size, hidden_size):
    """Deterministic init matching PyTorch nn.LSTM param shapes (num_layers=1)."""
    k = 1.0 / jnp.sqrt(hidden_size)
    k1, k2, k3, k4 = jax.random.split(key, 4)
    return {
        "w_ih": jax.random.uniform(k1, (4 * hidden_size, input_size),
                                   minval=-k, maxval=k, dtype=jnp.float32),
        "w_hh": jax.random.uniform(k2, (4 * hidden_size, hidden_size),
                                   minval=-k, maxval=k, dtype=jnp.float32),
        "b_ih": jax.random.uniform(k3, (4 * hidden_size,),
                                   minval=-k, maxval=k, dtype=jnp.float32),
        "b_hh": jax.random.uniform(k4, (4 * hidden_size,),
                                   minval=-k, maxval=k, dtype=jnp.float32),
    }


def _lstm_layer_ref(x_tbd, p):
    """Pure-JAX f32 reference for one LSTM layer (time-major input)."""
    T, B, D = x_tbd.shape
    H = p["w_hh"].shape[1]
    wih_t = p["w_ih"].T
    whh_t = p["w_hh"].T
    bias = p["b_ih"] + p["b_hh"]

    def step(carry, x_t):
        h, c = carry
        g = jnp.dot(x_t, wih_t) + jnp.dot(h, whh_t) + bias
        i = jax.nn.sigmoid(g[:, 0 * H:1 * H])
        f = jax.nn.sigmoid(g[:, 1 * H:2 * H])
        gg = jnp.tanh(g[:, 2 * H:3 * H])
        o = jax.nn.sigmoid(g[:, 3 * H:4 * H])
        c_new = f * c + i * gg
        h_new = o * jnp.tanh(c_new)
        return (h_new, c_new), h_new

    init = (jnp.zeros((B, H), jnp.float32), jnp.zeros((B, H), jnp.float32))
    (h_n, c_n), out = lax.scan(step, init, x_tbd)
    return out, h_n, c_n


if __name__ == "__main__":
    B, T = 2, 8
    INPUT_SIZE, H1, H2 = 4, 32, 16

    key = jax.random.PRNGKey(0)
    k_in, k_p1, k_p2 = jax.random.split(key, 3)

    w = jax.random.normal(k_in, (B, T, INPUT_SIZE), dtype=jnp.float32)
    params1 = init_lstm_params(k_p1, INPUT_SIZE, H1)
    params2 = init_lstm_params(k_p2, H1, H2)

    encoder = make_encoder(params1, params2, INPUT_SIZE)
    out, (h_n, c_n) = encoder(w)
    out = jax.block_until_ready(out)
    h_n = jax.block_until_ready(h_n)
    c_n = jax.block_until_ready(c_n)

    # sanity check against a pure-JAX f32 reference
    x_tbd = jnp.transpose(w, (1, 0, 2))
    o1_ref, _, _ = _lstm_layer_ref(x_tbd, params1)
    o2_ref, h_ref, c_ref = _lstm_layer_ref(o1_ref, params2)
    assert out.shape == (B, T, H2)
    assert h_n.shape == (1, B, H2) and c_n.shape == (1, B, H2)
    tol = dict(atol=5e-3, rtol=5e-3)   # bf16 weight storage / bf16 MXU operands
    assert jnp.allclose(out, jnp.transpose(o2_ref, (1, 0, 2)), **tol)
    assert jnp.allclose(h_n[0], h_ref, **tol)
    assert jnp.allclose(c_n[0], c_ref, **tol)

    print("KERNEL_OK")
</pallas_src>

<mosaic_0001>
module attributes {stable_mosaic.version = 11 : i64} {
  func.func @_encoder_kernel(%arg0: i32, %arg1: memref<64x128xbf16, #tpu.memory_space<vmem>>, %arg2: memref<128x512xbf16, #tpu.memory_space<vmem>>, %arg3: memref<1x512xf32, #tpu.memory_space<vmem>>, %arg4: memref<128x1024xbf16, #tpu.memory_space<vmem>>, %arg5: memref<128x512xbf16, #tpu.memory_space<vmem>>, %arg6: memref<1x512xf32, #tpu.memory_space<vmem>>, %arg7: memref<8x8x128xf32, #tpu.memory_space<vmem>>, %arg8: memref<8x128xf32, #tpu.memory_space<vmem>>, %arg9: memref<64x512xf32, #tpu.memory_space<vmem>>) attributes {dimension_semantics = [#tpu.dimension_semantics<arbitrary>], iteration_bounds = array<i64: 1>, scalar_prefetch = 0 : i64, scratch_operands = 1 : i64, tpu.core_type = #tpu.core_type<tc>, window_params = [{pipeline_mode = #tpu.pipeline_mode<synchronous>, transform_indices = @transform_0, window_bounds = array<i64: 64, 128>}, {pipeline_mode = #tpu.pipeline_mode<synchronous>, transform_indices = @transform_1, window_bounds = array<i64: 128, 512>}, {pipeline_mode = #tpu.pipeline_mode<synchronous>, transform_indices = @transform_2, window_bounds = array<i64: 1, 512>}, {pipeline_mode = #tpu.pipeline_mode<synchronous>, transform_indices = @transform_3, window_bounds = array<i64: 128, 1024>}, {pipeline_mode = #tpu.pipeline_mode<synchronous>, transform_indices = @transform_4, window_bounds = array<i64: 128, 512>}, {pipeline_mode = #tpu.pipeline_mode<synchronous>, transform_indices = @transform_5, window_bounds = array<i64: 1, 512>}, {pipeline_mode = #tpu.pipeline_mode<synchronous>, transform_indices = @transform_6, window_bounds = array<i64: 8, 8, 128>}, {pipeline_mode = #tpu.pipeline_mode<synchronous>, transform_indices = @transform_7, window_bounds = array<i64: 8, 128>}]} {
    %c0 = arith.constant 0 : index
    %c0_0 = arith.constant 0 : index
    %0 = vector.load %arg1[%c0, %c0_0] : memref<64x128xbf16, #tpu.memory_space<vmem>>, vector<64x128xbf16>
    %c0_1 = arith.constant 0 : index
    %c0_2 = arith.constant 0 : index
    %1 = vector.load %arg2[%c0_1, %c0_2] : memref<128x512xbf16, #tpu.memory_space<vmem>>, vector<128x512xbf16>
    %cst = arith.constant dense<0.000000e+00> : vector<64x512xf32>
    %2 = tpu.matmul %0, %1, %cst {dimension_numbers = #tpu.dot_dimension_numbers<[1], [0], [0], [1], [0, 0, 1, 1], [], []>} : vector<64x128xbf16>, vector<128x512xbf16>, vector<64x512xf32> -> vector<64x512xf32>
    %c0_3 = arith.constant 0 : index
    %c0_4 = arith.constant 0 : index
    %3 = vector.load %arg3[%c0_3, %c0_4] : memref<1x512xf32, #tpu.memory_space<vmem>>, vector<1x512xf32>
    %4 = vector.broadcast %3 : vector<1x512xf32> to vector<64x512xf32>
    %5 = arith.addf %2, %4 : vector<64x512xf32>
    %c0_5 = arith.constant 0 : index
    %c0_6 = arith.constant 0 : index
    %6 = vector.load %arg9[%c0_5, %c0_6] : memref<64x512xf32, #tpu.memory_space<vmem>>, vector<64x512xf32>
    tpu.vector_store %arg9[%c0_5, %c0_6], %5 {strides = array<i32>} : memref<64x512xf32, #tpu.memory_space<vmem>>, vector<64x512xf32>,
    %c0_7 = arith.constant 0 : index
    %c0_8 = arith.constant 0 : index
    %7 = vector.load %arg6[%c0_7, %c0_8] : memref<1x512xf32, #tpu.memory_space<vmem>>, vector<1x512xf32>
    %8 = vector.shape_cast %7 : vector<1x512xf32> to vector<1x512xf32>
    %9 = vector.broadcast %8 : vector<1x512xf32> to vector<8x512xf32>
    %cst_9 = arith.constant 0.000000e+00 : f32
    %10 = vector.broadcast %cst_9 : f32 to vector<8x128xf32>
    %cst_10 = arith.constant 0.000000e+00 : f32
    %11 = vector.broadcast %cst_10 : f32 to vector<8x128xf32>
    %cst_11 = arith.constant 0.000000e+00 : f32
    %12 = vector.broadcast %cst_11 : f32 to vector<8x128xf32>
    %cst_12 = arith.constant 0.000000e+00 : f32
    %13 = vector.broadcast %cst_12 : f32 to vector<8x512xf32>
    %c0_13 = arith.constant 0 : index
    %c0_14 = arith.constant 0 : index
    %14 = vector.load %arg9[%c0_13, %c0_14] : memref<64x512xf32, #tpu.memory_space<vmem>>, vector<8x512xf32>
    %15 = arith.addf %14, %13 : vector<8x512xf32>
    %16 = vector.extract_strided_slice %15 {offsets = [0, 0], sizes = [8, 128], strides = [1, 1]} : vector<8x512xf32> to vector<8x128xf32>
    %cst_15 = arith.constant 5.000000e-01 : f32
    %17 = vector.broadcast %cst_15 : f32 to vector<8x128xf32>
    %18 = arith.mulf %17, %16 : vector<8x128xf32>
    %19 = math.tanh %18 : vector<8x128xf32>
    %cst_16 = arith.constant 5.000000e-01 : f32
    %20 = vector.broadcast %cst_16 : f32 to vector<8x128xf32>
    %21 = arith.mulf %20, %19 : vector<8x128xf32>
    %cst_17 = arith.constant 5.000000e-01 : f32
    %22 = vector.broadcast %cst_17 : f32 to vector<8x128xf32>
    %23 = arith.addf %21, %22 : vector<8x128xf32>
    %24 = vector.extract_strided_slice %15 {offsets = [0, 128], sizes = [8, 128], strides = [1, 1]} : vector<8x512xf32> to vector<8x128xf32>
    %cst_18 = arith.constant 5.000000e-01 : f32
    %25 = vector.broadcast %cst_18 : f32 to vector<8x128xf32>
    %26 = arith.mulf %25, %24 : vector<8x128xf32>
    %27 = math.tanh %26 : vector<8x128xf32>
    %cst_19 = arith.constant 5.000000e-01 : f32
    %28 = vector.broadcast %cst_19 : f32 to vector<8x128xf32>
    %29 = arith.mulf %28, %27 : vector<8x128xf32>
    %cst_20 = arith.constant 5.000000e-01 : f32
    %30 = vector.broadcast %cst_20 : f32 to vector<8x128xf32>
    %31 = arith.addf %29, %30 : vector<8x128xf32>
    %32 = vector.extract_strided_slice %15 {offsets = [0, 256], sizes = [8, 128], strides = [1, 1]} : vector<8x512xf32> to vector<8x128xf32>
    %33 = math.tanh %32 : vector<8x128xf32>
    %34 = vector.extract_strided_slice %15 {offsets = [0, 384], sizes = [8, 128], strides = [1, 1]} : vector<8x512xf32> to vector<8x128xf32>
    %cst_21 = arith.constant 5.000000e-01 : f32
    %35 = vector.broadcast %cst_21 : f32 to vector<8x128xf32>
    %36 = arith.mulf %35, %34 : vector<8x128xf32>
    %37 = math.tanh %36 : vector<8x128xf32>
    %cst_22 = arith.constant 5.000000e-01 : f32
    %38 = vector.broadcast %cst_22 : f32 to vector<8x128xf32>
    %39 = arith.mulf %38, %37 : vector<8x128xf32>
    %cst_23 = arith.constant 5.000000e-01 : f32
    %40 = vector.broadcast %cst_23 : f32 to vector<8x128xf32>
    %41 = arith.addf %39, %40 : vector<8x128xf32>
    %42 = arith.mulf %31, %10 : vector<8x128xf32>
    %43 = arith.mulf %23, %33 : vector<8x128xf32>
    %44 = arith.addf %42, %43 : vector<8x128xf32>
    %45 = math.tanh %44 : vector<8x128xf32>
    %46 = arith.mulf %41, %45 : vector<8x128xf32>
    %47 = arith.truncf %46 : vector<8x128xf32> to vector<8x128xbf16>
    %c0_24 = arith.constant 0 : index
    %c0_25 = arith.constant 0 : index
    %48 = vector.load %arg4[%c0_24, %c0_25] : memref<128x1024xbf16, #tpu.memory_space<vmem>>, vector<128x1024xbf16>
    %cst_26 = arith.constant dense<0.000000e+00> : vector<8x1024xf32>
    %49 = tpu.matmul %47, %48, %cst_26 {dimension_numbers = #tpu.dot_dimension_numbers<[1], [0], [0], [1], [0, 0, 1, 1], [], []>} : vector<8x128xbf16>, vector<128x1024xbf16>, vector<8x1024xf32> -> vector<8x1024xf32>
    %50 = vector.extract_strided_slice %49 {offsets = [0, 0], sizes = [8, 512], strides = [1, 1]} : vector<8x1024xf32> to vector<8x512xf32>
    %51 = vector.extract_strided_slice %49 {offsets = [0, 512], sizes = [8, 512], strides = [1, 1]} : vector<8x1024xf32> to vector<8x512xf32>
    %52 = arith.truncf %11 : vector<8x128xf32> to vector<8x128xbf16>
    %c0_27 = arith.constant 0 : index
    %c0_28 = arith.constant 0 : index
    %53 = vector.load %arg5[%c0_27, %c0_28] : memref<128x512xbf16, #tpu.memory_space<vmem>>, vector<128x512xbf16>
    %cst_29 = arith.constant dense<0.000000e+00> : vector<8x512xf32>
    %54 = tpu.matmul %52, %53, %cst_29 {dimension_numbers = #tpu.dot_dimension_numbers<[1], [0], [0], [1], [0, 0, 1, 1], [], []>} : vector<8x128xbf16>, vector<128x512xbf16>, vector<8x512xf32> -> vector<8x512xf32>
    %55 = arith.addf %51, %54 : vector<8x512xf32>
    %56 = arith.addf %55, %9 : vector<8x512xf32>
    %57 = vector.extract_strided_slice %56 {offsets = [0, 0], sizes = [8, 128], strides = [1, 1]} : vector<8x512xf32> to vector<8x128xf32>
    %cst_30 = arith.constant 5.000000e-01 : f32
    %58 = vector.broadcast %cst_30 : f32 to vector<8x128xf32>
    %59 = arith.mulf %58, %57 : vector<8x128xf32>
    %60 = math.tanh %59 : vector<8x128xf32>
    %cst_31 = arith.constant 5.000000e-01 : f32
    %61 = vector.broadcast %cst_31 : f32 to vector<8x128xf32>
    %62 = arith.mulf %61, %60 : vector<8x128xf32>
    %cst_32 = arith.constant 5.000000e-01 : f32
    %63 = vector.broadcast %cst_32 : f32 to vector<8x128xf32>
    %64 = arith.addf %62, %63 : vector<8x128xf32>
    %65 = vector.extract_strided_slice %56 {offsets = [0, 128], sizes = [8, 128], strides = [1, 1]} : vector<8x512xf32> to vector<8x128xf32>
    %cst_33 = arith.constant 5.000000e-01 : f32
    %66 = vector.broadcast %cst_33 : f32 to vector<8x128xf32>
    %67 = arith.mulf %66, %65 : vector<8x128xf32>
    %68 = math.tanh %67 : vector<8x128xf32>
    %cst_34 = arith.constant 5.000000e-01 : f32
    %69 = vector.broadcast %cst_34 : f32 to vector<8x128xf32>
    %70 = arith.mulf %69, %68 : vector<8x128xf32>
    %cst_35 = arith.constant 5.000000e-01 : f32
    %71 = vector.broadcast %cst_35 : f32 to vector<8x128xf32>
    %72 = arith.addf %70, %71 : vector<8x128xf32>
    %73 = vector.extract_strided_slice %56 {offsets = [0, 256], sizes = [8, 128], strides = [1, 1]} : vector<8x512xf32> to vector<8x128xf32>
    %74 = math.tanh %73 : vector<8x128xf32>
    %75 = vector.extract_strided_slice %56 {offsets = [0, 384], sizes = [8, 128], strides = [1, 1]} : vector<8x512xf32> to vector<8x128xf32>
    %cst_36 = arith.constant 5.000000e-01 : f32
    %76 = vector.broadcast %cst_36 : f32 to vector<8x128xf32>
    %77 = arith.mulf %76, %75 : vector<8x128xf32>
    %78 = math.tanh %77 : vector<8x128xf32>
    %cst_37 = arith.constant 5.000000e-01 : f32
    %79 = vector.broadcast %cst_37 : f32 to vector<8x128xf32>
    %80 = arith.mulf %79, %78 : vector<8x128xf32>
    %cst_38 = arith.constant 5.000000e-01 : f32
    %81 = vector.broadcast %cst_38 : f32 to vector<8x128xf32>
    %82 = arith.addf %80, %81 : vector<8x128xf32>
    %83 = arith.mulf %72, %12 : vector<8x128xf32>
    %84 = arith.mulf %64, %74 : vector<8x128xf32>
    %85 = arith.addf %83, %84 : vector<8x128xf32>
    %86 = math.tanh %85 : vector<8x128xf32>
    %87 = arith.mulf %82, %86 : vector<8x128xf32>
    %c0_39 = arith.constant 0 : index
    %c0_40 = arith.constant 0 : index
    %c0_41 = arith.constant 0 : index
    %88 = vector.load %arg7[%c0_39, %c0_40, %c0_41] : memref<8x8x128xf32, #tpu.memory_space<vmem>>, vector<1x8x128xf32>
    %89 = vector.shape_cast %88 : vector<1x8x128xf32> to vector<8x128xf32>
    %90 = vector.shape_cast %87 : vector<8x128xf32> to vector<1x8x128xf32>
    tpu.vector_store %arg7[%c0_39, %c0_40, %c0_41], %90 {strides = array<i32>} : memref<8x8x128xf32, #tpu.memory_space<vmem>>, vector<1x8x128xf32>,
    %c8 = arith.constant 8 : index
    %c0_42 = arith.constant 0 : index
    %91 = vector.load %arg9[%c8, %c0_42] : memref<64x512xf32, #tpu.memory_space<vmem>>, vector<8x512xf32>
    %92 = arith.addf %91, %50 : vector<8x512xf32>
    %93 = vector.extract_strided_slice %92 {offsets = [0, 0], sizes = [8, 128], strides = [1, 1]} : vector<8x512xf32> to vector<8x128xf32>
    %cst_43 = arith.constant 5.000000e-01 : f32
    %94 = vector.broadcast %cst_43 : f32 to vector<8x128xf32>
    %95 = arith.mulf %94, %93 : vector<8x128xf32>
    %96 = math.tanh %95 : vector<8x128xf32>
    %cst_44 = arith.constant 5.000000e-01 : f32
    %97 = vector.broadcast %cst_44 : f32 to vector<8x128xf32>
    %98 = arith.mulf %97, %96 : vector<8x128xf32>
    %cst_45 = arith.constant 5.000000e-01 : f32
    %99 = vector.broadcast %cst_45 : f32 to vector<8x128xf32>
    %100 = arith.addf %98, %99 : vector<8x128xf32>
    %101 = vector.extract_strided_slice %92 {offsets = [0, 128], sizes = [8, 128], strides = [1, 1]} : vector<8x512xf32> to vector<8x128xf32>
    %cst_46 = arith.constant 5.000000e-01 : f32
    %102 = vector.broadcast %cst_46 : f32 to vector<8x128xf32>
    %103 = arith.mulf %102, %101 : vector<8x128xf32>
    %104 = math.tanh %103 : vector<8x128xf32>
    %cst_47 = arith.constant 5.000000e-01 : f32
    %105 = vector.broadcast %cst_47 : f32 to vector<8x128xf32>
    %106 = arith.mulf %105, %104 : vector<8x128xf32>
    %cst_48 = arith.constant 5.000000e-01 : f32
    %107 = vector.broadcast %cst_48 : f32 to vector<8x128xf32>
    %108 = arith.addf %106, %107 : vector<8x128xf32>
    %109 = vector.extract_strided_slice %92 {offsets = [0, 256], sizes = [8, 128], strides = [1, 1]} : vector<8x512xf32> to vector<8x128xf32>
    %110 = math.tanh %109 : vector<8x128xf32>
    %111 = vector.extract_strided_slice %92 {offsets = [0, 384], sizes = [8, 128], strides = [1, 1]} : vector<8x512xf32> to vector<8x128xf32>
    %cst_49 = arith.constant 5.000000e-01 : f32
    %112 = vector.broadcast %cst_49 : f32 to vector<8x128xf32>
    %113 = arith.mulf %112, %111 : vector<8x128xf32>
    %114 = math.tanh %113 : vector<8x128xf32>
    %cst_50 = arith.constant 5.000000e-01 : f32
    %115 = vector.broadcast %cst_50 : f32 to vector<8x128xf32>
    %116 = arith.mulf %115, %114 : vector<8x128xf32>
    %cst_51 = arith.constant 5.000000e-01 : f32
    %117 = vector.broadcast %cst_51 : f32 to vector<8x128xf32>
    %118 = arith.addf %116, %117 : vector<8x128xf32>
    %119 = arith.mulf %108, %44 : vector<8x128xf32>
    %120 = arith.mulf %100, %110 : vector<8x128xf32>
    %121 = arith.addf %119, %120 : vector<8x128xf32>
    %122 = math.tanh %121 : vector<8x128xf32>
    %123 = arith.mulf %118, %122 : vector<8x128xf32>
    %124 = arith.truncf %123 : vector<8x128xf32> to vector<8x128xbf16>
    %c0_52 = arith.constant 0 : index
    %c0_53 = arith.constant 0 : index
    %125 = vector.load %arg4[%c0_52, %c0_53] : memref<128x1024xbf16, #tpu.memory_space<vmem>>, vector<128x1024xbf16>
    %cst_54 = arith.constant dense<0.000000e+00> : vector<8x1024xf32>
    %126 = tpu.matmul %124, %125, %cst_54 {dimension_numbers = #tpu.dot_dimension_numbers<[1], [0], [0], [1], [0, 0, 1, 1], [], []>} : vector<8x128xbf16>, vector<128x1024xbf16>, vector<8x1024xf32> -> vector<8x1024xf32>
    %127 = vector.extract_strided_slice %126 {offsets = [0, 0], sizes = [8, 512], strides = [1, 1]} : vector<8x1024xf32> to vector<8x512xf32>
    %128 = vector.extract_strided_slice %126 {offsets = [0, 512], sizes = [8, 512], strides = [1, 1]} : vector<8x1024xf32> to vector<8x512xf32>
    %129 = arith.truncf %87 : vector<8x128xf32> to vector<8x128xbf16>
    %c0_55 = arith.constant 0 : index
    %c0_56 = arith.constant 0 : index
    %130 = vector.load %arg5[%c0_55, %c0_56] : memref<128x512xbf16, #tpu.memory_space<vmem>>, vector<128x512xbf16>
    %cst_57 = arith.constant dense<0.000000e+00> : vector<8x512xf32>
    %131 = tpu.matmul %129, %130, %cst_57 {dimension_numbers = #tpu.dot_dimension_numbers<[1], [0], [0], [1], [0, 0, 1, 1], [], []>} : vector<8x128xbf16>, vector<128x512xbf16>, vector<8x512xf32> -> vector<8x512xf32>
    %132 = arith.addf %128, %131 : vector<8x512xf32>
    %133 = arith.addf %132, %9 : vector<8x512xf32>
    %134 = vector.extract_strided_slice %133 {offsets = [0, 0], sizes = [8, 128], strides = [1, 1]} : vector<8x512xf32> to vector<8x128xf32>
    %cst_58 = arith.constant 5.000000e-01 : f32
    %135 = vector.broadcast %cst_58 : f32 to vector<8x128xf32>
    %136 = arith.mulf %135, %134 : vector<8x128xf32>
    %137 = math.tanh %136 : vector<8x128xf32>
    %cst_59 = arith.constant 5.000000e-01 : f32
    %138 = vector.broadcast %cst_59 : f32 to vector<8x128xf32>
    %139 = arith.mulf %138, %137 : vector<8x128xf32>
    %cst_60 = arith.constant 5.000000e-01 : f32
    %140 = vector.broadcast %cst_60 : f32 to vector<8x128xf32>
    %141 = arith.addf %139, %140 : vector<8x128xf32>
    %142 = vector.extract_strided_slice %133 {offsets = [0, 128], sizes = [8, 128], strides = [1, 1]} : vector<8x512xf32> to vector<8x128xf32>
    %cst_61 = arith.constant 5.000000e-01 : f32
    %143 = vector.broadcast %cst_61 : f32 to vector<8x128xf32>
    %144 = arith.mulf %143, %142 : vector<8x128xf32>
    %145 = math.tanh %144 : vector<8x128xf32>
    %cst_62 = arith.constant 5.000000e-01 : f32
    %146 = vector.broadcast %cst_62 : f32 to vector<8x128xf32>
    %147 = arith.mulf %146, %145 : vector<8x128xf32>
    %cst_63 = arith.constant 5.000000e-01 : f32
    %148 = vector.broadcast %cst_63 : f32 to vector<8x128xf32>
    %149 = arith.addf %147, %148 : vector<8x128xf32>
    %150 = vector.extract_strided_slice %133 {offsets = [0, 256], sizes = [8, 128], strides = [1, 1]} : vector<8x512xf32> to vector<8x128xf32>
    %151 = math.tanh %150 : vector<8x128xf32>
    %152 = vector.extract_strided_slice %133 {offsets = [0, 384], sizes = [8, 128], strides = [1, 1]} : vector<8x512xf32> to vector<8x128xf32>
    %cst_64 = arith.constant 5.000000e-01 : f32
    %153 = vector.broadcast %cst_64 : f32 to vector<8x128xf32>
    %154 = arith.mulf %153, %152 : vector<8x128xf32>
    %155 = math.tanh %154 : vector<8x128xf32>
    %cst_65 = arith.constant 5.000000e-01 : f32
    %156 = vector.broadcast %cst_65 : f32 to vector<8x128xf32>
    %157 = arith.mulf %156, %155 : vector<8x128xf32>
    %cst_66 = arith.constant 5.000000e-01 : f32
    %158 = vector.broadcast %cst_66 : f32 to vector<8x128xf32>
    %159 = arith.addf %157, %158 : vector<8x128xf32>
    %160 = arith.mulf %149, %85 : vector<8x128xf32>
    %161 = arith.mulf %141, %151 : vector<8x128xf32>
    %162 = arith.addf %160, %161 : vector<8x128xf32>
    %163 = math.tanh %162 : vector<8x128xf32>
    %164 = arith.mulf %159, %163 : vector<8x128xf32>
    %c1 = arith.constant 1 : index
    %c0_67 = arith.constant 0 : index
    %c0_68 = arith.constant 0 : index
    %165 = vector.load %arg7[%c1, %c0_67, %c0_68] : memref<8x8x128xf32, #tpu.memory_space<vmem>>, vector<1x8x128xf32>
    %166 = vector.shape_cast %165 : vector<1x8x128xf32> to vector<8x128xf32>
    %167 = vector.shape_cast %164 : vector<8x128xf32> to vector<1x8x128xf32>
    tpu.vector_store %arg7[%c1, %c0_67, %c0_68], %167 {strides = array<i32>} : memref<8x8x128xf32, #tpu.memory_space<vmem>>, vector<1x8x128xf32>,
    %c16 = arith.constant 16 : index
    %c0_69 = arith.constant 0 : index
    %168 = vector.load %arg9[%c16, %c0_69] : memref<64x512xf32, #tpu.memory_space<vmem>>, vector<8x512xf32>
    %169 = arith.addf %168, %127 : vector<8x512xf32>
    %170 = vector.extract_strided_slice %169 {offsets = [0, 0], sizes = [8, 128], strides = [1, 1]} : vector<8x512xf32> to vector<8x128xf32>
    %cst_70 = arith.constant 5.000000e-01 : f32
    %171 = vector.broadcast %cst_70 : f32 to vector<8x128xf32>
    %172 = arith.mulf %171, %170 : vector<8x128xf32>
    %173 = math.tanh %172 : vector<8x128xf32>
    %cst_71 = arith.constant 5.000000e-01 : f32
    %174 = vector.broadcast %cst_71 : f32 to vector<8x128xf32>
    %175 = arith.mulf %174, %173 : vector<8x128xf32>
    %cst_72 = arith.constant 5.000000e-01 : f32
    %176 = vector.broadcast %cst_72 : f32 to vector<8x128xf32>
    %177 = arith.addf %175, %176 : vector<8x128xf32>
    %178 = vector.extract_strided_slice %169 {offsets = [0, 128], sizes = [8, 128], strides = [1, 1]} : vector<8x512xf32> to vector<8x128xf32>
    %cst_73 = arith.constant 5.000000e-01 : f32
    %179 = vector.broadcast %cst_73 : f32 to vector<8x128xf32>
    %180 = arith.mulf %179, %178 : vector<8x128xf32>
    %181 = math.tanh %180 : vector<8x128xf32>
    %cst_74 = arith.constant 5.000000e-01 : f32
    %182 = vector.broadcast %cst_74 : f32 to vector<8x128xf32>
    %183 = arith.mulf %182, %181 : vector<8x128xf32>
    %cst_75 = arith.constant 5.000000e-01 : f32
    %184 = vector.broadcast %cst_75 : f32 to vector<8x128xf32>
    %185 = arith.addf %183, %184 : vector<8x128xf32>
    %186 = vector.extract_strided_slice %169 {offsets = [0, 256], sizes = [8, 128], strides = [1, 1]} : vector<8x512xf32> to vector<8x128xf32>
    %187 = math.tanh %186 : vector<8x128xf32>
    %188 = vector.extract_strided_slice %169 {offsets = [0, 384], sizes = [8, 128], strides = [1, 1]} : vector<8x512xf32> to vector<8x128xf32>
    %cst_76 = arith.constant 5.000000e-01 : f32
    %189 = vector.broadcast %cst_76 : f32 to vector<8x128xf32>
    %190 = arith.mulf %189, %188 : vector<8x128xf32>
    %191 = math.tanh %190 : vector<8x128xf32>
    %cst_77 = arith.constant 5.000000e-01 : f32
    %192 = vector.broadcast %cst_77 : f32 to vector<8x128xf32>
    %193 = arith.mulf %192, %191 : vector<8x128xf32>
    %cst_78 = arith.constant 5.000000e-01 : f32
    %194 = vector.broadcast %cst_78 : f32 to vector<8x128xf32>
    %195 = arith.addf %193, %194 : vector<8x128xf32>
    %196 = arith.mulf %185, %121 : vector<8x128xf32>
    %197 = arith.mulf %177, %187 : vector<8x128xf32>
    %198 = arith.addf %196, %197 : vector<8x128xf32>
    %199 = math.tanh %198 : vector<8x128xf32>
    %200 = arith.mulf %195, %199 : vector<8x128xf32>
    %201 = arith.truncf %200 : vector<8x128xf32> to vector<8x128xbf16>
    %c0_79 = arith.constant 0 : index
    %c0_80 = arith.constant 0 : index
    %202 = vector.load %arg4[%c0_79, %c0_80] : memref<128x1024xbf16, #tpu.memory_space<vmem>>, vector<128x1024xbf16>
    %cst_81 = arith.constant dense<0.000000e+00> : vector<8x1024xf32>
    %203 = tpu.matmul %201, %202, %cst_81 {dimension_numbers = #tpu.dot_dimension_numbers<[1], [0], [0], [1], [0, 0, 1, 1], [], []>} : vector<8x128xbf16>, vector<128x1024xbf16>, vector<8x1024xf32> -> vector<8x1024xf32>
    %204 = vector.extract_strided_slice %203 {offsets = [0, 0], sizes = [8, 512], strides = [1, 1]} : vector<8x1024xf32> to vector<8x512xf32>
    %205 = vector.extract_strided_slice %203 {offsets = [0, 512], sizes = [8, 512], strides = [1, 1]} : vector<8x1024xf32> to vector<8x512xf32>
    %206 = arith.truncf %164 : vector<8x128xf32> to vector<8x128xbf16>
    %c0_82 = arith.constant 0 : index
    %c0_83 = arith.constant 0 : index
    %207 = vector.load %arg5[%c0_82, %c0_83] : memref<128x512xbf16, #tpu.memory_space<vmem>>, vector<128x512xbf16>
    %cst_84 = arith.constant dense<0.000000e+00> : vector<8x512xf32>
    %208 = tpu.matmul %206, %207, %cst_84 {dimension_numbers = #tpu.dot_dimension_numbers<[1], [0], [0], [1], [0, 0, 1, 1], [], []>} : vector<8x128xbf16>, vector<128x512xbf16>, vector<8x512xf32> -> vector<8x512xf32>
    %209 = arith.addf %205, %208 : vector<8x512xf32>
    %210 = arith.addf %209, %9 : vector<8x512xf32>
    %211 = vector.extract_strided_slice %210 {offsets = [0, 0], sizes = [8, 128], strides = [1, 1]} : vector<8x512xf32> to vector<8x128xf32>
    %cst_85 = arith.constant 5.000000e-01 : f32
    %212 = vector.broadcast %cst_85 : f32 to vector<8x128xf32>
    %213 = arith.mulf %212, %211 : vector<8x128xf32>
    %214 = math.tanh %213 : vector<8x128xf32>
    %cst_86 = arith.constant 5.000000e-01 : f32
    %215 = vector.broadcast %cst_86 : f32 to vector<8x128xf32>
    %216 = arith.mulf %215, %214 : vector<8x128xf32>
    %cst_87 = arith.constant 5.000000e-01 : f32
    %217 = vector.broadcast %cst_87 : f32 to vector<8x128xf32>
    %218 = arith.addf %216, %217 : vector<8x128xf32>
    %219 = vector.extract_strided_slice %210 {offsets = [0, 128], sizes = [8, 128], strides = [1, 1]} : vector<8x512xf32> to vector<8x128xf32>
    %cst_88 = arith.constant 5.000000e-01 : f32
    %220 = vector.broadcast %cst_88 : f32 to vector<8x128xf32>
    %221 = arith.mulf %220, %219 : vector<8x128xf32>
    %222 = math.tanh %221 : vector<8x128xf32>
    %cst_89 = arith.constant 5.000000e-01 : f32
    %223 = vector.broadcast %cst_89 : f32 to vector<8x128xf32>
    %224 = arith.mulf %223, %222 : vector<8x128xf32>
    %cst_90 = arith.constant 5.000000e-01 : f32
    %225 = vector.broadcast %cst_90 : f32 to vector<8x128xf32>
    %226 = arith.addf %224, %225 : vector<8x128xf32>
    %227 = vector.extract_strided_slice %210 {offsets = [0, 256], sizes = [8, 128], strides = [1, 1]} : vector<8x512xf32> to vector<8x128xf32>
    %228 = math.tanh %227 : vector<8x128xf32>
    %229 = vector.extract_strided_slice %210 {offsets = [0, 384], sizes = [8, 128], strides = [1, 1]} : vector<8x512xf32> to vector<8x128xf32>
    %cst_91 = arith.constant 5.000000e-01 : f32
    %230 = vector.broadcast %cst_91 : f32 to vector<8x128xf32>
    %231 = arith.mulf %230, %229 : vector<8x128xf32>
    %232 = math.tanh %231 : vector<8x128xf32>
    %cst_92 = arith.constant 5.000000e-01 : f32
    %233 = vector.broadcast %cst_92 : f32 to vector<8x128xf32>
    %234 = arith.mulf %233, %232 : vector<8x128xf32>
    %cst_93 = arith.constant 5.000000e-01 : f32
    %235 = vector.broadcast %cst_93 : f32 to vector<8x128xf32>
    %236 = arith.addf %234, %235 : vector<8x128xf32>
    %237 = arith.mulf %226, %162 : vector<8x128xf32>
    %238 = arith.mulf %218, %228 : vector<8x128xf32>
    %239 = arith.addf %237, %238 : vector<8x128xf32>
    %240 = math.tanh %239 : vector<8x128xf32>
    %241 = arith.mulf %236, %240 : vector<8x128xf32>
    %c2 = arith.constant 2 : index
    %c0_94 = arith.constant 0 : index
    %c0_95 = arith.constant 0 : index
    %242 = vector.load %arg7[%c2, %c0_94, %c0_95] : memref<8x8x128xf32, #tpu.memory_space<vmem>>, vector<1x8x128xf32>
    %243 = vector.shape_cast %242 : vector<1x8x128xf32> to vector<8x128xf32>
    %244 = vector.shape_cast %241 : vector<8x128xf32> to vector<1x8x128xf32>
    tpu.vector_store %arg7[%c2, %c0_94, %c0_95], %244 {strides = array<i32>} : memref<8x8x128xf32, #tpu.memory_space<vmem>>, vector<1x8x128xf32>,
    %c24 = arith.constant 24 : index
    %c0_96 = arith.constant 0 : index
    %245 = vector.load %arg9[%c24, %c0_96] : memref<64x512xf32, #tpu.memory_space<vmem>>, vector<8x512xf32>
    %246 = arith.addf %245, %204 : vector<8x512xf32>
    %247 = vector.extract_strided_slice %246 {offsets = [0, 0], sizes = [8, 128], strides = [1, 1]} : vector<8x512xf32> to vector<8x128xf32>
    %cst_97 = arith.constant 5.000000e-01 : f32
    %248 = vector.broadcast %cst_97 : f32 to vector<8x128xf32>
    %249 = arith.mulf %248, %247 : vector<8x128xf32>
    %250 = math.tanh %249 : vector<8x128xf32>
    %cst_98 = arith.constant 5.000000e-01 : f32
    %251 = vector.broadcast %cst_98 : f32 to vector<8x128xf32>
    %252 = arith.mulf %251, %250 : vector<8x128xf32>
    %cst_99 = arith.constant 5.000000e-01 : f32
    %253 = vector.broadcast %cst_99 : f32 to vector<8x128xf32>
    %254 = arith.addf %252, %253 : vector<8x128xf32>
    %255 = vector.extract_strided_slice %246 {offsets = [0, 128], sizes = [8, 128], strides = [1, 1]} : vector<8x512xf32> to vector<8x128xf32>
    %cst_100 = arith.constant 5.000000e-01 : f32
    %256 = vector.broadcast %cst_100 : f32 to vector<8x128xf32>
    %257 = arith.mulf %256, %255 : vector<8x128xf32>
    %258 = math.tanh %257 : vector<8x128xf32>
    %cst_101 = arith.constant 5.000000e-01 : f32
    %259 = vector.broadcast %cst_101 : f32 to vector<8x128xf32>
    %260 = arith.mulf %259, %258 : vector<8x128xf32>
    %cst_102 = arith.constant 5.000000e-01 : f32
    %261 = vector.broadcast %cst_102 : f32 to vector<8x128xf32>
    %262 = arith.addf %260, %261 : vector<8x128xf32>
    %263 = vector.extract_strided_slice %246 {offsets = [0, 256], sizes = [8, 128], strides = [1, 1]} : vector<8x512xf32> to vector<8x128xf32>
    %264 = math.tanh %263 : vector<8x128xf32>
    %265 = vector.extract_strided_slice %246 {offsets = [0, 384], sizes = [8, 128], strides = [1, 1]} : vector<8x512xf32> to vector<8x128xf32>
    %cst_103 = arith.constant 5.000000e-01 : f32
    %266 = vector.broadcast %cst_103 : f32 to vector<8x128xf32>
    %267 = arith.mulf %266, %265 : vector<8x128xf32>
    %268 = math.tanh %267 : vector<8x128xf32>
    %cst_104 = arith.constant 5.000000e-01 : f32
    %269 = vector.broadcast %cst_104 : f32 to vector<8x128xf32>
    %270 = arith.mulf %269, %268 : vector<8x128xf32>
    %cst_105 = arith.constant 5.000000e-01 : f32
    %271 = vector.broadcast %cst_105 : f32 to vector<8x128xf32>
    %272 = arith.addf %270, %271 : vector<8x128xf32>
    %273 = arith.mulf %262, %198 : vector<8x128xf32>
    %274 = arith.mulf %254, %264 : vector<8x128xf32>
    %275 = arith.addf %273, %274 : vector<8x128xf32>
    %276 = math.tanh %275 : vector<8x128xf32>
    %277 = arith.mulf %272, %276 : vector<8x128xf32>
    %278 = arith.truncf %277 : vector<8x128xf32> to vector<8x128xbf16>
    %c0_106 = arith.constant 0 : index
    %c0_107 = arith.constant 0 : index
    %279 = vector.load %arg4[%c0_106, %c0_107] : memref<128x1024xbf16, #tpu.memory_space<vmem>>, vector<128x1024xbf16>
    %cst_108 = arith.constant dense<0.000000e+00> : vector<8x1024xf32>
    %280 = tpu.matmul %278, %279, %cst_108 {dimension_numbers = #tpu.dot_dimension_numbers<[1], [0], [0], [1], [0, 0, 1, 1], [], []>} : vector<8x128xbf16>, vector<128x1024xbf16>, vector<8x1024xf32> -> vector<8x1024xf32>
    %281 = vector.extract_strided_slice %280 {offsets = [0, 0], sizes = [8, 512], strides = [1, 1]} : vector<8x1024xf32> to vector<8x512xf32>
    %282 = vector.extract_strided_slice %280 {offsets = [0, 512], sizes = [8, 512], strides = [1, 1]} : vector<8x1024xf32> to vector<8x512xf32>
    %283 = arith.truncf %241 : vector<8x128xf32> to vector<8x128xbf16>
    %c0_109 = arith.constant 0 : index
    %c0_110 = arith.constant 0 : index
    %284 = vector.load %arg5[%c0_109, %c0_110] : memref<128x512xbf16, #tpu.memory_space<vmem>>, vector<128x512xbf16>
    %cst_111 = arith.constant dense<0.000000e+00> : vector<8x512xf32>
    %285 = tpu.matmul %283, %284, %cst_111 {dimension_numbers = #tpu.dot_dimension_numbers<[1], [0], [0], [1], [0, 0, 1, 1], [], []>} : vector<8x128xbf16>, vector<128x512xbf16>, vector<8x512xf32> -> vector<8x512xf32>
    %286 = arith.addf %282, %285 : vector<8x512xf32>
    %287 = arith.addf %286, %9 : vector<8x512xf32>
    %288 = vector.extract_strided_slice %287 {offsets = [0, 0], sizes = [8, 128], strides = [1, 1]} : vector<8x512xf32> to vector<8x128xf32>
    %cst_112 = arith.constant 5.000000e-01 : f32
    %289 = vector.broadcast %cst_112 : f32 to vector<8x128xf32>
    %290 = arith.mulf %289, %288 : vector<8x128xf32>
    %291 = math.tanh %290 : vector<8x128xf32>
    %cst_113 = arith.constant 5.000000e-01 : f32
    %292 = vector.broadcast %cst_113 : f32 to vector<8x128xf32>
    %293 = arith.mulf %292, %291 : vector<8x128xf32>
    %cst_114 = arith.constant 5.000000e-01 : f32
    %294 = vector.broadcast %cst_114 : f32 to vector<8x128xf32>
    %295 = arith.addf %293, %294 : vector<8x128xf32>
    %296 = vector.extract_strided_slice %287 {offsets = [0, 128], sizes = [8, 128], strides = [1, 1]} : vector<8x512xf32> to vector<8x128xf32>
    %cst_115 = arith.constant 5.000000e-01 : f32
    %297 = vector.broadcast %cst_115 : f32 to vector<8x128xf32>
    %298 = arith.mulf %297, %296 : vector<8x128xf32>
    %299 = math.tanh %298 : vector<8x128xf32>
    %cst_116 = arith.constant 5.000000e-01 : f32
    %300 = vector.broadcast %cst_116 : f32 to vector<8x128xf32>
    %301 = arith.mulf %300, %299 : vector<8x128xf32>
    %cst_117 = arith.constant 5.000000e-01 : f32
    %302 = vector.broadcast %cst_117 : f32 to vector<8x128xf32>
    %303 = arith.addf %301, %302 : vector<8x128xf32>
    %304 = vector.extract_strided_slice %287 {offsets = [0, 256], sizes = [8, 128], strides = [1, 1]} : vector<8x512xf32> to vector<8x128xf32>
    %305 = math.tanh %304 : vector<8x128xf32>
    %306 = vector.extract_strided_slice %287 {offsets = [0, 384], sizes = [8, 128], strides = [1, 1]} : vector<8x512xf32> to vector<8x128xf32>
    %cst_118 = arith.constant 5.000000e-01 : f32
    %307 = vector.broadcast %cst_118 : f32 to vector<8x128xf32>
    %308 = arith.mulf %307, %306 : vector<8x128xf32>
    %309 = math.tanh %308 : vector<8x128xf32>
    %cst_119 = arith.constant 5.000000e-01 : f32
    %310 = vector.broadcast %cst_119 : f32 to vector<8x128xf32>
    %311 = arith.mulf %310, %309 : vector<8x128xf32>
    %cst_120 = arith.constant 5.000000e-01 : f32
    %312 = vector.broadcast %cst_120 : f32 to vector<8x128xf32>
    %313 = arith.addf %311, %312 : vector<8x128xf32>
    %314 = arith.mulf %303, %239 : vector<8x128xf32>
    %315 = arith.mulf %295, %305 : vector<8x128xf32>
    %316 = arith.addf %314, %315 : vector<8x128xf32>
    %317 = math.tanh %316 : vector<8x128xf32>
    %318 = arith.mulf %313, %317 : vector<8x128xf32>
    %c3 = arith.constant 3 : index
    %c0_121 = arith.constant 0 : index
    %c0_122 = arith.constant 0 : index
    %319 = vector.load %arg7[%c3, %c0_121, %c0_122] : memref<8x8x128xf32, #tpu.memory_space<vmem>>, vector<1x8x128xf32>
    %320 = vector.shape_cast %319 : vector<1x8x128xf32> to vector<8x128xf32>
    %321 = vector.shape_cast %318 : vector<8x128xf32> to vector<1x8x128xf32>
    tpu.vector_store %arg7[%c3, %c0_121, %c0_122], %321 {strides = array<i32>} : memref<8x8x128xf32, #tpu.memory_space<vmem>>, vector<1x8x128xf32>,
    %c32 = arith.constant 32 : index
    %c0_123 = arith.constant 0 : index
    %322 = vector.load %arg9[%c32, %c0_123] : memref<64x512xf32, #tpu.memory_space<vmem>>, vector<8x512xf32>
    %323 = arith.addf %322, %281 : vector<8x512xf32>
    %324 = vector.extract_strided_slice %323 {offsets = [0, 0], sizes = [8, 128], strides = [1, 1]} : vector<8x512xf32> to vector<8x128xf32>
    %cst_124 = arith.constant 5.000000e-01 : f32
    %325 = vector.broadcast %cst_124 : f32 to vector<8x128xf32>
    %326 = arith.mulf %325, %324 : vector<8x128xf32>
    %327 = math.tanh %326 : vector<8x128xf32>
    %cst_125 = arith.constant 5.000000e-01 : f32
    %328 = vector.broadcast %cst_125 : f32 to vector<8x128xf32>
    %329 = arith.mulf %328, %327 : vector<8x128xf32>
    %cst_126 = arith.constant 5.000000e-01 : f32
    %330 = vector.broadcast %cst_126 : f32 to vector<8x128xf32>
    %331 = arith.addf %329, %330 : vector<8x128xf32>
    %332 = vector.extract_strided_slice %323 {offsets = [0, 128], sizes = [8, 128], strides = [1, 1]} : vector<8x512xf32> to vector<8x128xf32>
    %cst_127 = arith.constant 5.000000e-01 : f32
    %333 = vector.broadcast %cst_127 : f32 to vector<8x128xf32>
    %334 = arith.mulf %333, %332 : vector<8x128xf32>
    %335 = math.tanh %334 : vector<8x128xf32>
    %cst_128 = arith.constant 5.000000e-01 : f32
    %336 = vector.broadcast %cst_128 : f32 to vector<8x128xf32>
    %337 = arith.mulf %336, %335 : vector<8x128xf32>
    %cst_129 = arith.constant 5.000000e-01 : f32
    %338 = vector.broadcast %cst_129 : f32 to vector<8x128xf32>
    %339 = arith.addf %337, %338 : vector<8x128xf32>
    %340 = vector.extract_strided_slice %323 {offsets = [0, 256], sizes = [8, 128], strides = [1, 1]} : vector<8x512xf32> to vector<8x128xf32>
    %341 = math.tanh %340 : vector<8x128xf32>
    %342 = vector.extract_strided_slice %323 {offsets = [0, 384], sizes = [8, 128], strides = [1, 1]} : vector<8x512xf32> to vector<8x128xf32>
    %cst_130 = arith.constant 5.000000e-01 : f32
    %343 = vector.broadcast %cst_130 : f32 to vector<8x128xf32>
    %344 = arith.mulf %343, %342 : vector<8x128xf32>
    %345 = math.tanh %344 : vector<8x128xf32>
    %cst_131 = arith.constant 5.000000e-01 : f32
    %346 = vector.broadcast %cst_131 : f32 to vector<8x128xf32>
    %347 = arith.mulf %346, %345 : vector<8x128xf32>
    %cst_132 = arith.constant 5.000000e-01 : f32
    %348 = vector.broadcast %cst_132 : f32 to vector<8x128xf32>
    %349 = arith.addf %347, %348 : vector<8x128xf32>
    %350 = arith.mulf %339, %275 : vector<8x128xf32>
    %351 = arith.mulf %331, %341 : vector<8x128xf32>
    %352 = arith.addf %350, %351 : vector<8x128xf32>
    %353 = math.tanh %352 : vector<8x128xf32>
    %354 = arith.mulf %349, %353 : vector<8x128xf32>
    %355 = arith.truncf %354 : vector<8x128xf32> to vector<8x128xbf16>
    %c0_133 = arith.constant 0 : index
    %c0_134 = arith.constant 0 : index
    %356 = vector.load %arg4[%c0_133, %c0_134] : memref<128x1024xbf16, #tpu.memory_space<vmem>>, vector<128x1024xbf16>
    %cst_135 = arith.constant dense<0.000000e+00> : vector<8x1024xf32>
    %357 = tpu.matmul %355, %356, %cst_135 {dimension_numbers = #tpu.dot_dimension_numbers<[1], [0], [0], [1], [0, 0, 1, 1], [], []>} : vector<8x128xbf16>, vector<128x1024xbf16>, vector<8x1024xf32> -> vector<8x1024xf32>
    %358 = vector.extract_strided_slice %357 {offsets = [0, 0], sizes = [8, 512], strides = [1, 1]} : vector<8x1024xf32> to vector<8x512xf32>
    %359 = vector.extract_strided_slice %357 {offsets = [0, 512], sizes = [8, 512], strides = [1, 1]} : vector<8x1024xf32> to vector<8x512xf32>
    %360 = arith.truncf %318 : vector<8x128xf32> to vector<8x128xbf16>
    %c0_136 = arith.constant 0 : index
    %c0_137 = arith.constant 0 : index
    %361 = vector.load %arg5[%c0_136, %c0_137] : memref<128x512xbf16, #tpu.memory_space<vmem>>, vector<128x512xbf16>
    %cst_138 = arith.constant dense<0.000000e+00> : vector<8x512xf32>
    %362 = tpu.matmul %360, %361, %cst_138 {dimension_numbers = #tpu.dot_dimension_numbers<[1], [0], [0], [1], [0, 0, 1, 1], [], []>} : vector<8x128xbf16>, vector<128x512xbf16>, vector<8x512xf32> -> vector<8x512xf32>
    %363 = arith.addf %359, %362 : vector<8x512xf32>
    %364 = arith.addf %363, %9 : vector<8x512xf32>
    %365 = vector.extract_strided_slice %364 {offsets = [0, 0], sizes = [8, 128], strides = [1, 1]} : vector<8x512xf32> to vector<8x128xf32>
    %cst_139 = arith.constant 5.000000e-01 : f32
    %366 = vector.broadcast %cst_139 : f32 to vector<8x128xf32>
    %367 = arith.mulf %366, %365 : vector<8x128xf32>
    %368 = math.tanh %367 : vector<8x128xf32>
    %cst_140 = arith.constant 5.000000e-01 : f32
    %369 = vector.broadcast %cst_140 : f32 to vector<8x128xf32>
    %370 = arith.mulf %369, %368 : vector<8x128xf32>
    %cst_141 = arith.constant 5.000000e-01 : f32
    %371 = vector.broadcast %cst_141 : f32 to vector<8x128xf32>
    %372 = arith.addf %370, %371 : vector<8x128xf32>
    %373 = vector.extract_strided_slice %364 {offsets = [0, 128], sizes = [8, 128], strides = [1, 1]} : vector<8x512xf32> to vector<8x128xf32>
    %cst_142 = arith.constant 5.000000e-01 : f32
    %374 = vector.broadcast %cst_142 : f32 to vector<8x128xf32>
    %375 = arith.mulf %374, %373 : vector<8x128xf32>
    %376 = math.tanh %375 : vector<8x128xf32>
    %cst_143 = arith.constant 5.000000e-01 : f32
    %377 = vector.broadcast %cst_143 : f32 to vector<8x128xf32>
    %378 = arith.mulf %377, %376 : vector<8x128xf32>
    %cst_144 = arith.constant 5.000000e-01 : f32
    %379 = vector.broadcast %cst_144 : f32 to vector<8x128xf32>
    %380 = arith.addf %378, %379 : vector<8x128xf32>
    %381 = vector.extract_strided_slice %364 {offsets = [0, 256], sizes = [8, 128], strides = [1, 1]} : vector<8x512xf32> to vector<8x128xf32>
    %382 = math.tanh %381 : vector<8x128xf32>
    %383 = vector.extract_strided_slice %364 {offsets = [0, 384], sizes = [8, 128], strides = [1, 1]} : vector<8x512xf32> to vector<8x128xf32>
    %cst_145 = arith.constant 5.000000e-01 : f32
    %384 = vector.broadcast %cst_145 : f32 to vector<8x128xf32>
    %385 = arith.mulf %384, %383 : vector<8x128xf32>
    %386 = math.tanh %385 : vector<8x128xf32>
    %cst_146 = arith.constant 5.000000e-01 : f32
    %387 = vector.broadcast %cst_146 : f32 to vector<8x128xf32>
    %388 = arith.mulf %387, %386 : vector<8x128xf32>
    %cst_147 = arith.constant 5.000000e-01 : f32
    %389 = vector.broadcast %cst_147 : f32 to vector<8x128xf32>
    %390 = arith.addf %388, %389 : vector<8x128xf32>
    %391 = arith.mulf %380, %316 : vector<8x128xf32>
    %392 = arith.mulf %372, %382 : vector<8x128xf32>
    %393 = arith.addf %391, %392 : vector<8x128xf32>
    %394 = math.tanh %393 : vector<8x128xf32>
    %395 = arith.mulf %390, %394 : vector<8x128xf32>
    %c4 = arith.constant 4 : index
    %c0_148 = arith.constant 0 : index
    %c0_149 = arith.constant 0 : index
    %396 = vector.load %arg7[%c4, %c0_148, %c0_149] : memref<8x8x128xf32, #tpu.memory_space<vmem>>, vector<1x8x128xf32>
    %397 = vector.shape_cast %396 : vector<1x8x128xf32> to vector<8x128xf32>
    %398 = vector.shape_cast %395 : vector<8x128xf32> to vector<1x8x128xf32>
    tpu.vector_store %arg7[%c4, %c0_148, %c0_149], %398 {strides = array<i32>} : memref<8x8x128xf32, #tpu.memory_space<vmem>>, vector<1x8x128xf32>,
    %c40 = arith.constant 40 : index
    %c0_150 = arith.constant 0 : index
    %399 = vector.load %arg9[%c40, %c0_150] : memref<64x512xf32, #tpu.memory_space<vmem>>, vector<8x512xf32>
    %400 = arith.addf %399, %358 : vector<8x512xf32>
    %401 = vector.extract_strided_slice %400 {offsets = [0, 0], sizes = [8, 128], strides = [1, 1]} : vector<8x512xf32> to vector<8x128xf32>
    %cst_151 = arith.constant 5.000000e-01 : f32
    %402 = vector.broadcast %cst_151 : f32 to vector<8x128xf32>
    %403 = arith.mulf %402, %401 : vector<8x128xf32>
    %404 = math.tanh %403 : vector<8x128xf32>
    %cst_152 = arith.constant 5.000000e-01 : f32
    %405 = vector.broadcast %cst_152 : f32 to vector<8x128xf32>
    %406 = arith.mulf %405, %404 : vector<8x128xf32>
    %cst_153 = arith.constant 5.000000e-01 : f32
    %407 = vector.broadcast %cst_153 : f32 to vector<8x128xf32>
    %408 = arith.addf %406, %407 : vector<8x128xf32>
    %409 = vector.extract_strided_slice %400 {offsets = [0, 128], sizes = [8, 128], strides = [1, 1]} : vector<8x512xf32> to vector<8x128xf32>
    %cst_154 = arith.constant 5.000000e-01 : f32
    %410 = vector.broadcast %cst_154 : f32 to vector<8x128xf32>
    %411 = arith.mulf %410, %409 : vector<8x128xf32>
    %412 = math.tanh %411 : vector<8x128xf32>
    %cst_155 = arith.constant 5.000000e-01 : f32
    %413 = vector.broadcast %cst_155 : f32 to vector<8x128xf32>
    %414 = arith.mulf %413, %412 : vector<8x128xf32>
    %cst_156 = arith.constant 5.000000e-01 : f32
    %415 = vector.broadcast %cst_156 : f32 to vector<8x128xf32>
    %416 = arith.addf %414, %415 : vector<8x128xf32>
    %417 = vector.extract_strided_slice %400 {offsets = [0, 256], sizes = [8, 128], strides = [1, 1]} : vector<8x512xf32> to vector<8x128xf32>
    %418 = math.tanh %417 : vector<8x128xf32>
    %419 = vector.extract_strided_slice %400 {offsets = [0, 384], sizes = [8, 128], strides = [1, 1]} : vector<8x512xf32> to vector<8x128xf32>
    %cst_157 = arith.constant 5.000000e-01 : f32
    %420 = vector.broadcast %cst_157 : f32 to vector<8x128xf32>
    %421 = arith.mulf %420, %419 : vector<8x128xf32>
    %422 = math.tanh %421 : vector<8x128xf32>
    %cst_158 = arith.constant 5.000000e-01 : f32
    %423 = vector.broadcast %cst_158 : f32 to vector<8x128xf32>
    %424 = arith.mulf %423, %422 : vector<8x128xf32>
    %cst_159 = arith.constant 5.000000e-01 : f32
    %425 = vector.broadcast %cst_159 : f32 to vector<8x128xf32>
    %426 = arith.addf %424, %425 : vector<8x128xf32>
    %427 = arith.mulf %416, %352 : vector<8x128xf32>
    %428 = arith.mulf %408, %418 : vector<8x128xf32>
    %429 = arith.addf %427, %428 : vector<8x128xf32>
    %430 = math.tanh %429 : vector<8x128xf32>
    %431 = arith.mulf %426, %430 : vector<8x128xf32>
    %432 = arith.truncf %431 : vector<8x128xf32> to vector<8x128xbf16>
    %c0_160 = arith.constant 0 : index
    %c0_161 = arith.constant 0 : index
    %433 = vector.load %arg4[%c0_160, %c0_161] : memref<128x1024xbf16, #tpu.memory_space<vmem>>, vector<128x1024xbf16>
    %cst_162 = arith.constant dense<0.000000e+00> : vector<8x1024xf32>
    %434 = tpu.matmul %432, %433, %cst_162 {dimension_numbers = #tpu.dot_dimension_numbers<[1], [0], [0], [1], [0, 0, 1, 1], [], []>} : vector<8x128xbf16>, vector<128x1024xbf16>, vector<8x1024xf32> -> vector<8x1024xf32>
    %435 = vector.extract_strided_slice %434 {offsets = [0, 0], sizes = [8, 512], strides = [1, 1]} : vector<8x1024xf32> to vector<8x512xf32>
    %436 = vector.extract_strided_slice %434 {offsets = [0, 512], sizes = [8, 512], strides = [1, 1]} : vector<8x1024xf32> to vector<8x512xf32>
    %437 = arith.truncf %395 : vector<8x128xf32> to vector<8x128xbf16>
    %c0_163 = arith.constant 0 : index
    %c0_164 = arith.constant 0 : index
    %438 = vector.load %arg5[%c0_163, %c0_164] : memref<128x512xbf16, #tpu.memory_space<vmem>>, vector<128x512xbf16>
    %cst_165 = arith.constant dense<0.000000e+00> : vector<8x512xf32>
    %439 = tpu.matmul %437, %438, %cst_165 {dimension_numbers = #tpu.dot_dimension_numbers<[1], [0], [0], [1], [0, 0, 1, 1], [], []>} : vector<8x128xbf16>, vector<128x512xbf16>, vector<8x512xf32> -> vector<8x512xf32>
    %440 = arith.addf %436, %439 : vector<8x512xf32>
    %441 = arith.addf %440, %9 : vector<8x512xf32>
    %442 = vector.extract_strided_slice %441 {offsets = [0, 0], sizes = [8, 128], strides = [1, 1]} : vector<8x512xf32> to vector<8x128xf32>
    %cst_166 = arith.constant 5.000000e-01 : f32
    %443 = vector.broadcast %cst_166 : f32 to vector<8x128xf32>
    %444 = arith.mulf %443, %442 : vector<8x128xf32>
    %445 = math.tanh %444 : vector<8x128xf32>
    %cst_167 = arith.constant 5.000000e-01 : f32
    %446 = vector.broadcast %cst_167 : f32 to vector<8x128xf32>
    %447 = arith.mulf %446, %445 : vector<8x128xf32>
    %cst_168 = arith.constant 5.000000e-01 : f32
    %448 = vector.broadcast %cst_168 : f32 to vector<8x128xf32>
    %449 = arith.addf %447, %448 : vector<8x128xf32>
    %450 = vector.extract_strided_slice %441 {offsets = [0, 128], sizes = [8, 128], strides = [1, 1]} : vector<8x512xf32> to vector<8x128xf32>
    %cst_169 = arith.constant 5.000000e-01 : f32
    %451 = vector.broadcast %cst_169 : f32 to vector<8x128xf32>
    %452 = arith.mulf %451, %450 : vector<8x128xf32>
    %453 = math.tanh %452 : vector<8x128xf32>
    %cst_170 = arith.constant 5.000000e-01 : f32
    %454 = vector.broadcast %cst_170 : f32 to vector<8x128xf32>
    %455 = arith.mulf %454, %453 : vector<8x128xf32>
    %cst_171 = arith.constant 5.000000e-01 : f32
    %456 = vector.broadcast %cst_171 : f32 to vector<8x128xf32>
    %457 = arith.addf %455, %456 : vector<8x128xf32>
    %458 = vector.extract_strided_slice %441 {offsets = [0, 256], sizes = [8, 128], strides = [1, 1]} : vector<8x512xf32> to vector<8x128xf32>
    %459 = math.tanh %458 : vector<8x128xf32>
    %460 = vector.extract_strided_slice %441 {offsets = [0, 384], sizes = [8, 128], strides = [1, 1]} : vector<8x512xf32> to vector<8x128xf32>
    %cst_172 = arith.constant 5.000000e-01 : f32
    %461 = vector.broadcast %cst_172 : f32 to vector<8x128xf32>
    %462 = arith.mulf %461, %460 : vector<8x128xf32>
    %463 = math.tanh %462 : vector<8x128xf32>
    %cst_173 = arith.constant 5.000000e-01 : f32
    %464 = vector.broadcast %cst_173 : f32 to vector<8x128xf32>
    %465 = arith.mulf %464, %463 : vector<8x128xf32>
    %cst_174 = arith.constant 5.000000e-01 : f32
    %466 = vector.broadcast %cst_174 : f32 to vector<8x128xf32>
    %467 = arith.addf %465, %466 : vector<8x128xf32>
    %468 = arith.mulf %457, %393 : vector<8x128xf32>
    %469 = arith.mulf %449, %459 : vector<8x128xf32>
    %470 = arith.addf %468, %469 : vector<8x128xf32>
    %471 = math.tanh %470 : vector<8x128xf32>
    %472 = arith.mulf %467, %471 : vector<8x128xf32>
    %c5 = arith.constant 5 : index
    %c0_175 = arith.constant 0 : index
    %c0_176 = arith.constant 0 : index
    %473 = vector.load %arg7[%c5, %c0_175, %c0_176] : memref<8x8x128xf32, #tpu.memory_space<vmem>>, vector<1x8x128xf32>
    %474 = vector.shape_cast %473 : vector<1x8x128xf32> to vector<8x128xf32>
    %475 = vector.shape_cast %472 : vector<8x128xf32> to vector<1x8x128xf32>
    tpu.vector_store %arg7[%c5, %c0_175, %c0_176], %475 {strides = array<i32>} : memref<8x8x128xf32, #tpu.memory_space<vmem>>, vector<1x8x128xf32>,
    %c48 = arith.constant 48 : index
    %c0_177 = arith.constant 0 : index
    %476 = vector.load %arg9[%c48, %c0_177] : memref<64x512xf32, #tpu.memory_space<vmem>>, vector<8x512xf32>
    %477 = arith.addf %476, %435 : vector<8x512xf32>
    %478 = vector.extract_strided_slice %477 {offsets = [0, 0], sizes = [8, 128], strides = [1, 1]} : vector<8x512xf32> to vector<8x128xf32>
    %cst_178 = arith.constant 5.000000e-01 : f32
    %479 = vector.broadcast %cst_178 : f32 to vector<8x128xf32>
    %480 = arith.mulf %479, %478 : vector<8x128xf32>
    %481 = math.tanh %480 : vector<8x128xf32>
    %cst_179 = arith.constant 5.000000e-01 : f32
    %482 = vector.broadcast %cst_179 : f32 to vector<8x128xf32>
    %483 = arith.mulf %482, %481 : vector<8x128xf32>
    %cst_180 = arith.constant 5.000000e-01 : f32
    %484 = vector.broadcast %cst_180 : f32 to vector<8x128xf32>
    %485 = arith.addf %483, %484 : vector<8x128xf32>
    %486 = vector.extract_strided_slice %477 {offsets = [0, 128], sizes = [8, 128], strides = [1, 1]} : vector<8x512xf32> to vector<8x128xf32>
    %cst_181 = arith.constant 5.000000e-01 : f32
    %487 = vector.broadcast %cst_181 : f32 to vector<8x128xf32>
    %488 = arith.mulf %487, %486 : vector<8x128xf32>
    %489 = math.tanh %488 : vector<8x128xf32>
    %cst_182 = arith.constant 5.000000e-01 : f32
    %490 = vector.broadcast %cst_182 : f32 to vector<8x128xf32>
    %491 = arith.mulf %490, %489 : vector<8x128xf32>
    %cst_183 = arith.constant 5.000000e-01 : f32
    %492 = vector.broadcast %cst_183 : f32 to vector<8x128xf32>
    %493 = arith.addf %491, %492 : vector<8x128xf32>
    %494 = vector.extract_strided_slice %477 {offsets = [0, 256], sizes = [8, 128], strides = [1, 1]} : vector<8x512xf32> to vector<8x128xf32>
    %495 = math.tanh %494 : vector<8x128xf32>
    %496 = vector.extract_strided_slice %477 {offsets = [0, 384], sizes = [8, 128], strides = [1, 1]} : vector<8x512xf32> to vector<8x128xf32>
    %cst_184 = arith.constant 5.000000e-01 : f32
    %497 = vector.broadcast %cst_184 : f32 to vector<8x128xf32>
    %498 = arith.mulf %497, %496 : vector<8x128xf32>
    %499 = math.tanh %498 : vector<8x128xf32>
    %cst_185 = arith.constant 5.000000e-01 : f32
    %500 = vector.broadcast %cst_185 : f32 to vector<8x128xf32>
    %501 = arith.mulf %500, %499 : vector<8x128xf32>
    %cst_186 = arith.constant 5.000000e-01 : f32
    %502 = vector.broadcast %cst_186 : f32 to vector<8x128xf32>
    %503 = arith.addf %501, %502 : vector<8x128xf32>
    %504 = arith.mulf %493, %429 : vector<8x128xf32>
    %505 = arith.mulf %485, %495 : vector<8x128xf32>
    %506 = arith.addf %504, %505 : vector<8x128xf32>
    %507 = math.tanh %506 : vector<8x128xf32>
    %508 = arith.mulf %503, %507 : vector<8x128xf32>
    %509 = arith.truncf %508 : vector<8x128xf32> to vector<8x128xbf16>
    %c0_187 = arith.constant 0 : index
    %c0_188 = arith.constant 0 : index
    %510 = vector.load %arg4[%c0_187, %c0_188] : memref<128x1024xbf16, #tpu.memory_space<vmem>>, vector<128x1024xbf16>
    %cst_189 = arith.constant dense<0.000000e+00> : vector<8x1024xf32>
    %511 = tpu.matmul %509, %510, %cst_189 {dimension_numbers = #tpu.dot_dimension_numbers<[1], [0], [0], [1], [0, 0, 1, 1], [], []>} : vector<8x128xbf16>, vector<128x1024xbf16>, vector<8x1024xf32> -> vector<8x1024xf32>
    %512 = vector.extract_strided_slice %511 {offsets = [0, 0], sizes = [8, 512], strides = [1, 1]} : vector<8x1024xf32> to vector<8x512xf32>
    %513 = vector.extract_strided_slice %511 {offsets = [0, 512], sizes = [8, 512], strides = [1, 1]} : vector<8x1024xf32> to vector<8x512xf32>
    %514 = arith.truncf %472 : vector<8x128xf32> to vector<8x128xbf16>
    %c0_190 = arith.constant 0 : index
    %c0_191 = arith.constant 0 : index
    %515 = vector.load %arg5[%c0_190, %c0_191] : memref<128x512xbf16, #tpu.memory_space<vmem>>, vector<128x512xbf16>
    %cst_192 = arith.constant dense<0.000000e+00> : vector<8x512xf32>
    %516 = tpu.matmul %514, %515, %cst_192 {dimension_numbers = #tpu.dot_dimension_numbers<[1], [0], [0], [1], [0, 0, 1, 1], [], []>} : vector<8x128xbf16>, vector<128x512xbf16>, vector<8x512xf32> -> vector<8x512xf32>
    %517 = arith.addf %513, %516 : vector<8x512xf32>
    %518 = arith.addf %517, %9 : vector<8x512xf32>
    %519 = vector.extract_strided_slice %518 {offsets = [0, 0], sizes = [8, 128], strides = [1, 1]} : vector<8x512xf32> to vector<8x128xf32>
    %cst_193 = arith.constant 5.000000e-01 : f32
    %520 = vector.broadcast %cst_193 : f32 to vector<8x128xf32>
    %521 = arith.mulf %520, %519 : vector<8x128xf32>
    %522 = math.tanh %521 : vector<8x128xf32>
    %cst_194 = arith.constant 5.000000e-01 : f32
    %523 = vector.broadcast %cst_194 : f32 to vector<8x128xf32>
    %524 = arith.mulf %523, %522 : vector<8x128xf32>
    %cst_195 = arith.constant 5.000000e-01 : f32
    %525 = vector.broadcast %cst_195 : f32 to vector<8x128xf32>
    %526 = arith.addf %524, %525 : vector<8x128xf32>
    %527 = vector.extract_strided_slice %518 {offsets = [0, 128], sizes = [8, 128], strides = [1, 1]} : vector<8x512xf32> to vector<8x128xf32>
    %cst_196 = arith.constant 5.000000e-01 : f32
    %528 = vector.broadcast %cst_196 : f32 to vector<8x128xf32>
    %529 = arith.mulf %528, %527 : vector<8x128xf32>
    %530 = math.tanh %529 : vector<8x128xf32>
    %cst_197 = arith.constant 5.000000e-01 : f32
    %531 = vector.broadcast %cst_197 : f32 to vector<8x128xf32>
    %532 = arith.mulf %531, %530 : vector<8x128xf32>
    %cst_198 = arith.constant 5.000000e-01 : f32
    %533 = vector.broadcast %cst_198 : f32 to vector<8x128xf32>
    %534 = arith.addf %532, %533 : vector<8x128xf32>
    %535 = vector.extract_strided_slice %518 {offsets = [0, 256], sizes = [8, 128], strides = [1, 1]} : vector<8x512xf32> to vector<8x128xf32>
    %536 = math.tanh %535 : vector<8x128xf32>
    %537 = vector.extract_strided_slice %518 {offsets = [0, 384], sizes = [8, 128], strides = [1, 1]} : vector<8x512xf32> to vector<8x128xf32>
    %cst_199 = arith.constant 5.000000e-01 : f32
    %538 = vector.broadcast %cst_199 : f32 to vector<8x128xf32>
    %539 = arith.mulf %538, %537 : vector<8x128xf32>
    %540 = math.tanh %539 : vector<8x128xf32>
    %cst_200 = arith.constant 5.000000e-01 : f32
    %541 = vector.broadcast %cst_200 : f32 to vector<8x128xf32>
    %542 = arith.mulf %541, %540 : vector<8x128xf32>
    %cst_201 = arith.constant 5.000000e-01 : f32
    %543 = vector.broadcast %cst_201 : f32 to vector<8x128xf32>
    %544 = arith.addf %542, %543 : vector<8x128xf32>
    %545 = arith.mulf %534, %470 : vector<8x128xf32>
    %546 = arith.mulf %526, %536 : vector<8x128xf32>
    %547 = arith.addf %545, %546 : vector<8x128xf32>
    %548 = math.tanh %547 : vector<8x128xf32>
    %549 = arith.mulf %544, %548 : vector<8x128xf32>
    %c6 = arith.constant 6 : index
    %c0_202 = arith.constant 0 : index
    %c0_203 = arith.constant 0 : index
    %550 = vector.load %arg7[%c6, %c0_202, %c0_203] : memref<8x8x128xf32, #tpu.memory_space<vmem>>, vector<1x8x128xf32>
    %551 = vector.shape_cast %550 : vector<1x8x128xf32> to vector<8x128xf32>
    %552 = vector.shape_cast %549 : vector<8x128xf32> to vector<1x8x128xf32>
    tpu.vector_store %arg7[%c6, %c0_202, %c0_203], %552 {strides = array<i32>} : memref<8x8x128xf32, #tpu.memory_space<vmem>>, vector<1x8x128xf32>,
    %c56 = arith.constant 56 : index
    %c0_204 = arith.constant 0 : index
    %553 = vector.load %arg9[%c56, %c0_204] : memref<64x512xf32, #tpu.memory_space<vmem>>, vector<8x512xf32>
    %554 = arith.addf %553, %512 : vector<8x512xf32>
    %555 = vector.extract_strided_slice %554 {offsets = [0, 0], sizes = [8, 128], strides = [1, 1]} : vector<8x512xf32> to vector<8x128xf32>
    %cst_205 = arith.constant 5.000000e-01 : f32
    %556 = vector.broadcast %cst_205 : f32 to vector<8x128xf32>
    %557 = arith.mulf %556, %555 : vector<8x128xf32>
    %558 = math.tanh %557 : vector<8x128xf32>
    %cst_206 = arith.constant 5.000000e-01 : f32
    %559 = vector.broadcast %cst_206 : f32 to vector<8x128xf32>
    %560 = arith.mulf %559, %558 : vector<8x128xf32>
    %cst_207 = arith.constant 5.000000e-01 : f32
    %561 = vector.broadcast %cst_207 : f32 to vector<8x128xf32>
    %562 = arith.addf %560, %561 : vector<8x128xf32>
    %563 = vector.extract_strided_slice %554 {offsets = [0, 128], sizes = [8, 128], strides = [1, 1]} : vector<8x512xf32> to vector<8x128xf32>
    %cst_208 = arith.constant 5.000000e-01 : f32
    %564 = vector.broadcast %cst_208 : f32 to vector<8x128xf32>
    %565 = arith.mulf %564, %563 : vector<8x128xf32>
    %566 = math.tanh %565 : vector<8x128xf32>
    %cst_209 = arith.constant 5.000000e-01 : f32
    %567 = vector.broadcast %cst_209 : f32 to vector<8x128xf32>
    %568 = arith.mulf %567, %566 : vector<8x128xf32>
    %cst_210 = arith.constant 5.000000e-01 : f32
    %569 = vector.broadcast %cst_210 : f32 to vector<8x128xf32>
    %570 = arith.addf %568, %569 : vector<8x128xf32>
    %571 = vector.extract_strided_slice %554 {offsets = [0, 256], sizes = [8, 128], strides = [1, 1]} : vector<8x512xf32> to vector<8x128xf32>
    %572 = math.tanh %571 : vector<8x128xf32>
    %573 = vector.extract_strided_slice %554 {offsets = [0, 384], sizes = [8, 128], strides = [1, 1]} : vector<8x512xf32> to vector<8x128xf32>
    %cst_211 = arith.constant 5.000000e-01 : f32
    %574 = vector.broadcast %cst_211 : f32 to vector<8x128xf32>
    %575 = arith.mulf %574, %573 : vector<8x128xf32>
    %576 = math.tanh %575 : vector<8x128xf32>
    %cst_212 = arith.constant 5.000000e-01 : f32
    %577 = vector.broadcast %cst_212 : f32 to vector<8x128xf32>
    %578 = arith.mulf %577, %576 : vector<8x128xf32>
    %cst_213 = arith.constant 5.000000e-01 : f32
    %579 = vector.broadcast %cst_213 : f32 to vector<8x128xf32>
    %580 = arith.addf %578, %579 : vector<8x128xf32>
    %581 = arith.mulf %570, %506 : vector<8x128xf32>
    %582 = arith.mulf %562, %572 : vector<8x128xf32>
    %583 = arith.addf %581, %582 : vector<8x128xf32>
    %584 = math.tanh %583 : vector<8x128xf32>
    %585 = arith.mulf %580, %584 : vector<8x128xf32>
    %586 = arith.truncf %585 : vector<8x128xf32> to vector<8x128xbf16>
    %c0_214 = arith.constant 0 : index
    %c0_215 = arith.constant 0 : index
    %587 = vector.load %arg4[%c0_214, %c0_215] : memref<128x1024xbf16, #tpu.memory_space<vmem>>, vector<128x1024xbf16>
    %cst_216 = arith.constant dense<0.000000e+00> : vector<8x1024xf32>
    %588 = tpu.matmul %586, %587, %cst_216 {dimension_numbers = #tpu.dot_dimension_numbers<[1], [0], [0], [1], [0, 0, 1, 1], [], []>} : vector<8x128xbf16>, vector<128x1024xbf16>, vector<8x1024xf32> -> vector<8x1024xf32>
    %589 = vector.extract_strided_slice %588 {offsets = [0, 512], sizes = [8, 512], strides = [1, 1]} : vector<8x1024xf32> to vector<8x512xf32>
    %590 = arith.truncf %549 : vector<8x128xf32> to vector<8x128xbf16>
    %c0_217 = arith.constant 0 : index
    %c0_218 = arith.constant 0 : index
    %591 = vector.load %arg5[%c0_217, %c0_218] : memref<128x512xbf16, #tpu.memory_space<vmem>>, vector<128x512xbf16>
    %cst_219 = arith.constant dense<0.000000e+00> : vector<8x512xf32>
    %592 = tpu.matmul %590, %591, %cst_219 {dimension_numbers = #tpu.dot_dimension_numbers<[1], [0], [0], [1], [0, 0, 1, 1], [], []>} : vector<8x128xbf16>, vector<128x512xbf16>, vector<8x512xf32> -> vector<8x512xf32>
    %593 = arith.addf %589, %592 : vector<8x512xf32>
    %594 = arith.addf %593, %9 : vector<8x512xf32>
    %595 = vector.extract_strided_slice %594 {offsets = [0, 0], sizes = [8, 128], strides = [1, 1]} : vector<8x512xf32> to vector<8x128xf32>
    %cst_220 = arith.constant 5.000000e-01 : f32
    %596 = vector.broadcast %cst_220 : f32 to vector<8x128xf32>
    %597 = arith.mulf %596, %595 : vector<8x128xf32>
    %598 = math.tanh %597 : vector<8x128xf32>
    %cst_221 = arith.constant 5.000000e-01 : f32
    %599 = vector.broadcast %cst_221 : f32 to vector<8x128xf32>
    %600 = arith.mulf %599, %598 : vector<8x128xf32>
    %cst_222 = arith.constant 5.000000e-01 : f32
    %601 = vector.broadcast %cst_222 : f32 to vector<8x128xf32>
    %602 = arith.addf %600, %601 : vector<8x128xf32>
    %603 = vector.extract_strided_slice %594 {offsets = [0, 128], sizes = [8, 128], strides = [1, 1]} : vector<8x512xf32> to vector<8x128xf32>
    %cst_223 = arith.constant 5.000000e-01 : f32
    %604 = vector.broadcast %cst_223 : f32 to vector<8x128xf32>
    %605 = arith.mulf %604, %603 : vector<8x128xf32>
    %606 = math.tanh %605 : vector<8x128xf32>
    %cst_224 = arith.constant 5.000000e-01 : f32
    %607 = vector.broadcast %cst_224 : f32 to vector<8x128xf32>
    %608 = arith.mulf %607, %606 : vector<8x128xf32>
    %cst_225 = arith.constant 5.000000e-01 : f32
    %609 = vector.broadcast %cst_225 : f32 to vector<8x128xf32>
    %610 = arith.addf %608, %609 : vector<8x128xf32>
    %611 = vector.extract_strided_slice %594 {offsets = [0, 256], sizes = [8, 128], strides = [1, 1]} : vector<8x512xf32> to vector<8x128xf32>
    %612 = math.tanh %611 : vector<8x128xf32>
    %613 = vector.extract_strided_slice %594 {offsets = [0, 384], sizes = [8, 128], strides = [1, 1]} : vector<8x512xf32> to vector<8x128xf32>
    %cst_226 = arith.constant 5.000000e-01 : f32
    %614 = vector.broadcast %cst_226 : f32 to vector<8x128xf32>
    %615 = arith.mulf %614, %613 : vector<8x128xf32>
    %616 = math.tanh %615 : vector<8x128xf32>
    %cst_227 = arith.constant 5.000000e-01 : f32
    %617 = vector.broadcast %cst_227 : f32 to vector<8x128xf32>
    %618 = arith.mulf %617, %616 : vector<8x128xf32>
    %cst_228 = arith.constant 5.000000e-01 : f32
    %619 = vector.broadcast %cst_228 : f32 to vector<8x128xf32>
    %620 = arith.addf %618, %619 : vector<8x128xf32>
    %621 = arith.mulf %610, %547 : vector<8x128xf32>
    %622 = arith.mulf %602, %612 : vector<8x128xf32>
    %623 = arith.addf %621, %622 : vector<8x128xf32>
    %624 = math.tanh %623 : vector<8x128xf32>
    %625 = arith.mulf %620, %624 : vector<8x128xf32>
    %c7 = arith.constant 7 : index
    %c0_229 = arith.constant 0 : index
    %c0_230 = arith.constant 0 : index
    %626 = vector.load %arg7[%c7, %c0_229, %c0_230] : memref<8x8x128xf32, #tpu.memory_space<vmem>>, vector<1x8x128xf32>
    %627 = vector.shape_cast %626 : vector<1x8x128xf32> to vector<8x128xf32>
    %628 = vector.shape_cast %625 : vector<8x128xf32> to vector<1x8x128xf32>
    tpu.vector_store %arg7[%c7, %c0_229, %c0_230], %628 {strides = array<i32>} : memref<8x8x128xf32, #tpu.memory_space<vmem>>, vector<1x8x128xf32>,
    %c0_231 = arith.constant 0 : index
    %c0_232 = arith.constant 0 : index
    %629 = vector.load %arg8[%c0_231, %c0_232] : memref<8x128xf32, #tpu.memory_space<vmem>>, vector<8x128xf32>
    tpu.vector_store %arg8[%c0_231, %c0_232], %623 {strides = array<i32>} : memref<8x128xf32, #tpu.memory_space<vmem>>, vector<8x128xf32>,
    return
  }
  func.func @transform_0(%arg0: i32) -> (i32, i32) {
    %c0_i32 = arith.constant 0 : i32
    %c0_i32_0 = arith.constant 0 : i32
    %c0_i32_1 = arith.constant 0 : i32
    return %c0_i32, %c0_i32_0 : i32, i32
  }
  func.func @transform_1(%arg0: i32) -> (i32, i32) {
    %c0_i32 = arith.constant 0 : i32
    %c0_i32_0 = arith.constant 0 : i32
    %c0_i32_1 = arith.constant 0 : i32
    return %c0_i32, %c0_i32_0 : i32, i32
  }
  func.func @transform_2(%arg0: i32) -> (i32, i32) {
    %c0_i32 = arith.constant 0 : i32
    %c0_i32_0 = arith.constant 0 : i32
    %c0_i32_1 = arith.constant 0 : i32
    return %c0_i32, %c0_i32_0 : i32, i32
  }
  func.func @transform_3(%arg0: i32) -> (i32, i32) {
    %c0_i32 = arith.constant 0 : i32
    %c0_i32_0 = arith.constant 0 : i32
    %c0_i32_1 = arith.constant 0 : i32
    return %c0_i32, %c0_i32_0 : i32, i32
  }
  func.func @transform_4(%arg0: i32) -> (i32, i32) {
    %c0_i32 = arith.constant 0 : i32
    %c0_i32_0 = arith.constant 0 : i32
    %c0_i32_1 = arith.constant 0 : i32
    return %c0_i32, %c0_i32_0 : i32, i32
  }
  func.func @transform_5(%arg0: i32) -> (i32, i32) {
    %c0_i32 = arith.constant 0 : i32
    %c0_i32_0 = arith.constant 0 : i32
    %c0_i32_1 = arith.constant 0 : i32
    return %c0_i32, %c0_i32_0 : i32, i32
  }
  func.func @transform_6(%arg0: i32) -> (i32, i32, i32) {
    %c0_i32 = arith.constant 0 : i32
    %c0_i32_0 = arith.constant 0 : i32
    %c0_i32_1 = arith.constant 0 : i32
    %c0_i32_2 = arith.constant 0 : i32
    return %c0_i32, %c0_i32_0, %c0_i32_1 : i32, i32, i32
  }
  func.func @transform_7(%arg0: i32) -> (i32, i32) {
    %c0_i32 = arith.constant 0 : i32
    %c0_i32_0 = arith.constant 0 : i32
    %c0_i32_1 = arith.constant 0 : i32
    return %c0_i32, %c0_i32_0 : i32, i32
  }
}

</mosaic_0001>

<bundles_post_ra>
// kernel: forward.1
= control target key start
LH: loop header
LB: loop body
LE: loop exit
PB: predicated region body
PF: predicated region fallthrough
CT: control target
= control target key end

     0   :  { %13 = vsyncpa [#allocation4], 0  ;;  %s11099_s0 = inlined_call_operand.vmem [shape: bf16[64,128], index: 0, kind: input, shape index: {}]   ;;  %s11100_s1 = inlined_call_operand.hbm [shape: bf16[128,512], index: 1, kind: input, shape index: {}]   ;;  %s11101_s2 = inlined_call_operand.vmem [shape: f32[1,512], index: 2, kind: input, shape index: {}]   ;;  %s11102_s3 = inlined_call_operand.hbm [shape: bf16[128,1024], index: 3, kind: input, shape index: {}]   ;;  %s11103_s4 = inlined_call_operand.hbm [shape: bf16[128,512], index: 4, kind: input, shape index: {}]   ;;  %s11104_s5 = inlined_call_operand.vmem [shape: f32[1,512], index: 5, kind: input, shape index: {}]   ;;  %s11105_s6 = inlined_call_operand.vmem [shape: f32[8,8,128], index: 6, kind: output, shape index: {0}]   ;;  %s11106_s7 = inlined_call_operand.vmem [shape: f32[8,128], index: 7, kind: output, shape index: {1}]  }
   0x1   :  { %14 = vsyncpa [#allocation6], 0  ;;  %s36_s26 = sshll.u32 %s11102_s3, 4  ;;  %s10645_s27 = smov [#allocation5]   ;;  %s37_s26 = int_to_ptr.hbm [resolvable:$true] %s36_s26 }
   0x2   :  { %s38_s28 = sshll.u32 %s10645_s27, 4  ;;  %s21_s8 = sshll.u32 %s11100_s1, 4  ;;  %s39_s28 = int_to_ptr.vmem [resolvable:$true] %s38_s28  ;;  %s22_s8 = int_to_ptr.hbm [resolvable:$true] %s21_s8 }
   0x3   :  { %s10646_s9 = smov 512   ;;  %s10647_s10 = smov 32  }
   0x4   :  { %44 = dma.hbm_to_vmem [thread:$0]  %s37_s26, 8192, %s39_s28, [#allocation6], %s10646_s9, %s10646_s9, %s10647_s10  }
   0x5   :  { %s10648_s11 = smov [#allocation3]   ;;  %s10649_s13 = smov 256  }
   0x6   :  { %s23_s12 = sshll.u32 %s10648_s11, 4  ;;  %s10650_s14 = smov 16   ;;  %s24_s12 = int_to_ptr.vmem [resolvable:$true] %s23_s12 }
   0x7   :  { %29 = dma.hbm_to_vmem [thread:$0]  %s22_s8, 4096, %s24_s12, [#allocation4], %s10649_s13, %s10649_s13, %s10650_s14  }
   0x8   :  { %s49_s16 = sshll.u32 %s11103_s4, 4  ;;  %s10651_s17 = smov [#allocation7]   ;;  %s50_s16 = int_to_ptr.hbm [resolvable:$true] %s49_s16 }
   0x9   :  { %s51_s18 = sshll.u32 %s10651_s17, 4  ;;  %s52_s18 = int_to_ptr.vmem [resolvable:$true] %s51_s18 }
   0xa   :  { %57 = dma.hbm_to_vmem [thread:$0]  %s50_s16, 4096, %s52_s18, [#allocation6], %s10649_s13, %s10649_s13, %s10650_s14  }
   0xb   :  { %10641 = dma.done.wait [#allocation4], 4096  }
   0xc   :  { %10642 = vsyncadd [#allocation4], 4294963200 }
   0xd   :  { %10643 = dma.done.wait [#allocation6], 12288  }
   0xe   :  { %10644 = vsyncadd [#allocation6], 4294955008  ;;  %v6664_v0 = vld [vmem:[#allocation3 + $0xe0] sm:$0xf]  ;;  %v9663_v1 = vld [vmem:[#allocation3 + $0xec] sm:$0xf0] }
   0xf   :  { %v9661_v2 = vld [vmem:[#allocation3 + $0xe4] sm:$0xf]  ;;  %v6665_v3 = vor.u32 %v9663_v1, %v6664_v0  ;;  %v6666_v4 = vld [vmem:[#allocation3 + $0xf0] sm:$0xf0]  ;;  %v6672_v5 = vld [vmem:[#allocation3 + $0xe8] sm:$0xf] }
  0x10   :  { %v9664_v6 = vld [vmem:[#allocation3 + $0xf4] sm:$0xf0]  ;;  %v6669_v7 = vor.u32 %v9661_v2, %v6666_v4  ;;  %v9662_v9 = vld [vmem:[#allocation3 + $0xec] sm:$0xf]  ;;  %v6674_v10 = vld [vmem:[#allocation3 + $0xf8] sm:$0xf0] }
  0x11   :  { %v6673_v8 = vor.u32 %v9664_v6, %v6672_v5  ;;  %v6648_v11 = vld [vmem:[#allocation3 + $0xc0] sm:$0xf]  ;;  %307 = vmatpush.bf16.msra.mxu0 %v6665_v3  ;;  %v6677_v12 = vor.u32 %v9662_v9, %v6674_v10  ;;  %v9659_v13 = vld [vmem:[#allocation3 + $0xcc] sm:$0xf0]  ;;  %v9657_v14 = vld [vmem:[#allocation3 + $0xc4] sm:$0xf] }
  0x12   :  { %v6650_v15 = vld [vmem:[#allocation3 + $0xd0] sm:$0xf0]  ;;  %336 = vmatpush.bf16.msra.mxu1 %v6669_v7  ;;  %v6649_v16 = vor.u32 %v9659_v13, %v6648_v11  ;;  %v6656_v18 = vld [vmem:[#allocation3 + $0xc8] sm:$0xf]  ;;  %v9660_v19 = vld [vmem:[#allocation3 + $0xd4] sm:$0xf0] }
  0x13   :  { %365 = vmatpush.bf16.msra.mxu2 %v6673_v8  ;;  %v6653_v17 = vor.u32 %v9657_v14, %v6650_v15  ;;  %v9658_v20 = vld [vmem:[#allocation3 + $0xcc] sm:$0xf]  ;;  %394 = vmatpush.bf16.msra.mxu3 %v6677_v12  ;;  %v6657_v21 = vor.u32 %v9660_v19, %v6656_v18  ;;  %v6658_v22 = vld [vmem:[#allocation3 + $0xd8] sm:$0xf0]  ;;  %v6632_v23 = vld [vmem:[#allocation3 + $0xa0] sm:$0xf] }
  0x14   :  { %v9655_v24 = vld [vmem:[#allocation3 + $0xac] sm:$0xf0]  ;;  %v6661_v25 = vor.u32 %v9658_v20, %v6658_v22  ;;  %v9653_v26 = vld [vmem:[#allocation3 + $0xa4] sm:$0xf]  ;;  %v6634_v27 = vld [vmem:[#allocation3 + $0xb0] sm:$0xf0] }
  0x15   :  { %v6640_v28 = vld [vmem:[#allocation3 + $0xa8] sm:$0xf]  ;;  %308 = vmatpush.bf16.msra.mxu0 %v6649_v16  ;;  %v6633_v29 = vor.u32 %v9655_v24, %v6632_v23  ;;  %v9656_v30 = vld [vmem:[#allocation3 + $0xb4] sm:$0xf0]  ;;  %v9654_v31 = vld [vmem:[#allocation3 + $0xac] sm:$0xf]  ;;  %v6637_v33 = vor.u32 %v9653_v26, %v6634_v27 }
  0x16   :  { %v6642_v32 = vld [vmem:[#allocation3 + $0xb8] sm:$0xf0]  ;;  %337 = vmatpush.bf16.msra.mxu1 %v6653_v17  ;;  %v6641_v34 = vor.u32 %v9656_v30, %v6640_v28  ;;  %v6616_v35 = vld [vmem:[#allocation3 + $0x80] sm:$0xf]  ;;  %v9651_v36 = vld [vmem:[#allocation3 + $0x8c] sm:$0xf0] }
  0x17   :  { %366 = vmatpush.bf16.msra.mxu2 %v6657_v21  ;;  %v9649_v37 = vld [vmem:[#allocation3 + $0x84] sm:$0xf]  ;;  %395 = vmatpush.bf16.msra.mxu3 %v6661_v25  ;;  %v6645_v38 = vor.u32 %v9654_v31, %v6642_v32  ;;  %v6618_v39 = vld [vmem:[#allocation3 + $0x90] sm:$0xf0]  ;;  %v6624_v40 = vld [vmem:[#allocation3 + $0x88] sm:$0xf]  ;;  %v6617_v44 = vor.u32 %v9651_v36, %v6616_v35 }
  0x18   :  { %v9652_v41 = vld [vmem:[#allocation3 + $0x94] sm:$0xf0]  ;;  %v9650_v42 = vld [vmem:[#allocation3 + $0x8c] sm:$0xf]  ;;  %v6626_v43 = vld [vmem:[#allocation3 + $0x98] sm:$0xf0]  ;;  %v6621_v45 = vor.u32 %v9649_v37, %v6618_v39 }
  0x19   :  { %309 = vmatpush.bf16.msra.mxu0 %v6633_v29  ;;  %v6625_v46 = vor.u32 %v9652_v41, %v6624_v40  ;;  %v6600_v47 = vld [vmem:[#allocation3 + $0x60] sm:$0xf]  ;;  %v9647_v48 = vld [vmem:[#allocation3 + $0x6c] sm:$0xf0]  ;;  %v9645_v49 = vld [vmem:[#allocation3 + $0x64] sm:$0xf]  ;;  %v6629_v50 = vor.u32 %v9650_v42, %v6626_v43 }
  0x1a   :  { %338 = vmatpush.bf16.msra.mxu1 %v6637_v33  ;;  %v6602_v51 = vld [vmem:[#allocation3 + $0x70] sm:$0xf0]  ;;  %v6608_v52 = vld [vmem:[#allocation3 + $0x68] sm:$0xf]  ;;  %v9648_v53 = vld [vmem:[#allocation3 + $0x74] sm:$0xf0]  ;;  %v6601_v56 = vor.u32 %v9647_v48, %v6600_v47 }
  0x1b   :  { %367 = vmatpush.bf16.msra.mxu2 %v6641_v34  ;;  %396 = vmatpush.bf16.msra.mxu3 %v6645_v38  ;;  %v9646_v54 = vld [vmem:[#allocation3 + $0x6c] sm:$0xf]  ;;  %v6610_v55 = vld [vmem:[#allocation3 + $0x78] sm:$0xf0]  ;;  %v6605_v57 = vor.u32 %v9645_v49, %v6602_v51  ;;  %v6609_v58 = vor.u32 %v9648_v53, %v6608_v52  ;;  %v6584_v59 = vld [vmem:[#allocation3 + $0x40] sm:$0xf] }
  0x1c   :  { %v9643_v60 = vld [vmem:[#allocation3 + $0x4c] sm:$0xf0]  ;;  %v9641_v61 = vld [vmem:[#allocation3 + $0x44] sm:$0xf]  ;;  %v6613_v62 = vor.u32 %v9646_v54, %v6610_v55  ;;  %v6586_v63 = vld [vmem:[#allocation3 + $0x50] sm:$0xf0] }
  0x1d   :  { %310 = vmatpush.bf16.msra.mxu0 %v6617_v44  ;;  %v6592_v0 = vld [vmem:[#allocation3 + $0x48] sm:$0xf]  ;;  %v9644_v1 = vld [vmem:[#allocation3 + $0x54] sm:$0xf0]  ;;  %v9642_v2 = vld [vmem:[#allocation3 + $0x4c] sm:$0xf]  ;;  %v6585_v4 = vor.u32 %v9643_v60, %v6584_v59  ;;  %v6589_v5 = vor.u32 %v9641_v61, %v6586_v63 }
  0x1e   :  { %339 = vmatpush.bf16.msra.mxu1 %v6621_v45  ;;  %v6594_v3 = vld [vmem:[#allocation3 + $0x58] sm:$0xf0]  ;;  %v6593_v6 = vor.u32 %v9644_v1, %v6592_v0  ;;  %v6568_v7 = vld [vmem:[#allocation3 + $0x20] sm:$0xf]  ;;  %v9639_v8 = vld [vmem:[#allocation3 + $0x2c] sm:$0xf0] }
  0x1f   :  { %368 = vmatpush.bf16.msra.mxu2 %v6625_v46  ;;  %397 = vmatpush.bf16.msra.mxu3 %v6629_v50  ;;  %v9637_v9 = vld [vmem:[#allocation3 + $0x24] sm:$0xf]  ;;  %v6597_v10 = vor.u32 %v9642_v2, %v6594_v3  ;;  %v6570_v11 = vld [vmem:[#allocation3 + $0x30] sm:$0xf0]  ;;  %v6576_v12 = vld [vmem:[#allocation3 + $0x28] sm:$0xf]  ;;  %v6569_v16 = vor.u32 %v9639_v8, %v6568_v7 }
  0x20   :  { %v9640_v13 = vld [vmem:[#allocation3 + $0x34] sm:$0xf0]  ;;  %v9638_v14 = vld [vmem:[#allocation3 + $0x2c] sm:$0xf]  ;;  %v6578_v15 = vld [vmem:[#allocation3 + $0x38] sm:$0xf0]  ;;  %v6573_v18 = vor.u32 %v9637_v9, %v6570_v11 }
  0x21   :  { %311 = vmatpush.bf16.msra.mxu0 %v6601_v56  ;;  %v6552_v17 = vld [vmem:[#allocation3] sm:$0xf]  ;;  %v6577_v19 = vor.u32 %v9640_v13, %v6576_v12  ;;  %v9635_v20 = vld [vmem:[#allocation3 + $0xc] sm:$0xf0]  ;;  %v9633_v21 = vld [vmem:[#allocation3 + $0x4] sm:$0xf]  ;;  %v6581_v23 = vor.u32 %v9638_v14, %v6578_v15 }
  0x22   :  { %340 = vmatpush.bf16.msra.mxu1 %v6605_v57  ;;  %v6554_v22 = vld [vmem:[#allocation3 + $0x10] sm:$0xf0]  ;;  %v6560_v24 = vld [vmem:[#allocation3 + $0x8] sm:$0xf]  ;;  %v9636_v25 = vld [vmem:[#allocation3 + $0x14] sm:$0xf0]  ;;  %v6553_v30 = vor.u32 %v9635_v20, %v6552_v17 }
  0x23   :  { %369 = vmatpush.bf16.msra.mxu2 %v6609_v58  ;;  %398 = vmatpush.bf16.msra.mxu3 %v6613_v62  ;;  %v9634_v26 = vld [vmem:[#allocation3 + $0xc] sm:$0xf]  ;;  %v6562_v27 = vld [vmem:[#allocation3 + $0x18] sm:$0xf0]  ;;  %v6904_v28 = vld [vmem:[#allocation5 + $0x1c0] sm:$0xf]  ;;  %v6557_v33 = vor.u32 %v9633_v21, %v6554_v22  ;;  %v6561_v34 = vor.u32 %v9636_v25, %v6560_v24 }
  0x24   :  { %v9725_v29 = vld [vmem:[#allocation5 + $0x1dc] sm:$0xf0]  ;;  %v9721_v31 = vld [vmem:[#allocation5 + $0x1c4] sm:$0xf]  ;;  %v6565_v36 = vor.u32 %v9634_v26, %v6562_v27  ;;  %v6912_v38 = vld [vmem:[#allocation5 + $0x1c8] sm:$0xf] }
  0x25   :  { %312 = vmatpush.bf16.msra.mxu0 %v6585_v4  ;;  %v6906_v32 = vld [vmem:[#allocation5 + $0x1e0] sm:$0xf0]  ;;  %v6905_v37 = vor.u32 %v9725_v29, %v6904_v28  ;;  %v9726_v39 = vld [vmem:[#allocation5 + $0x1e4] sm:$0xf0]  ;;  %v9722_v40 = vld [vmem:[#allocation5 + $0x1cc] sm:$0xf] }
  0x26   :  { %341 = vmatpush.bf16.msra.mxu1 %v6589_v5  ;;  %v9629_v35 = vld [vmem:[%s11099_s0] sm:$0xff]  ;;  %v6909_v41 = vor.u32 %v9721_v31, %v6906_v32  ;;  %v6914_v42 = vld [vmem:[#allocation5 + $0x1e8] sm:$0xf0]  ;;  %v6913_v47 = vor.u32 %v9726_v39, %v6912_v38  ;;  %v6880_v50 = vld [vmem:[#allocation5 + $0x188] sm:$0xf] }
  0x27   :  { %370 = vmatpush.bf16.msra.mxu2 %v6593_v6  ;;  %399 = vmatpush.bf16.msra.mxu3 %v6597_v10  ;;  %v6872_v43 = vld [vmem:[#allocation5 + $0x180] sm:$0xf]  ;;  %v9713_v45 = vld [vmem:[#allocation5 + $0x184] sm:$0xf]  ;;  %v6917_v48 = vor.u32 %v9722_v40, %v6914_v42  ;;  %v9718_v51 = vld [vmem:[#allocation5 + $0x1a4] sm:$0xf0] }
  0x28   :  { %v9717_v44 = vld [vmem:[#allocation5 + $0x19c] sm:$0xf0]  ;;  %v6874_v46 = vld [vmem:[#allocation5 + $0x1a0] sm:$0xf0]  ;;  %v9714_v52 = vld [vmem:[#allocation5 + $0x18c] sm:$0xf]  ;;  %v6881_v59 = vor.u32 %v9718_v51, %v6880_v50 }
  0x29   :  { %313 = vmatpush.bf16.msra.mxu0 %v6569_v16  ;;  %v6873_v49 = vor.u32 %v9717_v44, %v6872_v43  ;;  %v6877_v53 = vor.u32 %v9713_v45, %v6874_v46  ;;  %v6882_v54 = vld [vmem:[#allocation5 + $0x1a8] sm:$0xf0]  ;;  %v6840_v55 = vld [vmem:[#allocation5 + $0x140] sm:$0xf]  ;;  %v9705_v57 = vld [vmem:[#allocation5 + $0x144] sm:$0xf] }
  0x2a   :  { %342 = vmatpush.bf16.msra.mxu1 %v6573_v18  ;;  %v9709_v56 = vld [vmem:[#allocation5 + $0x15c] sm:$0xf0]  ;;  %v6842_v58 = vld [vmem:[#allocation5 + $0x160] sm:$0xf0]  ;;  %v6885_v60 = vor.u32 %v9714_v52, %v6882_v54  ;;  %v6848_v62 = vld [vmem:[#allocation5 + $0x148] sm:$0xf] }
  0x2b   :  { %371 = vmatpush.bf16.msra.mxu2 %v6577_v19  ;;  %400 = vmatpush.bf16.msra.mxu3 %v6581_v23  ;;  %v6841_v61 = vor.u32 %v9709_v56, %v6840_v55  ;;  %v9710_v63 = vld [vmem:[#allocation5 + $0x164] sm:$0xf0]  ;;  %v9706_v0 = vld [vmem:[#allocation5 + $0x14c] sm:$0xf]  ;;  %v6845_v1 = vor.u32 %v9705_v57, %v6842_v58  ;;  %v6808_v3 = vld [vmem:[#allocation5 + $0x100] sm:$0xf] }
  0x2c   :  { %v6850_v2 = vld [vmem:[#allocation5 + $0x168] sm:$0xf0]  ;;  %v9701_v4 = vld [vmem:[#allocation5 + $0x11c] sm:$0xf0]  ;;  %v9697_v5 = vld [vmem:[#allocation5 + $0x104] sm:$0xf]  ;;  %v6849_v7 = vor.u32 %v9710_v63, %v6848_v62 }
  0x2d   :  { %314 = vmatpush.bf16.msra.mxu0 %v6553_v30  ;;  %v6810_v6 = vld [vmem:[#allocation5 + $0x120] sm:$0xf0]  ;;  %v6853_v8 = vor.u32 %v9706_v0, %v6850_v2  ;;  %v6809_v9 = vor.u32 %v9701_v4, %v6808_v3  ;;  %v6816_v10 = vld [vmem:[#allocation5 + $0x108] sm:$0xf]  ;;  %v9698_v12 = vld [vmem:[#allocation5 + $0x10c] sm:$0xf] }
  0x2e   :  { %343 = vmatpush.bf16.msra.mxu1 %v6557_v33  ;;  %v9702_v11 = vld [vmem:[#allocation5 + $0x124] sm:$0xf0]  ;;  %v6813_v13 = vor.u32 %v9697_v5, %v6810_v6  ;;  %v6818_v14 = vld [vmem:[#allocation5 + $0x128] sm:$0xf0]  ;;  %v6776_v15 = vld [vmem:[#allocation5 + $0xc0] sm:$0xf] }
  0x2f   :  { %372 = vmatpush.bf16.msra.mxu2 %v6561_v34  ;;  %401 = vmatpush.bf16.msra.mxu3 %v6565_v36  ;;  %v9693_v16 = vld [vmem:[#allocation5 + $0xdc] sm:$0xf0]  ;;  %v9689_v17 = vld [vmem:[#allocation5 + $0xc4] sm:$0xf]  ;;  %v9630_v19 = vld [vmem:[%s11099_s0 + $0x8] sm:$0xff]  ;;  %v6817_v20 = vor.u32 %v9702_v11, %v6816_v10  ;;  %v6821_v21 = vor.u32 %v9698_v12, %v6818_v14 }
  0x30   :  { %315 = vmatmul.bf16.vlgmr.msra.gmra.mxu0 %v9629_v35  ;;  %v6778_v18 = vld [vmem:[#allocation5 + $0xe0] sm:$0xf0]  ;;  %v6777_v22 = vor.u32 %v9693_v16, %v6776_v15  ;;  %v6784_v23 = vld [vmem:[#allocation5 + $0xc8] sm:$0xf]  ;;  %v9690_v25 = vld [vmem:[#allocation5 + $0xcc] sm:$0xf] }
  0x31   :  { %876 = vmatpush.bf16.msrb.mxu0 %v6905_v37  ;;  %344 = vmatmul.bf16.vlgmr.msra.gmra.mxu1 %v9629_v35  ;;  %v9694_v24 = vld [vmem:[#allocation5 + $0xe4] sm:$0xf0]  ;;  %v6781_v26 = vor.u32 %v9689_v17, %v6778_v18  ;;  %v6786_v27 = vld [vmem:[#allocation5 + $0xe8] sm:$0xf0]  ;;  %v6744_v28 = vld [vmem:[#allocation5 + $0x80] sm:$0xf] }
  0x32   :  { %889 = vmatpush.bf16.msrb.mxu1 %v6909_v41  ;;  %373 = vmatmul.bf16.vlgmr.msra.gmra.mxu2 %v9629_v35  ;;  %v9685_v29 = vld [vmem:[#allocation5 + $0x9c] sm:$0xf0]  ;;  %v9681_v30 = vld [vmem:[#allocation5 + $0x84] sm:$0xf]  ;;  %v6785_v32 = vor.u32 %v9694_v24, %v6784_v23  ;;  %v6789_v33 = vor.u32 %v9690_v25, %v6786_v27  ;;  %v9686_v36 = vld [vmem:[#allocation5 + $0xa4] sm:$0xf0] }
  0x33   :  { %402 = vmatmul.bf16.vlgmr.msra.gmra.mxu3 %v9629_v35  ;;  %902 = vmatpush.bf16.msrb.mxu2 %v6913_v47  ;;  %v6746_v31 = vld [vmem:[#allocation5 + $0xa0] sm:$0xf0]  ;;  %v6745_v34 = vor.u32 %v9685_v29, %v6744_v28  ;;  %v6752_v35 = vld [vmem:[#allocation5 + $0x88] sm:$0xf]  ;;  %v9682_v37 = vld [vmem:[#allocation5 + $0x8c] sm:$0xf] }
  0x34   :  { %915 = vmatpush.bf16.msrb.mxu3 %v6917_v48  ;;  %v6749_v38 = vor.u32 %v9681_v30, %v6746_v31  ;;  %v6754_v39 = vld [vmem:[#allocation5 + $0xa8] sm:$0xf0]  ;;  %v6712_v40 = vld [vmem:[#allocation5 + $0x40] sm:$0xf]  ;;  %v9673_v42 = vld [vmem:[#allocation5 + $0x44] sm:$0xf]  ;;  %v6753_v44 = vor.u32 %v9686_v36, %v6752_v35 }
  0x35   :  { %877 = vmatpush.bf16.msrb.mxu0 %v6873_v49  ;;  %v9677_v41 = vld [vmem:[#allocation5 + $0x5c] sm:$0xf0]  ;;  %v6714_v43 = vld [vmem:[#allocation5 + $0x60] sm:$0xf0]  ;;  %v6757_v45 = vor.u32 %v9682_v37, %v6754_v39  ;;  %v6720_v47 = vld [vmem:[#allocation5 + $0x48] sm:$0xf] }
  0x36   :  { %890 = vmatpush.bf16.msrb.mxu1 %v6877_v53  ;;  %v6713_v46 = vor.u32 %v9677_v41, %v6712_v40  ;;  %v9678_v48 = vld [vmem:[#allocation5 + $0x64] sm:$0xf0]  ;;  %v6717_v49 = vor.u32 %v9673_v42, %v6714_v43  ;;  %v9674_v50 = vld [vmem:[#allocation5 + $0x4c] sm:$0xf]  ;;  %v9631_v54 = vld [vmem:[%s11099_s0 + $0x10] sm:$0xff] }
  0x37   :  { %903 = vmatpush.bf16.msrb.mxu2 %v6881_v59  ;;  %v6722_v51 = vld [vmem:[#allocation5 + $0x68] sm:$0xf0]  ;;  %v6721_v52 = vor.u32 %v9678_v48, %v6720_v47  ;;  %v6680_v55 = vld [vmem:[#allocation5] sm:$0xf]  ;;  %v9665_v58 = vld [vmem:[#allocation5 + $0x4] sm:$0xf] }
  0x38   :  { %916 = vmatpush.bf16.msrb.mxu3 %v6885_v60  ;;  %v6725_v53 = vor.u32 %v9674_v50, %v6722_v51  ;;  %v9669_v56 = vld [vmem:[#allocation5 + $0x1c] sm:$0xf0]  ;;  %v6682_v59 = vld [vmem:[#allocation5 + $0x20] sm:$0xf0]  ;;  %v6688_v60 = vld [vmem:[#allocation5 + $0x8] sm:$0xf] }
  0x39   :  { %878 = vmatpush.bf16.msrb.mxu0 %v6841_v61  ;;  %v6681_v57 = vor.u32 %v9669_v56, %v6680_v55  ;;  %v6685_v61 = vor.u32 %v9665_v58, %v6682_v59  ;;  %v9670_v62 = vld [vmem:[#allocation5 + $0x24] sm:$0xf0]  ;;  %v9666_v63 = vld [vmem:[#allocation5 + $0xc] sm:$0xf]  ;;  %v6920_v3 = vld [vmem:[#allocation5 + $0x1d0] sm:$0xf] }
  0x3a   :  { %891 = vmatpush.bf16.msrb.mxu1 %v6845_v1  ;;  %v6690_v0 = vld [vmem:[#allocation5 + $0x28] sm:$0xf0]  ;;  %v6689_v1 = vor.u32 %v9670_v62, %v6688_v60  ;;  %v9727_v4 = vld [vmem:[#allocation5 + $0x1ec] sm:$0xf0]  ;;  %v9723_v5 = vld [vmem:[#allocation5 + $0x1d4] sm:$0xf] }
  0x3b   :  { %904 = vmatpush.bf16.msrb.mxu2 %v6849_v7  ;;  %v6693_v2 = vor.u32 %v9666_v63, %v6690_v0  ;;  %v6921_v6 = vor.u32 %v9727_v4, %v6920_v3  ;;  %v6922_v7 = vld [vmem:[#allocation5 + $0x1f0] sm:$0xf0]  ;;  %v9724_v12 = vld [vmem:[#allocation5 + $0x1dc] sm:$0xf]  ;;  %v6888_v14 = vld [vmem:[#allocation5 + $0x190] sm:$0xf] }
  0x3c   :  { %917 = vmatpush.bf16.msrb.mxu3 %v6853_v8  ;;  %v6928_v8 = vld [vmem:[#allocation5 + $0x1d8] sm:$0xf]  ;;  %v6925_v10 = vor.u32 %v9723_v5, %v6922_v7  ;;  %v9719_v17 = vld [vmem:[#allocation5 + $0x1ac] sm:$0xf0]  ;;  %v9715_v18 = vld [vmem:[#allocation5 + $0x194] sm:$0xf] }
  0x3d   :  { %879 = vmatpush.bf16.msrb.mxu0 %v6809_v9  ;;  %v9728_v9 = vld [vmem:[#allocation5 + $0x1f4] sm:$0xf0]  ;;  %v9716_v25 = vld [vmem:[#allocation5 + $0x19c] sm:$0xf]  ;;  %v6856_v28 = vld [vmem:[#allocation5 + $0x150] sm:$0xf] }
  0x3e   :  { %892 = vmatpush.bf16.msrb.mxu1 %v6813_v13  ;;  %v6929_v11 = vor.u32 %v9728_v9, %v6928_v8  ;;  %v6930_v13 = vld [vmem:[#allocation5 + $0x1f8] sm:$0xf0]  ;;  %v9711_v29 = vld [vmem:[#allocation5 + $0x16c] sm:$0xf0]  ;;  %v9707_v30 = vld [vmem:[#allocation5 + $0x154] sm:$0xf] }
  0x3f   :  { %905 = vmatpush.bf16.msrb.mxu2 %v6817_v20  ;;  %v6933_v15 = vor.u32 %v9724_v12, %v6930_v13  ;;  %v9632_v16 = vld [vmem:[%s11099_s0 + $0x18] sm:$0xff]  ;;  %v6890_v20 = vld [vmem:[#allocation5 + $0x1b0] sm:$0xf0]  ;;  %v6857_v31 = vor.u32 %v9711_v29, %v6856_v28  ;;  %v6824_v40 = vld [vmem:[#allocation5 + $0x110] sm:$0xf] }
  0x40   :  { %918 = vmatpush.bf16.msrb.mxu3 %v6821_v21  ;;  %320 = vmatmul.bf16.gmra.mxu0 %v9630_v19  ;;  %v6896_v21 = vld [vmem:[#allocation5 + $0x198] sm:$0xf]  ;;  %v6893_v23 = vor.u32 %v9715_v18, %v6890_v20  ;;  %v9708_v37 = vld [vmem:[#allocation5 + $0x15c] sm:$0xf]  ;;  %v9703_v41 = vld [vmem:[#allocation5 + $0x12c] sm:$0xf0] }
  0x41   :  { %880 = vmatpush.bf16.msrb.mxu0 %v6777_v22  ;;  %349 = vmatmul.bf16.gmra.mxu1 %v9630_v19  ;;  %v9720_v22 = vld [vmem:[#allocation5 + $0x1b4] sm:$0xf0]  ;;  %v9699_v42 = vld [vmem:[#allocation5 + $0x114] sm:$0xf]  ;;  %v6825_v43 = vor.u32 %v9703_v41, %v6824_v40  ;;  %v6834_v50 = vld [vmem:[#allocation5 + $0x138] sm:$0xf0] }
  0x42   :  { %893 = vmatpush.bf16.msrb.mxu1 %v6781_v26  ;;  %378 = vmatmul.bf16.gmra.mxu2 %v9630_v19  ;;  %v6897_v24 = vor.u32 %v9720_v22, %v6896_v21  ;;  %v6898_v26 = vld [vmem:[#allocation5 + $0x1b8] sm:$0xf0]  ;;  %v6794_v56 = vld [vmem:[#allocation5 + $0xf0] sm:$0xf0]  ;;  %v9696_v58 = vld [vmem:[#allocation5 + $0xf4] sm:$0xf0] }
  0x43   :  { %407 = vmatmul.bf16.gmra.mxu3 %v9630_v19  ;;  %906 = vmatpush.bf16.msrb.mxu2 %v6785_v32  ;;  %v6889_v19 = vor.u32 %v9719_v17, %v6888_v14  ;;  %v6901_v27 = vor.u32 %v9716_v25, %v6898_v26  ;;  %v6858_v32 = vld [vmem:[#allocation5 + $0x170] sm:$0xf0]  ;;  %v6802_v62 = vld [vmem:[#allocation5 + $0xf8] sm:$0xf0]  ;;  %v6760_v0 = vld [vmem:[#allocation5 + $0x90] sm:$0xf] }
  0x44   :  { %919 = vmatpush.bf16.msrb.mxu3 %v6789_v33  ;;  %v6864_v33 = vld [vmem:[#allocation5 + $0x158] sm:$0xf]  ;;  %v6861_v35 = vor.u32 %v9707_v30, %v6858_v32  ;;  %v6762_v4 = vld [vmem:[#allocation5 + $0xb0] sm:$0xf0]  ;;  %v9684_v9 = vld [vmem:[#allocation5 + $0x9c] sm:$0xf] }
  0x45   :  { %881 = vmatpush.bf16.msrb.mxu0 %v6745_v34  ;;  %v9712_v34 = vld [vmem:[#allocation5 + $0x174] sm:$0xf0]  ;;  %v6728_v13 = vld [vmem:[#allocation5 + $0x50] sm:$0xf]  ;;  %v6730_v17 = vld [vmem:[#allocation5 + $0x70] sm:$0xf0] }
  0x46   :  { %894 = vmatpush.bf16.msrb.mxu1 %v6749_v38  ;;  %v6865_v36 = vor.u32 %v9712_v34, %v6864_v33  ;;  %v6866_v38 = vld [vmem:[#allocation5 + $0x178] sm:$0xf0]  ;;  %v6768_v5 = vld [vmem:[#allocation5 + $0x98] sm:$0xf]  ;;  %v9679_v14 = vld [vmem:[#allocation5 + $0x6c] sm:$0xf0] }
  0x47   :  { %907 = vmatpush.bf16.msrb.mxu2 %v6753_v44  ;;  %v6869_v39 = vor.u32 %v9708_v37, %v6866_v38  ;;  %v6826_v44 = vld [vmem:[#allocation5 + $0x130] sm:$0xf0]  ;;  %v6736_v18 = vld [vmem:[#allocation5 + $0x58] sm:$0xf]  ;;  %v9676_v22 = vld [vmem:[#allocation5 + $0x5c] sm:$0xf] }
  0x48   :  { %920 = vmatpush.bf16.msrb.mxu3 %v6757_v45  ;;  %v6832_v45 = vld [vmem:[#allocation5 + $0x118] sm:$0xf]  ;;  %v6829_v47 = vor.u32 %v9699_v42, %v6826_v44  ;;  %v9671_v28 = vld [vmem:[#allocation5 + $0x2c] sm:$0xf0]  ;;  %v9667_v29 = vld [vmem:[#allocation5 + $0x14] sm:$0xf] }
  0x49   :  { %882 = vmatpush.bf16.msrb.mxu0 %v6713_v46  ;;  %v9704_v46 = vld [vmem:[#allocation5 + $0x134] sm:$0xf0]  ;;  %v9668_v37 = vld [vmem:[#allocation5 + $0x1c] sm:$0xf] }
  0x4a   :  { %895 = vmatpush.bf16.msrb.mxu1 %v6717_v49  ;;  %v6833_v48 = vor.u32 %v9704_v46, %v6832_v45  ;;  %v9700_v49 = vld [vmem:[#allocation5 + $0x11c] sm:$0xf]  ;;  %v6704_v32 = vld [vmem:[#allocation5 + $0x18] sm:$0xf] }
  0x4b   :  { %908 = vmatpush.bf16.msrb.mxu2 %v6721_v52  ;;  %v6837_v51 = vor.u32 %v9700_v49, %v6834_v50  ;;  %v6792_v52 = vld [vmem:[#allocation5 + $0xd0] sm:$0xf]  ;;  %v9672_v33 = vld [vmem:[#allocation5 + $0x34] sm:$0xf0]  ;;  %v6706_v38 = vld [vmem:[#allocation5 + $0x38] sm:$0xf0] }
  0x4c   :  { %921 = vmatpush.bf16.msrb.mxu3 %v6725_v53  ;;  %v9695_v53 = vld [vmem:[#allocation5 + $0xec] sm:$0xf0]  ;;  %v6709_v41 = vor.u32 %v9668_v37, %v6706_v38  ;;  %v7026_v37 = vld [vmem:[#allocation7 + $0xb8] sm:$0xf0] }
  0x4d   :  { %883 = vmatpush.bf16.msrb.mxu0 %v6681_v57  ;;  %v6793_v55 = vor.u32 %v9695_v53, %v6792_v52  ;;  %v6800_v57 = vld [vmem:[#allocation5 + $0xd8] sm:$0xf] }
  0x4e   :  { %896 = vmatpush.bf16.msrb.mxu1 %v6685_v61  ;;  %v6801_v60 = vor.u32 %v9696_v58, %v6800_v57  ;;  %v9692_v61 = vld [vmem:[#allocation5 + $0xdc] sm:$0xf] }
  0x4f   :  { %909 = vmatpush.bf16.msrb.mxu2 %v6689_v1  ;;  %v6805_v63 = vor.u32 %v9692_v61, %v6802_v62  ;;  %v9687_v1 = vld [vmem:[#allocation5 + $0xac] sm:$0xf0] }
  0x50   :  { %325 = vmatmul.bf16.gmra.mxu0 %v9631_v54  ;;  %922 = vmatpush.bf16.msrb.mxu3 %v6693_v2  ;;  %v9683_v2 = vld [vmem:[#allocation5 + $0x94] sm:$0xf]  ;;  %v6761_v3 = vor.u32 %v9687_v1, %v6760_v0  ;;  %v7048_v1 = vld [vmem:[#allocation7 + $0xe0] sm:$0xf] }
  0x51   :  { %354 = vmatmul.bf16.gmra.mxu1 %v9631_v54  ;;  %928 = vmatpush.bf16.msra.mxu0 %v6921_v6  ;;  %v9688_v6 = vld [vmem:[#allocation5 + $0xb4] sm:$0xf0]  ;;  %v6765_v7 = vor.u32 %v9683_v2, %v6762_v4  ;;  %v9759_v2 = vld [vmem:[#allocation7 + $0xec] sm:$0xf0]  ;;  %v9757_v4 = vld [vmem:[#allocation7 + $0xe4] sm:$0xf] }
  0x52   :  { %383 = vmatmul.bf16.gmra.mxu2 %v9631_v54  ;;  %941 = vmatpush.bf16.msra.mxu1 %v6925_v10  ;;  %v6769_v8 = vor.u32 %v9688_v6, %v6768_v5  ;;  %v6770_v10 = vld [vmem:[#allocation5 + $0xb8] sm:$0xf0]  ;;  %v7050_v5 = vld [vmem:[#allocation7 + $0xf0] sm:$0xf0]  ;;  %v7056_v6 = vld [vmem:[#allocation7 + $0xe8] sm:$0xf] }
  0x53   :  { %412 = vmatmul.bf16.gmra.mxu3 %v9631_v54  ;;  %954 = vmatpush.bf16.msra.mxu2 %v6929_v11  ;;  %v9691_v54 = vld [vmem:[#allocation5 + $0xd4] sm:$0xf]  ;;  %v113_v11 = vld [vmem:[%s11101_s2] sm:$0xf]  ;;  %v6773_v12 = vor.u32 %v9684_v9, %v6770_v10  ;;  %v9758_v9 = vld [vmem:[#allocation7 + $0xec] sm:$0xf] }
  0x54   :  { %967 = vmatpush.bf16.msra.mxu3 %v6933_v15  ;;  %v6797_v59 = vor.u32 %v9691_v54, %v6794_v56  ;;  %v9675_v15 = vld [vmem:[#allocation5 + $0x54] sm:$0xf]  ;;  %v10719_v25 = vperm.slane %v113_v11, 1  ;;  %v10723_v45 = vperm.slane %v113_v11, 2  ;;  %v10725_v46 = vperm.slane %v113_v11, 3 }
  0x55   :  { %929 = vmatpush.bf16.msra.mxu0 %v6889_v19  ;;  %v9680_v19 = vld [vmem:[#allocation5 + $0x74] sm:$0xf0]  ;;  %v6733_v20 = vor.u32 %v9675_v15, %v6730_v17  ;;  %v7058_v10 = vld [vmem:[#allocation7 + $0xf8] sm:$0xf0]  ;;  %v9755_v15 = vld [vmem:[#allocation7 + $0xcc] sm:$0xf0] }
  0x56   :  { %942 = vmatpush.bf16.msra.mxu1 %v6893_v23  ;;  %v6737_v21 = vor.u32 %v9680_v19, %v6736_v18  ;;  %v6738_v23 = vld [vmem:[#allocation5 + $0x78] sm:$0xf0]  ;;  %v7061_v17 = vor.u32 %v9758_v9, %v7058_v10  ;;  %v9753_v18 = vld [vmem:[#allocation7 + $0xc4] sm:$0xf]  ;;  %v7034_v19 = vld [vmem:[#allocation7 + $0xd0] sm:$0xf0] }
  0x57   :  { %955 = vmatpush.bf16.msra.mxu2 %v6897_v24  ;;  %v10717_v24 = vperm.slane %v113_v11, 0  ;;  %v6741_v26 = vor.u32 %v9676_v22, %v6738_v23  ;;  %v9754_v22 = vld [vmem:[#allocation7 + $0xcc] sm:$0xf]  ;;  %v7042_v23 = vld [vmem:[#allocation7 + $0xd8] sm:$0xf0] }
  0x58   :  { %968 = vmatpush.bf16.msra.mxu3 %v6901_v27  ;;  %v6696_v27 = vld [vmem:[#allocation5 + $0x10] sm:$0xf]  ;;  %v6976_v9 = vld [vmem:[#allocation7 + $0x48] sm:$0xf]  ;;  %v9740_v10 = vld [vmem:[#allocation7 + $0x54] sm:$0xf0] }
  0x59   :  { %930 = vmatpush.bf16.msra.mxu0 %v6857_v31  ;;  %v6697_v30 = vor.u32 %v9671_v28, %v6696_v27  ;;  %v6698_v31 = vld [vmem:[#allocation5 + $0x30] sm:$0xf0]  ;;  %v7037_v27 = vor.u32 %v9753_v18, %v7034_v19  ;;  %v7016_v28 = vld [vmem:[#allocation7 + $0xa0] sm:$0xf]  ;;  %v6977_v18 = vor.u32 %v9740_v10, %v6976_v9  ;;  %v9801_v9 = vld [vmem:[#allocation5 + $0x144] sm:$0xf] }
  0x5a   :  { %943 = vmatpush.bf16.msra.mxu1 %v6861_v35  ;;  %v6701_v35 = vor.u32 %v9667_v29, %v6698_v31  ;;  %v9751_v29 = vld [vmem:[#allocation7 + $0xac] sm:$0xf0]  ;;  %v7045_v31 = vor.u32 %v9754_v22, %v7042_v23  ;;  %v6960_v22 = vld [vmem:[#allocation7 + $0x28] sm:$0xf]  ;;  %v9736_v23 = vld [vmem:[#allocation7 + $0x34] sm:$0xf0] }
  0x5b   :  { %956 = vmatpush.bf16.msra.mxu2 %v6865_v36  ;;  %v6705_v36 = vor.u32 %v9672_v33, %v6704_v32  ;;  %v9749_v32 = vld [vmem:[#allocation7 + $0xa4] sm:$0xf]  ;;  %v7018_v33 = vld [vmem:[#allocation7 + $0xb0] sm:$0xf0]  ;;  %v7017_v38 = vor.u32 %v9751_v29, %v7016_v28  ;;  %v6936_v29 = vld [vmem:[#allocation7] sm:$0xf] }
  0x5c   :  { %969 = vmatpush.bf16.msra.mxu3 %v6869_v39 }
  0x5d   :  { %931 = vmatpush.bf16.msra.mxu0 %v6825_v43 }
  0x5e   :  { %944 = vmatpush.bf16.msra.mxu1 %v6829_v47 }
  0x5f   :  { %957 = vmatpush.bf16.msra.mxu2 %v6833_v48 }
  0x60   :  { %330 = vmatmul.bf16.gmra.mxu0 %v9632_v16  ;;  %970 = vmatpush.bf16.msra.mxu3 %v6837_v51 }
  0x61   :  { %359 = vmatmul.bf16.gmra.mxu1 %v9632_v16  ;;  %932 = vmatpush.bf16.msra.mxu0 %v6793_v55 }
  0x62   :  { %388 = vmatmul.bf16.gmra.mxu2 %v9632_v16  ;;  %945 = vmatpush.bf16.msra.mxu1 %v6797_v59 }
  0x63   :  { %417 = vmatmul.bf16.gmra.mxu3 %v9632_v16  ;;  %958 = vmatpush.bf16.msra.mxu2 %v6801_v60  ;;  %v6729_v16 = vor.u32 %v9679_v14, %v6728_v13  ;;  %v7053_v13 = vor.u32 %v9757_v4, %v7050_v5  ;;  %v7032_v14 = vld [vmem:[#allocation7 + $0xc0] sm:$0xf]  ;;  %v9739_v4 = vld [vmem:[#allocation7 + $0x4c] sm:$0xf0] }
  0x64   :  { %971 = vmatpush.bf16.msra.mxu3 %v6805_v63 }
  0x65   :  { %933 = vmatpush.bf16.msra.mxu0 %v6761_v3 }
  0x66   :  { %946 = vmatpush.bf16.msra.mxu1 %v6765_v7 }
  0x67   :  { %959 = vmatpush.bf16.msra.mxu2 %v6769_v8  ;;  %v9760_v8 = vld [vmem:[#allocation7 + $0xf4] sm:$0xf0] }
  0x68   :  { %972 = vmatpush.bf16.msra.mxu3 %v6773_v12  ;;  %v7049_v12 = vor.u32 %v9759_v2, %v7048_v1 }
  0x69   :  { %934 = vmatpush.bf16.msra.mxu0 %v6729_v16  ;;  %v7057_v16 = vor.u32 %v9760_v8, %v7056_v6  ;;  %v6970_v8 = vld [vmem:[#allocation7 + $0x50] sm:$0xf0] }
  0x6a   :  { %947 = vmatpush.bf16.msra.mxu1 %v6733_v20  ;;  %v7040_v20 = vld [vmem:[#allocation7 + $0xc8] sm:$0xf] }
  0x6b   :  { %960 = vmatpush.bf16.msra.mxu2 %v6737_v21  ;;  %v9756_v21 = vld [vmem:[#allocation7 + $0xd4] sm:$0xf0] }
  0x6c   :  { %973 = vmatpush.bf16.msra.mxu3 %v6741_v26  ;;  %v7033_v26 = vor.u32 %v9755_v15, %v7032_v14 }
  0x6d   :  { %935 = vmatpush.bf16.msra.mxu0 %v6697_v30  ;;  %v7041_v30 = vor.u32 %v9756_v21, %v7040_v20  ;;  %v9733_v20 = vld [vmem:[#allocation7 + $0x24] sm:$0xf]  ;;  %v6954_v21 = vld [vmem:[#allocation7 + $0x30] sm:$0xf0] }
  0x6e   :  { %948 = vmatpush.bf16.msra.mxu1 %v6701_v35  ;;  %v9752_v35 = vld [vmem:[#allocation7 + $0xb4] sm:$0xf0] }
  0x6f   :  { %961 = vmatpush.bf16.msra.mxu2 %v6705_v36  ;;  %v9750_v36 = vld [vmem:[#allocation7 + $0xac] sm:$0xf] }
  0x70   :  { %974 = vmatpush.bf16.msra.mxu3 %v6709_v41  ;;  %v9747_v41 = vld [vmem:[#allocation7 + $0x8c] sm:$0xf0] }
  0xad   :  { %v316_v34 = vpop.f32.mrf.mxu0 }
  0xae   :  { %v317_v39 = vadd.f32 %v316_v34, %v10717_v24  ;;  %v345_v40 = vpop.f32.mrf.mxu1  ;;  %v7024_v34 = vld [vmem:[#allocation7 + $0xa8] sm:$0xf] }
  0xaf   :  { %v346_v42 = vadd.f32 %v345_v40, %v10719_v25  ;;  %v7000_v40 = vld [vmem:[#allocation7 + $0x80] sm:$0xf] }
  0xb0   :  { %v473_v43 = vmul.f32 0.5, %v317_v39  ;;  %v7021_v39 = vor.u32 %v9749_v32, %v7018_v33  ;;  %v9729_v33 = vld [vmem:[#allocation7 + $0x4] sm:$0xf] }
  0xb1   :  { %v477_v44 = vmul.f32 0.5, %v346_v42  ;;  %v7025_v42 = vor.u32 %v9752_v35, %v7024_v34  ;;  %v6938_v34 = vld [vmem:[#allocation7 + $0x10] sm:$0xf0]  ;;  %v6944_v35 = vld [vmem:[#allocation7 + $0x8] sm:$0xf] }
  0xb2   :  { %10409 = vtanh.f32 %v473_v43  ;;  %v7029_v43 = vor.u32 %v9750_v36, %v7026_v37  ;;  %v9732_v36 = vld [vmem:[#allocation7 + $0x14] sm:$0xf0]  ;;  %v9730_v37 = vld [vmem:[#allocation7 + $0xc] sm:$0xf] }
  0xb3   :  { %10411 = vtanh.f32 %v477_v44  ;;  %v9745_v44 = vld [vmem:[#allocation7 + $0x84] sm:$0xf] }
  0xb5   :  { %v374_v47 = vpop.f32.mrf.mxu2 }
  0xb6   :  { %v375_v48 = vadd.f32 %v374_v47, %v10723_v45  ;;  %v403_v49 = vpop.f32.mrf.mxu3  ;;  %v7002_v47 = vld [vmem:[#allocation7 + $0x90] sm:$0xf0] }
  0xb7   :  { %v404_v50 = vadd.f32 %v403_v49, %v10725_v46  ;;  %v9748_v49 = vld [vmem:[#allocation7 + $0x94] sm:$0xf0] }
  0xb8   :  { %10413 = vtanh.f32 %v375_v48  ;;  %v10410_v51 = vpop.eup %10409  ;;  %v7008_v48 = vld [vmem:[#allocation7 + $0x88] sm:$0xf] }
  0xb9   :  { %v482_v52 = vmul.f32 0.5, %v404_v50  ;;  %v10412_v53 = vpop.eup %10411  ;;  %v475_v54 = vmul.f32 0.5, %v10410_v51  ;;  %v9746_v50 = vld [vmem:[#allocation7 + $0x8c] sm:$0xf]  ;;  %v7010_v51 = vld [vmem:[#allocation7 + $0x98] sm:$0xf0] }
  0xba   :  { %v479_v55 = vmul.f32 0.5, %v10412_v53  ;;  %v7005_v53 = vor.u32 %v9745_v44, %v7002_v47  ;;  %v7288_v44 = vld [vmem:[#allocation5 + $0x1c0] sm:$0xf] }
  0xbb   :  { %10415 = vtanh.f32 %v482_v52  ;;  %v476_v56 = vadd.f32 0.5, %v475_v54  ;;  %v7001_v52 = vor.u32 %v9747_v41, %v7000_v40  ;;  %v6984_v54 = vld [vmem:[#allocation7 + $0x60] sm:$0xf]  ;;  %v6941_v40 = vor.u32 %v9729_v33, %v6938_v34 }
  0xbc   :  { %v480_v57 = vadd.f32 0.5, %v479_v55  ;;  %v9743_v55 = vld [vmem:[#allocation7 + $0x6c] sm:$0xf0]  ;;  %v6945_v41 = vor.u32 %v9732_v36, %v6944_v35  ;;  %v9821_v47 = vld [vmem:[#allocation5 + $0x1dc] sm:$0xf0] }
  0xbd   :  { %v6985_v1 = vor.u32 %v9743_v55, %v6984_v54  ;;  %v9818_v55 = vld [vmem:[#allocation5 + $0x1cc] sm:$0xf]  ;;  %v7160_v33 = vld [vmem:[#allocation5 + $0xc0] sm:$0xf]  ;;  %v9785_v35 = vld [vmem:[#allocation5 + $0xc4] sm:$0xf] }
  0xbe   :  { %v10414_v58 = vpop.eup %10413  ;;  %v486_v59 = vmul.f32 0.0, %v480_v57  ;;  %v7013_v57 = vor.u32 %v9746_v50, %v7010_v51  ;;  %v7290_v50 = vld [vmem:[#allocation5 + $0x1e0] sm:$0xf0]  ;;  %v7296_v51 = vld [vmem:[#allocation5 + $0x1c8] sm:$0xf] }
  0xbf   :  { %v487_v60 = vmul.f32 %v10414_v58, %v476_v56  ;;  %v7009_v56 = vor.u32 %v9748_v49, %v7008_v48  ;;  %v9741_v58 = vld [vmem:[#allocation7 + $0x64] sm:$0xf]  ;;  %v7289_v49 = vor.u32 %v9821_v47, %v7288_v44  ;;  %v9789_v34 = vld [vmem:[#allocation5 + $0xdc] sm:$0xf0] }
  0xc0   :  { %v9817_v48 = vld [vmem:[#allocation5 + $0x1c4] sm:$0xf]  ;;  %v7161_v36 = vor.u32 %v9789_v34, %v7160_v33  ;;  %v7128_v44 = vld [vmem:[#allocation5 + $0x80] sm:$0xf]  ;;  %v7072_v33 = vld [vmem:[#allocation5 + $0x8] sm:$0xf] }
  0xc1   :  { %v10416_v61 = vpop.eup %10415  ;;  %v10729_v62 = vadd.f32 %v487_v60, %v486_v59  ;;  %v6986_v59 = vld [vmem:[#allocation7 + $0x70] sm:$0xf0]  ;;  %v6992_v60 = vld [vmem:[#allocation7 + $0x68] sm:$0xf] }
  0xc2   :  { %v484_v63 = vmul.f32 0.5, %v10416_v61  ;;  %v9744_v61 = vld [vmem:[#allocation7 + $0x74] sm:$0xf0]  ;;  %v6989_v2 = vor.u32 %v9741_v58, %v6986_v59  ;;  %v9813_v59 = vld [vmem:[#allocation5 + $0x19c] sm:$0xf0] }
  0xc3   :  { %10417 = vtanh.f32 %v10729_v62  ;;  %v6993_v5 = vor.u32 %v9744_v61, %v6992_v60  ;;  %v9809_v60 = vld [vmem:[#allocation5 + $0x184] sm:$0xf]  ;;  %v9766_v34 = vld [vmem:[#allocation5 + $0x24] sm:$0xf0] }
  0xc4   :  { %v485_v0 = vadd.f32 0.5, %v484_v63  ;;  %v9742_v63 = vld [vmem:[#allocation7 + $0x6c] sm:$0xf]  ;;  %v7258_v61 = vld [vmem:[#allocation5 + $0x1a0] sm:$0xf0] }
  0xc9   :  { %v10418_v3 = vpop.eup %10417 }
  0xca   :  { %v490_v7 = vmul.f32 %v10418_v3, %v485_v0  ;;  %v6994_v0 = vld [vmem:[#allocation7 + $0x78] sm:$0xf0]  ;;  %v6968_v3 = vld [vmem:[#allocation7 + $0x40] sm:$0xf] }
  0xcb   :  { %v6997_v6 = vor.u32 %v9742_v63, %v6994_v0  ;;  %v6969_v14 = vor.u32 %v9739_v4, %v6968_v3  ;;  %v7261_v0 = vor.u32 %v9809_v60, %v7258_v61  ;;  %v9810_v3 = vld [vmem:[#allocation5 + $0x18c] sm:$0xf]  ;;  %v10746_v61 = vpop.f32.mrf.mxu2 }
  0xcc   :  { %v10732_v11 = vpack.c.bf16 %v490_v7, %v490_v7  ;;  %v9737_v7 = vld [vmem:[#allocation7 + $0x44] sm:$0xf] }
  0xcd   :  { %v6973_v15 = vor.u32 %v9737_v7, %v6970_v8  ;;  %v7224_v7 = vld [vmem:[#allocation5 + $0x140] sm:$0xf] }
  0xce   :  { %884 = vmatmul.bf16.vlgmr.msrb.gmra.mxu0 %v10732_v11  ;;  %897 = vmatmul.bf16.vlgmr.msrb.gmra.mxu1 %v10732_v11  ;;  %v9805_v8 = vld [vmem:[#allocation5 + $0x15c] sm:$0xf0] }
  0xcf   :  { %910 = vmatmul.bf16.vlgmr.msrb.gmra.mxu2 %v10732_v11  ;;  %923 = vmatmul.bf16.vlgmr.msrb.gmra.mxu3 %v10732_v11  ;;  %v7225_v10 = vor.u32 %v9805_v8, %v7224_v7 }
  0xd0   :  { %1172 = vmatpush.bf16.msrb.mxu0 %v7049_v12  ;;  %1185 = vmatpush.bf16.msrb.mxu1 %v7053_v13  ;;  %v9738_v12 = vld [vmem:[#allocation7 + $0x4c] sm:$0xf]  ;;  %v6978_v13 = vld [vmem:[#allocation7 + $0x58] sm:$0xf0] }
  0xd1   :  { %1198 = vmatpush.bf16.msrb.mxu2 %v7057_v16  ;;  %1211 = vmatpush.bf16.msrb.mxu3 %v7061_v17  ;;  %v6952_v16 = vld [vmem:[#allocation7 + $0x20] sm:$0xf]  ;;  %v9735_v17 = vld [vmem:[#allocation7 + $0x2c] sm:$0xf0]  ;;  %v6981_v19 = vor.u32 %v9738_v12, %v6978_v13  ;;  %v7226_v12 = vld [vmem:[#allocation5 + $0x160] sm:$0xf0] }
  0xd2   :  { %v6953_v28 = vor.u32 %v9735_v17, %v6952_v16  ;;  %v7232_v13 = vld [vmem:[#allocation5 + $0x148] sm:$0xf]  ;;  %v9802_v17 = vld [vmem:[#allocation5 + $0x14c] sm:$0xf] }
  0xd4   :  { %1173 = vmatpush.bf16.msrb.mxu0 %v7033_v26  ;;  %1186 = vmatpush.bf16.msrb.mxu1 %v7037_v27  ;;  %v9734_v26 = vld [vmem:[#allocation7 + $0x2c] sm:$0xf]  ;;  %v6962_v27 = vld [vmem:[#allocation7 + $0x38] sm:$0xf0] }
  0xd5   :  { %1199 = vmatpush.bf16.msrb.mxu2 %v7041_v30  ;;  %1212 = vmatpush.bf16.msrb.mxu3 %v7045_v31  ;;  %v9731_v30 = vld [vmem:[#allocation7 + $0xc] sm:$0xf0]  ;;  %v6961_v31 = vor.u32 %v9736_v23, %v6960_v22  ;;  %v6965_v32 = vor.u32 %v9734_v26, %v6962_v27  ;;  %v9793_v22 = vld [vmem:[#allocation5 + $0x104] sm:$0xf] }
  0xd6   :  { %v7194_v23 = vld [vmem:[#allocation5 + $0x120] sm:$0xf0] }
  0xd7   :  { %v7197_v27 = vor.u32 %v9793_v22, %v7194_v23  ;;  %v9770_v22 = vld [vmem:[#allocation5 + $0x4c] sm:$0xf] }
  0xd8   :  { %1174 = vmatpush.bf16.msrb.mxu0 %v7017_v38  ;;  %1187 = vmatpush.bf16.msrb.mxu1 %v7021_v39  ;;  %v6946_v38 = vld [vmem:[#allocation7 + $0x18] sm:$0xf0]  ;;  %v6937_v39 = vor.u32 %v9731_v30, %v6936_v29  ;;  %v9794_v29 = vld [vmem:[#allocation5 + $0x10c] sm:$0xf] }
  0xd9   :  { %1200 = vmatpush.bf16.msrb.mxu2 %v7025_v42  ;;  %1213 = vmatpush.bf16.msrb.mxu3 %v7029_v43  ;;  %v6949_v42 = vor.u32 %v9730_v37, %v6946_v38  ;;  %v10652_v43 = vmov 0   ;;  %v7162_v37 = vld [vmem:[#allocation5 + $0xe0] sm:$0xf0]  ;;  %v7168_v38 = vld [vmem:[#allocation5 + $0xc8] sm:$0xf] }
  0xda   :  { %v7106_v23 = vld [vmem:[#allocation5 + $0x68] sm:$0xf0] }
  0xdc   :  { %1175 = vmatpush.bf16.msrb.mxu0 %v7001_v52  ;;  %1188 = vmatpush.bf16.msrb.mxu1 %v7005_v53  ;;  %v9822_v52 = vld [vmem:[#allocation5 + $0x1e4] sm:$0xf0]  ;;  %v7293_v53 = vor.u32 %v9817_v48, %v7290_v50  ;;  %v9781_v48 = vld [vmem:[#allocation5 + $0x9c] sm:$0xf0]  ;;  %v7130_v50 = vld [vmem:[#allocation5 + $0xa0] sm:$0xf0] }
  0xdd   :  { %1201 = vmatpush.bf16.msrb.mxu2 %v7009_v56  ;;  %1214 = vmatpush.bf16.msrb.mxu3 %v7013_v57  ;;  %v7297_v54 = vor.u32 %v9822_v52, %v7296_v51  ;;  %v7298_v56 = vld [vmem:[#allocation5 + $0x1e8] sm:$0xf0]  ;;  %v7256_v57 = vld [vmem:[#allocation5 + $0x180] sm:$0xf]  ;;  %v7136_v51 = vld [vmem:[#allocation5 + $0x88] sm:$0xf] }
  0xde   :  { %936 = vmatmul.bf16.vlgmr.msra.gmra.mxu0 %v10732_v11  ;;  %949 = vmatmul.bf16.vlgmr.msra.gmra.mxu1 %v10732_v11  ;;  %v7301_v58 = vor.u32 %v9818_v55, %v7298_v56  ;;  %v7257_v63 = vor.u32 %v9813_v59, %v7256_v57  ;;  %v9782_v52 = vld [vmem:[#allocation5 + $0xa4] sm:$0xf0]  ;;  %v10744_v55 = vpop.f32.mrf.mxu1  ;;  %v7129_v56 = vor.u32 %v9781_v48, %v7128_v44  ;;  %v7138_v57 = vld [vmem:[#allocation5 + $0xa8] sm:$0xf0]  ;;  %v7312_v48 = vld [vmem:[#allocation5 + $0x1d8] sm:$0xf] }
  0xdf   :  { %962 = vmatmul.bf16.vlgmr.msra.gmra.mxu2 %v10732_v11  ;;  %975 = vmatmul.bf16.vlgmr.msra.gmra.mxu3 %v10732_v11  ;;  %v6957_v11 = vor.u32 %v9733_v20, %v6954_v21  ;;  %v9797_v21 = vld [vmem:[#allocation5 + $0x11c] sm:$0xf0]  ;;  %v7137_v59 = vor.u32 %v9782_v52, %v7136_v51  ;;  %v7314_v52 = vld [vmem:[#allocation5 + $0x1f8] sm:$0xf0] }
  0xe0   :  { %1176 = vmatpush.bf16.msrb.mxu0 %v6985_v1  ;;  %1189 = vmatpush.bf16.msrb.mxu1 %v6989_v2  ;;  %v7264_v1 = vld [vmem:[#allocation5 + $0x188] sm:$0xf] }
  0xe1   :  { %1202 = vmatpush.bf16.msrb.mxu2 %v6993_v5  ;;  %1215 = vmatpush.bf16.msrb.mxu3 %v6997_v6  ;;  %v9814_v2 = vld [vmem:[#allocation5 + $0x1a4] sm:$0xf0]  ;;  %v7266_v5 = vld [vmem:[#allocation5 + $0x1a8] sm:$0xf0] }
  0xe2   :  { %v7265_v4 = vor.u32 %v9814_v2, %v7264_v1  ;;  %v7269_v6 = vor.u32 %v9810_v3, %v7266_v5  ;;  %v10754_v2 = vpop.f32.mrf.mxu2 }
  0xe4   :  { %1177 = vmatpush.bf16.msrb.mxu0 %v6969_v14  ;;  %1190 = vmatpush.bf16.msrb.mxu1 %v6973_v15  ;;  %v9806_v14 = vld [vmem:[#allocation5 + $0x164] sm:$0xf0]  ;;  %v7229_v15 = vor.u32 %v9801_v9, %v7226_v12  ;;  %v9773_v12 = vld [vmem:[#allocation5 + $0x5c] sm:$0xf0] }
  0xe5   :  { %1203 = vmatpush.bf16.msrb.mxu2 %v6977_v18  ;;  %1216 = vmatpush.bf16.msrb.mxu3 %v6981_v19  ;;  %v7233_v16 = vor.u32 %v9806_v14, %v7232_v13  ;;  %v7234_v18 = vld [vmem:[#allocation5 + $0x168] sm:$0xf0]  ;;  %v7192_v19 = vld [vmem:[#allocation5 + $0x100] sm:$0xf]  ;;  %v9769_v13 = vld [vmem:[#allocation5 + $0x44] sm:$0xf] }
  0xe6   :  { %v7237_v20 = vor.u32 %v9802_v17, %v7234_v18  ;;  %v7193_v26 = vor.u32 %v9797_v21, %v7192_v19  ;;  %v10752_v1 = vpop.f32.mrf.mxu1  ;;  %v9774_v17 = vld [vmem:[#allocation5 + $0x64] sm:$0xf0] }
  0xe8   :  { %1178 = vmatpush.bf16.msrb.mxu0 %v6953_v28  ;;  %1191 = vmatpush.bf16.msrb.mxu1 %v6957_v11  ;;  %v7200_v28 = vld [vmem:[#allocation5 + $0x108] sm:$0xf] }
  0xe9   :  { %1204 = vmatpush.bf16.msrb.mxu2 %v6961_v31  ;;  %1217 = vmatpush.bf16.msrb.mxu3 %v6965_v32  ;;  %v9798_v11 = vld [vmem:[#allocation5 + $0x124] sm:$0xf0]  ;;  %v7202_v31 = vld [vmem:[#allocation5 + $0x128] sm:$0xf0] }
  0xea   :  { %v7201_v30 = vor.u32 %v9798_v11, %v7200_v28  ;;  %v7205_v32 = vor.u32 %v9794_v29, %v7202_v31  ;;  %v9765_v28 = vld [vmem:[#allocation5 + $0x1c] sm:$0xf0]  ;;  %v9761_v11 = vld [vmem:[#allocation5 + $0x4] sm:$0xf] }
  0xec   :  { %1179 = vmatpush.bf16.msrb.mxu0 %v6937_v39  ;;  %1192 = vmatpush.bf16.msrb.mxu1 %v6941_v40  ;;  %v9790_v39 = vld [vmem:[#allocation5 + $0xe4] sm:$0xf0]  ;;  %v7165_v40 = vor.u32 %v9785_v35, %v7162_v37  ;;  %v9762_v37 = vld [vmem:[#allocation5 + $0xc] sm:$0xf] }
  0xed   :  { %1205 = vmatpush.bf16.msrb.mxu2 %v6945_v41  ;;  %1218 = vmatpush.bf16.msrb.mxu3 %v6949_v42  ;;  %v7169_v41 = vor.u32 %v9790_v39, %v7168_v38  ;;  %v9786_v42 = vld [vmem:[#allocation5 + $0xcc] sm:$0xf]  ;;  %v7304_v39 = vld [vmem:[#allocation5 + $0x1d0] sm:$0xf] }
  0xee   :  { %v10760_v5 = vpop.f32.mrf.mxu1  ;;  %v7074_v38 = vld [vmem:[#allocation5 + $0x28] sm:$0xf0] }
  0xef   :  { %1180 = vmatmul.bf16.vlgmr.msrb.gmra.mxu0 %v10652_v43  ;;  %1193 = vmatmul.bf16.vlgmr.msrb.gmra.mxu1 %v10652_v43 }
  0xf0   :  { %1206 = vmatmul.bf16.vlgmr.msrb.gmra.mxu2 %v10652_v43  ;;  %1219 = vmatmul.bf16.vlgmr.msrb.gmra.mxu3 %v10652_v43  ;;  %v7170_v43 = vld [vmem:[#allocation5 + $0xe8] sm:$0xf0] }
  0xf1   :  { %1662 = vmatpush.bf16.msra.mxu0 %v7289_v49  ;;  %1675 = vmatpush.bf16.msra.mxu1 %v7293_v53  ;;  %v7173_v47 = vor.u32 %v9786_v42, %v7170_v43  ;;  %v9777_v49 = vld [vmem:[#allocation5 + $0x84] sm:$0xf]  ;;  %v9778_v53 = vld [vmem:[#allocation5 + $0x8c] sm:$0xf]  ;;  %v9819_v42 = vld [vmem:[#allocation5 + $0x1d4] sm:$0xf] }
  0xf2   :  { %1688 = vmatpush.bf16.msra.mxu2 %v7297_v54  ;;  %1701 = vmatpush.bf16.msra.mxu3 %v7301_v58  ;;  %v10742_v54 = vpop.f32.mrf.mxu0  ;;  %v7133_v58 = vor.u32 %v9777_v49, %v7130_v50  ;;  %v7141_v60 = vor.u32 %v9778_v53, %v7138_v57  ;;  %v7306_v43 = vld [vmem:[#allocation5 + $0x1f0] sm:$0xf0]  ;;  %v9824_v49 = vld [vmem:[#allocation5 + $0x1f4] sm:$0xf0]  ;;  %v9820_v50 = vld [vmem:[#allocation5 + $0x1dc] sm:$0xf] }
  0xf3   :  { %v7313_v51 = vor.u32 %v9824_v49, %v7312_v48  ;;  %v7272_v53 = vld [vmem:[#allocation5 + $0x190] sm:$0xf]  ;;  %v7317_v57 = vor.u32 %v9820_v50, %v7314_v52  ;;  %v9796_v50 = vld [vmem:[#allocation5 + $0x11c] sm:$0xf] }
  0xf5   :  { %1663 = vmatpush.bf16.msra.mxu0 %v7257_v63  ;;  %1676 = vmatpush.bf16.msra.mxu1 %v7261_v0  ;;  %v10748_v63 = vpop.f32.mrf.mxu3 }
  0xf6   :  { %1689 = vmatpush.bf16.msra.mxu2 %v7265_v4  ;;  %1702 = vmatpush.bf16.msra.mxu3 %v7269_v6  ;;  %v10762_v6 = vpop.f32.mrf.mxu2  ;;  %v10768_v9 = vpop.f32.mrf.mxu1 }
  0xf9   :  { %1664 = vmatpush.bf16.msra.mxu0 %v7225_v10  ;;  %1677 = vmatpush.bf16.msra.mxu1 %v7229_v15  ;;  %v7096_v10 = vld [vmem:[#allocation5 + $0x40] sm:$0xf]  ;;  %v7098_v15 = vld [vmem:[#allocation5 + $0x60] sm:$0xf0] }
  0xfa   :  { %1690 = vmatpush.bf16.msra.mxu2 %v7233_v16  ;;  %1703 = vmatpush.bf16.msra.mxu3 %v7237_v20  ;;  %v10750_v0 = vpop.f32.mrf.mxu0  ;;  %v7097_v14 = vor.u32 %v9773_v12, %v7096_v10  ;;  %v7104_v16 = vld [vmem:[#allocation5 + $0x48] sm:$0xf]  ;;  %v7101_v20 = vor.u32 %v9769_v13, %v7098_v15  ;;  %v7280_v10 = vld [vmem:[#allocation5 + $0x198] sm:$0xf]  ;;  %v7282_v15 = vld [vmem:[#allocation5 + $0x1b8] sm:$0xf0] }
  0xfb   :  { %v7105_v21 = vor.u32 %v9774_v17, %v7104_v16  ;;  %v9816_v13 = vld [vmem:[#allocation5 + $0x1b4] sm:$0xf0] }
  0xfd   :  { %1665 = vmatpush.bf16.msra.mxu0 %v7193_v26  ;;  %1678 = vmatpush.bf16.msra.mxu1 %v7197_v27  ;;  %v10756_v3 = vpop.f32.mrf.mxu3  ;;  %v7109_v26 = vor.u32 %v9770_v22, %v7106_v23  ;;  %v7064_v27 = vld [vmem:[#allocation5] sm:$0xf]  ;;  %v7240_v22 = vld [vmem:[#allocation5 + $0x150] sm:$0xf] }
  0xfe   :  { %1691 = vmatpush.bf16.msra.mxu2 %v7201_v30  ;;  %1704 = vmatpush.bf16.msra.mxu3 %v7205_v32  ;;  %v10770_v18 = vpop.f32.mrf.mxu2  ;;  %v10776_v30 = vpop.f32.mrf.mxu1  ;;  %v7065_v31 = vor.u32 %v9765_v28, %v7064_v27  ;;  %v7066_v32 = vld [vmem:[#allocation5 + $0x20] sm:$0xf0]  ;;  %v9807_v23 = vld [vmem:[#allocation5 + $0x16c] sm:$0xf0]  ;;  %v7242_v28 = vld [vmem:[#allocation5 + $0x170] sm:$0xf0] }
  0xff   :  { %v7069_v35 = vor.u32 %v9761_v11, %v7066_v32  ;;  %v7241_v27 = vor.u32 %v9807_v23, %v7240_v22  ;;  %v7248_v11 = vld [vmem:[#allocation5 + $0x158] sm:$0xf] }
 0x101   :  { %1666 = vmatpush.bf16.msra.mxu0 %v7161_v36  ;;  %1679 = vmatpush.bf16.msra.mxu1 %v7165_v40  ;;  %v7073_v36 = vor.u32 %v9766_v34, %v7072_v33  ;;  %v7077_v40 = vor.u32 %v9762_v37, %v7074_v38  ;;  %v7250_v37 = vld [vmem:[#allocation5 + $0x178] sm:$0xf0] }
 0x102   :  { %1692 = vmatpush.bf16.msra.mxu2 %v7169_v41  ;;  %1705 = vmatpush.bf16.msra.mxu3 %v7173_v47  ;;  %v10758_v4 = vpop.f32.mrf.mxu0  ;;  %v9823_v41 = vld [vmem:[#allocation5 + $0x1ec] sm:$0xf0]  ;;  %v7309_v47 = vor.u32 %v9819_v42, %v7306_v43  ;;  %v7210_v43 = vld [vmem:[#allocation5 + $0x130] sm:$0xf0] }
 0x103   :  { %v7305_v44 = vor.u32 %v9823_v41, %v7304_v39  ;;  %v7208_v39 = vld [vmem:[#allocation5 + $0x110] sm:$0xf]  ;;  %v9795_v41 = vld [vmem:[#allocation5 + $0x114] sm:$0xf] }
 0x104   :  { %v7213_v48 = vor.u32 %v9795_v41, %v7210_v43  ;;  %v9775_v43 = vld [vmem:[#allocation5 + $0x6c] sm:$0xf0] }
 0x105   :  { %1667 = vmatpush.bf16.msra.mxu0 %v7129_v56  ;;  %1680 = vmatpush.bf16.msra.mxu1 %v7133_v58  ;;  %v10764_v7 = vpop.f32.mrf.mxu3  ;;  %v9815_v56 = vld [vmem:[#allocation5 + $0x1ac] sm:$0xf0] }
 0x106   :  { %1693 = vmatpush.bf16.msra.mxu2 %v7137_v59  ;;  %1706 = vmatpush.bf16.msra.mxu3 %v7141_v60  ;;  %v7273_v58 = vor.u32 %v9815_v56, %v7272_v53  ;;  %v9811_v59 = vld [vmem:[#allocation5 + $0x194] sm:$0xf]  ;;  %v10778_v16 = vpop.f32.mrf.mxu2  ;;  %v10784_v33 = vpop.f32.mrf.mxu1  ;;  %v7176_v53 = vld [vmem:[#allocation5 + $0xd0] sm:$0xf] }
 0x107   :  { %v7274_v60 = vld [vmem:[#allocation5 + $0x1b0] sm:$0xf0]  ;;  %v9791_v56 = vld [vmem:[#allocation5 + $0xec] sm:$0xf0] }
 0x108   :  { %v7277_v12 = vor.u32 %v9811_v59, %v7274_v60  ;;  %v7177_v60 = vor.u32 %v9791_v56, %v7176_v53  ;;  %v9772_v53 = vld [vmem:[#allocation5 + $0x5c] sm:$0xf] }
 0x109   :  { %1668 = vmatpush.bf16.msra.mxu0 %v7097_v14  ;;  %1681 = vmatpush.bf16.msra.mxu1 %v7101_v20  ;;  %v9812_v14 = vld [vmem:[#allocation5 + $0x19c] sm:$0xf]  ;;  %v7281_v20 = vor.u32 %v9816_v13, %v7280_v10  ;;  %v7178_v10 = vld [vmem:[#allocation5 + $0xf0] sm:$0xf0]  ;;  %v9792_v13 = vld [vmem:[#allocation5 + $0xf4] sm:$0xf0] }
 0x10a   :  { %v10766_v8 = vpop.f32.mrf.mxu0  ;;  %1694 = vmatpush.bf16.msra.mxu2 %v7105_v21  ;;  %1707 = vmatpush.bf16.msra.mxu3 %v7109_v26  ;;  %v7285_v21 = vor.u32 %v9812_v14, %v7282_v15  ;;  %v9803_v26 = vld [vmem:[#allocation5 + $0x154] sm:$0xf]  ;;  %v7122_v56 = vld [vmem:[#allocation5 + $0x78] sm:$0xf0] }
 0x10b   :  { %v7245_v34 = vor.u32 %v9803_v26, %v7242_v28  ;;  %v9783_v28 = vld [vmem:[#allocation5 + $0xac] sm:$0xf0] }
 0x10d   :  { %v10772_v19 = vpop.f32.mrf.mxu3  ;;  %1669 = vmatpush.bf16.msra.mxu0 %v7065_v31  ;;  %1682 = vmatpush.bf16.msra.mxu1 %v7069_v35  ;;  %v9808_v31 = vld [vmem:[#allocation5 + $0x174] sm:$0xf0] }
 0x10e   :  { %1695 = vmatpush.bf16.msra.mxu2 %v7073_v36  ;;  %1708 = vmatpush.bf16.msra.mxu3 %v7077_v40  ;;  %v7249_v35 = vor.u32 %v9808_v31, %v7248_v11  ;;  %v9804_v36 = vld [vmem:[#allocation5 + $0x15c] sm:$0xf]  ;;  %v9799_v40 = vld [vmem:[#allocation5 + $0x12c] sm:$0xf0]  ;;  %v10792_v26 = vpop.f32.mrf.mxu1  ;;  %v9779_v11 = vld [vmem:[#allocation5 + $0x94] sm:$0xf] }
 0x10f   :  { %v7253_v38 = vor.u32 %v9804_v36, %v7250_v37  ;;  %v7209_v42 = vor.u32 %v9799_v40, %v7208_v39  ;;  %11107 = vst [vmem:[#allocation10_spill] sm:$0xff] %v10792_v26  ;;  %v9784_v36 = vld [vmem:[#allocation5 + $0xb4] sm:$0xf0]  ;;  %v9780_v39 = vld [vmem:[#allocation5 + $0x9c] sm:$0xf] }
 0x110   :  { %v7154_v40 = vld [vmem:[#allocation5 + $0xb8] sm:$0xf0] }
 0x111   :  { %1714 = vmatpush.bf16.msrb.mxu0 %v7305_v44  ;;  %1727 = vmatpush.bf16.msrb.mxu1 %v7309_v47  ;;  %v7216_v44 = vld [vmem:[#allocation5 + $0x118] sm:$0xf]  ;;  %v7157_v41 = vor.u32 %v9780_v39, %v7154_v40  ;;  %v7090_v39 = vld [vmem:[#allocation5 + $0x38] sm:$0xf0] }
 0x112   :  { %v10774_v29 = vpop.f32.mrf.mxu0  ;;  %1740 = vmatpush.bf16.msrb.mxu2 %v7313_v51  ;;  %1753 = vmatpush.bf16.msrb.mxu3 %v7317_v57  ;;  %v9800_v47 = vld [vmem:[#allocation5 + $0x134] sm:$0xf0]  ;;  %v7218_v51 = vld [vmem:[#allocation5 + $0x138] sm:$0xf0]  ;;  %v9787_v57 = vld [vmem:[#allocation5 + $0xd4] sm:$0xf] }
 0x113   :  { %v7217_v49 = vor.u32 %v9800_v47, %v7216_v44  ;;  %v7221_v52 = vor.u32 %v9796_v50, %v7218_v51  ;;  %v7181_v14 = vor.u32 %v9787_v57, %v7178_v10  ;;  %v9771_v44 = vld [vmem:[#allocation5 + $0x54] sm:$0xf]  ;;  %v9776_v50 = vld [vmem:[#allocation5 + $0x74] sm:$0xf0]  ;;  %v319_v57 = vadd.f32 %v10742_v54, %v10717_v24 }
 0x114   :  { %v7082_v54 = vld [vmem:[#allocation5 + $0x30] sm:$0xf0] }
 0x115   :  { %v10780_v17 = vpop.f32.mrf.mxu3  ;;  %1715 = vmatpush.bf16.msrb.mxu0 %v7273_v58  ;;  %1728 = vmatpush.bf16.msrb.mxu1 %v7277_v12  ;;  %v10786_v58 = vpop.f32.mrf.mxu2  ;;  %v7184_v12 = vld [vmem:[#allocation5 + $0xd8] sm:$0xf] }
 0x116   :  { %1741 = vmatpush.bf16.msrb.mxu2 %v7281_v20  ;;  %1754 = vmatpush.bf16.msrb.mxu3 %v7285_v21  ;;  %v7185_v15 = vor.u32 %v9792_v13, %v7184_v12  ;;  %v9788_v20 = vld [vmem:[#allocation5 + $0xdc] sm:$0xf]  ;;  %v7125_v13 = vor.u32 %v9772_v53, %v7122_v56 }
 0x117   :  { %v7186_v21 = vld [vmem:[#allocation5 + $0xf8] sm:$0xf0] }
 0x118   :  { %v7189_v22 = vor.u32 %v9788_v20, %v7186_v21  ;;  %v7080_v20 = vld [vmem:[#allocation5 + $0x10] sm:$0xf] }
 0x119   :  { %1716 = vmatpush.bf16.msrb.mxu0 %v7241_v27  ;;  %1729 = vmatpush.bf16.msrb.mxu1 %v7245_v34  ;;  %v7144_v27 = vld [vmem:[#allocation5 + $0x90] sm:$0xf]  ;;  %v7146_v34 = vld [vmem:[#allocation5 + $0xb0] sm:$0xf0] }
 0x11a   :  { %v10782_v32 = vpop.f32.mrf.mxu0  ;;  %1742 = vmatpush.bf16.msrb.mxu2 %v7249_v35  ;;  %1755 = vmatpush.bf16.msrb.mxu3 %v7253_v38  ;;  %v7145_v31 = vor.u32 %v9783_v28, %v7144_v27  ;;  %v7152_v35 = vld [vmem:[#allocation5 + $0x98] sm:$0xf]  ;;  %v7149_v37 = vor.u32 %v9779_v11, %v7146_v34  ;;  %v9767_v21 = vld [vmem:[#allocation5 + $0x2c] sm:$0xf0] }
 0x11b   :  { %v7153_v38 = vor.u32 %v9784_v36, %v7152_v35  ;;  %v7081_v11 = vor.u32 %v9767_v21, %v7080_v20  ;;  %v9768_v34 = vld [vmem:[#allocation5 + $0x34] sm:$0xf0]  ;;  %v9764_v35 = vld [vmem:[#allocation5 + $0x1c] sm:$0xf] }
 0x11c   :  { %v7093_v40 = vor.u32 %v9764_v35, %v7090_v39  ;;  %v455_v35 = vld [vmem:[%s11104_s5] sm:$0xf]  ;;  %v9853_v39 = vld [vmem:[#allocation7 + $0xe4] sm:$0xf] }
 0x11d   :  { %v10788_v59 = vpop.f32.mrf.mxu3  ;;  %1717 = vmatpush.bf16.msrb.mxu0 %v7209_v42  ;;  %1730 = vmatpush.bf16.msrb.mxu1 %v7213_v48  ;;  %v7112_v42 = vld [vmem:[#allocation5 + $0x50] sm:$0xf]  ;;  %v7114_v48 = vld [vmem:[#allocation5 + $0x70] sm:$0xf0]  ;;  %v10798_v10 = vpop.f32.mrf.mxu2 }
 0x11e   :  { %1743 = vmatpush.bf16.msrb.mxu2 %v7217_v49  ;;  %1756 = vmatpush.bf16.msrb.mxu3 %v7221_v52  ;;  %v7113_v47 = vor.u32 %v9775_v43, %v7112_v42  ;;  %v7120_v49 = vld [vmem:[#allocation5 + $0x58] sm:$0xf]  ;;  %v7117_v51 = vor.u32 %v9771_v44, %v7114_v48  ;;  %11108 = vst [vmem:[#allocation11_spill] sm:$0xff] %v10798_v10  ;;  %v7394_v10 = vld [vmem:[#allocation7 + $0x98] sm:$0xf0] }
 0x11f   :  { %v7121_v52 = vor.u32 %v9776_v50, %v7120_v49  ;;  %v406_v42 = vadd.f32 %v10748_v63, %v10725_v46 }
 0x121   :  { %1718 = vmatpush.bf16.msrb.mxu0 %v7177_v60  ;;  %1731 = vmatpush.bf16.msrb.mxu1 %v7181_v14  ;;  %v348_v60 = vadd.f32 %v10744_v55, %v10719_v25 }
 0x122   :  { %v10790_v23 = vpop.f32.mrf.mxu0  ;;  %1744 = vmatpush.bf16.msrb.mxu2 %v7185_v15  ;;  %1757 = vmatpush.bf16.msrb.mxu3 %v7189_v22  ;;  %v9763_v22 = vld [vmem:[#allocation5 + $0x14] sm:$0xf] }
 0x123   :  { %v7085_v55 = vor.u32 %v9763_v22, %v7082_v54 }
 0x125   :  { %1719 = vmatpush.bf16.msrb.mxu0 %v7145_v31  ;;  %1732 = vmatpush.bf16.msrb.mxu1 %v7149_v37  ;;  %v10800_v12 = vpop.f32.mrf.mxu3  ;;  %v7088_v31 = vld [vmem:[#allocation5 + $0x18] sm:$0xf] }
 0x126   :  { %1745 = vmatpush.bf16.msrb.mxu2 %v7153_v38  ;;  %11109 = vst [vmem:[#allocation12_spill] sm:$0xff] %v10800_v12  ;;  %1758 = vmatpush.bf16.msrb.mxu3 %v7157_v41  ;;  %v7089_v38 = vor.u32 %v9768_v34, %v7088_v31  ;;  %v377_v41 = vadd.f32 %v10746_v61, %v10723_v45  ;;  %v9848_v12 = vld [vmem:[#allocation7 + $0xb4] sm:$0xf0] }
 0x129   :  { %1720 = vmatpush.bf16.msrb.mxu0 %v7113_v47  ;;  %1733 = vmatpush.bf16.msrb.mxu1 %v7117_v51 }
 0x12a   :  { %1746 = vmatpush.bf16.msrb.mxu2 %v7121_v52  ;;  %1759 = vmatpush.bf16.msrb.mxu3 %v7125_v13 }
 0x12d   :  { %1721 = vmatpush.bf16.msrb.mxu0 %v7081_v11  ;;  %1734 = vmatpush.bf16.msrb.mxu1 %v7085_v55 }
 0x12e   :  { %1747 = vmatpush.bf16.msrb.mxu2 %v7089_v38  ;;  %1760 = vmatpush.bf16.msrb.mxu3 %v7093_v40  ;;  %v7434_v40 = vld [vmem:[#allocation7 + $0xf0] sm:$0xf0] }
 0x14b   :  { %v885_v14 = vpop.f32.mrf.mxu0  ;;  %v898_v15 = vpop.f32.mrf.mxu1 }
 0x14c   :  { %v1255_v27 = vadd.f32 %v885_v14, %v319_v57  ;;  %v1256_v28 = vadd.f32 %v898_v15, %v348_v60 }
 0x14e   :  { %v1259_v36 = vmul.f32 0.5, %v1255_v27  ;;  %v1263_v37 = vmul.f32 0.5, %v1256_v28 }
 0x150   :  { %10419 = vtanh.f32 %v1259_v36 }
 0x151   :  { %10421 = vtanh.f32 %v1263_v37  ;;  %v7432_v37 = vld [vmem:[#allocation7 + $0xe0] sm:$0xf] }
 0x152   :  { %v911_v43 = vpop.f32.mrf.mxu2  ;;  %v924_v44 = vpop.f32.mrf.mxu3 }
 0x153   :  { %v1257_v47 = vadd.f32 %v911_v43, %v377_v41  ;;  %v1258_v48 = vadd.f32 %v924_v44, %v406_v42  ;;  %v887_v49 = vpop.f32.mrf.mxu0  ;;  %v900_v50 = vpop.f32.mrf.mxu1  ;;  %v7440_v41 = vld [vmem:[#allocation7 + $0xe8] sm:$0xf]  ;;  %v9856_v43 = vld [vmem:[#allocation7 + $0xf4] sm:$0xf0]  ;;  %v9854_v44 = vld [vmem:[#allocation7 + $0xec] sm:$0xf] }
 0x154   :  { %v10821_v50 = vperm.slane %v455_v35, 1 }
 0x155   :  { %10423 = vtanh.f32 %v1257_v47  ;;  %v1268_v51 = vmul.f32 0.5, %v1258_v48  ;;  %v7442_v47 = vld [vmem:[#allocation7 + $0xf8] sm:$0xf0]  ;;  %v10817_v48 = vperm.slane %v455_v35, 0 }
 0x156   :  { %v10420_v52 = vpop.eup %10419 }
 0x157   :  { %v10422_v53 = vpop.eup %10421  ;;  %v1261_v56 = vmul.f32 0.5, %v10420_v52  ;;  %10425 = vtanh.f32 %v1268_v51  ;;  %v7437_v52 = vor.u32 %v9853_v39, %v7434_v40  ;;  %v7400_v39 = vld [vmem:[#allocation7 + $0xa0] sm:$0xf]  ;;  %v9847_v40 = vld [vmem:[#allocation7 + $0xac] sm:$0xf0] }
 0x158   :  { %v1265_v57 = vmul.f32 0.5, %v10422_v53  ;;  %v7416_v53 = vld [vmem:[#allocation7 + $0xc0] sm:$0xf] }
 0x159   :  { %v1262_v61 = vadd.f32 0.5, %v1261_v56  ;;  %v9851_v56 = vld [vmem:[#allocation7 + $0xcc] sm:$0xf0] }
 0x15a   :  { %v1266_v60 = vadd.f32 0.5, %v1265_v57  ;;  %v913_v13 = vpop.f32.mrf.mxu2  ;;  %v926_v63 = vpop.f32.mrf.mxu3 }
 0x15b   :  { %v10424_v14 = vpop.eup %10423  ;;  %v937_v15 = vpop.f32.mrf.mxu0  ;;  %v7445_v13 = vor.u32 %v9854_v44, %v7442_v47  ;;  %v9849_v63 = vld [vmem:[#allocation7 + $0xc4] sm:$0xf]  ;;  %v7402_v44 = vld [vmem:[#allocation7 + $0xb0] sm:$0xf0]  ;;  %v7408_v47 = vld [vmem:[#allocation7 + $0xa8] sm:$0xf] }
 0x15c   :  { %v950_v20 = vpop.f32.mrf.mxu1  ;;  %v1272_v21 = vmul.f32 %v1266_v60, %v10729_v62  ;;  %v1273_v22 = vmul.f32 %v10424_v14, %v1262_v61  ;;  %v9855_v62 = vld [vmem:[#allocation7 + $0xec] sm:$0xf0]  ;;  %v7441_v60 = vor.u32 %v9856_v43, %v7440_v41  ;;  %v7418_v14 = vld [vmem:[#allocation7 + $0xd0] sm:$0xf0]  ;;  %v9845_v43 = vld [vmem:[#allocation7 + $0xa4] sm:$0xf] }
 0x15d   :  { %v10426_v27 = vpop.eup %10425  ;;  %v7433_v51 = vor.u32 %v9855_v62, %v7432_v37 }
 0x15e   :  { %v10807_v28 = vadd.f32 %v1273_v22, %v1272_v21  ;;  %v1270_v11 = vmul.f32 0.5, %v10426_v27  ;;  %v7424_v21 = vld [vmem:[#allocation7 + $0xc8] sm:$0xf]  ;;  %v9852_v22 = vld [vmem:[#allocation7 + $0xd4] sm:$0xf0] }
 0x15f   :  { %v9850_v27 = vld [vmem:[#allocation7 + $0xcc] sm:$0xf]  ;;  %v7425_v41 = vor.u32 %v9852_v22, %v7424_v21  ;;  %v9841_v21 = vld [vmem:[#allocation7 + $0x84] sm:$0xf]  ;;  %v7409_v22 = vor.u32 %v9848_v12, %v7408_v47 }
 0x160   :  { %10427 = vtanh.f32 %v10807_v28  ;;  %v1271_v36 = vadd.f32 0.5, %v1270_v11  ;;  %v7426_v11 = vld [vmem:[#allocation7 + $0xd8] sm:$0xf0] }
 0x162   :  { %v10810_v54 = vpop.f32.mrf.mxu2  ;;  %v10812_v31 = vpop.f32.mrf.mxu3 }
 0x163   :  { %v939_v55 = vpop.f32.mrf.mxu0 }
 0x164   :  { %v952_v34 = vpop.f32.mrf.mxu1 }
 0x166   :  { %v10428_v38 = vpop.eup %10427 }
 0x167   :  { %v1276_v42 = vmul.f32 %v10428_v38, %v1271_v36  ;;  %v7417_v36 = vor.u32 %v9851_v56, %v7416_v53  ;;  %v7421_v38 = vor.u32 %v9849_v63, %v7418_v14  ;;  %v9846_v53 = vld [vmem:[#allocation7 + $0xac] sm:$0xf]  ;;  %v7405_v63 = vor.u32 %v9845_v43, %v7402_v44  ;;  %v9843_v14 = vld [vmem:[#allocation7 + $0x8c] sm:$0xf0]  ;;  %v7368_v43 = vld [vmem:[#allocation7 + $0x60] sm:$0xf] }
 0x168   :  { %v9839_v44 = vld [vmem:[#allocation7 + $0x6c] sm:$0xf0] }
 0x169   :  { %v10819_v49 = vpack.c.bf16 %v1276_v42, %v1276_v42  ;;  %v7429_v42 = vor.u32 %v9850_v27, %v7426_v11  ;;  %v7386_v11 = vld [vmem:[#allocation7 + $0x90] sm:$0xf0] }
 0x16a   :  { %v965_v57 = vpop.f32.mrf.mxu2  ;;  %v978_v61 = vpop.f32.mrf.mxu3  ;;  %v7389_v12 = vor.u32 %v9841_v21, %v7386_v11  ;;  %v9835_v11 = vld [vmem:[#allocation7 + $0x4c] sm:$0xf0] }
 0x16b   :  { %1670 = vmatmul.bf16.vlgmr.msra.gmra.mxu0 %v10819_v49  ;;  %1683 = vmatmul.bf16.vlgmr.msra.gmra.mxu1 %v10819_v49 }
 0x16c   :  { %1696 = vmatmul.bf16.vlgmr.msra.gmra.mxu2 %v10819_v49  ;;  %1709 = vmatmul.bf16.vlgmr.msra.gmra.mxu3 %v10819_v49  ;;  %v1181_v55 = vpop.f32.mrf.mxu0  ;;  %v1194_v34 = vpop.f32.mrf.mxu1 }
 0x16d   :  { %v1224_v37 = vadd.f32 %v1181_v55, %v937_v15  ;;  %v1225_v62 = vadd.f32 %v1194_v34, %v950_v20  ;;  %1959 = vmatpush.bf16.msra.mxu0 %v7433_v51  ;;  %1972 = vmatpush.bf16.msra.mxu1 %v7437_v52  ;;  %v7410_v15 = vld [vmem:[#allocation7 + $0xb8] sm:$0xf0]  ;;  %v10829_v20 = vperm.slane %v455_v35, 2  ;;  %v10831_v51 = vperm.slane %v455_v35, 3  ;;  %v7384_v52 = vld [vmem:[#allocation7 + $0x80] sm:$0xf] }
 0x16e   :  { %1985 = vmatpush.bf16.msra.mxu2 %v7441_v60  ;;  %1998 = vmatpush.bf16.msra.mxu3 %v7445_v13  ;;  %v7401_v13 = vor.u32 %v9847_v40, %v7400_v39  ;;  %v7413_v27 = vor.u32 %v9846_v53, %v7410_v15  ;;  %v7392_v55 = vld [vmem:[#allocation7 + $0x88] sm:$0xf]  ;;  %v9844_v34 = vld [vmem:[#allocation7 + $0x94] sm:$0xf0]  ;;  %v9837_v53 = vld [vmem:[#allocation7 + $0x64] sm:$0xf] }
 0x16f   :  { %v1228_v57 = vadd.f32 %v1224_v37, %v10817_v48  ;;  %v1229_v61 = vadd.f32 %v1225_v62, %v10821_v50  ;;  %v9842_v62 = vld [vmem:[#allocation7 + $0x8c] sm:$0xf]  ;;  %v7376_v15 = vld [vmem:[#allocation7 + $0x68] sm:$0xf] }
 0x171   :  { %v1232_v56 = vmul.f32 0.5, %v1228_v57  ;;  %v1236_v60 = vmul.f32 0.5, %v1229_v61  ;;  %1960 = vmatpush.bf16.msra.mxu0 %v7417_v36  ;;  %1973 = vmatpush.bf16.msra.mxu1 %v7421_v38  ;;  %v7397_v61 = vor.u32 %v9842_v62, %v7394_v10  ;;  %v9836_v62 = vld [vmem:[#allocation7 + $0x54] sm:$0xf0] }
 0x172   :  { %1986 = vmatpush.bf16.msra.mxu2 %v7425_v41  ;;  %1999 = vmatpush.bf16.msra.mxu3 %v7429_v42  ;;  %v7385_v41 = vor.u32 %v9843_v14, %v7384_v52  ;;  %v7393_v42 = vor.u32 %v9844_v34, %v7392_v55  ;;  %v7352_v52 = vld [vmem:[#allocation7 + $0x40] sm:$0xf]  ;;  %v7369_v14 = vor.u32 %v9839_v44, %v7368_v43  ;;  %v9833_v55 = vld [vmem:[#allocation7 + $0x44] sm:$0xf]  ;;  %v7354_v34 = vld [vmem:[#allocation7 + $0x50] sm:$0xf0] }
 0x173   :  { %10429 = vtanh.f32 %v1232_v56  ;;  %v1207_v37 = vpop.f32.mrf.mxu2  ;;  %v1220_v35 = vpop.f32.mrf.mxu3  ;;  %v9838_v56 = vld [vmem:[#allocation7 + $0x6c] sm:$0xf]  ;;  %v7353_v44 = vor.u32 %v9835_v11, %v7352_v52 }
 0x174   :  { %10431 = vtanh.f32 %v1236_v60  ;;  %v1226_v36 = vadd.f32 %v1207_v37, %v10810_v54  ;;  %v1227_v38 = vadd.f32 %v1220_v35, %v10812_v31  ;;  %v1183_v39 = vpop.f32.mrf.mxu0  ;;  %v1196_v40 = vpop.f32.mrf.mxu1  ;;  %v7370_v54 = vld [vmem:[#allocation7 + $0x70] sm:$0xf0]  ;;  %v9840_v31 = vld [vmem:[#allocation7 + $0x74] sm:$0xf0]  ;;  %v7378_v60 = vld [vmem:[#allocation7 + $0x78] sm:$0xf0] }
 0x175   :  { %1961 = vmatpush.bf16.msra.mxu0 %v7401_v13  ;;  %1974 = vmatpush.bf16.msra.mxu1 %v7405_v63  ;;  %v7373_v21 = vor.u32 %v9837_v53, %v7370_v54  ;;  %v7377_v10 = vor.u32 %v9840_v31, %v7376_v15  ;;  %v7381_v37 = vor.u32 %v9838_v56, %v7378_v60  ;;  %v7360_v35 = vld [vmem:[#allocation7 + $0x48] sm:$0xf]  ;;  %v9834_v40 = vld [vmem:[#allocation7 + $0x4c] sm:$0xf]  ;;  %v7338_v31 = vld [vmem:[#allocation7 + $0x30] sm:$0xf0] }
 0x176   :  { %v1230_v47 = vadd.f32 %v1226_v36, %v10829_v20  ;;  %v1231_v57 = vadd.f32 %v1227_v38, %v10831_v51  ;;  %1987 = vmatpush.bf16.msra.mxu2 %v7409_v22  ;;  %2000 = vmatpush.bf16.msra.mxu3 %v7413_v27  ;;  %v7361_v54 = vor.u32 %v9836_v62, %v7360_v35  ;;  %v7344_v56 = vld [vmem:[#allocation7 + $0x28] sm:$0xf]  ;;  %v9832_v60 = vld [vmem:[#allocation7 + $0x34] sm:$0xf0] }
 0x177   :  { %v9828_v62 = vld [vmem:[#allocation7 + $0x14] sm:$0xf0] }
 0x178   :  { %10433 = vtanh.f32 %v1230_v47  ;;  %v1241_v13 = vmul.f32 0.5, %v1231_v57  ;;  %v7357_v47 = vor.u32 %v9833_v55, %v7354_v34  ;;  %v9831_v57 = vld [vmem:[#allocation7 + $0x2c] sm:$0xf0]  ;;  %v9825_v55 = vld [vmem:[#allocation7 + $0x4] sm:$0xf] }
 0x179   :  { %v10430_v63 = vpop.eup %10429  ;;  %1962 = vmatpush.bf16.msra.mxu0 %v7385_v41  ;;  %1975 = vmatpush.bf16.msra.mxu1 %v7389_v12  ;;  %v7362_v41 = vld [vmem:[#allocation7 + $0x58] sm:$0xf0]  ;;  %v7322_v34 = vld [vmem:[#allocation7 + $0x10] sm:$0xf0] }
 0x17a   :  { %v10432_v22 = vpop.eup %10431  ;;  %v1234_v27 = vmul.f32 0.5, %v10430_v63  ;;  %1988 = vmatpush.bf16.msra.mxu2 %v7393_v42  ;;  %2001 = vmatpush.bf16.msra.mxu3 %v7397_v61  ;;  %10435 = vtanh.f32 %v1241_v13  ;;  %v7336_v42 = vld [vmem:[#allocation7 + $0x20] sm:$0xf]  ;;  %v9829_v61 = vld [vmem:[#allocation7 + $0x24] sm:$0xf]  ;;  %v7365_v15 = vor.u32 %v9834_v40, %v7362_v41 }
 0x17b   :  { %v1238_v36 = vmul.f32 0.5, %v10432_v22  ;;  %v1209_v38 = vpop.f32.mrf.mxu2  ;;  %v1222_v39 = vpop.f32.mrf.mxu3  ;;  %1722 = vmatmul.bf16.vlgmr.msrb.gmra.mxu0 %v10819_v49  ;;  %1735 = vmatmul.bf16.vlgmr.msrb.gmra.mxu1 %v10819_v49  ;;  %v9830_v22 = vld [vmem:[#allocation7 + $0x2c] sm:$0xf]  ;;  %v7337_v52 = vor.u32 %v9831_v57, %v7336_v42  ;;  %v7341_v11 = vor.u32 %v9829_v61, %v7338_v31  ;;  %v7673_v40 = vld [vmem:[#allocation5 + $0x1c0] sm:$0xf]  ;;  %v7325_v57 = vor.u32 %v9825_v55, %v7322_v34 }
 0x17c   :  { %v1235_v12 = vadd.f32 0.5, %v1234_v27  ;;  %1748 = vmatmul.bf16.vlgmr.msrb.gmra.mxu2 %v10819_v49  ;;  %1761 = vmatmul.bf16.vlgmr.msrb.gmra.mxu3 %v10819_v49  ;;  %v7346_v49 = vld [vmem:[#allocation7 + $0x38] sm:$0xf0]  ;;  %v7320_v27 = vld [vmem:[#allocation7] sm:$0xf] }
 0x17d   :  { %v1239_v43 = vadd.f32 0.5, %v1238_v36  ;;  %1963 = vmatpush.bf16.msra.mxu0 %v7369_v14  ;;  %1976 = vmatpush.bf16.msra.mxu1 %v7373_v21  ;;  %v9827_v36 = vld [vmem:[#allocation7 + $0xc] sm:$0xf0]  ;;  %v7349_v35 = vor.u32 %v9830_v22, %v7346_v49  ;;  %v9826_v38 = vld [vmem:[#allocation7 + $0xc] sm:$0xf] }
 0x17e   :  { %v10434_v53 = vpop.eup %10433  ;;  %1989 = vmatpush.bf16.msra.mxu2 %v7377_v10  ;;  %2002 = vmatpush.bf16.msra.mxu3 %v7381_v37  ;;  %v7328_v10 = vld [vmem:[#allocation7 + $0x8] sm:$0xf]  ;;  %v7345_v37 = vor.u32 %v9832_v60, %v7344_v56  ;;  %v7330_v39 = vld [vmem:[#allocation7 + $0x18] sm:$0xf0]  ;;  %v9917_v41 = vld [vmem:[#allocation5 + $0x1dc] sm:$0xf0]  ;;  %v7321_v42 = vor.u32 %v9827_v36, %v7320_v27 }
 0x17f   :  { %v1245_v13 = vmul.f32 0.0, %v1239_v43  ;;  %v1246_v63 = vmul.f32 %v10434_v53, %v1235_v12  ;;  %v9913_v12 = vld [vmem:[#allocation5 + $0x1c4] sm:$0xf]  ;;  %v9918_v61 = vld [vmem:[#allocation5 + $0x1e4] sm:$0xf0]  ;;  %v7333_v31 = vor.u32 %v9826_v38, %v7330_v39  ;;  %v7674_v56 = vor.u32 %v9917_v41, %v7673_v40 }
 0x180   :  { %v10436_v14 = vpop.eup %10435  ;;  %v9914_v53 = vld [vmem:[#allocation5 + $0x1cc] sm:$0xf]  ;;  %v7641_v49 = vld [vmem:[#allocation5 + $0x180] sm:$0xf]  ;;  %v7643_v27 = vld [vmem:[#allocation5 + $0x1a0] sm:$0xf0] }
 0x181   :  { %v10841_v21 = vadd.f32 %v1246_v63, %v1245_v13  ;;  %1964 = vmatpush.bf16.msra.mxu0 %v7353_v44  ;;  %1977 = vmatpush.bf16.msra.mxu1 %v7357_v47  ;;  %v1243_v43 = vmul.f32 0.5, %v10436_v14  ;;  %v7675_v44 = vld [vmem:[#allocation5 + $0x1e0] sm:$0xf0]  ;;  %v7681_v47 = vld [vmem:[#allocation5 + $0x1c8] sm:$0xf] }
 0x182   :  { %1990 = vmatpush.bf16.msra.mxu2 %v7361_v54  ;;  %2003 = vmatpush.bf16.msra.mxu3 %v7365_v15  ;;  %v7683_v54 = vld [vmem:[#allocation5 + $0x1e8] sm:$0xf0]  ;;  %v7329_v15 = vor.u32 %v9828_v62, %v7328_v10  ;;  %v7678_v60 = vor.u32 %v9913_v12, %v7675_v44  ;;  %v7682_v63 = vor.u32 %v9918_v61, %v7681_v47  ;;  %v9909_v14 = vld [vmem:[#allocation5 + $0x19c] sm:$0xf0]  ;;  %v7649_v36 = vld [vmem:[#allocation5 + $0x188] sm:$0xf] }
 0x183   :  { %10437 = vtanh.f32 %v10841_v21  ;;  %v1244_v13 = vadd.f32 0.5, %v1243_v43  ;;  %v7686_v22 = vor.u32 %v9914_v53, %v7683_v54  ;;  %v9910_v55 = vld [vmem:[#allocation5 + $0x1a4] sm:$0xf0]  ;;  %v9906_v34 = vld [vmem:[#allocation5 + $0x18c] sm:$0xf] }
 0x184   :  { %v7651_v10 = vld [vmem:[#allocation5 + $0x1a8] sm:$0xf0]  ;;  %v7609_v38 = vld [vmem:[#allocation5 + $0x140] sm:$0xf]  ;;  %v7650_v40 = vor.u32 %v9910_v55, %v7649_v36  ;;  %v9897_v41 = vld [vmem:[#allocation5 + $0x144] sm:$0xf] }
 0x185   :  { %1965 = vmatpush.bf16.msra.mxu0 %v7337_v52  ;;  %1978 = vmatpush.bf16.msra.mxu1 %v7341_v11  ;;  %v9905_v52 = vld [vmem:[#allocation5 + $0x184] sm:$0xf]  ;;  %v9901_v39 = vld [vmem:[#allocation5 + $0x15c] sm:$0xf0]  ;;  %v7617_v43 = vld [vmem:[#allocation5 + $0x148] sm:$0xf] }
 0x186   :  { %1991 = vmatpush.bf16.msra.mxu2 %v7345_v37  ;;  %2004 = vmatpush.bf16.msra.mxu3 %v7349_v35  ;;  %v7642_v35 = vor.u32 %v9909_v14, %v7641_v49  ;;  %v7646_v62 = vor.u32 %v9905_v52, %v7643_v27  ;;  %v7611_v12 = vld [vmem:[#allocation5 + $0x160] sm:$0xf0]  ;;  %v9902_v44 = vld [vmem:[#allocation5 + $0x164] sm:$0xf0]  ;;  %v9898_v47 = vld [vmem:[#allocation5 + $0x14c] sm:$0xf] }
 0x187   :  { %v7614_v61 = vor.u32 %v9897_v41, %v7611_v12  ;;  %v7577_v53 = vld [vmem:[#allocation5 + $0x100] sm:$0xf]  ;;  %v7587_v49 = vld [vmem:[#allocation5 + $0x128] sm:$0xf0] }
 0x188   :  { %v9893_v54 = vld [vmem:[#allocation5 + $0x11c] sm:$0xf0] }
 0x189   :  { %v10438_v26 = vpop.eup %10437  ;;  %1966 = vmatpush.bf16.msra.mxu0 %v7321_v42  ;;  %1979 = vmatpush.bf16.msra.mxu1 %v7325_v57  ;;  %v7619_v42 = vld [vmem:[#allocation5 + $0x168] sm:$0xf0]  ;;  %v7610_v57 = vor.u32 %v9901_v39, %v7609_v38  ;;  %v7578_v14 = vor.u32 %v9893_v54, %v7577_v53  ;;  %v7545_v27 = vld [vmem:[#allocation5 + $0xc0] sm:$0xf] }
 0x18a   :  { %v1249_v11 = vmul.f32 %v10438_v26, %v1244_v13  ;;  %1992 = vmatpush.bf16.msra.mxu2 %v7329_v15  ;;  %2005 = vmatpush.bf16.msra.mxu3 %v7333_v31  ;;  %v7654_v26 = vor.u32 %v9906_v34, %v7651_v10  ;;  %v7618_v15 = vor.u32 %v9902_v44, %v7617_v43  ;;  %v7585_v13 = vld [vmem:[#allocation5 + $0x108] sm:$0xf]  ;;  %v9885_v36 = vld [vmem:[#allocation5 + $0xdc] sm:$0xf0]  ;;  %v9881_v34 = vld [vmem:[#allocation5 + $0xc4] sm:$0xf] }
 0x18b   :  { %v7622_v31 = vor.u32 %v9898_v47, %v7619_v42  ;;  %v7547_v10 = vld [vmem:[#allocation5 + $0xe0] sm:$0xf0]  ;;  %v7555_v38 = vld [vmem:[#allocation5 + $0xe8] sm:$0xf0]  ;;  %v7546_v39 = vor.u32 %v9885_v36, %v7545_v27  ;;  %v9877_v41 = vld [vmem:[#allocation5 + $0x9c] sm:$0xf0] }
 0x18c   :  { %1250 = vst [vmem:[%s11105_s6] sm:$0xff] %v1249_v11  ;;  %v1766_v37 = vpack.c.bf16 %v1249_v11, %v1249_v11  ;;  %v9873_v44 = vld [vmem:[#allocation5 + $0x84] sm:$0xf]  ;;  %v7521_v42 = vld [vmem:[#allocation5 + $0x88] sm:$0xf]  ;;  %v7523_v53 = vld [vmem:[#allocation5 + $0xa8] sm:$0xf0] }
 0x18d   :  { %2450 = vmatpush.bf16.msrb.mxu0 %v7674_v56  ;;  %2463 = vmatpush.bf16.msrb.mxu1 %v7678_v60  ;;  %v9889_v56 = vld [vmem:[#allocation5 + $0x104] sm:$0xf] }
 0x18e   :  { %2476 = vmatpush.bf16.msrb.mxu2 %v7682_v63  ;;  %2489 = vmatpush.bf16.msrb.mxu3 %v7686_v22  ;;  %v7579_v60 = vld [vmem:[#allocation5 + $0x120] sm:$0xf0]  ;;  %v9894_v63 = vld [vmem:[#allocation5 + $0x124] sm:$0xf0]  ;;  %v9890_v22 = vld [vmem:[#allocation5 + $0x10c] sm:$0xf] }
 0x18f   :  { %1967 = vmatmul.bf16.vlgmr.msra.gmra.mxu0 %v1766_v37  ;;  %1980 = vmatmul.bf16.vlgmr.msra.gmra.mxu1 %v1766_v37  ;;  %v7582_v52 = vor.u32 %v9889_v56, %v7579_v60  ;;  %v7586_v11 = vor.u32 %v9894_v63, %v7585_v13  ;;  %v7590_v55 = vor.u32 %v9890_v22, %v7587_v49  ;;  %v7515_v47 = vld [vmem:[#allocation5 + $0xa0] sm:$0xf0]  ;;  %v7481_v60 = vld [vmem:[#allocation5 + $0x40] sm:$0xf] }
 0x190   :  { %1993 = vmatmul.bf16.vlgmr.msra.gmra.mxu2 %v1766_v37  ;;  %2006 = vmatmul.bf16.vlgmr.msra.gmra.mxu3 %v1766_v37  ;;  %v7553_v37 = vld [vmem:[#allocation5 + $0xc8] sm:$0xf]  ;;  %v9869_v13 = vld [vmem:[#allocation5 + $0x5c] sm:$0xf0]  ;;  %v9865_v63 = vld [vmem:[#allocation5 + $0x44] sm:$0xf] }
 0x191   :  { %2451 = vmatpush.bf16.msrb.mxu0 %v7642_v35  ;;  %2464 = vmatpush.bf16.msrb.mxu1 %v7646_v62  ;;  %v9886_v35 = vld [vmem:[#allocation5 + $0xe4] sm:$0xf0]  ;;  %v9882_v62 = vld [vmem:[#allocation5 + $0xcc] sm:$0xf]  ;;  %v7482_v22 = vor.u32 %v9869_v13, %v7481_v60  ;;  %v7483_v49 = vld [vmem:[#allocation5 + $0x60] sm:$0xf0] }
 0x192   :  { %2477 = vmatpush.bf16.msrb.mxu2 %v7650_v40  ;;  %2490 = vmatpush.bf16.msrb.mxu3 %v7654_v26  ;;  %v7550_v40 = vor.u32 %v9881_v34, %v7547_v10  ;;  %v7513_v26 = vld [vmem:[#allocation5 + $0x80] sm:$0xf]  ;;  %v7554_v12 = vor.u32 %v9886_v35, %v7553_v37  ;;  %v7558_v43 = vor.u32 %v9882_v62, %v7555_v38  ;;  %v9857_v35 = vld [vmem:[#allocation5 + $0x4] sm:$0xf]  ;;  %v7699_v13 = vld [vmem:[#allocation5 + $0x1f8] sm:$0xf0] }
 0x193   :  { %v7514_v54 = vor.u32 %v9877_v41, %v7513_v26  ;;  %v7486_v27 = vor.u32 %v9865_v63, %v7483_v49  ;;  %v7449_v10 = vld [vmem:[#allocation5] sm:$0xf]  ;;  %v7451_v38 = vld [vmem:[#allocation5 + $0x20] sm:$0xf0]  ;;  %v7657_v63 = vld [vmem:[#allocation5 + $0x190] sm:$0xf] }
 0x194   :  { %v9861_v37 = vld [vmem:[#allocation5 + $0x1c] sm:$0xf0]  ;;  %v7454_v26 = vor.u32 %v9857_v35, %v7451_v38  ;;  %v9903_v38 = vld [vmem:[#allocation5 + $0x16c] sm:$0xf0] }
 0x195   :  { %2452 = vmatpush.bf16.msrb.mxu0 %v7610_v57  ;;  %2465 = vmatpush.bf16.msrb.mxu1 %v7614_v61  ;;  %v9878_v57 = vld [vmem:[#allocation5 + $0xa4] sm:$0xf0]  ;;  %v9874_v61 = vld [vmem:[#allocation5 + $0x8c] sm:$0xf]  ;;  %v7450_v62 = vor.u32 %v9861_v37, %v7449_v10  ;;  %v7667_v10 = vld [vmem:[#allocation5 + $0x1b8] sm:$0xf0] }
 0x196   :  { %2478 = vmatpush.bf16.msrb.mxu2 %v7618_v15  ;;  %2491 = vmatpush.bf16.msrb.mxu3 %v7622_v31  ;;  %v7518_v15 = vor.u32 %v9873_v44, %v7515_v47  ;;  %v7522_v31 = vor.u32 %v9878_v57, %v7521_v42  ;;  %v7526_v56 = vor.u32 %v9874_v61, %v7523_v53  ;;  %v7689_v44 = vld [vmem:[#allocation5 + $0x1d0] sm:$0xf]  ;;  %v9915_v57 = vld [vmem:[#allocation5 + $0x1d4] sm:$0xf] }
 0x197   :  { %v9919_v42 = vld [vmem:[#allocation5 + $0x1ec] sm:$0xf0]  ;;  %v7691_v61 = vld [vmem:[#allocation5 + $0x1f0] sm:$0xf0] }
 0x198   :  { %v7690_v53 = vor.u32 %v9919_v42, %v7689_v44  ;;  %v7635_v42 = vld [vmem:[#allocation5 + $0x178] sm:$0xf0] }
 0x199   :  { %2453 = vmatpush.bf16.msrb.mxu0 %v7578_v14  ;;  %2466 = vmatpush.bf16.msrb.mxu1 %v7582_v52  ;;  %v7489_v14 = vld [vmem:[#allocation5 + $0x48] sm:$0xf] }
 0x19a   :  { %2479 = vmatpush.bf16.msrb.mxu2 %v7586_v11  ;;  %2492 = vmatpush.bf16.msrb.mxu3 %v7590_v55  ;;  %v9870_v52 = vld [vmem:[#allocation5 + $0x64] sm:$0xf0]  ;;  %v9866_v11 = vld [vmem:[#allocation5 + $0x4c] sm:$0xf] }
 0x19b   :  { %v7490_v36 = vor.u32 %v9870_v52, %v7489_v14  ;;  %v7491_v55 = vld [vmem:[#allocation5 + $0x68] sm:$0xf0]  ;;  %v9907_v52 = vld [vmem:[#allocation5 + $0x194] sm:$0xf] }
 0x19c   :  { %v7494_v34 = vor.u32 %v9866_v11, %v7491_v55  ;;  %v9912_v55 = vld [vmem:[#allocation5 + $0x1b4] sm:$0xf0] }
 0x19d   :  { %2454 = vmatpush.bf16.msrb.mxu0 %v7546_v39  ;;  %2467 = vmatpush.bf16.msrb.mxu1 %v7550_v40  ;;  %v7457_v39 = vld [vmem:[#allocation5 + $0x8] sm:$0xf] }
 0x19e   :  { %2480 = vmatpush.bf16.msrb.mxu2 %v7554_v12  ;;  %2493 = vmatpush.bf16.msrb.mxu3 %v7558_v43  ;;  %v9862_v40 = vld [vmem:[#allocation5 + $0x24] sm:$0xf0]  ;;  %v9858_v12 = vld [vmem:[#allocation5 + $0xc] sm:$0xf] }
 0x19f   :  { %v7458_v41 = vor.u32 %v9862_v40, %v7457_v39  ;;  %v7459_v43 = vld [vmem:[#allocation5 + $0x28] sm:$0xf0]  ;;  %v9899_v39 = vld [vmem:[#allocation5 + $0x154] sm:$0xf] }
 0x1a0   :  { %v7462_v47 = vor.u32 %v9858_v12, %v7459_v43  ;;  %v9904_v12 = vld [vmem:[#allocation5 + $0x174] sm:$0xf0] }
 0x1a1   :  { %2455 = vmatpush.bf16.msrb.mxu0 %v7514_v54  ;;  %2468 = vmatpush.bf16.msrb.mxu1 %v7518_v15  ;;  %v7694_v54 = vor.u32 %v9915_v57, %v7691_v61  ;;  %v7697_v15 = vld [vmem:[#allocation5 + $0x1d8] sm:$0xf]  ;;  %v7593_v61 = vld [vmem:[#allocation5 + $0x110] sm:$0xf] }
 0x1a2   :  { %2481 = vmatpush.bf16.msrb.mxu2 %v7522_v31  ;;  %2494 = vmatpush.bf16.msrb.mxu3 %v7526_v56  ;;  %v9920_v31 = vld [vmem:[#allocation5 + $0x1f4] sm:$0xf0]  ;;  %v9916_v56 = vld [vmem:[#allocation5 + $0x1dc] sm:$0xf] }
 0x1a3   :  { %v7698_v60 = vor.u32 %v9920_v31, %v7697_v15  ;;  %v7702_v49 = vor.u32 %v9916_v56, %v7699_v13  ;;  %v7595_v31 = vld [vmem:[#allocation5 + $0x130] sm:$0xf0]  ;;  %v7601_v56 = vld [vmem:[#allocation5 + $0x118] sm:$0xf] }
 0x1a5   :  { %2456 = vmatpush.bf16.msrb.mxu0 %v7482_v22  ;;  %2469 = vmatpush.bf16.msrb.mxu1 %v7486_v27  ;;  %v9911_v22 = vld [vmem:[#allocation5 + $0x1ac] sm:$0xf0]  ;;  %v7659_v27 = vld [vmem:[#allocation5 + $0x1b0] sm:$0xf0] }
 0x1a6   :  { %2482 = vmatpush.bf16.msrb.mxu2 %v7490_v36  ;;  %2495 = vmatpush.bf16.msrb.mxu3 %v7494_v34  ;;  %v7658_v14 = vor.u32 %v9911_v22, %v7657_v63  ;;  %v7665_v36 = vld [vmem:[#allocation5 + $0x198] sm:$0xf]  ;;  %v7662_v11 = vor.u32 %v9907_v52, %v7659_v27  ;;  %v9908_v34 = vld [vmem:[#allocation5 + $0x19c] sm:$0xf]  ;;  %v7561_v52 = vld [vmem:[#allocation5 + $0xd0] sm:$0xf] }
 0x1a7   :  { %v7666_v37 = vor.u32 %v9912_v55, %v7665_v36  ;;  %v7670_v35 = vor.u32 %v9908_v34, %v7667_v10  ;;  %v9892_v22 = vld [vmem:[#allocation5 + $0x11c] sm:$0xf]  ;;  %v9887_v27 = vld [vmem:[#allocation5 + $0xec] sm:$0xf0]  ;;  %v9883_v36 = vld [vmem:[#allocation5 + $0xd4] sm:$0xf] }
 0x1a8   :  { %v7563_v55 = vld [vmem:[#allocation5 + $0xf0] sm:$0xf0]  ;;  %v7569_v34 = vld [vmem:[#allocation5 + $0xd8] sm:$0xf] }
 0x1a9   :  { %2457 = vmatpush.bf16.msrb.mxu0 %v7450_v62  ;;  %2470 = vmatpush.bf16.msrb.mxu1 %v7454_v26  ;;  %v7625_v62 = vld [vmem:[#allocation5 + $0x150] sm:$0xf]  ;;  %v7627_v26 = vld [vmem:[#allocation5 + $0x170] sm:$0xf0]  ;;  %v9888_v10 = vld [vmem:[#allocation5 + $0xf4] sm:$0xf0] }
 0x1aa   :  { %2483 = vmatpush.bf16.msrb.mxu2 %v7458_v41  ;;  %2496 = vmatpush.bf16.msrb.mxu3 %v7462_v47  ;;  %v7626_v40 = vor.u32 %v9903_v38, %v7625_v62  ;;  %v7633_v41 = vld [vmem:[#allocation5 + $0x158] sm:$0xf]  ;;  %v7630_v43 = vor.u32 %v9899_v39, %v7627_v26  ;;  %v9900_v47 = vld [vmem:[#allocation5 + $0x15c] sm:$0xf]  ;;  %v9879_v26 = vld [vmem:[#allocation5 + $0xac] sm:$0xf0] }
 0x1ab   :  { %v7634_v44 = vor.u32 %v9904_v12, %v7633_v41  ;;  %v7638_v57 = vor.u32 %v9900_v47, %v7635_v42  ;;  %v9884_v62 = vld [vmem:[#allocation5 + $0xdc] sm:$0xf]  ;;  %v9875_v41 = vld [vmem:[#allocation5 + $0x94] sm:$0xf]  ;;  %v9880_v47 = vld [vmem:[#allocation5 + $0xb4] sm:$0xf0] }
 0x1ac   :  { %v7571_v38 = vld [vmem:[#allocation5 + $0xf8] sm:$0xf0] }
 0x1ad   :  { %2502 = vmatpush.bf16.msra.mxu0 %v7690_v53  ;;  %2515 = vmatpush.bf16.msra.mxu1 %v7694_v54  ;;  %v9895_v53 = vld [vmem:[#allocation5 + $0x12c] sm:$0xf0]  ;;  %v9891_v54 = vld [vmem:[#allocation5 + $0x114] sm:$0xf]  ;;  %v7574_v39 = vor.u32 %v9884_v62, %v7571_v38 }
 0x1ae   :  { %2528 = vmatpush.bf16.msra.mxu2 %v7698_v60  ;;  %2541 = vmatpush.bf16.msra.mxu3 %v7702_v49  ;;  %v7594_v15 = vor.u32 %v9895_v53, %v7593_v61  ;;  %v9896_v60 = vld [vmem:[#allocation5 + $0x134] sm:$0xf0]  ;;  %v7598_v13 = vor.u32 %v9891_v54, %v7595_v31  ;;  %v7603_v49 = vld [vmem:[#allocation5 + $0x138] sm:$0xf0]  ;;  %v9871_v31 = vld [vmem:[#allocation5 + $0x6c] sm:$0xf0] }
 0x1af   :  { %v7602_v63 = vor.u32 %v9896_v60, %v7601_v56  ;;  %v9876_v61 = vld [vmem:[#allocation5 + $0x9c] sm:$0xf]  ;;  %v9867_v56 = vld [vmem:[#allocation5 + $0x54] sm:$0xf]  ;;  %v322_v60 = vadd.f32 %v10750_v0, %v10717_v24  ;;  %v9863_v62 = vld [vmem:[#allocation5 + $0x2c] sm:$0xf0] }
 0x1b0   :  { %v7539_v53 = vld [vmem:[#allocation5 + $0xb8] sm:$0xf0] }
 0x1b1   :  { %2503 = vmatpush.bf16.msra.mxu0 %v7658_v14  ;;  %2516 = vmatpush.bf16.msra.mxu1 %v7662_v11  ;;  %v7606_v14 = vor.u32 %v9892_v22, %v7603_v49  ;;  %v7562_v11 = vor.u32 %v9887_v27, %v7561_v52  ;;  %v7542_v54 = vor.u32 %v9876_v61, %v7539_v53  ;;  %v7499_v22 = vld [vmem:[#allocation5 + $0x70] sm:$0xf0]  ;;  %v7505_v49 = vld [vmem:[#allocation5 + $0x58] sm:$0xf] }
 0x1b2   :  { %2529 = vmatpush.bf16.msra.mxu2 %v7666_v37  ;;  %2542 = vmatpush.bf16.msra.mxu3 %v7670_v35  ;;  %v7566_v37 = vor.u32 %v9883_v36, %v7563_v55  ;;  %v7570_v35 = vor.u32 %v9888_v10, %v7569_v34  ;;  %v7502_v36 = vor.u32 %v9867_v56, %v7499_v22  ;;  %v9868_v55 = vld [vmem:[#allocation5 + $0x5c] sm:$0xf] }
 0x1b3   :  { %v7507_v34 = vld [vmem:[#allocation5 + $0x78] sm:$0xf0]  ;;  %v380_v61 = vadd.f32 %v10754_v2, %v10723_v45  ;;  %v409_v53 = vadd.f32 %v10756_v3, %v10725_v46 }
 0x1b4   :  { %v7510_v0 = vor.u32 %v9868_v55, %v7507_v34 }
 0x1b5   :  { %2504 = vmatpush.bf16.msra.mxu0 %v7626_v40  ;;  %2517 = vmatpush.bf16.msra.mxu1 %v7630_v43  ;;  %v7529_v40 = vld [vmem:[#allocation5 + $0x90] sm:$0xf]  ;;  %v7531_v43 = vld [vmem:[#allocation5 + $0xb0] sm:$0xf0] }
 0x1b6   :  { %2530 = vmatpush.bf16.msra.mxu2 %v7634_v44  ;;  %2543 = vmatpush.bf16.msra.mxu3 %v7638_v57  ;;  %v7530_v12 = vor.u32 %v9879_v26, %v7529_v40  ;;  %v7537_v44 = vld [vmem:[#allocation5 + $0x98] sm:$0xf]  ;;  %v7534_v42 = vor.u32 %v9875_v41, %v7531_v43  ;;  %v7467_v26 = vld [vmem:[#allocation5 + $0x30] sm:$0xf0] }
 0x1b7   :  { %v7538_v57 = vor.u32 %v9880_v47, %v7537_v44  ;;  %v7473_v41 = vld [vmem:[#allocation5 + $0x18] sm:$0xf]  ;;  %v9860_v44 = vld [vmem:[#allocation5 + $0x1c] sm:$0xf] }
 0x1b8   :  { %v9864_v43 = vld [vmem:[#allocation5 + $0x34] sm:$0xf0]  ;;  %v7475_v47 = vld [vmem:[#allocation5 + $0x38] sm:$0xf0] }
 0x1b9   :  { %2505 = vmatpush.bf16.msra.mxu0 %v7594_v15  ;;  %2518 = vmatpush.bf16.msra.mxu1 %v7598_v13  ;;  %v7497_v15 = vld [vmem:[#allocation5 + $0x50] sm:$0xf]  ;;  %v351_v13 = vadd.f32 %v10752_v1, %v10719_v25  ;;  %v9859_v1 = vld [vmem:[#allocation5 + $0x14] sm:$0xf] }
 0x1ba   :  { %2531 = vmatpush.bf16.msra.mxu2 %v7602_v63  ;;  %2544 = vmatpush.bf16.msra.mxu3 %v7606_v14  ;;  %v7498_v63 = vor.u32 %v9871_v31, %v7497_v15  ;;  %v9872_v14 = vld [vmem:[#allocation5 + $0x74] sm:$0xf0] }
 0x1bd   :  { %2506 = vmatpush.bf16.msra.mxu0 %v7562_v11  ;;  %2519 = vmatpush.bf16.msra.mxu1 %v7566_v37  ;;  %v7506_v11 = vor.u32 %v9872_v14, %v7505_v49 }
 0x1be   :  { %2532 = vmatpush.bf16.msra.mxu2 %v7570_v35  ;;  %2545 = vmatpush.bf16.msra.mxu3 %v7574_v39  ;;  %v7465_v35 = vld [vmem:[#allocation5 + $0x10] sm:$0xf] }
 0x1bf   :  { %v7466_v40 = vor.u32 %v9863_v62, %v7465_v35 }
 0x1c1   :  { %2507 = vmatpush.bf16.msra.mxu0 %v7530_v12  ;;  %2520 = vmatpush.bf16.msra.mxu1 %v7534_v42  ;;  %v7470_v12 = vor.u32 %v9859_v1, %v7467_v26  ;;  %v7474_v42 = vor.u32 %v9864_v43, %v7473_v41  ;;  %v7817_v41 = vld [vmem:[#allocation7 + $0xe0] sm:$0xf] }
 0x1c2   :  { %2533 = vmatpush.bf16.msra.mxu2 %v7538_v57  ;;  %2546 = vmatpush.bf16.msra.mxu3 %v7542_v54  ;;  %v7478_v57 = vor.u32 %v9860_v44, %v7475_v47  ;;  %v9949_v44 = vld [vmem:[#allocation7 + $0xe4] sm:$0xf]  ;;  %v7819_v47 = vld [vmem:[#allocation7 + $0xf0] sm:$0xf0] }
 0x1c5   :  { %2508 = vmatpush.bf16.msra.mxu0 %v7498_v63  ;;  %2521 = vmatpush.bf16.msra.mxu1 %v7502_v36 }
 0x1c6   :  { %2534 = vmatpush.bf16.msra.mxu2 %v7506_v11  ;;  %2547 = vmatpush.bf16.msra.mxu3 %v7510_v0 }
 0x1c9   :  { %2509 = vmatpush.bf16.msra.mxu0 %v7466_v40  ;;  %2522 = vmatpush.bf16.msra.mxu1 %v7470_v12  ;;  %v9951_v12 = vld [vmem:[#allocation7 + $0xec] sm:$0xf0] }
 0x1ca   :  { %2535 = vmatpush.bf16.msra.mxu2 %v7474_v42  ;;  %2548 = vmatpush.bf16.msra.mxu3 %v7478_v57  ;;  %v9952_v57 = vld [vmem:[#allocation7 + $0xf4] sm:$0xf0] }
 0x1e8   :  { %v1671_v52 = vpop.f32.mrf.mxu0  ;;  %v1684_v27 = vpop.f32.mrf.mxu1 }
 0x1e9   :  { %v2043_v10 = vadd.f32 %v1671_v52, %v322_v60  ;;  %v2044_v37 = vadd.f32 %v1684_v27, %v351_v13 }
 0x1eb   :  { %v2047_v38 = vmul.f32 0.5, %v2043_v10  ;;  %v2051_v39 = vmul.f32 0.5, %v2044_v37 }
 0x1ed   :  { %10439 = vtanh.f32 %v2047_v38 }
 0x1ee   :  { %10441 = vtanh.f32 %v2051_v39 }
 0x1ef   :  { %v1697_v54 = vpop.f32.mrf.mxu2  ;;  %v1710_v15 = vpop.f32.mrf.mxu3 }
 0x1f0   :  { %v2045_v31 = vadd.f32 %v1697_v54, %v380_v61  ;;  %v2046_v56 = vadd.f32 %v1710_v15, %v409_v53  ;;  %v1673_v60 = vpop.f32.mrf.mxu0  ;;  %v1686_v13 = vpop.f32.mrf.mxu1  ;;  %v9950_v61 = vld [vmem:[#allocation7 + $0xec] sm:$0xf]  ;;  %v7827_v53 = vld [vmem:[#allocation7 + $0xf8] sm:$0xf0]  ;;  %v7818_v15 = vor.u32 %v9951_v12, %v7817_v41  ;;  %v9941_v41 = vld [vmem:[#allocation7 + $0xa4] sm:$0xf] }
 0x1f1   :  { %v9947_v60 = vld [vmem:[#allocation7 + $0xcc] sm:$0xf0]  ;;  %v7787_v12 = vld [vmem:[#allocation7 + $0xb0] sm:$0xf0] }
 0x1f2   :  { %10443 = vtanh.f32 %v2045_v31  ;;  %v2056_v63 = vmul.f32 0.5, %v2046_v56  ;;  %v7822_v31 = vor.u32 %v9949_v44, %v7819_v47  ;;  %v7801_v56 = vld [vmem:[#allocation7 + $0xc0] sm:$0xf] }
 0x1f3   :  { %v10440_v22 = vpop.eup %10439 }
 0x1f4   :  { %v10442_v49 = vpop.eup %10441  ;;  %v2049_v14 = vmul.f32 0.5, %v10440_v22  ;;  %10445 = vtanh.f32 %v2056_v63 }
 0x1f5   :  { %v2053_v2 = vmul.f32 0.5, %v10442_v49  ;;  %v7830_v49 = vor.u32 %v9950_v61, %v7827_v53 }
 0x1f6   :  { %v2050_v52 = vadd.f32 0.5, %v2049_v14  ;;  %v9945_v14 = vld [vmem:[#allocation7 + $0xc4] sm:$0xf] }
 0x1f7   :  { %v2054_v3 = vadd.f32 0.5, %v2053_v2  ;;  %v1699_v27 = vpop.f32.mrf.mxu2  ;;  %v1712_v36 = vpop.f32.mrf.mxu3  ;;  %v7803_v2 = vld [vmem:[#allocation7 + $0xd0] sm:$0xf0] }
 0x1f8   :  { %v10444_v11 = vpop.eup %10443  ;;  %v1723_v55 = vpop.f32.mrf.mxu0  ;;  %v9946_v27 = vld [vmem:[#allocation7 + $0xcc] sm:$0xf]  ;;  %v7811_v36 = vld [vmem:[#allocation7 + $0xd8] sm:$0xf0] }
 0x1f9   :  { %v1736_v34 = vpop.f32.mrf.mxu1  ;;  %v2060_v10 = vmul.f32 %v2054_v3, %v10807_v28  ;;  %v2061_v37 = vmul.f32 %v10444_v11, %v2050_v52  ;;  %v7825_v28 = vld [vmem:[#allocation7 + $0xe8] sm:$0xf]  ;;  %v9948_v3 = vld [vmem:[#allocation7 + $0xd4] sm:$0xf0]  ;;  %v7802_v11 = vor.u32 %v9947_v60, %v7801_v56  ;;  %v7769_v56 = vld [vmem:[#allocation7 + $0x80] sm:$0xf] }
 0x1fa   :  { %v10446_v0 = vpop.eup %10445  ;;  %v7826_v22 = vor.u32 %v9952_v57, %v7825_v28  ;;  %v7809_v52 = vld [vmem:[#allocation7 + $0xc8] sm:$0xf]  ;;  %v9944_v28 = vld [vmem:[#allocation7 + $0xb4] sm:$0xf0]  ;;  %v7795_v57 = vld [vmem:[#allocation7 + $0xb8] sm:$0xf0] }
 0x1fb   :  { %v10856_v35 = vadd.f32 %v2061_v37, %v2060_v10  ;;  %v2058_v62 = vmul.f32 0.5, %v10446_v0  ;;  %v7806_v10 = vor.u32 %v9945_v14, %v7803_v2  ;;  %v7785_v37 = vld [vmem:[#allocation7 + $0xa0] sm:$0xf]  ;;  %v9943_v0 = vld [vmem:[#allocation7 + $0xac] sm:$0xf0] }
 0x1fc   :  { %v7786_v61 = vor.u32 %v9943_v0, %v7785_v37  ;;  %v9939_v60 = vld [vmem:[#allocation7 + $0x8c] sm:$0xf0]  ;;  %v7753_v0 = vld [vmem:[#allocation7 + $0x60] sm:$0xf] }
 0x1fd   :  { %10447 = vtanh.f32 %v10856_v35  ;;  %v2059_v26 = vadd.f32 0.5, %v2058_v62 }
 0x1ff   :  { %v10859_v1 = vpop.f32.mrf.mxu2  ;;  %v10861_v38 = vpop.f32.mrf.mxu3 }
 0x200   :  { %v1725_v39 = vpop.f32.mrf.mxu0 }
 0x201   :  { %v1738_v40 = vpop.f32.mrf.mxu1 }
 0x202   :  { %v7810_v40 = vor.u32 %v9948_v3, %v7809_v52  ;;  %v9938_v52 = vld [vmem:[#allocation7 + $0x8c] sm:$0xf]  ;;  %v7779_v3 = vld [vmem:[#allocation7 + $0x98] sm:$0xf0] }
 0x203   :  { %v10448_v43 = vpop.eup %10447 }
 0x204   :  { %v2064_v42 = vmul.f32 %v10448_v43, %v2059_v26  ;;  %v7814_v26 = vor.u32 %v9946_v27, %v7811_v36  ;;  %v7793_v43 = vld [vmem:[#allocation7 + $0xa8] sm:$0xf] }
 0x206   :  { %v10863_v54 = vpack.c.bf16 %v2064_v42, %v2064_v42  ;;  %v9942_v42 = vld [vmem:[#allocation7 + $0xac] sm:$0xf] }
 0x207   :  { %v1751_v13 = vpop.f32.mrf.mxu2  ;;  %v1764_v63 = vpop.f32.mrf.mxu3 }
 0x208   :  { %2458 = vmatmul.bf16.vlgmr.msrb.gmra.mxu0 %v10863_v54  ;;  %2471 = vmatmul.bf16.vlgmr.msrb.gmra.mxu1 %v10863_v54  ;;  %v9937_v13 = vld [vmem:[#allocation7 + $0x84] sm:$0xf]  ;;  %v7794_v63 = vor.u32 %v9944_v28, %v7793_v43  ;;  %v9936_v28 = vld [vmem:[#allocation7 + $0x74] sm:$0xf0] }
 0x209   :  { %2484 = vmatmul.bf16.vlgmr.msrb.gmra.mxu2 %v10863_v54  ;;  %2497 = vmatmul.bf16.vlgmr.msrb.gmra.mxu3 %v10863_v54  ;;  %v9933_v43 = vld [vmem:[#allocation7 + $0x64] sm:$0xf] }
 0x20a   :  { %2747 = vmatpush.bf16.msrb.mxu0 %v7818_v15  ;;  %2760 = vmatpush.bf16.msrb.mxu1 %v7822_v31  ;;  %v7790_v31 = vor.u32 %v9941_v41, %v7787_v12  ;;  %v7782_v12 = vor.u32 %v9938_v52, %v7779_v3 }
 0x20b   :  { %2773 = vmatpush.bf16.msrb.mxu2 %v7826_v22  ;;  %2786 = vmatpush.bf16.msrb.mxu3 %v7830_v49  ;;  %v7798_v22 = vor.u32 %v9942_v42, %v7795_v57  ;;  %v9940_v49 = vld [vmem:[#allocation7 + $0x94] sm:$0xf0]  ;;  %v9934_v42 = vld [vmem:[#allocation7 + $0x6c] sm:$0xf]  ;;  %v7763_v57 = vld [vmem:[#allocation7 + $0x78] sm:$0xf0] }
 0x20c   :  { %v1968_v62 = vpop.f32.mrf.mxu0  ;;  %v1981_v39 = vpop.f32.mrf.mxu1 }
 0x20d   :  { %v2011_v44 = vadd.f32 %v1968_v62, %v1723_v55  ;;  %v2012_v47 = vadd.f32 %v1981_v39, %v1736_v34  ;;  %v7771_v55 = vld [vmem:[#allocation7 + $0x90] sm:$0xf0]  ;;  %v7777_v34 = vld [vmem:[#allocation7 + $0x88] sm:$0xf]  ;;  %v9935_v62 = vld [vmem:[#allocation7 + $0x6c] sm:$0xf0] }
 0x20e   :  { %2748 = vmatpush.bf16.msrb.mxu0 %v7802_v11  ;;  %2761 = vmatpush.bf16.msrb.mxu1 %v7806_v10  ;;  %v7770_v11 = vor.u32 %v9939_v60, %v7769_v56  ;;  %v7774_v10 = vor.u32 %v9937_v13, %v7771_v55  ;;  %v7778_v37 = vor.u32 %v9940_v49, %v7777_v34  ;;  %v9929_v56 = vld [vmem:[#allocation7 + $0x44] sm:$0xf]  ;;  %v7745_v55 = vld [vmem:[#allocation7 + $0x48] sm:$0xf]  ;;  %v9932_v49 = vld [vmem:[#allocation7 + $0x54] sm:$0xf0] }
 0x20f   :  { %v2015_v53 = vadd.f32 %v2011_v44, %v10817_v48  ;;  %v2016_v15 = vadd.f32 %v2012_v47, %v10821_v50  ;;  %2774 = vmatpush.bf16.msrb.mxu2 %v7810_v40  ;;  %2787 = vmatpush.bf16.msrb.mxu3 %v7814_v26  ;;  %v7755_v44 = vld [vmem:[#allocation7 + $0x70] sm:$0xf0]  ;;  %v7761_v47 = vld [vmem:[#allocation7 + $0x68] sm:$0xf] }
 0x210   :  { %v7762_v13 = vor.u32 %v9936_v28, %v7761_v47  ;;  %v9926_v47 = vld [vmem:[#allocation7 + $0x2c] sm:$0xf]  ;;  %v7731_v28 = vld [vmem:[#allocation7 + $0x38] sm:$0xf0] }
 0x211   :  { %v2019_v14 = vmul.f32 0.5, %v2015_v53  ;;  %v2023_v2 = vmul.f32 0.5, %v2016_v15  ;;  %v7758_v15 = vor.u32 %v9933_v43, %v7755_v44  ;;  %v7729_v43 = vld [vmem:[#allocation7 + $0x28] sm:$0xf]  ;;  %v9928_v44 = vld [vmem:[#allocation7 + $0x34] sm:$0xf0] }
 0x212   :  { %2749 = vmatpush.bf16.msrb.mxu0 %v7786_v61  ;;  %2762 = vmatpush.bf16.msrb.mxu1 %v7790_v31  ;;  %v9931_v31 = vld [vmem:[#allocation7 + $0x4c] sm:$0xf0] }
 0x213   :  { %10449 = vtanh.f32 %v2019_v14  ;;  %v1994_v27 = vpop.f32.mrf.mxu2  ;;  %v2007_v36 = vpop.f32.mrf.mxu3  ;;  %2775 = vmatpush.bf16.msrb.mxu2 %v7794_v63  ;;  %2788 = vmatpush.bf16.msrb.mxu3 %v7798_v22  ;;  %v7766_v63 = vor.u32 %v9934_v42, %v7763_v57  ;;  %v7739_v22 = vld [vmem:[#allocation7 + $0x50] sm:$0xf0]  ;;  %v9930_v14 = vld [vmem:[#allocation7 + $0x4c] sm:$0xf] }
 0x214   :  { %10451 = vtanh.f32 %v2023_v2  ;;  %v2013_v39 = vadd.f32 %v1994_v27, %v10859_v1  ;;  %v2014_v40 = vadd.f32 %v2007_v36, %v10861_v38  ;;  %v1970_v26 = vpop.f32.mrf.mxu0  ;;  %v1983_v41 = vpop.f32.mrf.mxu1  ;;  %v7754_v1 = vor.u32 %v9935_v62, %v7753_v0  ;;  %v7737_v38 = vld [vmem:[#allocation7 + $0x40] sm:$0xf]  ;;  %v7747_v2 = vld [vmem:[#allocation7 + $0x58] sm:$0xf0]  ;;  %v9927_v36 = vld [vmem:[#allocation7 + $0x2c] sm:$0xf0] }
 0x215   :  { %v7721_v27 = vld [vmem:[#allocation7 + $0x20] sm:$0xf]  ;;  %v7738_v0 = vor.u32 %v9931_v31, %v7737_v38  ;;  %v7742_v62 = vor.u32 %v9929_v56, %v7739_v22  ;;  %v7746_v41 = vor.u32 %v9932_v49, %v7745_v55  ;;  %v9923_v38 = vld [vmem:[#allocation7 + $0xc] sm:$0xf0]  ;;  %v9921_v31 = vld [vmem:[#allocation7 + $0x4] sm:$0xf] }
 0x216   :  { %v2017_v61 = vadd.f32 %v2013_v39, %v10829_v20  ;;  %v2018_v53 = vadd.f32 %v2014_v40, %v10831_v51  ;;  %2750 = vmatpush.bf16.msrb.mxu0 %v7770_v11  ;;  %2763 = vmatpush.bf16.msrb.mxu1 %v7774_v10  ;;  %v9925_v39 = vld [vmem:[#allocation7 + $0x24] sm:$0xf]  ;;  %v7723_v40 = vld [vmem:[#allocation7 + $0x30] sm:$0xf0]  ;;  %v7722_v57 = vor.u32 %v9927_v36, %v7721_v27  ;;  %v9924_v22 = vld [vmem:[#allocation7 + $0x14] sm:$0xf0] }
 0x217   :  { %2776 = vmatpush.bf16.msrb.mxu2 %v7778_v37  ;;  %2789 = vmatpush.bf16.msrb.mxu3 %v7782_v12  ;;  %v7750_v12 = vor.u32 %v9930_v14, %v7747_v2  ;;  %v7707_v56 = vld [vmem:[#allocation7 + $0x10] sm:$0xf0]  ;;  %v9922_v55 = vld [vmem:[#allocation7 + $0xc] sm:$0xf]  ;;  %v7715_v14 = vld [vmem:[#allocation7 + $0x18] sm:$0xf0] }
 0x218   :  { %10453 = vtanh.f32 %v2017_v61  ;;  %v2028_v60 = vmul.f32 0.5, %v2018_v53  ;;  %2510 = vmatmul.bf16.vlgmr.msra.gmra.mxu0 %v10863_v54  ;;  %2523 = vmatmul.bf16.vlgmr.msra.gmra.mxu1 %v10863_v54  ;;  %v7705_v61 = vld [vmem:[#allocation7] sm:$0xf]  ;;  %v8066_v27 = vld [vmem:[#allocation5 + $0x1c8] sm:$0xf] }
 0x219   :  { %v10450_v34 = vpop.eup %10449  ;;  %2536 = vmatmul.bf16.vlgmr.msra.gmra.mxu2 %v10863_v54  ;;  %2549 = vmatmul.bf16.vlgmr.msra.gmra.mxu3 %v10863_v54  ;;  %v8058_v2 = vld [vmem:[#allocation5 + $0x1c0] sm:$0xf]  ;;  %v7706_v36 = vor.u32 %v9923_v38, %v7705_v61  ;;  %v10006_v61 = vld [vmem:[#allocation5 + $0x1a4] sm:$0xf0]  ;;  %v10002_v38 = vld [vmem:[#allocation5 + $0x18c] sm:$0xf] }
 0x21a   :  { %v10452_v52 = vpop.eup %10451  ;;  %v2021_v3 = vmul.f32 0.5, %v10450_v34  ;;  %10455 = vtanh.f32 %v2028_v60  ;;  %2751 = vmatpush.bf16.msrb.mxu0 %v7754_v1  ;;  %2764 = vmatpush.bf16.msrb.mxu1 %v7758_v15  ;;  %v7726_v15 = vor.u32 %v9925_v39, %v7723_v40  ;;  %v7730_v60 = vor.u32 %v9928_v44, %v7729_v43 }
 0x21b   :  { %v2025_v11 = vmul.f32 0.5, %v10452_v52  ;;  %v1996_v10 = vpop.f32.mrf.mxu2  ;;  %v2009_v37 = vpop.f32.mrf.mxu3  ;;  %2777 = vmatpush.bf16.msrb.mxu2 %v7762_v13  ;;  %2790 = vmatpush.bf16.msrb.mxu3 %v7766_v63  ;;  %v7734_v13 = vor.u32 %v9926_v47, %v7731_v28  ;;  %v7713_v63 = vld [vmem:[#allocation7 + $0x8] sm:$0xf]  ;;  %v10009_v52 = vld [vmem:[#allocation5 + $0x1c4] sm:$0xf]  ;;  %v7718_v40 = vor.u32 %v9922_v55, %v7715_v14 }
 0x21c   :  { %v2022_v26 = vadd.f32 0.5, %v2021_v3  ;;  %v8060_v3 = vld [vmem:[#allocation5 + $0x1e0] sm:$0xf0]  ;;  %v10014_v10 = vld [vmem:[#allocation5 + $0x1e4] sm:$0xf0]  ;;  %v7714_v39 = vor.u32 %v9924_v22, %v7713_v63 }
 0x21d   :  { %v2026_v54 = vadd.f32 0.5, %v2025_v11  ;;  %v7710_v11 = vor.u32 %v9921_v31, %v7707_v56  ;;  %v10010_v37 = vld [vmem:[#allocation5 + $0x1cc] sm:$0xf]  ;;  %v8067_v43 = vor.u32 %v10014_v10, %v8066_v27  ;;  %v10001_v47 = vld [vmem:[#allocation5 + $0x184] sm:$0xf] }
 0x21e   :  { %v10454_v42 = vpop.eup %10453  ;;  %2752 = vmatpush.bf16.msrb.mxu0 %v7738_v0  ;;  %2765 = vmatpush.bf16.msrb.mxu1 %v7742_v62  ;;  %v8068_v0 = vld [vmem:[#allocation5 + $0x1e8] sm:$0xf0]  ;;  %v8028_v28 = vld [vmem:[#allocation5 + $0x1a0] sm:$0xf0]  ;;  %v7994_v56 = vld [vmem:[#allocation5 + $0x140] sm:$0xf] }
 0x21f   :  { %v2032_v53 = vmul.f32 %v2026_v54, %v10841_v21  ;;  %v2033_v1 = vmul.f32 %v10454_v42, %v2022_v26  ;;  %2778 = vmatpush.bf16.msrb.mxu2 %v7746_v41  ;;  %2791 = vmatpush.bf16.msrb.mxu3 %v7750_v12  ;;  %v10013_v21 = vld [vmem:[#allocation5 + $0x1dc] sm:$0xf0]  ;;  %v8063_v41 = vor.u32 %v10009_v52, %v8060_v3  ;;  %v8036_v31 = vld [vmem:[#allocation5 + $0x1a8] sm:$0xf0]  ;;  %v9993_v63 = vld [vmem:[#allocation5 + $0x144] sm:$0xf] }
 0x220   :  { %v10456_v34 = vpop.eup %10455  ;;  %v8059_v26 = vor.u32 %v10013_v21, %v8058_v2  ;;  %v8026_v12 = vld [vmem:[#allocation5 + $0x180] sm:$0xf]  ;;  %v8071_v44 = vor.u32 %v10010_v37, %v8068_v0  ;;  %v7996_v22 = vld [vmem:[#allocation5 + $0x160] sm:$0xf0]  ;;  %v8039_v14 = vor.u32 %v10002_v38, %v8036_v31  ;;  %v8002_v2 = vld [vmem:[#allocation5 + $0x148] sm:$0xf] }
 0x221   :  { %v10880_v49 = vadd.f32 %v2033_v1, %v2032_v53  ;;  %v2030_v62 = vmul.f32 0.5, %v10456_v34  ;;  %v10005_v54 = vld [vmem:[#allocation5 + $0x19c] sm:$0xf0]  ;;  %v9998_v21 = vld [vmem:[#allocation5 + $0x164] sm:$0xf0]  ;;  %v7999_v3 = vor.u32 %v9993_v63, %v7996_v22 }
 0x222   :  { %2753 = vmatpush.bf16.msrb.mxu0 %v7722_v57  ;;  %2766 = vmatpush.bf16.msrb.mxu1 %v7726_v15  ;;  %v8034_v57 = vld [vmem:[#allocation5 + $0x188] sm:$0xf]  ;;  %v8027_v1 = vor.u32 %v10005_v54, %v8026_v12  ;;  %v8031_v15 = vor.u32 %v10001_v47, %v8028_v28  ;;  %v9994_v27 = vld [vmem:[#allocation5 + $0x14c] sm:$0xf]  ;;  %v9989_v10 = vld [vmem:[#allocation5 + $0x11c] sm:$0xf0] }
 0x223   :  { %10457 = vtanh.f32 %v10880_v49  ;;  %2779 = vmatpush.bf16.msrb.mxu2 %v7730_v60  ;;  %2792 = vmatpush.bf16.msrb.mxu3 %v7734_v13  ;;  %v2031_v42 = vadd.f32 0.5, %v2030_v62  ;;  %v9997_v13 = vld [vmem:[#allocation5 + $0x15c] sm:$0xf0]  ;;  %v8035_v34 = vor.u32 %v10006_v61, %v8034_v57  ;;  %v9985_v37 = vld [vmem:[#allocation5 + $0x104] sm:$0xf]  ;;  %v8003_v62 = vor.u32 %v9998_v21, %v8002_v2 }
 0x224   :  { %v7995_v52 = vor.u32 %v9997_v13, %v7994_v56  ;;  %v7964_v0 = vld [vmem:[#allocation5 + $0x120] sm:$0xf0]  ;;  %v7930_v54 = vld [vmem:[#allocation5 + $0xc0] sm:$0xf]  ;;  %v9982_v38 = vld [vmem:[#allocation5 + $0xe4] sm:$0xf0] }
 0x225   :  { %v7967_v12 = vor.u32 %v9985_v37, %v7964_v0  ;;  %v9981_v47 = vld [vmem:[#allocation5 + $0xdc] sm:$0xf0]  ;;  %v9977_v28 = vld [vmem:[#allocation5 + $0xc4] sm:$0xf]  ;;  %v9978_v31 = vld [vmem:[#allocation5 + $0xcc] sm:$0xf] }
 0x226   :  { %2754 = vmatpush.bf16.msrb.mxu0 %v7706_v36  ;;  %2767 = vmatpush.bf16.msrb.mxu1 %v7710_v11  ;;  %v8004_v36 = vld [vmem:[#allocation5 + $0x168] sm:$0xf0]  ;;  %v7962_v11 = vld [vmem:[#allocation5 + $0x100] sm:$0xf]  ;;  %v7906_v2 = vld [vmem:[#allocation5 + $0x88] sm:$0xf] }
 0x227   :  { %2780 = vmatpush.bf16.msrb.mxu2 %v7714_v39  ;;  %2793 = vmatpush.bf16.msrb.mxu3 %v7718_v40  ;;  %v8007_v39 = vor.u32 %v9994_v27, %v8004_v36  ;;  %v7970_v40 = vld [vmem:[#allocation5 + $0x108] sm:$0xf]  ;;  %v7940_v56 = vld [vmem:[#allocation5 + $0xe8] sm:$0xf0]  ;;  %v7898_v63 = vld [vmem:[#allocation5 + $0x80] sm:$0xf] }
 0x228   :  { %v7943_v13 = vor.u32 %v9978_v31, %v7940_v56  ;;  %v9973_v22 = vld [vmem:[#allocation5 + $0x9c] sm:$0xf0]  ;;  %v9974_v21 = vld [vmem:[#allocation5 + $0xa4] sm:$0xf0]  ;;  %v9970_v27 = vld [vmem:[#allocation5 + $0x8c] sm:$0xf] }
 0x229   :  { %v10458_v53 = vpop.eup %10457  ;;  %v7908_v36 = vld [vmem:[#allocation5 + $0xa8] sm:$0xf0]  ;;  %v9965_v37 = vld [vmem:[#allocation5 + $0x5c] sm:$0xf0]  ;;  %v9961_v0 = vld [vmem:[#allocation5 + $0x44] sm:$0xf] }
 0x22a   :  { %3238 = vmatpush.bf16.msra.mxu0 %v8059_v26  ;;  %3251 = vmatpush.bf16.msra.mxu1 %v8063_v41  ;;  %v2036_v60 = vmul.f32 %v10458_v53, %v2031_v42  ;;  %v9990_v26 = vld [vmem:[#allocation5 + $0x124] sm:$0xf0]  ;;  %v7963_v41 = vor.u32 %v9989_v10, %v7962_v11  ;;  %v7932_v42 = vld [vmem:[#allocation5 + $0xe0] sm:$0xf0]  ;;  %v7911_v11 = vor.u32 %v9970_v27, %v7908_v36  ;;  %v7866_v10 = vld [vmem:[#allocation5 + $0x40] sm:$0xf] }
 0x22b   :  { %3264 = vmatpush.bf16.msra.mxu2 %v8067_v43  ;;  %3277 = vmatpush.bf16.msra.mxu3 %v8071_v44  ;;  %v9986_v43 = vld [vmem:[#allocation5 + $0x10c] sm:$0xf]  ;;  %v7971_v57 = vor.u32 %v9990_v26, %v7970_v40  ;;  %v7938_v53 = vld [vmem:[#allocation5 + $0xc8] sm:$0xf]  ;;  %v8084_v27 = vld [vmem:[#allocation5 + $0x1f8] sm:$0xf0] }
 0x22c   :  { %7446 = vst [vmem:[%s11105_s6 + $0x8] sm:$0xff] %v2036_v60  ;;  %v2554_v55 = vpack.c.bf16 %v2036_v60, %v2036_v60  ;;  %v7972_v44 = vld [vmem:[#allocation5 + $0x128] sm:$0xf0]  ;;  %v7939_v60 = vor.u32 %v9982_v38, %v7938_v53  ;;  %v7874_v40 = vld [vmem:[#allocation5 + $0x48] sm:$0xf] }
 0x22d   :  { %v7975_v61 = vor.u32 %v9986_v43, %v7972_v44  ;;  %v9966_v26 = vld [vmem:[#allocation5 + $0x64] sm:$0xf0]  ;;  %v9962_v43 = vld [vmem:[#allocation5 + $0x4c] sm:$0xf]  ;;  %v8042_v36 = vld [vmem:[#allocation5 + $0x190] sm:$0xf] }
 0x22e   :  { %3239 = vmatpush.bf16.msra.mxu0 %v8027_v1  ;;  %3252 = vmatpush.bf16.msra.mxu1 %v8031_v15  ;;  %v7931_v1 = vor.u32 %v9981_v47, %v7930_v54  ;;  %v7935_v15 = vor.u32 %v9977_v28, %v7932_v42  ;;  %v7876_v44 = vld [vmem:[#allocation5 + $0x68] sm:$0xf0]  ;;  %v7834_v47 = vld [vmem:[#allocation5] sm:$0xf]  ;;  %v9953_v42 = vld [vmem:[#allocation5 + $0x4] sm:$0xf] }
 0x22f   :  { %2755 = vmatmul.bf16.vlgmr.msrb.gmra.mxu0 %v2554_v55  ;;  %2768 = vmatmul.bf16.vlgmr.msrb.gmra.mxu1 %v2554_v55  ;;  %v7879_v54 = vor.u32 %v9962_v43, %v7876_v44  ;;  %v9957_v28 = vld [vmem:[#allocation5 + $0x1c] sm:$0xf0]  ;;  %v7842_v53 = vld [vmem:[#allocation5 + $0x8] sm:$0xf]  ;;  %v9954_v31 = vld [vmem:[#allocation5 + $0xc] sm:$0xf] }
 0x230   :  { %2781 = vmatmul.bf16.vlgmr.msrb.gmra.mxu2 %v2554_v55  ;;  %2794 = vmatmul.bf16.vlgmr.msrb.gmra.mxu3 %v2554_v55  ;;  %v9969_v55 = vld [vmem:[#allocation5 + $0x84] sm:$0xf]  ;;  %v7844_v56 = vld [vmem:[#allocation5 + $0x28] sm:$0xf0] }
 0x231   :  { %3265 = vmatpush.bf16.msra.mxu2 %v8035_v34  ;;  %3278 = vmatpush.bf16.msra.mxu3 %v8039_v14  ;;  %v7899_v34 = vor.u32 %v9973_v22, %v7898_v63  ;;  %v7900_v14 = vld [vmem:[#allocation5 + $0xa0] sm:$0xf0]  ;;  %v10015_v63 = vld [vmem:[#allocation5 + $0x1ec] sm:$0xf0]  ;;  %v10011_v22 = vld [vmem:[#allocation5 + $0x1d4] sm:$0xf] }
 0x232   :  { %3240 = vmatpush.bf16.msra.mxu0 %v7995_v52  ;;  %3253 = vmatpush.bf16.msra.mxu1 %v7999_v3  ;;  %v7903_v52 = vor.u32 %v9969_v55, %v7900_v14  ;;  %v7907_v3 = vor.u32 %v9974_v21, %v7906_v2  ;;  %v8076_v55 = vld [vmem:[#allocation5 + $0x1f0] sm:$0xf0]  ;;  %v8082_v2 = vld [vmem:[#allocation5 + $0x1d8] sm:$0xf] }
 0x233   :  { %v8079_v14 = vor.u32 %v10011_v22, %v8076_v55  ;;  %v10016_v21 = vld [vmem:[#allocation5 + $0x1f4] sm:$0xf0]  ;;  %v7980_v55 = vld [vmem:[#allocation5 + $0x130] sm:$0xf0] }
 0x235   :  { %3266 = vmatpush.bf16.msra.mxu2 %v8003_v62  ;;  %3279 = vmatpush.bf16.msra.mxu3 %v8007_v39  ;;  %v7867_v62 = vor.u32 %v9965_v37, %v7866_v10  ;;  %v7868_v39 = vld [vmem:[#allocation5 + $0x60] sm:$0xf0] }
 0x236   :  { %3241 = vmatpush.bf16.msra.mxu0 %v7963_v41  ;;  %3254 = vmatpush.bf16.msra.mxu1 %v7967_v12  ;;  %v7871_v41 = vor.u32 %v9961_v0, %v7868_v39  ;;  %v7875_v12 = vor.u32 %v9966_v26, %v7874_v40  ;;  %v10003_v0 = vld [vmem:[#allocation5 + $0x194] sm:$0xf]  ;;  %v8050_v39 = vld [vmem:[#allocation5 + $0x198] sm:$0xf] }
 0x237   :  { %v10008_v26 = vld [vmem:[#allocation5 + $0x1b4] sm:$0xf0] }
 0x238   :  { %v8051_v43 = vor.u32 %v10008_v26, %v8050_v39  ;;  %v9984_v39 = vld [vmem:[#allocation5 + $0xf4] sm:$0xf0] }
 0x239   :  { %3267 = vmatpush.bf16.msra.mxu2 %v7971_v57  ;;  %3280 = vmatpush.bf16.msra.mxu3 %v7975_v61  ;;  %v7835_v57 = vor.u32 %v9957_v28, %v7834_v47  ;;  %v7836_v61 = vld [vmem:[#allocation5 + $0x20] sm:$0xf0]  ;;  %v9999_v47 = vld [vmem:[#allocation5 + $0x16c] sm:$0xf0]  ;;  %v9995_v28 = vld [vmem:[#allocation5 + $0x154] sm:$0xf] }
 0x23a   :  { %3242 = vmatpush.bf16.msra.mxu0 %v7931_v1  ;;  %3255 = vmatpush.bf16.msra.mxu1 %v7935_v15  ;;  %v9958_v1 = vld [vmem:[#allocation5 + $0x24] sm:$0xf0]  ;;  %v7839_v15 = vor.u32 %v9953_v42, %v7836_v61  ;;  %v8018_v61 = vld [vmem:[#allocation5 + $0x158] sm:$0xf] }
 0x23b   :  { %v7843_v38 = vor.u32 %v9958_v1, %v7842_v53  ;;  %v10000_v53 = vld [vmem:[#allocation5 + $0x174] sm:$0xf0] }
 0x23d   :  { %3268 = vmatpush.bf16.msra.mxu2 %v7939_v60  ;;  %3281 = vmatpush.bf16.msra.mxu3 %v7943_v13  ;;  %v8074_v60 = vld [vmem:[#allocation5 + $0x1d0] sm:$0xf]  ;;  %v7847_v13 = vor.u32 %v9954_v31, %v7844_v56  ;;  %v8020_v31 = vld [vmem:[#allocation5 + $0x178] sm:$0xf0] }
 0x23e   :  { %3243 = vmatpush.bf16.msra.mxu0 %v7899_v34  ;;  %3256 = vmatpush.bf16.msra.mxu1 %v7903_v52  ;;  %v8075_v34 = vor.u32 %v10015_v63, %v8074_v60  ;;  %v10012_v52 = vld [vmem:[#allocation5 + $0x1dc] sm:$0xf]  ;;  %v7978_v60 = vld [vmem:[#allocation5 + $0x110] sm:$0xf]  ;;  %v9987_v63 = vld [vmem:[#allocation5 + $0x114] sm:$0xf] }
 0x23f   :  { %v8087_v10 = vor.u32 %v10012_v52, %v8084_v27  ;;  %v9988_v52 = vld [vmem:[#allocation5 + $0x11c] sm:$0xf] }
 0x241   :  { %3269 = vmatpush.bf16.msra.mxu2 %v7907_v3  ;;  %3282 = vmatpush.bf16.msra.mxu3 %v7911_v11  ;;  %v8083_v3 = vor.u32 %v10016_v21, %v8082_v2  ;;  %v10007_v11 = vld [vmem:[#allocation5 + $0x1ac] sm:$0xf0]  ;;  %v7983_v2 = vor.u32 %v9987_v63, %v7980_v55 }
 0x242   :  { %3244 = vmatpush.bf16.msra.mxu0 %v7867_v62  ;;  %3257 = vmatpush.bf16.msra.mxu1 %v7871_v41  ;;  %v8043_v37 = vor.u32 %v10007_v11, %v8042_v36  ;;  %v8044_v62 = vld [vmem:[#allocation5 + $0x1b0] sm:$0xf0]  ;;  %v10004_v41 = vld [vmem:[#allocation5 + $0x19c] sm:$0xf]  ;;  %v7946_v36 = vld [vmem:[#allocation5 + $0xd0] sm:$0xf] }
 0x243   :  { %v8047_v40 = vor.u32 %v10003_v0, %v8044_v62  ;;  %v9983_v11 = vld [vmem:[#allocation5 + $0xec] sm:$0xf0]  ;;  %v7948_v0 = vld [vmem:[#allocation5 + $0xf0] sm:$0xf0]  ;;  %v7954_v62 = vld [vmem:[#allocation5 + $0xd8] sm:$0xf] }
 0x244   :  { %v7955_v26 = vor.u32 %v9984_v39, %v7954_v62  ;;  %v9967_v55 = vld [vmem:[#allocation5 + $0x6c] sm:$0xf0] }
 0x245   :  { %3270 = vmatpush.bf16.msra.mxu2 %v7875_v12  ;;  %3283 = vmatpush.bf16.msra.mxu3 %v7879_v54  ;;  %v8052_v12 = vld [vmem:[#allocation5 + $0x1b8] sm:$0xf0]  ;;  %v8010_v54 = vld [vmem:[#allocation5 + $0x150] sm:$0xf] }
 0x246   :  { %3245 = vmatpush.bf16.msra.mxu0 %v7835_v57  ;;  %3258 = vmatpush.bf16.msra.mxu1 %v7839_v15  ;;  %v8055_v44 = vor.u32 %v10004_v41, %v8052_v12  ;;  %v8011_v42 = vor.u32 %v9999_v47, %v8010_v54  ;;  %v8012_v57 = vld [vmem:[#allocation5 + $0x170] sm:$0xf0]  ;;  %v8019_v15 = vor.u32 %v10000_v53, %v8018_v61  ;;  %v9980_v41 = vld [vmem:[#allocation5 + $0xdc] sm:$0xf]  ;;  %v9975_v54 = vld [vmem:[#allocation5 + $0xac] sm:$0xf0] }
 0x247   :  { %v8015_v1 = vor.u32 %v9995_v28, %v8012_v57  ;;  %v7956_v12 = vld [vmem:[#allocation5 + $0xf8] sm:$0xf0]  ;;  %v9971_v47 = vld [vmem:[#allocation5 + $0x94] sm:$0xf]  ;;  %v7922_v57 = vld [vmem:[#allocation5 + $0x98] sm:$0xf] }
 0x248   :  { %v9976_v61 = vld [vmem:[#allocation5 + $0xb4] sm:$0xf0]  ;;  %v7850_v62 = vld [vmem:[#allocation5 + $0x10] sm:$0xf] }
 0x249   :  { %3271 = vmatpush.bf16.msra.mxu2 %v7843_v38  ;;  %3284 = vmatpush.bf16.msra.mxu3 %v7847_v13  ;;  %v9996_v38 = vld [vmem:[#allocation5 + $0x15c] sm:$0xf]  ;;  %v9991_v13 = vld [vmem:[#allocation5 + $0x12c] sm:$0xf0] }
 0x24a   :  { %3290 = vmatpush.bf16.msrb.mxu0 %v8075_v34  ;;  %3303 = vmatpush.bf16.msrb.mxu1 %v8079_v14  ;;  %v8023_v56 = vor.u32 %v9996_v38, %v8020_v31  ;;  %v7979_v22 = vor.u32 %v9991_v13, %v7978_v60  ;;  %v7986_v34 = vld [vmem:[#allocation5 + $0x118] sm:$0xf]  ;;  %v7924_v38 = vld [vmem:[#allocation5 + $0xb8] sm:$0xf0]  ;;  %v324_v31 = vadd.f32 %v10758_v4, %v10717_v24  ;;  %v9959_v39 = vld [vmem:[#allocation5 + $0x2c] sm:$0xf0] }
 0x24b   :  { %v9992_v14 = vld [vmem:[#allocation5 + $0x134] sm:$0xf0] }
 0x24c   :  { %v7987_v21 = vor.u32 %v9992_v14, %v7986_v34  ;;  %v9963_v34 = vld [vmem:[#allocation5 + $0x54] sm:$0xf] }
 0x24d   :  { %3316 = vmatpush.bf16.msrb.mxu2 %v8083_v3  ;;  %3329 = vmatpush.bf16.msrb.mxu3 %v8087_v10  ;;  %v7988_v3 = vld [vmem:[#allocation5 + $0x138] sm:$0xf0]  ;;  %v9979_v10 = vld [vmem:[#allocation5 + $0xd4] sm:$0xf] }
 0x24e   :  { %3291 = vmatpush.bf16.msrb.mxu0 %v8043_v37  ;;  %3304 = vmatpush.bf16.msrb.mxu1 %v8047_v40  ;;  %v7991_v27 = vor.u32 %v9988_v52, %v7988_v3  ;;  %v7947_v37 = vor.u32 %v9983_v11, %v7946_v36  ;;  %v7951_v40 = vor.u32 %v9979_v10, %v7948_v0  ;;  %v7884_v52 = vld [vmem:[#allocation5 + $0x70] sm:$0xf0]  ;;  %v7890_v3 = vld [vmem:[#allocation5 + $0x58] sm:$0xf]  ;;  %v9964_v11 = vld [vmem:[#allocation5 + $0x5c] sm:$0xf] }
 0x24f   :  { %v7887_v4 = vor.u32 %v9963_v34, %v7884_v52 }
 0x251   :  { %3317 = vmatpush.bf16.msrb.mxu2 %v8051_v43  ;;  %3330 = vmatpush.bf16.msrb.mxu3 %v8055_v44  ;;  %v7959_v43 = vor.u32 %v9980_v41, %v7956_v12  ;;  %v7914_v44 = vld [vmem:[#allocation5 + $0x90] sm:$0xf]  ;;  %v7851_v41 = vor.u32 %v9959_v39, %v7850_v62  ;;  %v7852_v12 = vld [vmem:[#allocation5 + $0x30] sm:$0xf0]  ;;  %v8202_v39 = vld [vmem:[#allocation7 + $0xe0] sm:$0xf] }
 0x252   :  { %3292 = vmatpush.bf16.msrb.mxu0 %v8011_v42  ;;  %3305 = vmatpush.bf16.msrb.mxu1 %v8015_v1  ;;  %v7915_v28 = vor.u32 %v9975_v54, %v7914_v44  ;;  %v7916_v42 = vld [vmem:[#allocation5 + $0xb0] sm:$0xf0]  ;;  %v7923_v1 = vor.u32 %v9976_v61, %v7922_v57  ;;  %v9960_v44 = vld [vmem:[#allocation5 + $0x34] sm:$0xf0]  ;;  %v411_v54 = vadd.f32 %v10764_v7, %v10725_v46  ;;  %v7860_v57 = vld [vmem:[#allocation5 + $0x38] sm:$0xf0] }
 0x253   :  { %v7919_v53 = vor.u32 %v9971_v47, %v7916_v42  ;;  %v9956_v42 = vld [vmem:[#allocation5 + $0x1c] sm:$0xf] }
 0x255   :  { %3318 = vmatpush.bf16.msrb.mxu2 %v8019_v15  ;;  %3331 = vmatpush.bf16.msrb.mxu3 %v8023_v56  ;;  %v9972_v15 = vld [vmem:[#allocation5 + $0x9c] sm:$0xf]  ;;  %v353_v56 = vadd.f32 %v10760_v5, %v10719_v25 }
 0x256   :  { %3293 = vmatpush.bf16.msrb.mxu0 %v7979_v22  ;;  %3306 = vmatpush.bf16.msrb.mxu1 %v7983_v2  ;;  %v7927_v60 = vor.u32 %v9972_v15, %v7924_v38  ;;  %v7882_v22 = vld [vmem:[#allocation5 + $0x50] sm:$0xf]  ;;  %v7892_v5 = vld [vmem:[#allocation5 + $0x78] sm:$0xf0] }
 0x257   :  { %v7895_v0 = vor.u32 %v9964_v11, %v7892_v5 }
 0x259   :  { %3319 = vmatpush.bf16.msrb.mxu2 %v7987_v21  ;;  %3332 = vmatpush.bf16.msrb.mxu3 %v7991_v27  ;;  %v7883_v21 = vor.u32 %v9967_v55, %v7882_v22  ;;  %v9968_v27 = vld [vmem:[#allocation5 + $0x74] sm:$0xf0] }
 0x25a   :  { %3294 = vmatpush.bf16.msrb.mxu0 %v7947_v37  ;;  %3307 = vmatpush.bf16.msrb.mxu1 %v7951_v40  ;;  %v7891_v36 = vor.u32 %v9968_v27, %v7890_v3  ;;  %v9955_v40 = vld [vmem:[#allocation5 + $0x14] sm:$0xf] }
 0x25b   :  { %v7855_v47 = vor.u32 %v9955_v40, %v7852_v12  ;;  %v10047_v40 = vld [vmem:[#allocation7 + $0xec] sm:$0xf0]  ;;  %v8204_v12 = vld [vmem:[#allocation7 + $0xf0] sm:$0xf0] }
 0x25d   :  { %3320 = vmatpush.bf16.msrb.mxu2 %v7955_v26  ;;  %3333 = vmatpush.bf16.msrb.mxu3 %v7959_v43  ;;  %v382_v26 = vadd.f32 %v10762_v6, %v10723_v45  ;;  %v7858_v43 = vld [vmem:[#allocation5 + $0x18] sm:$0xf]  ;;  %v7863_v6 = vor.u32 %v9956_v42, %v7860_v57  ;;  %v8203_v42 = vor.u32 %v10047_v40, %v8202_v39 }
 0x25e   :  { %3295 = vmatpush.bf16.msrb.mxu0 %v7915_v28  ;;  %3308 = vmatpush.bf16.msrb.mxu1 %v7919_v53  ;;  %v7859_v28 = vor.u32 %v9960_v44, %v7858_v43  ;;  %v10048_v44 = vld [vmem:[#allocation7 + $0xf4] sm:$0xf0] }
 0x261   :  { %3321 = vmatpush.bf16.msrb.mxu2 %v7923_v1  ;;  %3334 = vmatpush.bf16.msrb.mxu3 %v7927_v60 }
 0x262   :  { %3296 = vmatpush.bf16.msrb.mxu0 %v7883_v21  ;;  %3309 = vmatpush.bf16.msrb.mxu1 %v7887_v4 }
 0x265   :  { %3322 = vmatpush.bf16.msrb.mxu2 %v7891_v36  ;;  %3335 = vmatpush.bf16.msrb.mxu3 %v7895_v0 }
 0x266   :  { %3297 = vmatpush.bf16.msrb.mxu0 %v7851_v41  ;;  %3310 = vmatpush.bf16.msrb.mxu1 %v7855_v47  ;;  %v10045_v41 = vld [vmem:[#allocation7 + $0xe4] sm:$0xf]  ;;  %v8212_v47 = vld [vmem:[#allocation7 + $0xf8] sm:$0xf0] }
 0x267   :  { %v8207_v57 = vor.u32 %v10045_v41, %v8204_v12 }
 0x269   :  { %3323 = vmatpush.bf16.msrb.mxu2 %v7859_v28  ;;  %3336 = vmatpush.bf16.msrb.mxu3 %v7863_v6 }
 0x285   :  { %v2459_v13 = vpop.f32.mrf.mxu0  ;;  %v2472_v63 = vpop.f32.mrf.mxu1 }
 0x286   :  { %v2831_v14 = vadd.f32 %v2459_v13, %v324_v31  ;;  %v2832_v2 = vadd.f32 %v2472_v63, %v353_v56 }
 0x288   :  { %v2835_v10 = vmul.f32 0.5, %v2831_v14  ;;  %v2839_v37 = vmul.f32 0.5, %v2832_v2 }
 0x28a   :  { %10459 = vtanh.f32 %v2835_v10 }
 0x28b   :  { %10461 = vtanh.f32 %v2839_v37 }
 0x28c   :  { %v2485_v61 = vpop.f32.mrf.mxu2  ;;  %v2498_v53 = vpop.f32.mrf.mxu3 }
 0x28d   :  { %v2833_v1 = vadd.f32 %v2485_v61, %v382_v26  ;;  %v2834_v15 = vadd.f32 %v2498_v53, %v411_v54  ;;  %v2461_v38 = vpop.f32.mrf.mxu0  ;;  %v2474_v31 = vpop.f32.mrf.mxu1  ;;  %v10046_v54 = vld [vmem:[#allocation7 + $0xec] sm:$0xf]  ;;  %v8186_v61 = vld [vmem:[#allocation7 + $0xc0] sm:$0xf]  ;;  %v10043_v53 = vld [vmem:[#allocation7 + $0xcc] sm:$0xf0] }
 0x28e   :  { %v8215_v38 = vor.u32 %v10046_v54, %v8212_v47  ;;  %v10041_v31 = vld [vmem:[#allocation7 + $0xc4] sm:$0xf] }
 0x28f   :  { %10463 = vtanh.f32 %v2833_v1  ;;  %v2844_v56 = vmul.f32 0.5, %v2834_v15 }
 0x290   :  { %v10460_v7 = vpop.eup %10459 }
 0x291   :  { %v10462_v60 = vpop.eup %10461  ;;  %v2837_v13 = vmul.f32 0.5, %v10460_v7  ;;  %10465 = vtanh.f32 %v2844_v56  ;;  %v8188_v56 = vld [vmem:[#allocation7 + $0xd0] sm:$0xf0]  ;;  %v8194_v7 = vld [vmem:[#allocation7 + $0xc8] sm:$0xf] }
 0x292   :  { %v2841_v63 = vmul.f32 0.5, %v10462_v60  ;;  %v10044_v60 = vld [vmem:[#allocation7 + $0xd4] sm:$0xf0] }
 0x293   :  { %v2838_v22 = vadd.f32 0.5, %v2837_v13  ;;  %v10042_v13 = vld [vmem:[#allocation7 + $0xcc] sm:$0xf] }
 0x294   :  { %v2842_v55 = vadd.f32 0.5, %v2841_v63  ;;  %v2487_v34 = vpop.f32.mrf.mxu2  ;;  %v2500_v14 = vpop.f32.mrf.mxu3  ;;  %v8196_v63 = vld [vmem:[#allocation7 + $0xd8] sm:$0xf0] }
 0x295   :  { %v10464_v2 = vpop.eup %10463  ;;  %v2511_v21 = vpop.f32.mrf.mxu0  ;;  %v8170_v34 = vld [vmem:[#allocation7 + $0xa0] sm:$0xf]  ;;  %v10039_v14 = vld [vmem:[#allocation7 + $0xac] sm:$0xf0] }
 0x296   :  { %v2524_v52 = vpop.f32.mrf.mxu1  ;;  %v2848_v3 = vmul.f32 %v2842_v55, %v10856_v35  ;;  %v2849_v27 = vmul.f32 %v10464_v2, %v2838_v22  ;;  %v8210_v35 = vld [vmem:[#allocation7 + $0xe8] sm:$0xf]  ;;  %v8187_v22 = vor.u32 %v10043_v53, %v8186_v61  ;;  %v8191_v55 = vor.u32 %v10041_v31, %v8188_v56 }
 0x297   :  { %v10466_v4 = vpop.eup %10465  ;;  %v8211_v15 = vor.u32 %v10048_v44, %v8210_v35  ;;  %v8195_v2 = vor.u32 %v10044_v60, %v8194_v7  ;;  %v10035_v44 = vld [vmem:[#allocation7 + $0x8c] sm:$0xf0]  ;;  %v8162_v61 = vld [vmem:[#allocation7 + $0x88] sm:$0xf] }
 0x298   :  { %v10895_v36 = vadd.f32 %v2849_v27, %v2848_v3  ;;  %v2846_v11 = vmul.f32 0.5, %v10466_v4  ;;  %v8199_v3 = vor.u32 %v10042_v13, %v8196_v63  ;;  %v10037_v27 = vld [vmem:[#allocation7 + $0xa4] sm:$0xf]  ;;  %v8172_v4 = vld [vmem:[#allocation7 + $0xb0] sm:$0xf0] }
 0x299   :  { %v8175_v35 = vor.u32 %v10037_v27, %v8172_v4  ;;  %v10031_v60 = vld [vmem:[#allocation7 + $0x6c] sm:$0xf0]  ;;  %v10029_v13 = vld [vmem:[#allocation7 + $0x64] sm:$0xf]  ;;  %v10030_v27 = vld [vmem:[#allocation7 + $0x6c] sm:$0xf] }
 0x29a   :  { %10467 = vtanh.f32 %v10895_v36  ;;  %v2847_v62 = vadd.f32 0.5, %v2846_v11  ;;  %v8178_v11 = vld [vmem:[#allocation7 + $0xa8] sm:$0xf]  ;;  %v8148_v4 = vld [vmem:[#allocation7 + $0x78] sm:$0xf0] }
 0x29c   :  { %v10898_v5 = vpop.f32.mrf.mxu2  ;;  %v10900_v10 = vpop.f32.mrf.mxu3 }
 0x29d   :  { %v2513_v37 = vpop.f32.mrf.mxu0 }
 0x29e   :  { %v2526_v0 = vpop.f32.mrf.mxu1  ;;  %v10040_v37 = vld [vmem:[#allocation7 + $0xb4] sm:$0xf0] }
 0x29f   :  { %v10038_v0 = vld [vmem:[#allocation7 + $0xac] sm:$0xf]  ;;  %v8179_v54 = vor.u32 %v10040_v37, %v8178_v11 }
 0x2a0   :  { %v10468_v26 = vpop.eup %10467 }
 0x2a1   :  { %v2852_v43 = vmul.f32 %v10468_v26, %v2847_v62  ;;  %v8180_v62 = vld [vmem:[#allocation7 + $0xb8] sm:$0xf0]  ;;  %v8171_v26 = vor.u32 %v10039_v14, %v8170_v34  ;;  %v8146_v34 = vld [vmem:[#allocation7 + $0x68] sm:$0xf]  ;;  %v10032_v14 = vld [vmem:[#allocation7 + $0x74] sm:$0xf0] }
 0x2a2   :  { %v8183_v47 = vor.u32 %v10038_v0, %v8180_v62 }
 0x2a3   :  { %v10902_v28 = vpack.c.bf16 %v2852_v43, %v2852_v43  ;;  %v8154_v43 = vld [vmem:[#allocation7 + $0x80] sm:$0xf] }
 0x2a4   :  { %v2539_v6 = vpop.f32.mrf.mxu2  ;;  %v2552_v1 = vpop.f32.mrf.mxu3  ;;  %v8155_v56 = vor.u32 %v10035_v44, %v8154_v43  ;;  %v8151_v44 = vor.u32 %v10030_v27, %v8148_v4  ;;  %v10019_v27 = vld [vmem:[#allocation7 + $0xc] sm:$0xf0] }
 0x2a5   :  { %3246 = vmatmul.bf16.vlgmr.msra.gmra.mxu0 %v10902_v28  ;;  %3259 = vmatmul.bf16.vlgmr.msra.gmra.mxu1 %v10902_v28  ;;  %v10036_v1 = vld [vmem:[#allocation7 + $0x94] sm:$0xf0] }
 0x2a6   :  { %3272 = vmatmul.bf16.vlgmr.msra.gmra.mxu2 %v10902_v28  ;;  %3285 = vmatmul.bf16.vlgmr.msra.gmra.mxu3 %v10902_v28  ;;  %v8163_v63 = vor.u32 %v10036_v1, %v8162_v61 }
 0x2a7   :  { %3535 = vmatpush.bf16.msra.mxu0 %v8203_v42  ;;  %3548 = vmatpush.bf16.msra.mxu1 %v8207_v57  ;;  %v10033_v42 = vld [vmem:[#allocation7 + $0x84] sm:$0xf]  ;;  %v8156_v57 = vld [vmem:[#allocation7 + $0x90] sm:$0xf0] }
 0x2a8   :  { %3561 = vmatpush.bf16.msra.mxu2 %v8211_v15  ;;  %3574 = vmatpush.bf16.msra.mxu3 %v8215_v38  ;;  %v10034_v15 = vld [vmem:[#allocation7 + $0x8c] sm:$0xf]  ;;  %v8159_v7 = vor.u32 %v10033_v42, %v8156_v57  ;;  %v8132_v57 = vld [vmem:[#allocation7 + $0x58] sm:$0xf0] }
 0x2a9   :  { %v10026_v42 = vld [vmem:[#allocation7 + $0x4c] sm:$0xf] }
 0x2ab   :  { %3536 = vmatpush.bf16.msra.mxu0 %v8187_v22  ;;  %3549 = vmatpush.bf16.msra.mxu1 %v8191_v55  ;;  %v8140_v55 = vld [vmem:[#allocation7 + $0x70] sm:$0xf0] }
 0x2ac   :  { %v2756_v39 = vpop.f32.mrf.mxu0  ;;  %v2769_v40 = vpop.f32.mrf.mxu1  ;;  %3562 = vmatpush.bf16.msra.mxu2 %v8195_v2  ;;  %3575 = vmatpush.bf16.msra.mxu3 %v8199_v3 }
 0x2ad   :  { %v2799_v41 = vadd.f32 %v2756_v39, %v2511_v21  ;;  %v2800_v12 = vadd.f32 %v2769_v40, %v2524_v52  ;;  %v8164_v21 = vld [vmem:[#allocation7 + $0x98] sm:$0xf0]  ;;  %v8138_v52 = vld [vmem:[#allocation7 + $0x60] sm:$0xf]  ;;  %v8143_v40 = vor.u32 %v10029_v13, %v8140_v55  ;;  %v8114_v13 = vld [vmem:[#allocation7 + $0x28] sm:$0xf] }
 0x2ae   :  { %v8167_v22 = vor.u32 %v10034_v15, %v8164_v21  ;;  %v8139_v39 = vor.u32 %v10031_v60, %v8138_v52  ;;  %v10023_v21 = vld [vmem:[#allocation7 + $0x2c] sm:$0xf0]  ;;  %v10021_v52 = vld [vmem:[#allocation7 + $0x24] sm:$0xf]  ;;  %v8135_v60 = vor.u32 %v10026_v42, %v8132_v57  ;;  %v8451_v57 = vld [vmem:[#allocation5 + $0x1c8] sm:$0xf] }
 0x2af   :  { %v2803_v53 = vadd.f32 %v2799_v41, %v10817_v48  ;;  %v2804_v6 = vadd.f32 %v2800_v12, %v10821_v50  ;;  %3537 = vmatpush.bf16.msra.mxu0 %v8171_v26  ;;  %3550 = vmatpush.bf16.msra.mxu1 %v8175_v35  ;;  %v8147_v26 = vor.u32 %v10032_v14, %v8146_v34  ;;  %v8122_v41 = vld [vmem:[#allocation7 + $0x40] sm:$0xf]  ;;  %v10027_v12 = vld [vmem:[#allocation7 + $0x4c] sm:$0xf0]  ;;  %v10022_v34 = vld [vmem:[#allocation7 + $0x2c] sm:$0xf] }
 0x2b0   :  { %3563 = vmatpush.bf16.msra.mxu2 %v8179_v54  ;;  %3576 = vmatpush.bf16.msra.mxu3 %v8183_v47  ;;  %v10025_v54 = vld [vmem:[#allocation7 + $0x44] sm:$0xf]  ;;  %v8130_v47 = vld [vmem:[#allocation7 + $0x48] sm:$0xf]  ;;  %v8123_v1 = vor.u32 %v10027_v12, %v8122_v41  ;;  %v8116_v14 = vld [vmem:[#allocation7 + $0x38] sm:$0xf0] }
 0x2b1   :  { %v2807_v38 = vmul.f32 0.5, %v2803_v53  ;;  %v2811_v31 = vmul.f32 0.5, %v2804_v6  ;;  %v8106_v53 = vld [vmem:[#allocation7 + $0x20] sm:$0xf]  ;;  %v8098_v41 = vld [vmem:[#allocation7 + $0x8] sm:$0xf] }
 0x2b2   :  { %v10020_v12 = vld [vmem:[#allocation7 + $0x14] sm:$0xf0]  ;;  %v8445_v42 = vld [vmem:[#allocation5 + $0x1e0] sm:$0xf0] }
 0x2b3   :  { %10469 = vtanh.f32 %v2807_v38  ;;  %v2782_v2 = vpop.f32.mrf.mxu2  ;;  %v2795_v3 = vpop.f32.mrf.mxu3  ;;  %3538 = vmatpush.bf16.msra.mxu0 %v8155_v56  ;;  %3551 = vmatpush.bf16.msra.mxu1 %v8159_v7  ;;  %v8108_v38 = vld [vmem:[#allocation7 + $0x30] sm:$0xf0] }
 0x2b4   :  { %10471 = vtanh.f32 %v2811_v31  ;;  %v2801_v11 = vadd.f32 %v2782_v2, %v10898_v5  ;;  %v2802_v37 = vadd.f32 %v2795_v3, %v10900_v10  ;;  %v2758_v0 = vpop.f32.mrf.mxu0  ;;  %v2771_v62 = vpop.f32.mrf.mxu1  ;;  %3564 = vmatpush.bf16.msra.mxu2 %v8163_v63  ;;  %3577 = vmatpush.bf16.msra.mxu3 %v8167_v22  ;;  %v8124_v5 = vld [vmem:[#allocation7 + $0x50] sm:$0xf0]  ;;  %v10028_v10 = vld [vmem:[#allocation7 + $0x54] sm:$0xf0]  ;;  %v8090_v3 = vld [vmem:[#allocation7] sm:$0xf] }
 0x2b5   :  { %3298 = vmatmul.bf16.vlgmr.msrb.gmra.mxu0 %v10902_v28  ;;  %3311 = vmatmul.bf16.vlgmr.msrb.gmra.mxu1 %v10902_v28  ;;  %v8127_v15 = vor.u32 %v10025_v54, %v8124_v5  ;;  %v8131_v7 = vor.u32 %v10028_v10, %v8130_v47  ;;  %v10024_v63 = vld [vmem:[#allocation7 + $0x34] sm:$0xf0]  ;;  %v10017_v0 = vld [vmem:[#allocation7 + $0x4] sm:$0xf]  ;;  %v8092_v62 = vld [vmem:[#allocation7 + $0x10] sm:$0xf0] }
 0x2b6   :  { %v2805_v35 = vadd.f32 %v2801_v11, %v10829_v20  ;;  %v2806_v43 = vadd.f32 %v2802_v37, %v10831_v51  ;;  %3324 = vmatmul.bf16.vlgmr.msrb.gmra.mxu2 %v10902_v28  ;;  %3337 = vmatmul.bf16.vlgmr.msrb.gmra.mxu3 %v10902_v28  ;;  %v8107_v11 = vor.u32 %v10023_v21, %v8106_v53  ;;  %v8100_v54 = vld [vmem:[#allocation7 + $0x18] sm:$0xf0]  ;;  %v8443_v5 = vld [vmem:[#allocation5 + $0x1c0] sm:$0xf]  ;;  %v10105_v10 = vld [vmem:[#allocation5 + $0x1c4] sm:$0xf] }
 0x2b7   :  { %3539 = vmatpush.bf16.msra.mxu0 %v8139_v39  ;;  %3552 = vmatpush.bf16.msra.mxu1 %v8143_v40  ;;  %v8111_v37 = vor.u32 %v10021_v52, %v8108_v38  ;;  %v8115_v40 = vor.u32 %v10024_v63, %v8114_v13  ;;  %v10109_v47 = vld [vmem:[#allocation5 + $0x1dc] sm:$0xf0]  ;;  %v10106_v21 = vld [vmem:[#allocation5 + $0x1cc] sm:$0xf]  ;;  %v10097_v13 = vld [vmem:[#allocation5 + $0x184] sm:$0xf] }
 0x2b8   :  { %10473 = vtanh.f32 %v2805_v35  ;;  %v2816_v61 = vmul.f32 0.5, %v2806_v43  ;;  %3565 = vmatpush.bf16.msra.mxu2 %v8147_v26  ;;  %3578 = vmatpush.bf16.msra.mxu3 %v8151_v44  ;;  %v8119_v26 = vor.u32 %v10022_v34, %v8116_v14  ;;  %v10018_v35 = vld [vmem:[#allocation7 + $0xc] sm:$0xf]  ;;  %v8419_v34 = vld [vmem:[#allocation5 + $0x188] sm:$0xf] }
 0x2b9   :  { %v10470_v6 = vpop.eup %10469  ;;  %v8453_v52 = vld [vmem:[#allocation5 + $0x1e8] sm:$0xf0]  ;;  %v8103_v38 = vor.u32 %v10018_v35, %v8100_v54  ;;  %v10102_v14 = vld [vmem:[#allocation5 + $0x1a4] sm:$0xf0] }
 0x2ba   :  { %v10472_v31 = vpop.eup %10471  ;;  %v2809_v56 = vmul.f32 0.5, %v10470_v6  ;;  %10475 = vtanh.f32 %v2816_v61  ;;  %v8091_v6 = vor.u32 %v10019_v27, %v8090_v3  ;;  %v8421_v3 = vld [vmem:[#allocation5 + $0x1a8] sm:$0xf0] }
 0x2bb   :  { %v2813_v22 = vmul.f32 0.5, %v10472_v31  ;;  %v2784_v28 = vpop.f32.mrf.mxu2  ;;  %v2797_v55 = vpop.f32.mrf.mxu3  ;;  %3540 = vmatpush.bf16.msra.mxu0 %v8123_v1  ;;  %3553 = vmatpush.bf16.msra.mxu1 %v8127_v15  ;;  %v8095_v1 = vor.u32 %v10017_v0, %v8092_v62  ;;  %v10110_v15 = vld [vmem:[#allocation5 + $0x1e4] sm:$0xf0]  ;;  %v8444_v31 = vor.u32 %v10109_v47, %v8443_v5  ;;  %v8379_v62 = vld [vmem:[#allocation5 + $0x140] sm:$0xf] }
 0x2bc   :  { %v2810_v2 = vadd.f32 0.5, %v2809_v56  ;;  %3566 = vmatpush.bf16.msra.mxu2 %v8131_v7  ;;  %3579 = vmatpush.bf16.msra.mxu3 %v8135_v60  ;;  %v8448_v56 = vor.u32 %v10105_v10, %v8445_v42  ;;  %v8411_v7 = vld [vmem:[#allocation5 + $0x180] sm:$0xf]  ;;  %v8456_v28 = vor.u32 %v10106_v21, %v8453_v52  ;;  %v8413_v55 = vld [vmem:[#allocation5 + $0x1a0] sm:$0xf0] }
 0x2bd   :  { %v2814_v4 = vadd.f32 0.5, %v2813_v22  ;;  %v10101_v60 = vld [vmem:[#allocation5 + $0x19c] sm:$0xf0]  ;;  %v8452_v22 = vor.u32 %v10110_v15, %v8451_v57  ;;  %v8389_v54 = vld [vmem:[#allocation5 + $0x168] sm:$0xf0] }
 0x2be   :  { %v10474_v39 = vpop.eup %10473  ;;  %v8412_v27 = vor.u32 %v10101_v60, %v8411_v7  ;;  %v8347_v42 = vld [vmem:[#allocation5 + $0x100] sm:$0xf]  ;;  %v8349_v15 = vld [vmem:[#allocation5 + $0x120] sm:$0xf0]  ;;  %v8355_v21 = vld [vmem:[#allocation5 + $0x108] sm:$0xf] }
 0x2bf   :  { %v2820_v43 = vmul.f32 %v2814_v4, %v10880_v49  ;;  %v2821_v44 = vmul.f32 %v10474_v39, %v2810_v2  ;;  %3541 = vmatpush.bf16.msra.mxu0 %v8107_v11  ;;  %3554 = vmatpush.bf16.msra.mxu1 %v8111_v37  ;;  %v8099_v49 = vor.u32 %v10020_v12, %v8098_v41  ;;  %v10098_v2 = vld [vmem:[#allocation5 + $0x18c] sm:$0xf]  ;;  %v10093_v39 = vld [vmem:[#allocation5 + $0x15c] sm:$0xf0]  ;;  %v8381_v41 = vld [vmem:[#allocation5 + $0x160] sm:$0xf0] }
 0x2c0   :  { %v10476_v61 = vpop.eup %10475  ;;  %3567 = vmatpush.bf16.msra.mxu2 %v8115_v40  ;;  %3580 = vmatpush.bf16.msra.mxu3 %v8119_v26  ;;  %v8416_v4 = vor.u32 %v10097_v13, %v8413_v55  ;;  %v8420_v37 = vor.u32 %v10102_v14, %v8419_v34  ;;  %v8424_v0 = vor.u32 %v10098_v2, %v8421_v3  ;;  %v10089_v26 = vld [vmem:[#allocation5 + $0x144] sm:$0xf]  ;;  %v8387_v12 = vld [vmem:[#allocation5 + $0x148] sm:$0xf]  ;;  %v10085_v57 = vld [vmem:[#allocation5 + $0x11c] sm:$0xf0] }
 0x2c1   :  { %v10919_v53 = vadd.f32 %v2821_v44, %v2820_v43  ;;  %v2818_v63 = vmul.f32 0.5, %v10476_v61  ;;  %v10094_v43 = vld [vmem:[#allocation5 + $0x164] sm:$0xf0]  ;;  %v10090_v44 = vld [vmem:[#allocation5 + $0x14c] sm:$0xf]  ;;  %v8380_v47 = vor.u32 %v10093_v39, %v8379_v62  ;;  %v8384_v10 = vor.u32 %v10089_v26, %v8381_v41 }
 0x2c2   :  { %v8388_v61 = vor.u32 %v10094_v43, %v8387_v12  ;;  %v10086_v52 = vld [vmem:[#allocation5 + $0x124] sm:$0xf0]  ;;  %v8315_v7 = vld [vmem:[#allocation5 + $0xc0] sm:$0xf]  ;;  %v10074_v14 = vld [vmem:[#allocation5 + $0xcc] sm:$0xf] }
 0x2c3   :  { %10477 = vtanh.f32 %v10919_v53  ;;  %3542 = vmatpush.bf16.msra.mxu0 %v8091_v6  ;;  %3555 = vmatpush.bf16.msra.mxu1 %v8095_v1  ;;  %v2819_v11 = vadd.f32 0.5, %v2818_v63  ;;  %v8392_v6 = vor.u32 %v10090_v44, %v8389_v54  ;;  %v10081_v1 = vld [vmem:[#allocation5 + $0x104] sm:$0xf]  ;;  %v10077_v60 = vld [vmem:[#allocation5 + $0xdc] sm:$0xf0]  ;;  %v8356_v13 = vor.u32 %v10086_v52, %v8355_v21 }
 0x2c4   :  { %3568 = vmatpush.bf16.msra.mxu2 %v8099_v49  ;;  %3581 = vmatpush.bf16.msra.mxu3 %v8103_v38  ;;  %v10082_v49 = vld [vmem:[#allocation5 + $0x10c] sm:$0xf]  ;;  %v8323_v55 = vld [vmem:[#allocation5 + $0xc8] sm:$0xf]  ;;  %v8316_v3 = vor.u32 %v10077_v60, %v8315_v7  ;;  %v10065_v62 = vld [vmem:[#allocation5 + $0x84] sm:$0xf] }
 0x2c5   :  { %v8357_v38 = vld [vmem:[#allocation5 + $0x128] sm:$0xf0]  ;;  %v10078_v34 = vld [vmem:[#allocation5 + $0xe4] sm:$0xf0]  ;;  %v8221_v60 = vld [vmem:[#allocation5 + $0x20] sm:$0xf0] }
 0x2c6   :  { %v8360_v63 = vor.u32 %v10082_v49, %v8357_v38  ;;  %v8325_v2 = vld [vmem:[#allocation5 + $0xe8] sm:$0xf0]  ;;  %v8291_v26 = vld [vmem:[#allocation5 + $0x88] sm:$0xf]  ;;  %v8219_v38 = vld [vmem:[#allocation5] sm:$0xf] }
 0x2c7   :  { %4026 = vmatpush.bf16.msrb.mxu0 %v8444_v31  ;;  %4039 = vmatpush.bf16.msrb.mxu1 %v8448_v56  ;;  %v8348_v31 = vor.u32 %v10085_v57, %v8347_v42  ;;  %v8352_v56 = vor.u32 %v10081_v1, %v8349_v15  ;;  %v10070_v41 = vld [vmem:[#allocation5 + $0xa4] sm:$0xf0]  ;;  %v10066_v43 = vld [vmem:[#allocation5 + $0x8c] sm:$0xf]  ;;  %v8253_v57 = vld [vmem:[#allocation5 + $0x60] sm:$0xf0] }
 0x2c8   :  { %4052 = vmatpush.bf16.msrb.mxu2 %v8452_v22  ;;  %4065 = vmatpush.bf16.msrb.mxu3 %v8456_v28  ;;  %v10073_v22 = vld [vmem:[#allocation5 + $0xc4] sm:$0xf]  ;;  %v8293_v44 = vld [vmem:[#allocation5 + $0xa8] sm:$0xf0] }
 0x2c9   :  { %v10478_v40 = vpop.eup %10477  ;;  %v8317_v28 = vld [vmem:[#allocation5 + $0xe0] sm:$0xf0]  ;;  %v8296_v54 = vor.u32 %v10066_v43, %v8293_v44  ;;  %v10058_v21 = vld [vmem:[#allocation5 + $0x4c] sm:$0xf]  ;;  %v10099_v44 = vld [vmem:[#allocation5 + $0x194] sm:$0xf] }
 0x2ca   :  { %v2824_v35 = vmul.f32 %v10478_v40, %v2819_v11  ;;  %v8328_v11 = vor.u32 %v10074_v14, %v8325_v2  ;;  %v8285_v40 = vld [vmem:[#allocation5 + $0xa0] sm:$0xf0]  ;;  %v8261_v52 = vld [vmem:[#allocation5 + $0x68] sm:$0xf0]  ;;  %v8459_v14 = vld [vmem:[#allocation5 + $0x1d0] sm:$0xf] }
 0x2cb   :  { %4027 = vmatpush.bf16.msrb.mxu0 %v8412_v27  ;;  %4040 = vmatpush.bf16.msrb.mxu1 %v8416_v4  ;;  %v8320_v27 = vor.u32 %v10073_v22, %v8317_v28  ;;  %v8324_v4 = vor.u32 %v10078_v34, %v8323_v55  ;;  %v8288_v12 = vor.u32 %v10065_v62, %v8285_v40  ;;  %v10050_v55 = vld [vmem:[#allocation5 + $0xc] sm:$0xf]  ;;  %v10112_v62 = vld [vmem:[#allocation5 + $0x1f4] sm:$0xf0] }
 0x2cc   :  { %7831 = vst [vmem:[%s11105_s6 + $0x10] sm:$0xff] %v2824_v35  ;;  %v3342_v5 = vpack.c.bf16 %v2824_v35, %v2824_v35  ;;  %4053 = vmatpush.bf16.msrb.mxu2 %v8420_v37  ;;  %4066 = vmatpush.bf16.msrb.mxu3 %v8424_v0  ;;  %v8283_v37 = vld [vmem:[#allocation5 + $0x80] sm:$0xf]  ;;  %v8292_v35 = vor.u32 %v10070_v41, %v8291_v26  ;;  %v8229_v34 = vld [vmem:[#allocation5 + $0x28] sm:$0xf0] }
 0x2cd   :  { %v10069_v0 = vld [vmem:[#allocation5 + $0x9c] sm:$0xf0]  ;;  %v8264_v49 = vor.u32 %v10058_v21, %v8261_v52  ;;  %v8232_v2 = vor.u32 %v10050_v55, %v8229_v34  ;;  %v8469_v26 = vld [vmem:[#allocation5 + $0x1f8] sm:$0xf0]  ;;  %v8427_v41 = vld [vmem:[#allocation5 + $0x190] sm:$0xf] }
 0x2ce   :  { %3543 = vmatmul.bf16.vlgmr.msra.gmra.mxu0 %v3342_v5  ;;  %3556 = vmatmul.bf16.vlgmr.msra.gmra.mxu1 %v3342_v5  ;;  %v8284_v39 = vor.u32 %v10069_v0, %v8283_v37  ;;  %v8467_v0 = vld [vmem:[#allocation5 + $0x1d8] sm:$0xf]  ;;  %v10091_v21 = vld [vmem:[#allocation5 + $0x154] sm:$0xf] }
 0x2cf   :  { %3569 = vmatmul.bf16.vlgmr.msra.gmra.mxu2 %v3342_v5  ;;  %3582 = vmatmul.bf16.vlgmr.msra.gmra.mxu3 %v3342_v5  ;;  %v8251_v5 = vld [vmem:[#allocation5 + $0x40] sm:$0xf]  ;;  %v8468_v40 = vor.u32 %v10112_v62, %v8467_v0  ;;  %v10083_v55 = vld [vmem:[#allocation5 + $0x114] sm:$0xf]  ;;  %v8331_v62 = vld [vmem:[#allocation5 + $0xd0] sm:$0xf] }
 0x2d0   :  { %4028 = vmatpush.bf16.msrb.mxu0 %v8380_v47  ;;  %4041 = vmatpush.bf16.msrb.mxu1 %v8384_v10  ;;  %v10061_v47 = vld [vmem:[#allocation5 + $0x5c] sm:$0xf0]  ;;  %v10057_v10 = vld [vmem:[#allocation5 + $0x44] sm:$0xf] }
 0x2d1   :  { %4054 = vmatpush.bf16.msrb.mxu2 %v8388_v61  ;;  %4067 = vmatpush.bf16.msrb.mxu3 %v8392_v6  ;;  %v8252_v42 = vor.u32 %v10061_v47, %v8251_v5  ;;  %v8259_v61 = vld [vmem:[#allocation5 + $0x48] sm:$0xf]  ;;  %v8256_v1 = vor.u32 %v10057_v10, %v8253_v57  ;;  %v8435_v5 = vld [vmem:[#allocation5 + $0x198] sm:$0xf]  ;;  %v8437_v57 = vld [vmem:[#allocation5 + $0x1b8] sm:$0xf0] }
 0x2d2   :  { %v10062_v6 = vld [vmem:[#allocation5 + $0x64] sm:$0xf0]  ;;  %v10104_v10 = vld [vmem:[#allocation5 + $0x1b4] sm:$0xf0] }
 0x2d3   :  { %v8260_v15 = vor.u32 %v10062_v6, %v8259_v61  ;;  %v8436_v61 = vor.u32 %v10104_v10, %v8435_v5  ;;  %v8341_v5 = vld [vmem:[#allocation5 + $0xf8] sm:$0xf0]  ;;  %v8299_v10 = vld [vmem:[#allocation5 + $0x90] sm:$0xf] }
 0x2d4   :  { %4029 = vmatpush.bf16.msrb.mxu0 %v8348_v31  ;;  %4042 = vmatpush.bf16.msrb.mxu1 %v8352_v56  ;;  %v10053_v31 = vld [vmem:[#allocation5 + $0x1c] sm:$0xf0]  ;;  %v10049_v56 = vld [vmem:[#allocation5 + $0x4] sm:$0xf] }
 0x2d5   :  { %4055 = vmatpush.bf16.msrb.mxu2 %v8356_v13  ;;  %4068 = vmatpush.bf16.msrb.mxu3 %v8360_v63  ;;  %v8220_v7 = vor.u32 %v10053_v31, %v8219_v38  ;;  %v8227_v13 = vld [vmem:[#allocation5 + $0x8] sm:$0xf]  ;;  %v8224_v22 = vor.u32 %v10049_v56, %v8221_v60  ;;  %v8403_v38 = vld [vmem:[#allocation5 + $0x158] sm:$0xf]  ;;  %v10092_v60 = vld [vmem:[#allocation5 + $0x15c] sm:$0xf] }
 0x2d6   :  { %v10054_v63 = vld [vmem:[#allocation5 + $0x24] sm:$0xf0]  ;;  %v10096_v31 = vld [vmem:[#allocation5 + $0x174] sm:$0xf0] }
 0x2d7   :  { %v8228_v28 = vor.u32 %v10054_v63, %v8227_v13  ;;  %v8405_v13 = vld [vmem:[#allocation5 + $0x178] sm:$0xf0] }
 0x2d8   :  { %4030 = vmatpush.bf16.msrb.mxu0 %v8316_v3  ;;  %4043 = vmatpush.bf16.msrb.mxu1 %v8320_v27  ;;  %v10111_v3 = vld [vmem:[#allocation5 + $0x1ec] sm:$0xf0]  ;;  %v10107_v27 = vld [vmem:[#allocation5 + $0x1d4] sm:$0xf]  ;;  %v8408_v63 = vor.u32 %v10092_v60, %v8405_v13  ;;  %v8309_v60 = vld [vmem:[#allocation5 + $0xb8] sm:$0xf0] }
 0x2d9   :  { %4056 = vmatpush.bf16.msrb.mxu2 %v8324_v4  ;;  %4069 = vmatpush.bf16.msrb.mxu3 %v8328_v11  ;;  %v8461_v4 = vld [vmem:[#allocation5 + $0x1f0] sm:$0xf0]  ;;  %v8460_v11 = vor.u32 %v10111_v3, %v8459_v14  ;;  %v10088_v3 = vld [vmem:[#allocation5 + $0x134] sm:$0xf0] }
 0x2da   :  { %v8464_v37 = vor.u32 %v10107_v27, %v8461_v4  ;;  %v8365_v14 = vld [vmem:[#allocation5 + $0x130] sm:$0xf0] }
 0x2db   :  { %v8368_v27 = vor.u32 %v10083_v55, %v8365_v14  ;;  %v8269_v55 = vld [vmem:[#allocation5 + $0x70] sm:$0xf0]  ;;  %v10064_v14 = vld [vmem:[#allocation5 + $0x74] sm:$0xf0] }
 0x2dc   :  { %4031 = vmatpush.bf16.msrb.mxu0 %v8284_v39  ;;  %4044 = vmatpush.bf16.msrb.mxu1 %v8288_v12  ;;  %v10108_v39 = vld [vmem:[#allocation5 + $0x1dc] sm:$0xf]  ;;  %v10103_v12 = vld [vmem:[#allocation5 + $0x1ac] sm:$0xf0] }
 0x2dd   :  { %4057 = vmatpush.bf16.msrb.mxu2 %v8292_v35  ;;  %4070 = vmatpush.bf16.msrb.mxu3 %v8296_v54  ;;  %v8472_v35 = vor.u32 %v10108_v39, %v8469_v26  ;;  %v8428_v43 = vor.u32 %v10103_v12, %v8427_v41  ;;  %v8429_v54 = vld [vmem:[#allocation5 + $0x1b0] sm:$0xf0]  ;;  %v10079_v39 = vld [vmem:[#allocation5 + $0xec] sm:$0xf0]  ;;  %v8339_v12 = vld [vmem:[#allocation5 + $0xd8] sm:$0xf] }
 0x2de   :  { %v8432_v47 = vor.u32 %v10099_v44, %v8429_v54  ;;  %v8332_v26 = vor.u32 %v10079_v39, %v8331_v62  ;;  %v8333_v41 = vld [vmem:[#allocation5 + $0xf0] sm:$0xf0]  ;;  %v10076_v54 = vld [vmem:[#allocation5 + $0xdc] sm:$0xf]  ;;  %v385_v39 = vadd.f32 %v10770_v18, %v10723_v45 }
 0x2e0   :  { %4032 = vmatpush.bf16.msrb.mxu0 %v8252_v42  ;;  %4045 = vmatpush.bf16.msrb.mxu1 %v8256_v1  ;;  %v10100_v42 = vld [vmem:[#allocation5 + $0x19c] sm:$0xf]  ;;  %v8395_v1 = vld [vmem:[#allocation5 + $0x150] sm:$0xf] }
 0x2e1   :  { %4058 = vmatpush.bf16.msrb.mxu2 %v8260_v15  ;;  %4071 = vmatpush.bf16.msrb.mxu3 %v8264_v49  ;;  %v8440_v6 = vor.u32 %v10100_v42, %v8437_v57  ;;  %v10095_v15 = vld [vmem:[#allocation5 + $0x16c] sm:$0xf0]  ;;  %v8397_v49 = vld [vmem:[#allocation5 + $0x170] sm:$0xf0] }
 0x2e2   :  { %v8396_v52 = vor.u32 %v10095_v15, %v8395_v1  ;;  %v8400_v56 = vor.u32 %v10091_v21, %v8397_v49  ;;  %v10071_v42 = vld [vmem:[#allocation5 + $0xac] sm:$0xf0]  ;;  %v10067_v57 = vld [vmem:[#allocation5 + $0x94] sm:$0xf]  ;;  %v8307_v21 = vld [vmem:[#allocation5 + $0x98] sm:$0xf] }
 0x2e3   :  { %v8300_v1 = vor.u32 %v10071_v42, %v8299_v10  ;;  %v8301_v15 = vld [vmem:[#allocation5 + $0xb0] sm:$0xf0] }
 0x2e4   :  { %4033 = vmatpush.bf16.msrb.mxu0 %v8220_v7  ;;  %4046 = vmatpush.bf16.msrb.mxu1 %v8224_v22  ;;  %v8404_v7 = vor.u32 %v10096_v31, %v8403_v38  ;;  %v8363_v22 = vld [vmem:[#allocation5 + $0x110] sm:$0xf]  ;;  %v8304_v31 = vor.u32 %v10067_v57, %v8301_v15 }
 0x2e5   :  { %4059 = vmatpush.bf16.msrb.mxu2 %v8228_v28  ;;  %4072 = vmatpush.bf16.msrb.mxu3 %v8232_v2  ;;  %v10087_v28 = vld [vmem:[#allocation5 + $0x12c] sm:$0xf0]  ;;  %v8371_v2 = vld [vmem:[#allocation5 + $0x118] sm:$0xf] }
 0x2e6   :  { %v8364_v34 = vor.u32 %v10087_v28, %v8363_v22  ;;  %v8372_v4 = vor.u32 %v10088_v3, %v8371_v2  ;;  %v8267_v22 = vld [vmem:[#allocation5 + $0x50] sm:$0xf] }
 0x2e7   :  { %v10063_v28 = vld [vmem:[#allocation5 + $0x6c] sm:$0xf0] }
 0x2e8   :  { %4078 = vmatpush.bf16.msra.mxu0 %v8460_v11  ;;  %4091 = vmatpush.bf16.msra.mxu1 %v8464_v37  ;;  %v10084_v11 = vld [vmem:[#allocation5 + $0x11c] sm:$0xf] }
 0x2e9   :  { %4104 = vmatpush.bf16.msra.mxu2 %v8468_v40  ;;  %4117 = vmatpush.bf16.msra.mxu3 %v8472_v35  ;;  %v8373_v37 = vld [vmem:[#allocation5 + $0x138] sm:$0xf0]  ;;  %v10075_v40 = vld [vmem:[#allocation5 + $0xd4] sm:$0xf]  ;;  %v10080_v35 = vld [vmem:[#allocation5 + $0xf4] sm:$0xf0] }
 0x2ea   :  { %v8376_v0 = vor.u32 %v10084_v11, %v8373_v37  ;;  %v8340_v44 = vor.u32 %v10080_v35, %v8339_v12  ;;  %v10060_v11 = vld [vmem:[#allocation5 + $0x5c] sm:$0xf]  ;;  %v10051_v12 = vld [vmem:[#allocation5 + $0x14] sm:$0xf] }
 0x2eb   :  { %v8277_v37 = vld [vmem:[#allocation5 + $0x78] sm:$0xf0] }
 0x2ec   :  { %4079 = vmatpush.bf16.msra.mxu0 %v8428_v43  ;;  %4092 = vmatpush.bf16.msra.mxu1 %v8432_v47  ;;  %v8336_v43 = vor.u32 %v10075_v40, %v8333_v41  ;;  %v8344_v47 = vor.u32 %v10076_v54, %v8341_v5  ;;  %v8280_v62 = vor.u32 %v10060_v11, %v8277_v37  ;;  %v10055_v41 = vld [vmem:[#allocation5 + $0x2c] sm:$0xf0]  ;;  %v8237_v54 = vld [vmem:[#allocation5 + $0x30] sm:$0xf0]  ;;  %v8243_v5 = vld [vmem:[#allocation5 + $0x18] sm:$0xf] }
 0x2ed   :  { %4105 = vmatpush.bf16.msra.mxu2 %v8436_v61  ;;  %4118 = vmatpush.bf16.msra.mxu3 %v8440_v6  ;;  %v327_v61 = vadd.f32 %v10766_v8, %v10717_v24  ;;  %v356_v6 = vadd.f32 %v10768_v9, %v10719_v25  ;;  %v10059_v9 = vld [vmem:[#allocation5 + $0x54] sm:$0xf]  ;;  %v414_v40 = vadd.f32 %v10772_v19, %v10725_v46  ;;  %v10052_v19 = vld [vmem:[#allocation5 + $0x1c] sm:$0xf]  ;;  %v8587_v37 = vld [vmem:[#allocation7 + $0xe0] sm:$0xf] }
 0x2ee   :  { %v8240_v18 = vor.u32 %v10051_v12, %v8237_v54  ;;  %v10142_v12 = vld [vmem:[#allocation7 + $0xec] sm:$0xf] }
 0x2f0   :  { %4080 = vmatpush.bf16.msra.mxu0 %v8396_v52  ;;  %4093 = vmatpush.bf16.msra.mxu1 %v8400_v56  ;;  %v10072_v52 = vld [vmem:[#allocation5 + $0xb4] sm:$0xf0] }
 0x2f1   :  { %4106 = vmatpush.bf16.msra.mxu2 %v8404_v7  ;;  %4119 = vmatpush.bf16.msra.mxu3 %v8408_v63  ;;  %v8308_v56 = vor.u32 %v10072_v52, %v8307_v21  ;;  %v10068_v7 = vld [vmem:[#allocation5 + $0x9c] sm:$0xf] }
 0x2f2   :  { %v8312_v8 = vor.u32 %v10068_v7, %v8309_v60 }
 0x2f4   :  { %4081 = vmatpush.bf16.msra.mxu0 %v8364_v34  ;;  %4094 = vmatpush.bf16.msra.mxu1 %v8368_v27  ;;  %v8275_v34 = vld [vmem:[#allocation5 + $0x58] sm:$0xf]  ;;  %v8268_v27 = vor.u32 %v10063_v28, %v8267_v22 }
 0x2f5   :  { %4107 = vmatpush.bf16.msra.mxu2 %v8372_v4  ;;  %4120 = vmatpush.bf16.msra.mxu3 %v8376_v0  ;;  %v8272_v4 = vor.u32 %v10059_v9, %v8269_v55  ;;  %v8276_v0 = vor.u32 %v10064_v14, %v8275_v34 }
 0x2f8   :  { %4082 = vmatpush.bf16.msra.mxu0 %v8332_v26  ;;  %4095 = vmatpush.bf16.msra.mxu1 %v8336_v43  ;;  %v8235_v26 = vld [vmem:[#allocation5 + $0x10] sm:$0xf] }
 0x2f9   :  { %4108 = vmatpush.bf16.msra.mxu2 %v8340_v44  ;;  %4121 = vmatpush.bf16.msra.mxu3 %v8344_v47  ;;  %v8236_v44 = vor.u32 %v10055_v41, %v8235_v26  ;;  %v10056_v47 = vld [vmem:[#allocation5 + $0x34] sm:$0xf0] }
 0x2fa   :  { %v10144_v41 = vld [vmem:[#allocation7 + $0xf4] sm:$0xf0] }
 0x2fc   :  { %4083 = vmatpush.bf16.msra.mxu0 %v8300_v1  ;;  %4096 = vmatpush.bf16.msra.mxu1 %v8304_v31  ;;  %v8245_v1 = vld [vmem:[#allocation5 + $0x38] sm:$0xf0] }
 0x2fd   :  { %4109 = vmatpush.bf16.msra.mxu2 %v8308_v56  ;;  %4122 = vmatpush.bf16.msra.mxu3 %v8312_v8  ;;  %v8248_v15 = vor.u32 %v10052_v19, %v8245_v1  ;;  %v8579_v19 = vld [vmem:[#allocation7 + $0xc8] sm:$0xf]  ;;  %v10140_v1 = vld [vmem:[#allocation7 + $0xd4] sm:$0xf0] }
 0x300   :  { %4084 = vmatpush.bf16.msra.mxu0 %v8268_v27  ;;  %4097 = vmatpush.bf16.msra.mxu1 %v8272_v4 }
 0x301   :  { %4110 = vmatpush.bf16.msra.mxu2 %v8276_v0  ;;  %4123 = vmatpush.bf16.msra.mxu3 %v8280_v62  ;;  %v10143_v0 = vld [vmem:[#allocation7 + $0xec] sm:$0xf0] }
 0x304   :  { %4085 = vmatpush.bf16.msra.mxu0 %v8236_v44  ;;  %4098 = vmatpush.bf16.msra.mxu1 %v8240_v18  ;;  %v8588_v44 = vor.u32 %v10143_v0, %v8587_v37  ;;  %v10137_v18 = vld [vmem:[#allocation7 + $0xc4] sm:$0xf] }
 0x305   :  { %4124 = vmatpush.bf16.msra.mxu3 %v8248_v15  ;;  %v10138_v15 = vld [vmem:[#allocation7 + $0xcc] sm:$0xf] }
 0x322   :  { %v3247_v49 = vpop.f32.mrf.mxu0  ;;  %v3260_v38 = vpop.f32.mrf.mxu1 }
 0x323   :  { %v3619_v13 = vadd.f32 %v3247_v49, %v327_v61  ;;  %v3620_v63 = vadd.f32 %v3260_v38, %v356_v6  ;;  %v8244_v6 = vor.u32 %v10056_v47, %v8243_v5  ;;  %v8571_v5 = vld [vmem:[#allocation7 + $0xc0] sm:$0xf]  ;;  %v10139_v47 = vld [vmem:[#allocation7 + $0xcc] sm:$0xf0] }
 0x325   :  { %v3623_v2 = vmul.f32 0.5, %v3619_v13  ;;  %v3627_v3 = vmul.f32 0.5, %v3620_v63  ;;  %4111 = vmatpush.bf16.msra.mxu2 %v8244_v6  ;;  %v8573_v6 = vld [vmem:[#allocation7 + $0xd0] sm:$0xf0] }
 0x327   :  { %10479 = vtanh.f32 %v3623_v2 }
 0x328   :  { %10481 = vtanh.f32 %v3627_v3 }
 0x329   :  { %v3273_v35 = vpop.f32.mrf.mxu2  ;;  %v3286_v43 = vpop.f32.mrf.mxu3 }
 0x32a   :  { %v3621_v10 = vadd.f32 %v3273_v35, %v385_v39  ;;  %v3622_v42 = vadd.f32 %v3286_v43, %v414_v40  ;;  %v3249_v57 = vpop.f32.mrf.mxu0  ;;  %v3262_v61 = vpop.f32.mrf.mxu1  ;;  %v10141_v39 = vld [vmem:[#allocation7 + $0xe4] sm:$0xf]  ;;  %v8589_v40 = vld [vmem:[#allocation7 + $0xf0] sm:$0xf0]  ;;  %v8597_v35 = vld [vmem:[#allocation7 + $0xf8] sm:$0xf0] }
 0x32b   :  { %v8592_v54 = vor.u32 %v10141_v39, %v8589_v40  ;;  %v8600_v61 = vor.u32 %v10142_v12, %v8597_v35  ;;  %v10129_v40 = vld [vmem:[#allocation7 + $0x84] sm:$0xf]  ;;  %v10132_v35 = vld [vmem:[#allocation7 + $0x94] sm:$0xf0] }
 0x32c   :  { %10483 = vtanh.f32 %v3621_v10  ;;  %v3632_v21 = vmul.f32 0.5, %v3622_v42 }
 0x32d   :  { %v10480_v52 = vpop.eup %10479 }
 0x32e   :  { %v10482_v49 = vpop.eup %10481  ;;  %v3625_v38 = vmul.f32 0.5, %v10480_v52  ;;  %10485 = vtanh.f32 %v3632_v21  ;;  %v8581_v21 = vld [vmem:[#allocation7 + $0xd8] sm:$0xf0]  ;;  %v8572_v52 = vor.u32 %v10139_v47, %v8571_v5 }
 0x32f   :  { %v3629_v31 = vmul.f32 0.5, %v10482_v49  ;;  %v8576_v49 = vor.u32 %v10137_v18, %v8573_v6  ;;  %v10125_v18 = vld [vmem:[#allocation7 + $0x64] sm:$0xf] }
 0x330   :  { %v3626_v56 = vadd.f32 0.5, %v3625_v38  ;;  %v8555_v38 = vld [vmem:[#allocation7 + $0xa0] sm:$0xf] }
 0x331   :  { %v3630_v7 = vadd.f32 0.5, %v3629_v31  ;;  %v3275_v60 = vpop.f32.mrf.mxu2  ;;  %v3288_v13 = vpop.f32.mrf.mxu3  ;;  %v10135_v31 = vld [vmem:[#allocation7 + $0xac] sm:$0xf0] }
 0x332   :  { %v10484_v63 = vpop.eup %10483  ;;  %v10933_v8 = vpop.f32.mrf.mxu0  ;;  %v10133_v60 = vld [vmem:[#allocation7 + $0xa4] sm:$0xf]  ;;  %v8557_v13 = vld [vmem:[#allocation7 + $0xb0] sm:$0xf0] }
 0x333   :  { %v10935_v22 = vpop.f32.mrf.mxu1  ;;  %v3636_v28 = vmul.f32 %v3630_v7, %v10895_v36  ;;  %v3637_v9 = vmul.f32 %v10484_v63, %v3626_v56  ;;  %v8595_v36 = vld [vmem:[#allocation7 + $0xe8] sm:$0xf]  ;;  %v8580_v56 = vor.u32 %v10140_v1, %v8579_v19  ;;  %v8584_v7 = vor.u32 %v10138_v15, %v8581_v21  ;;  %v8525_v19 = vld [vmem:[#allocation7 + $0x70] sm:$0xf0]  ;;  %v10128_v1 = vld [vmem:[#allocation7 + $0x74] sm:$0xf0] }
 0x334   :  { %v10486_v55 = vpop.eup %10485  ;;  %v8596_v57 = vor.u32 %v10144_v41, %v8595_v36  ;;  %v8563_v63 = vld [vmem:[#allocation7 + $0xa8] sm:$0xf]  ;;  %v8541_v36 = vld [vmem:[#allocation7 + $0x90] sm:$0xf0] }
 0x335   :  { %v10938_v34 = vadd.f32 %v3637_v9, %v3636_v28  ;;  %v3634_v14 = vmul.f32 0.5, %v10486_v55  ;;  %v10136_v28 = vld [vmem:[#allocation7 + $0xb4] sm:$0xf0]  ;;  %v10134_v9 = vld [vmem:[#allocation7 + $0xac] sm:$0xf] }
 0x336   :  { %v8565_v55 = vld [vmem:[#allocation7 + $0xb8] sm:$0xf0] }
 0x337   :  { %10487 = vtanh.f32 %v10938_v34  ;;  %v3635_v11 = vadd.f32 0.5, %v3634_v14  ;;  %v8556_v14 = vor.u32 %v10135_v31, %v8555_v38  ;;  %v8568_v39 = vor.u32 %v10134_v9, %v8565_v55 }
 0x339   :  { %v10941_v2 = vpop.f32.mrf.mxu2  ;;  %v10943_v3 = vpop.f32.mrf.mxu3 }
 0x33a   :  { %v3301_v27 = vpop.f32.mrf.mxu0 }
 0x33b   :  { %v3314_v4 = vpop.f32.mrf.mxu1  ;;  %v8560_v27 = vor.u32 %v10133_v60, %v8557_v13  ;;  %v8507_v13 = vld [vmem:[#allocation7 + $0x40] sm:$0xf] }
 0x33c   :  { %v8539_v4 = vld [vmem:[#allocation7 + $0x80] sm:$0xf] }
 0x33d   :  { %v10488_v62 = vpop.eup %10487 }
 0x33e   :  { %v3640_v26 = vmul.f32 %v10488_v62, %v3635_v11  ;;  %v10131_v11 = vld [vmem:[#allocation7 + $0x8c] sm:$0xf0]  ;;  %v8564_v62 = vor.u32 %v10136_v28, %v8563_v63 }
 0x33f   :  { %v8540_v5 = vor.u32 %v10131_v11, %v8539_v4  ;;  %v10123_v63 = vld [vmem:[#allocation7 + $0x4c] sm:$0xf0]  ;;  %v10121_v4 = vld [vmem:[#allocation7 + $0x44] sm:$0xf]  ;;  %v8509_v11 = vld [vmem:[#allocation7 + $0x50] sm:$0xf0] }
 0x340   :  { %v10945_v43 = vpack.c.bf16 %v3640_v26, %v3640_v26  ;;  %v8547_v26 = vld [vmem:[#allocation7 + $0x88] sm:$0xf] }
 0x341   :  { %v3327_v10 = vpop.f32.mrf.mxu2  ;;  %v3340_v42 = vpop.f32.mrf.mxu3  ;;  %v8548_v6 = vor.u32 %v10132_v35, %v8547_v26  ;;  %v8508_v26 = vor.u32 %v10123_v63, %v8507_v13  ;;  %v8493_v35 = vld [vmem:[#allocation7 + $0x30] sm:$0xf0]  ;;  %v10114_v13 = vld [vmem:[#allocation7 + $0xc] sm:$0xf]  ;;  %v8485_v63 = vld [vmem:[#allocation7 + $0x18] sm:$0xf0] }
 0x342   :  { %4034 = vmatmul.bf16.vlgmr.msrb.gmra.mxu0 %v10945_v43  ;;  %4047 = vmatmul.bf16.vlgmr.msrb.gmra.mxu1 %v10945_v43  ;;  %v8544_v42 = vor.u32 %v10129_v40, %v8541_v36  ;;  %v10119_v36 = vld [vmem:[#allocation7 + $0x2c] sm:$0xf0] }
 0x343   :  { %4060 = vmatmul.bf16.vlgmr.msrb.gmra.mxu2 %v10945_v43  ;;  %4073 = vmatmul.bf16.vlgmr.msrb.gmra.mxu3 %v10945_v43 }
 0x344   :  { %4323 = vmatpush.bf16.msrb.mxu0 %v8588_v44  ;;  %4336 = vmatpush.bf16.msrb.mxu1 %v8592_v54  ;;  %v10130_v44 = vld [vmem:[#allocation7 + $0x8c] sm:$0xf]  ;;  %v8549_v54 = vld [vmem:[#allocation7 + $0x98] sm:$0xf0] }
 0x345   :  { %4349 = vmatpush.bf16.msrb.mxu2 %v8596_v57  ;;  %4362 = vmatpush.bf16.msrb.mxu3 %v8600_v61  ;;  %v8523_v57 = vld [vmem:[#allocation7 + $0x60] sm:$0xf]  ;;  %v10127_v61 = vld [vmem:[#allocation7 + $0x6c] sm:$0xf0] }
 0x348   :  { %4324 = vmatpush.bf16.msrb.mxu0 %v8572_v52  ;;  %4337 = vmatpush.bf16.msrb.mxu1 %v8576_v49  ;;  %v10126_v52 = vld [vmem:[#allocation7 + $0x6c] sm:$0xf]  ;;  %v8533_v49 = vld [vmem:[#allocation7 + $0x78] sm:$0xf0] }
 0x349   :  { %4350 = vmatpush.bf16.msrb.mxu2 %v8580_v56  ;;  %4363 = vmatpush.bf16.msrb.mxu3 %v8584_v7  ;;  %v8524_v56 = vor.u32 %v10127_v61, %v8523_v57  ;;  %v8528_v7 = vor.u32 %v10125_v18, %v8525_v19  ;;  %v8501_v61 = vld [vmem:[#allocation7 + $0x38] sm:$0xf0]  ;;  %v10115_v18 = vld [vmem:[#allocation7 + $0xc] sm:$0xf0]  ;;  %v10113_v19 = vld [vmem:[#allocation7 + $0x4] sm:$0xf] }
 0x34b   :  { %v3544_v37 = vpop.f32.mrf.mxu0  ;;  %v3557_v0 = vpop.f32.mrf.mxu1 }
 0x34c   :  { %v3587_v41 = vadd.f32 %v3544_v37, %v10933_v8  ;;  %v3588_v12 = vadd.f32 %v3557_v0, %v10935_v22  ;;  %4325 = vmatpush.bf16.msrb.mxu0 %v8556_v14  ;;  %4338 = vmatpush.bf16.msrb.mxu1 %v8560_v27  ;;  %v8552_v8 = vor.u32 %v10130_v44, %v8549_v54  ;;  %v8531_v22 = vld [vmem:[#allocation7 + $0x68] sm:$0xf]  ;;  %v10124_v0 = vld [vmem:[#allocation7 + $0x54] sm:$0xf0] }
 0x34d   :  { %4351 = vmatpush.bf16.msrb.mxu2 %v8564_v62  ;;  %4364 = vmatpush.bf16.msrb.mxu3 %v8568_v39  ;;  %v8532_v60 = vor.u32 %v10128_v1, %v8531_v22  ;;  %v8536_v27 = vor.u32 %v10126_v52, %v8533_v49  ;;  %v8515_v37 = vld [vmem:[#allocation7 + $0x48] sm:$0xf]  ;;  %v10122_v62 = vld [vmem:[#allocation7 + $0x4c] sm:$0xf]  ;;  %v8517_v39 = vld [vmem:[#allocation7 + $0x58] sm:$0xf0] }
 0x34e   :  { %v3591_v47 = vadd.f32 %v3587_v41, %v10817_v48  ;;  %v3592_v10 = vadd.f32 %v3588_v12, %v10821_v50  ;;  %v8512_v41 = vor.u32 %v10121_v4, %v8509_v11  ;;  %v10117_v12 = vld [vmem:[#allocation7 + $0x24] sm:$0xf]  ;;  %v8499_v44 = vld [vmem:[#allocation7 + $0x28] sm:$0xf]  ;;  %v8477_v22 = vld [vmem:[#allocation7 + $0x10] sm:$0xf0] }
 0x34f   :  { %v8496_v49 = vor.u32 %v10117_v12, %v8493_v35  ;;  %v10201_v4 = vld [vmem:[#allocation5 + $0x1c4] sm:$0xf] }
 0x350   :  { %v3595_v15 = vmul.f32 0.5, %v3591_v47  ;;  %v3599_v21 = vmul.f32 0.5, %v3592_v10  ;;  %4326 = vmatpush.bf16.msrb.mxu0 %v8540_v5  ;;  %4339 = vmatpush.bf16.msrb.mxu1 %v8544_v42  ;;  %v8516_v5 = vor.u32 %v10124_v0, %v8515_v37  ;;  %v8520_v47 = vor.u32 %v10122_v62, %v8517_v39  ;;  %v10120_v10 = vld [vmem:[#allocation7 + $0x34] sm:$0xf0]  ;;  %v10118_v42 = vld [vmem:[#allocation7 + $0x2c] sm:$0xf] }
 0x351   :  { %4352 = vmatpush.bf16.msrb.mxu2 %v8548_v6  ;;  %4365 = vmatpush.bf16.msrb.mxu3 %v8552_v8  ;;  %v8830_v11 = vld [vmem:[#allocation5 + $0x1e0] sm:$0xf0]  ;;  %v8836_v37 = vld [vmem:[#allocation5 + $0x1c8] sm:$0xf]  ;;  %v8480_v39 = vor.u32 %v10113_v19, %v8477_v22  ;;  %v8764_v22 = vld [vmem:[#allocation5 + $0x140] sm:$0xf] }
 0x352   :  { %10489 = vtanh.f32 %v3595_v15  ;;  %v3570_v38 = vpop.f32.mrf.mxu2  ;;  %v3583_v31 = vpop.f32.mrf.mxu3  ;;  %4086 = vmatmul.bf16.vlgmr.msra.gmra.mxu0 %v10945_v43  ;;  %4099 = vmatmul.bf16.vlgmr.msra.gmra.mxu1 %v10945_v43 }
 0x353   :  { %10491 = vtanh.f32 %v3599_v21  ;;  %v3589_v28 = vadd.f32 %v3570_v38, %v10941_v2  ;;  %v3590_v9 = vadd.f32 %v3583_v31, %v10943_v3  ;;  %v3546_v55 = vpop.f32.mrf.mxu0  ;;  %v3559_v14 = vpop.f32.mrf.mxu1  ;;  %4112 = vmatmul.bf16.vlgmr.msra.gmra.mxu2 %v10945_v43  ;;  %4125 = vmatmul.bf16.vlgmr.msra.gmra.mxu3 %v10945_v43  ;;  %v8491_v3 = vld [vmem:[#allocation7 + $0x20] sm:$0xf]  ;;  %v8483_v38 = vld [vmem:[#allocation7 + $0x8] sm:$0xf]  ;;  %v10116_v31 = vld [vmem:[#allocation7 + $0x14] sm:$0xf0] }
 0x354   :  { %4327 = vmatpush.bf16.msrb.mxu0 %v8524_v56  ;;  %4340 = vmatpush.bf16.msrb.mxu1 %v8528_v7  ;;  %v8475_v43 = vld [vmem:[#allocation7] sm:$0xf]  ;;  %v8492_v52 = vor.u32 %v10119_v36, %v8491_v3  ;;  %v8500_v7 = vor.u32 %v10120_v10, %v8499_v44  ;;  %v8838_v3 = vld [vmem:[#allocation5 + $0x1e8] sm:$0xf0]  ;;  %v8484_v36 = vor.u32 %v10116_v31, %v8483_v38  ;;  %v10193_v10 = vld [vmem:[#allocation5 + $0x184] sm:$0xf] }
 0x355   :  { %v3593_v40 = vadd.f32 %v3589_v28, %v10829_v20  ;;  %v3594_v2 = vadd.f32 %v3590_v9, %v10831_v51  ;;  %4353 = vmatpush.bf16.msrb.mxu2 %v8532_v60  ;;  %4366 = vmatpush.bf16.msrb.mxu3 %v8536_v27  ;;  %v8504_v60 = vor.u32 %v10118_v42, %v8501_v61  ;;  %v8828_v9 = vld [vmem:[#allocation5 + $0x1c0] sm:$0xf]  ;;  %v8798_v42 = vld [vmem:[#allocation5 + $0x1a0] sm:$0xf0]  ;;  %v10198_v61 = vld [vmem:[#allocation5 + $0x1a4] sm:$0xf0] }
 0x356   :  { %v10205_v55 = vld [vmem:[#allocation5 + $0x1dc] sm:$0xf0]  ;;  %v8476_v27 = vor.u32 %v10115_v18, %v8475_v43  ;;  %v8833_v44 = vor.u32 %v10201_v4, %v8830_v11  ;;  %v10194_v43 = vld [vmem:[#allocation5 + $0x18c] sm:$0xf]  ;;  %v8801_v19 = vor.u32 %v10193_v10, %v8798_v42  ;;  %v8772_v31 = vld [vmem:[#allocation5 + $0x148] sm:$0xf] }
 0x357   :  { %10493 = vtanh.f32 %v3593_v40  ;;  %v3604_v54 = vmul.f32 0.5, %v3594_v2  ;;  %v10206_v40 = vld [vmem:[#allocation5 + $0x1e4] sm:$0xf0]  ;;  %v10202_v2 = vld [vmem:[#allocation5 + $0x1cc] sm:$0xf]  ;;  %v8829_v35 = vor.u32 %v10205_v55, %v8828_v9 }
 0x358   :  { %v10490_v57 = vpop.eup %10489  ;;  %4328 = vmatpush.bf16.msrb.mxu0 %v8508_v26  ;;  %4341 = vmatpush.bf16.msrb.mxu1 %v8512_v41  ;;  %v8488_v26 = vor.u32 %v10114_v13, %v8485_v63  ;;  %v8806_v18 = vld [vmem:[#allocation5 + $0x1a8] sm:$0xf0]  ;;  %v8732_v9 = vld [vmem:[#allocation5 + $0x100] sm:$0xf]  ;;  %v8734_v4 = vld [vmem:[#allocation5 + $0x120] sm:$0xf0] }
 0x359   :  { %v10492_v6 = vpop.eup %10491  ;;  %v3597_v8 = vmul.f32 0.5, %v10490_v57  ;;  %10495 = vtanh.f32 %v3604_v54  ;;  %4354 = vmatpush.bf16.msrb.mxu2 %v8516_v5  ;;  %4367 = vmatpush.bf16.msrb.mxu3 %v8520_v47  ;;  %v8796_v54 = vld [vmem:[#allocation5 + $0x180] sm:$0xf]  ;;  %v8837_v47 = vor.u32 %v10206_v40, %v8836_v37  ;;  %v8804_v57 = vld [vmem:[#allocation5 + $0x188] sm:$0xf] }
 0x35a   :  { %v3601_v1 = vmul.f32 0.5, %v10492_v6  ;;  %v3572_v15 = vpop.f32.mrf.mxu2  ;;  %v3585_v21 = vpop.f32.mrf.mxu3  ;;  %v10197_v5 = vld [vmem:[#allocation5 + $0x19c] sm:$0xf0]  ;;  %v10186_v63 = vld [vmem:[#allocation5 + $0x14c] sm:$0xf] }
 0x35b   :  { %v3598_v56 = vadd.f32 0.5, %v3597_v8  ;;  %v8797_v8 = vor.u32 %v10197_v5, %v8796_v54  ;;  %v8809_v15 = vor.u32 %v10194_v43, %v8806_v18  ;;  %v10189_v21 = vld [vmem:[#allocation5 + $0x15c] sm:$0xf0]  ;;  %v10169_v54 = vld [vmem:[#allocation5 + $0xc4] sm:$0xf] }
 0x35c   :  { %v3602_v28 = vadd.f32 0.5, %v3601_v1  ;;  %4329 = vmatpush.bf16.msrb.mxu0 %v8492_v52  ;;  %4342 = vmatpush.bf16.msrb.mxu1 %v8496_v49  ;;  %v8805_v1 = vor.u32 %v10198_v61, %v8804_v57  ;;  %v10185_v52 = vld [vmem:[#allocation5 + $0x144] sm:$0xf]  ;;  %v10174_v10 = vld [vmem:[#allocation5 + $0xe4] sm:$0xf0] }
 0x35d   :  { %v10494_v14 = vpop.eup %10493  ;;  %4355 = vmatpush.bf16.msrb.mxu2 %v8500_v7  ;;  %4368 = vmatpush.bf16.msrb.mxu3 %v8504_v60  ;;  %v8766_v49 = vld [vmem:[#allocation5 + $0x160] sm:$0xf0]  ;;  %v8765_v60 = vor.u32 %v10189_v21, %v8764_v22  ;;  %v10170_v61 = vld [vmem:[#allocation5 + $0xcc] sm:$0xf]  ;;  %v10166_v21 = vld [vmem:[#allocation5 + $0xa4] sm:$0xf0] }
 0x35e   :  { %v3608_v0 = vmul.f32 %v3602_v28, %v10919_v53  ;;  %v3609_v62 = vmul.f32 %v10494_v14, %v3598_v56  ;;  %v8841_v53 = vor.u32 %v10202_v2, %v8838_v3  ;;  %v10190_v56 = vld [vmem:[#allocation5 + $0x164] sm:$0xf0]  ;;  %v8769_v13 = vor.u32 %v10185_v52, %v8766_v49  ;;  %v8774_v28 = vld [vmem:[#allocation5 + $0x168] sm:$0xf0]  ;;  %v10181_v14 = vld [vmem:[#allocation5 + $0x11c] sm:$0xf0] }
 0x35f   :  { %v10496_v41 = vpop.eup %10495  ;;  %v8773_v37 = vor.u32 %v10190_v56, %v8772_v31  ;;  %v10182_v2 = vld [vmem:[#allocation5 + $0x124] sm:$0xf0]  ;;  %v10178_v3 = vld [vmem:[#allocation5 + $0x10c] sm:$0xf] }
 0x360   :  { %v10964_v12 = vadd.f32 %v3609_v62, %v3608_v0  ;;  %4330 = vmatpush.bf16.msrb.mxu0 %v8476_v27  ;;  %4343 = vmatpush.bf16.msrb.mxu1 %v8480_v39  ;;  %v3606_v6 = vmul.f32 0.5, %v10496_v41  ;;  %v10177_v27 = vld [vmem:[#allocation5 + $0x104] sm:$0xf]  ;;  %v8777_v0 = vor.u32 %v10186_v63, %v8774_v28  ;;  %v8740_v62 = vld [vmem:[#allocation5 + $0x108] sm:$0xf]  ;;  %v8733_v39 = vor.u32 %v10181_v14, %v8732_v9 }
 0x361   :  { %4356 = vmatpush.bf16.msrb.mxu2 %v8484_v36  ;;  %4369 = vmatpush.bf16.msrb.mxu3 %v8488_v26  ;;  %v8737_v40 = vor.u32 %v10177_v27, %v8734_v4  ;;  %v8742_v36 = vld [vmem:[#allocation5 + $0x128] sm:$0xf0]  ;;  %v8741_v26 = vor.u32 %v10182_v2, %v8740_v62  ;;  %v8638_v28 = vld [vmem:[#allocation5 + $0x60] sm:$0xf0]  ;;  %v8644_v9 = vld [vmem:[#allocation5 + $0x48] sm:$0xf] }
 0x362   :  { %10497 = vtanh.f32 %v10964_v12  ;;  %v3607_v38 = vadd.f32 0.5, %v3606_v6  ;;  %v8745_v41 = vor.u32 %v10178_v3, %v8742_v36  ;;  %v8710_v43 = vld [vmem:[#allocation5 + $0xe8] sm:$0xf0]  ;;  %v8668_v6 = vld [vmem:[#allocation5 + $0x80] sm:$0xf] }
 0x363   :  { %v8713_v18 = vor.u32 %v10170_v61, %v8710_v43  ;;  %v8678_v31 = vld [vmem:[#allocation5 + $0xa8] sm:$0xf0]  ;;  %v10149_v62 = vld [vmem:[#allocation5 + $0x1c] sm:$0xf0]  ;;  %v8606_v2 = vld [vmem:[#allocation5 + $0x20] sm:$0xf0] }
 0x364   :  { %4814 = vmatpush.bf16.msra.mxu0 %v8829_v35  ;;  %4827 = vmatpush.bf16.msra.mxu1 %v8833_v44  ;;  %v8700_v35 = vld [vmem:[#allocation5 + $0xc0] sm:$0xf]  ;;  %v10154_v4 = vld [vmem:[#allocation5 + $0x4c] sm:$0xf]  ;;  %v8612_v3 = vld [vmem:[#allocation5 + $0x8] sm:$0xf] }
 0x365   :  { %4840 = vmatpush.bf16.msra.mxu2 %v8837_v47  ;;  %4853 = vmatpush.bf16.msra.mxu3 %v8841_v53  ;;  %v10173_v44 = vld [vmem:[#allocation5 + $0xdc] sm:$0xf0]  ;;  %v8702_v47 = vld [vmem:[#allocation5 + $0xe0] sm:$0xf0]  ;;  %v8708_v53 = vld [vmem:[#allocation5 + $0xc8] sm:$0xf] }
 0x366   :  { %v8701_v5 = vor.u32 %v10173_v44, %v8700_v35  ;;  %v8705_v42 = vor.u32 %v10169_v54, %v8702_v47  ;;  %v8709_v57 = vor.u32 %v10174_v10, %v8708_v53  ;;  %v10150_v36 = vld [vmem:[#allocation5 + $0x24] sm:$0xf0]  ;;  %v10146_v35 = vld [vmem:[#allocation5 + $0xc] sm:$0xf]  ;;  %v8844_v54 = vld [vmem:[#allocation5 + $0x1d0] sm:$0xf] }
 0x367   :  { %v8614_v44 = vld [vmem:[#allocation5 + $0x28] sm:$0xf0]  ;;  %v10207_v47 = vld [vmem:[#allocation5 + $0x1ec] sm:$0xf0]  ;;  %v10203_v53 = vld [vmem:[#allocation5 + $0x1d4] sm:$0xf] }
 0x368   :  { %v10498_v7 = vpop.eup %10497  ;;  %4815 = vmatpush.bf16.msra.mxu0 %v8797_v8  ;;  %4828 = vmatpush.bf16.msra.mxu1 %v8801_v19  ;;  %v10165_v8 = vld [vmem:[#allocation5 + $0x9c] sm:$0xf0]  ;;  %v10161_v19 = vld [vmem:[#allocation5 + $0x84] sm:$0xf]  ;;  %v8846_v10 = vld [vmem:[#allocation5 + $0x1f0] sm:$0xf0] }
 0x369   :  { %v3612_v55 = vmul.f32 %v10498_v7, %v3607_v38  ;;  %4841 = vmatpush.bf16.msra.mxu2 %v8805_v1  ;;  %4854 = vmatpush.bf16.msra.mxu3 %v8809_v15  ;;  %v8669_v22 = vor.u32 %v10165_v8, %v8668_v6  ;;  %v8670_v1 = vld [vmem:[#allocation5 + $0xa0] sm:$0xf0]  ;;  %v8676_v15 = vld [vmem:[#allocation5 + $0x88] sm:$0xf]  ;;  %v10162_v38 = vld [vmem:[#allocation5 + $0x8c] sm:$0xf] }
 0x36a   :  { %v8673_v52 = vor.u32 %v10161_v19, %v8670_v1  ;;  %v8677_v49 = vor.u32 %v10166_v21, %v8676_v15  ;;  %v8681_v56 = vor.u32 %v10162_v38, %v8678_v31  ;;  %v8636_v7 = vld [vmem:[#allocation5 + $0x40] sm:$0xf]  ;;  %v8852_v61 = vld [vmem:[#allocation5 + $0x1d8] sm:$0xf]  ;;  %v8854_v8 = vld [vmem:[#allocation5 + $0x1f8] sm:$0xf0] }
 0x36b   :  { %8216 = vst [vmem:[%s11105_s6 + $0x18] sm:$0xff] %v3612_v55  ;;  %v4130_v11 = vpack.c.bf16 %v3612_v55, %v3612_v55  ;;  %v10158_v55 = vld [vmem:[#allocation5 + $0x64] sm:$0xf0]  ;;  %v10208_v43 = vld [vmem:[#allocation5 + $0x1f4] sm:$0xf0] }
 0x36c   :  { %4816 = vmatpush.bf16.msra.mxu0 %v8765_v60  ;;  %4829 = vmatpush.bf16.msra.mxu1 %v8769_v13  ;;  %v10157_v60 = vld [vmem:[#allocation5 + $0x5c] sm:$0xf0]  ;;  %v10153_v13 = vld [vmem:[#allocation5 + $0x44] sm:$0xf]  ;;  %v8645_v27 = vor.u32 %v10158_v55, %v8644_v9  ;;  %v8853_v6 = vor.u32 %v10208_v43, %v8852_v61  ;;  %v8812_v19 = vld [vmem:[#allocation5 + $0x190] sm:$0xf] }
 0x36d   :  { %4331 = vmatmul.bf16.vlgmr.msrb.gmra.mxu0 %v4130_v11  ;;  %4344 = vmatmul.bf16.vlgmr.msrb.gmra.mxu1 %v4130_v11  ;;  %v8637_v63 = vor.u32 %v10157_v60, %v8636_v7  ;;  %v8641_v14 = vor.u32 %v10153_v13, %v8638_v28  ;;  %v10195_v21 = vld [vmem:[#allocation5 + $0x194] sm:$0xf]  ;;  %v10200_v31 = vld [vmem:[#allocation5 + $0x1b4] sm:$0xf0]  ;;  %v8822_v7 = vld [vmem:[#allocation5 + $0x1b8] sm:$0xf0] }
 0x36e   :  { %4357 = vmatmul.bf16.vlgmr.msrb.gmra.mxu2 %v4130_v11  ;;  %4370 = vmatmul.bf16.vlgmr.msrb.gmra.mxu3 %v4130_v11  ;;  %v8646_v11 = vld [vmem:[#allocation5 + $0x68] sm:$0xf0]  ;;  %v10191_v28 = vld [vmem:[#allocation5 + $0x16c] sm:$0xf0]  ;;  %v10187_v9 = vld [vmem:[#allocation5 + $0x154] sm:$0xf] }
 0x36f   :  { %4842 = vmatpush.bf16.msra.mxu2 %v8773_v37  ;;  %4855 = vmatpush.bf16.msra.mxu3 %v8777_v0  ;;  %v8649_v37 = vor.u32 %v10154_v4, %v8646_v11  ;;  %v8604_v0 = vld [vmem:[#allocation5] sm:$0xf]  ;;  %v10192_v4 = vld [vmem:[#allocation5 + $0x174] sm:$0xf0]  ;;  %v8718_v43 = vld [vmem:[#allocation5 + $0xf0] sm:$0xf0] }
 0x370   :  { %4817 = vmatpush.bf16.msra.mxu0 %v8733_v39  ;;  %4830 = vmatpush.bf16.msra.mxu1 %v8737_v40  ;;  %v10145_v39 = vld [vmem:[#allocation5 + $0x4] sm:$0xf]  ;;  %v8605_v40 = vor.u32 %v10149_v62, %v8604_v0  ;;  %v10188_v0 = vld [vmem:[#allocation5 + $0x15c] sm:$0xf] }
 0x371   :  { %v8790_v62 = vld [vmem:[#allocation5 + $0x178] sm:$0xf0] }
 0x373   :  { %4843 = vmatpush.bf16.msra.mxu2 %v8741_v26  ;;  %4856 = vmatpush.bf16.msra.mxu3 %v8745_v41  ;;  %v8609_v26 = vor.u32 %v10145_v39, %v8606_v2  ;;  %v8613_v41 = vor.u32 %v10150_v36, %v8612_v3  ;;  %v8793_v39 = vor.u32 %v10188_v0, %v8790_v62  ;;  %v10183_v2 = vld [vmem:[#allocation5 + $0x12c] sm:$0xf0]  ;;  %v10179_v3 = vld [vmem:[#allocation5 + $0x114] sm:$0xf] }
 0x374   :  { %4818 = vmatpush.bf16.msra.mxu0 %v8701_v5  ;;  %4831 = vmatpush.bf16.msra.mxu1 %v8705_v42  ;;  %v8617_v5 = vor.u32 %v10146_v35, %v8614_v44  ;;  %v8845_v42 = vor.u32 %v10207_v47, %v8844_v54  ;;  %v10184_v35 = vld [vmem:[#allocation5 + $0x134] sm:$0xf0]  ;;  %v8758_v47 = vld [vmem:[#allocation5 + $0x138] sm:$0xf0]  ;;  %v10159_v62 = vld [vmem:[#allocation5 + $0x6c] sm:$0xf0] }
 0x377   :  { %4844 = vmatpush.bf16.msra.mxu2 %v8709_v57  ;;  %4857 = vmatpush.bf16.msra.mxu3 %v8713_v18  ;;  %v8849_v57 = vor.u32 %v10203_v53, %v8846_v10  ;;  %v10204_v18 = vld [vmem:[#allocation5 + $0x1dc] sm:$0xf]  ;;  %v8716_v10 = vld [vmem:[#allocation5 + $0xd0] sm:$0xf] }
 0x378   :  { %4819 = vmatpush.bf16.msra.mxu0 %v8669_v22  ;;  %4832 = vmatpush.bf16.msra.mxu1 %v8673_v52  ;;  %v10199_v22 = vld [vmem:[#allocation5 + $0x1ac] sm:$0xf0]  ;;  %v8857_v1 = vor.u32 %v10204_v18, %v8854_v8  ;;  %v8814_v52 = vld [vmem:[#allocation5 + $0x1b0] sm:$0xf0]  ;;  %v8724_v18 = vld [vmem:[#allocation5 + $0xd8] sm:$0xf] }
 0x379   :  { %v8813_v15 = vor.u32 %v10199_v22, %v8812_v19  ;;  %v8817_v38 = vor.u32 %v10195_v21, %v8814_v52  ;;  %v10172_v22 = vld [vmem:[#allocation5 + $0xdc] sm:$0xf]  ;;  %v358_v21 = vadd.f32 %v10776_v30, %v10719_v25 }
 0x37a   :  { %v8694_v30 = vld [vmem:[#allocation5 + $0xb8] sm:$0xf0] }
 0x37b   :  { %4845 = vmatpush.bf16.msra.mxu2 %v8677_v49  ;;  %4858 = vmatpush.bf16.msra.mxu3 %v8681_v56  ;;  %v8820_v49 = vld [vmem:[#allocation5 + $0x198] sm:$0xf]  ;;  %v10196_v56 = vld [vmem:[#allocation5 + $0x19c] sm:$0xf] }
 0x37c   :  { %4820 = vmatpush.bf16.msra.mxu0 %v8637_v63  ;;  %4833 = vmatpush.bf16.msra.mxu1 %v8641_v14  ;;  %v8821_v60 = vor.u32 %v10200_v31, %v8820_v49  ;;  %v8825_v13 = vor.u32 %v10196_v56, %v8822_v7  ;;  %v8780_v63 = vld [vmem:[#allocation5 + $0x150] sm:$0xf]  ;;  %v8782_v14 = vld [vmem:[#allocation5 + $0x170] sm:$0xf0] }
 0x37d   :  { %v8781_v55 = vor.u32 %v10191_v28, %v8780_v63  ;;  %v8785_v11 = vor.u32 %v10187_v9, %v8782_v14  ;;  %v8684_v31 = vld [vmem:[#allocation5 + $0x90] sm:$0xf]  ;;  %v10163_v7 = vld [vmem:[#allocation5 + $0x94] sm:$0xf]  ;;  %v8692_v9 = vld [vmem:[#allocation5 + $0x98] sm:$0xf] }
 0x37e   :  { %v10167_v56 = vld [vmem:[#allocation5 + $0xac] sm:$0xf0]  ;;  %v8686_v28 = vld [vmem:[#allocation5 + $0xb0] sm:$0xf0] }
 0x37f   :  { %4846 = vmatpush.bf16.msra.mxu2 %v8645_v27  ;;  %4859 = vmatpush.bf16.msra.mxu3 %v8649_v37  ;;  %v8788_v27 = vld [vmem:[#allocation5 + $0x158] sm:$0xf]  ;;  %v8685_v63 = vor.u32 %v10167_v56, %v8684_v31 }
 0x380   :  { %4821 = vmatpush.bf16.msra.mxu0 %v8605_v40  ;;  %4834 = vmatpush.bf16.msra.mxu1 %v8609_v26  ;;  %v8789_v37 = vor.u32 %v10192_v4, %v8788_v27  ;;  %v8748_v40 = vld [vmem:[#allocation5 + $0x110] sm:$0xf]  ;;  %v8750_v26 = vld [vmem:[#allocation5 + $0x130] sm:$0xf0]  ;;  %v10164_v27 = vld [vmem:[#allocation5 + $0x9c] sm:$0xf] }
 0x381   :  { %v8749_v36 = vor.u32 %v10183_v2, %v8748_v40  ;;  %v8753_v44 = vor.u32 %v10179_v3, %v8750_v26  ;;  %v8652_v4 = vld [vmem:[#allocation5 + $0x50] sm:$0xf]  ;;  %v8697_v0 = vor.u32 %v10164_v27, %v8694_v30  ;;  %v8654_v40 = vld [vmem:[#allocation5 + $0x70] sm:$0xf0]  ;;  %v8660_v2 = vld [vmem:[#allocation5 + $0x58] sm:$0xf] }
 0x382   :  { %v10160_v3 = vld [vmem:[#allocation5 + $0x74] sm:$0xf0] }
 0x383   :  { %4847 = vmatpush.bf16.msra.mxu2 %v8613_v41  ;;  %4860 = vmatpush.bf16.msra.mxu3 %v8617_v5  ;;  %v8756_v41 = vld [vmem:[#allocation5 + $0x118] sm:$0xf]  ;;  %v10180_v5 = vld [vmem:[#allocation5 + $0x11c] sm:$0xf] }
 0x384   :  { %4866 = vmatpush.bf16.msrb.mxu0 %v8845_v42  ;;  %4879 = vmatpush.bf16.msrb.mxu1 %v8849_v57  ;;  %v8757_v54 = vor.u32 %v10184_v35, %v8756_v41  ;;  %v8761_v53 = vor.u32 %v10180_v5, %v8758_v47  ;;  %v10175_v42 = vld [vmem:[#allocation5 + $0xec] sm:$0xf0]  ;;  %v10171_v57 = vld [vmem:[#allocation5 + $0xd4] sm:$0xf]  ;;  %v10156_v41 = vld [vmem:[#allocation5 + $0x5c] sm:$0xf]  ;;  %v8661_v5 = vor.u32 %v10160_v3, %v8660_v2 }
 0x385   :  { %v8717_v61 = vor.u32 %v10175_v42, %v8716_v10  ;;  %v8721_v8 = vor.u32 %v10171_v57, %v8718_v43  ;;  %v8662_v35 = vld [vmem:[#allocation5 + $0x78] sm:$0xf0]  ;;  %v8972_v3 = vld [vmem:[#allocation7 + $0xe0] sm:$0xf] }
 0x386   :  { %v8665_v10 = vor.u32 %v10156_v41, %v8662_v35  ;;  %v10237_v41 = vld [vmem:[#allocation7 + $0xe4] sm:$0xf]  ;;  %v8974_v35 = vld [vmem:[#allocation7 + $0xf0] sm:$0xf0] }
 0x387   :  { %4892 = vmatpush.bf16.msrb.mxu2 %v8853_v6  ;;  %4905 = vmatpush.bf16.msrb.mxu3 %v8857_v1  ;;  %v10176_v6 = vld [vmem:[#allocation5 + $0xf4] sm:$0xf0]  ;;  %v8726_v1 = vld [vmem:[#allocation5 + $0xf8] sm:$0xf0] }
 0x388   :  { %4867 = vmatpush.bf16.msrb.mxu0 %v8813_v15  ;;  %4880 = vmatpush.bf16.msrb.mxu1 %v8817_v38  ;;  %v8725_v19 = vor.u32 %v10176_v6, %v8724_v18  ;;  %v329_v15 = vadd.f32 %v10774_v29, %v10717_v24  ;;  %v8729_v52 = vor.u32 %v10172_v22, %v8726_v1  ;;  %v8620_v18 = vld [vmem:[#allocation5 + $0x10] sm:$0xf]  ;;  %v8628_v22 = vld [vmem:[#allocation5 + $0x18] sm:$0xf] }
 0x389   :  { %v8689_v29 = vor.u32 %v10163_v7, %v8686_v28  ;;  %v10151_v6 = vld [vmem:[#allocation5 + $0x2c] sm:$0xf0] }
 0x38b   :  { %4893 = vmatpush.bf16.msrb.mxu2 %v8821_v60  ;;  %4906 = vmatpush.bf16.msrb.mxu3 %v8825_v13 }
 0x38c   :  { %4868 = vmatpush.bf16.msrb.mxu0 %v8781_v55  ;;  %4881 = vmatpush.bf16.msrb.mxu1 %v8785_v11  ;;  %v10168_v55 = vld [vmem:[#allocation5 + $0xb4] sm:$0xf0] }
 0x38d   :  { %v8693_v14 = vor.u32 %v10168_v55, %v8692_v9 }
 0x38f   :  { %4894 = vmatpush.bf16.msrb.mxu2 %v8789_v37  ;;  %4907 = vmatpush.bf16.msrb.mxu3 %v8793_v39  ;;  %v10155_v39 = vld [vmem:[#allocation5 + $0x54] sm:$0xf] }
 0x390   :  { %4869 = vmatpush.bf16.msrb.mxu0 %v8749_v36  ;;  %4882 = vmatpush.bf16.msrb.mxu1 %v8753_v44  ;;  %v8653_v36 = vor.u32 %v10159_v62, %v8652_v4  ;;  %v8657_v26 = vor.u32 %v10155_v39, %v8654_v40  ;;  %v387_v44 = vadd.f32 %v10778_v16, %v10723_v45 }
 0x391   :  { %v8621_v16 = vor.u32 %v10151_v6, %v8620_v18 }
 0x393   :  { %4895 = vmatpush.bf16.msrb.mxu2 %v8757_v54  ;;  %4908 = vmatpush.bf16.msrb.mxu3 %v8761_v53  ;;  %v416_v54 = vadd.f32 %v10780_v17, %v10725_v46  ;;  %v10152_v17 = vld [vmem:[#allocation5 + $0x34] sm:$0xf0] }
 0x394   :  { %4870 = vmatpush.bf16.msrb.mxu0 %v8717_v61  ;;  %4883 = vmatpush.bf16.msrb.mxu1 %v8721_v8  ;;  %v10147_v8 = vld [vmem:[#allocation5 + $0x14] sm:$0xf] }
 0x397   :  { %4896 = vmatpush.bf16.msrb.mxu2 %v8725_v19  ;;  %4909 = vmatpush.bf16.msrb.mxu3 %v8729_v52  ;;  %v8622_v19 = vld [vmem:[#allocation5 + $0x30] sm:$0xf0]  ;;  %v10148_v52 = vld [vmem:[#allocation5 + $0x1c] sm:$0xf] }
 0x398   :  { %4871 = vmatpush.bf16.msrb.mxu0 %v8685_v63  ;;  %4884 = vmatpush.bf16.msrb.mxu1 %v8689_v29 }
 0x39b   :  { %4897 = vmatpush.bf16.msrb.mxu2 %v8693_v14  ;;  %4910 = vmatpush.bf16.msrb.mxu3 %v8697_v0 }
 0x39c   :  { %4872 = vmatpush.bf16.msrb.mxu0 %v8653_v36  ;;  %4885 = vmatpush.bf16.msrb.mxu1 %v8657_v26  ;;  %v10239_v36 = vld [vmem:[#allocation7 + $0xec] sm:$0xf0] }
 0x39f   :  { %4898 = vmatpush.bf16.msrb.mxu2 %v8661_v5  ;;  %4911 = vmatpush.bf16.msrb.mxu3 %v8665_v10  ;;  %v10238_v5 = vld [vmem:[#allocation7 + $0xec] sm:$0xf]  ;;  %v8973_v10 = vor.u32 %v10239_v36, %v8972_v3  ;;  %v8932_v3 = vld [vmem:[#allocation7 + $0x88] sm:$0xf]  ;;  %v10228_v36 = vld [vmem:[#allocation7 + $0x94] sm:$0xf0] }
 0x3a0   :  { %4873 = vmatpush.bf16.msrb.mxu0 %v8621_v16  ;;  %v10233_v16 = vld [vmem:[#allocation7 + $0xc4] sm:$0xf] }
 0x3bf   :  { %v4035_v49 = vpop.f32.mrf.mxu0  ;;  %v4048_v38 = vpop.f32.mrf.mxu1 }
 0x3c0   :  { %v4407_v60 = vadd.f32 %v4035_v49, %v329_v15  ;;  %v4408_v13 = vadd.f32 %v4048_v38, %v358_v21  ;;  %v8625_v15 = vor.u32 %v10147_v8, %v8622_v19  ;;  %v8629_v21 = vor.u32 %v10152_v17, %v8628_v22  ;;  %v8630_v49 = vld [vmem:[#allocation5 + $0x38] sm:$0xf0]  ;;  %v8958_v19 = vld [vmem:[#allocation7 + $0xd0] sm:$0xf0]  ;;  %v8964_v22 = vld [vmem:[#allocation7 + $0xc8] sm:$0xf] }
 0x3c1   :  { %v8633_v31 = vor.u32 %v10148_v52, %v8630_v49  ;;  %v10236_v17 = vld [vmem:[#allocation7 + $0xd4] sm:$0xf0]  ;;  %v8961_v52 = vor.u32 %v10233_v16, %v8958_v19  ;;  %v8940_v49 = vld [vmem:[#allocation7 + $0xa0] sm:$0xf] }
 0x3c2   :  { %v4411_v11 = vmul.f32 0.5, %v4407_v60  ;;  %v4415_v37 = vmul.f32 0.5, %v4408_v13  ;;  %4886 = vmatpush.bf16.msrb.mxu1 %v8625_v15  ;;  %4899 = vmatpush.bf16.msrb.mxu2 %v8629_v21  ;;  %v8966_v15 = vld [vmem:[#allocation7 + $0xd8] sm:$0xf0]  ;;  %v10224_v19 = vld [vmem:[#allocation7 + $0x74] sm:$0xf0] }
 0x3c3   :  { %4912 = vmatpush.bf16.msrb.mxu3 %v8633_v31  ;;  %v8965_v31 = vor.u32 %v10236_v17, %v8964_v22  ;;  %v8918_v22 = vld [vmem:[#allocation7 + $0x78] sm:$0xf0] }
 0x3c4   :  { %10499 = vtanh.f32 %v4411_v11 }
 0x3c5   :  { %10501 = vtanh.f32 %v4415_v37 }
 0x3c6   :  { %v4061_v47 = vpop.f32.mrf.mxu2  ;;  %v4074_v53 = vpop.f32.mrf.mxu3 }
 0x3c7   :  { %v4409_v42 = vadd.f32 %v4061_v47, %v387_v44  ;;  %v4410_v57 = vadd.f32 %v4074_v53, %v416_v54  ;;  %v4037_v61 = vpop.f32.mrf.mxu0  ;;  %v4050_v43 = vpop.f32.mrf.mxu1  ;;  %v10240_v54 = vld [vmem:[#allocation7 + $0xf4] sm:$0xf0]  ;;  %v8982_v47 = vld [vmem:[#allocation7 + $0xf8] sm:$0xf0] }
 0x3c8   :  { %v10235_v61 = vld [vmem:[#allocation7 + $0xcc] sm:$0xf0]  ;;  %v8985_v8 = vor.u32 %v10238_v5, %v8982_v47 }
 0x3c9   :  { %10503 = vtanh.f32 %v4409_v42  ;;  %v4420_v1 = vmul.f32 0.5, %v4410_v57  ;;  %v8977_v42 = vor.u32 %v10237_v41, %v8974_v35  ;;  %v8956_v57 = vld [vmem:[#allocation7 + $0xc0] sm:$0xf]  ;;  %v8934_v41 = vld [vmem:[#allocation7 + $0x98] sm:$0xf0] }
 0x3ca   :  { %v10500_v38 = vpop.eup %10499  ;;  %v8957_v21 = vor.u32 %v10235_v61, %v8956_v57  ;;  %v8933_v57 = vor.u32 %v10228_v36, %v8932_v3  ;;  %v10215_v3 = vld [vmem:[#allocation7 + $0x2c] sm:$0xf0] }
 0x3cb   :  { %v10502_v56 = vpop.eup %10501  ;;  %v4413_v7 = vmul.f32 0.5, %v10500_v38  ;;  %10505 = vtanh.f32 %v4420_v1  ;;  %v10234_v1 = vld [vmem:[#allocation7 + $0xcc] sm:$0xf]  ;;  %v10231_v38 = vld [vmem:[#allocation7 + $0xac] sm:$0xf0] }
 0x3cc   :  { %v4417_v60 = vmul.f32 0.5, %v10502_v56  ;;  %v8969_v56 = vor.u32 %v10234_v1, %v8966_v15 }
 0x3cd   :  { %v4414_v13 = vadd.f32 0.5, %v4413_v7  ;;  %v10229_v7 = vld [vmem:[#allocation7 + $0xa4] sm:$0xf] }
 0x3ce   :  { %v4418_v63 = vadd.f32 0.5, %v4417_v60  ;;  %v4063_v28 = vpop.f32.mrf.mxu2  ;;  %v4076_v9 = vpop.f32.mrf.mxu3  ;;  %v8942_v60 = vld [vmem:[#allocation7 + $0xb0] sm:$0xf0] }
 0x3cf   :  { %v10504_v55 = vpop.eup %10503  ;;  %v10978_v29 = vpop.f32.mrf.mxu0  ;;  %v10230_v28 = vld [vmem:[#allocation7 + $0xac] sm:$0xf]  ;;  %v8950_v9 = vld [vmem:[#allocation7 + $0xb8] sm:$0xf0] }
 0x3d0   :  { %v10980_v14 = vpop.f32.mrf.mxu1  ;;  %v4424_v27 = vmul.f32 %v4418_v63, %v10938_v34  ;;  %v4425_v30 = vmul.f32 %v10504_v55, %v4414_v13  ;;  %v8980_v34 = vld [vmem:[#allocation7 + $0xe8] sm:$0xf]  ;;  %v10232_v63 = vld [vmem:[#allocation7 + $0xb4] sm:$0xf0]  ;;  %v8941_v55 = vor.u32 %v10231_v38, %v8940_v49  ;;  %v10217_v49 = vld [vmem:[#allocation7 + $0x44] sm:$0xf] }
 0x3d1   :  { %v10506_v4 = vpop.eup %10505  ;;  %v8981_v6 = vor.u32 %v10240_v54, %v8980_v34  ;;  %v8948_v13 = vld [vmem:[#allocation7 + $0xa8] sm:$0xf] }
 0x3d2   :  { %v10983_v11 = vadd.f32 %v4425_v30, %v4424_v27  ;;  %v4422_v37 = vmul.f32 0.5, %v10506_v4  ;;  %v8945_v27 = vor.u32 %v10229_v7, %v8942_v60  ;;  %v8924_v30 = vld [vmem:[#allocation7 + $0x80] sm:$0xf]  ;;  %v10227_v4 = vld [vmem:[#allocation7 + $0x8c] sm:$0xf0] }
 0x3d3   :  { %v8900_v7 = vld [vmem:[#allocation7 + $0x48] sm:$0xf]  ;;  %v10220_v60 = vld [vmem:[#allocation7 + $0x54] sm:$0xf0] }
 0x3d4   :  { %10507 = vtanh.f32 %v10983_v11  ;;  %v4423_v2 = vadd.f32 0.5, %v4422_v37  ;;  %v8949_v37 = vor.u32 %v10232_v63, %v8948_v13 }
 0x3d6   :  { %v10986_v0 = vpop.f32.mrf.mxu2  ;;  %v10988_v62 = vpop.f32.mrf.mxu3 }
 0x3d7   :  { %v4089_v39 = vpop.f32.mrf.mxu0 }
 0x3d8   :  { %v4102_v40 = vpop.f32.mrf.mxu1  ;;  %v8953_v39 = vor.u32 %v10230_v28, %v8950_v9  ;;  %v10218_v28 = vld [vmem:[#allocation7 + $0x4c] sm:$0xf]  ;;  %v8902_v9 = vld [vmem:[#allocation7 + $0x58] sm:$0xf0] }
 0x3d9   :  { %v10225_v40 = vld [vmem:[#allocation7 + $0x84] sm:$0xf] }
 0x3da   :  { %v10508_v26 = vpop.eup %10507 }
 0x3db   :  { %v4428_v44 = vmul.f32 %v10508_v26, %v4423_v2  ;;  %v8926_v2 = vld [vmem:[#allocation7 + $0x90] sm:$0xf0]  ;;  %v10226_v26 = vld [vmem:[#allocation7 + $0x8c] sm:$0xf] }
 0x3dc   :  { %v8929_v47 = vor.u32 %v10225_v40, %v8926_v2  ;;  %v8937_v61 = vor.u32 %v10226_v26, %v8934_v41  ;;  %v8901_v40 = vor.u32 %v10220_v60, %v8900_v7  ;;  %v8876_v2 = vld [vmem:[#allocation7 + $0x20] sm:$0xf]  ;;  %v8878_v41 = vld [vmem:[#allocation7 + $0x30] sm:$0xf0]  ;;  %v10302_v7 = vld [vmem:[#allocation5 + $0x1e4] sm:$0xf0] }
 0x3dd   :  { %v10990_v53 = vpack.c.bf16 %v4428_v44, %v4428_v44  ;;  %v8925_v44 = vor.u32 %v10227_v4, %v8924_v30 }
 0x3de   :  { %v4115_v43 = vpop.f32.mrf.mxu2  ;;  %v4128_v18 = vpop.f32.mrf.mxu3 }
 0x3df   :  { %4822 = vmatmul.bf16.vlgmr.msra.gmra.mxu0 %v10990_v53  ;;  %4835 = vmatmul.bf16.vlgmr.msra.gmra.mxu1 %v10990_v53  ;;  %v10221_v43 = vld [vmem:[#allocation7 + $0x64] sm:$0xf]  ;;  %v8910_v18 = vld [vmem:[#allocation7 + $0x70] sm:$0xf0] }
 0x3e0   :  { %4848 = vmatmul.bf16.vlgmr.msra.gmra.mxu2 %v10990_v53  ;;  %4861 = vmatmul.bf16.vlgmr.msra.gmra.mxu3 %v10990_v53 }
 0x3e1   :  { %5111 = vmatpush.bf16.msra.mxu0 %v8973_v10  ;;  %5124 = vmatpush.bf16.msra.mxu1 %v8977_v42  ;;  %v8908_v10 = vld [vmem:[#allocation7 + $0x60] sm:$0xf]  ;;  %v10223_v42 = vld [vmem:[#allocation7 + $0x6c] sm:$0xf0] }
 0x3e2   :  { %5137 = vmatpush.bf16.msra.mxu2 %v8981_v6  ;;  %5150 = vmatpush.bf16.msra.mxu3 %v8985_v8  ;;  %v8916_v6 = vld [vmem:[#allocation7 + $0x68] sm:$0xf]  ;;  %v8909_v15 = vor.u32 %v10223_v42, %v8908_v10  ;;  %v10209_v10 = vld [vmem:[#allocation7 + $0x4] sm:$0xf]  ;;  %v8862_v42 = vld [vmem:[#allocation7 + $0x10] sm:$0xf0] }
 0x3e3   :  { %v8917_v38 = vor.u32 %v10224_v19, %v8916_v6  ;;  %v10212_v6 = vld [vmem:[#allocation7 + $0x14] sm:$0xf0] }
 0x3e5   :  { %5112 = vmatpush.bf16.msra.mxu0 %v8957_v21  ;;  %5125 = vmatpush.bf16.msra.mxu1 %v8961_v52  ;;  %v8913_v21 = vor.u32 %v10221_v43, %v8910_v18  ;;  %v10219_v52 = vld [vmem:[#allocation7 + $0x4c] sm:$0xf0]  ;;  %v8868_v18 = vld [vmem:[#allocation7 + $0x8] sm:$0xf] }
 0x3e6   :  { %5138 = vmatpush.bf16.msra.mxu2 %v8965_v31  ;;  %5151 = vmatpush.bf16.msra.mxu3 %v8969_v56  ;;  %v8894_v56 = vld [vmem:[#allocation7 + $0x50] sm:$0xf0] }
 0x3e9   :  { %5113 = vmatpush.bf16.msra.mxu0 %v8941_v55  ;;  %5126 = vmatpush.bf16.msra.mxu1 %v8945_v27 }
 0x3ea   :  { %v4332_v35 = vpop.f32.mrf.mxu0  ;;  %v4345_v34 = vpop.f32.mrf.mxu1  ;;  %5139 = vmatpush.bf16.msra.mxu2 %v8949_v37  ;;  %5152 = vmatpush.bf16.msra.mxu3 %v8953_v39  ;;  %v8897_v39 = vor.u32 %v10217_v49, %v8894_v56  ;;  %v10297_v49 = vld [vmem:[#allocation5 + $0x1c4] sm:$0xf]  ;;  %v9221_v56 = vld [vmem:[#allocation5 + $0x1c8] sm:$0xf] }
 0x3eb   :  { %v4375_v54 = vadd.f32 %v4332_v35, %v10978_v29  ;;  %v4376_v5 = vadd.f32 %v4345_v34, %v10980_v14  ;;  %v10222_v29 = vld [vmem:[#allocation7 + $0x6c] sm:$0xf]  ;;  %v8892_v14 = vld [vmem:[#allocation7 + $0x40] sm:$0xf]  ;;  %v8884_v35 = vld [vmem:[#allocation7 + $0x28] sm:$0xf] }
 0x3ec   :  { %v8921_v31 = vor.u32 %v10222_v29, %v8918_v22  ;;  %v8893_v37 = vor.u32 %v10219_v52, %v8892_v14  ;;  %v10214_v34 = vld [vmem:[#allocation7 + $0x2c] sm:$0xf] }
 0x3ed   :  { %v4379_v8 = vadd.f32 %v4375_v54, %v10817_v48  ;;  %v4380_v16 = vadd.f32 %v4376_v5, %v10821_v50  ;;  %5114 = vmatpush.bf16.msra.mxu0 %v8925_v44  ;;  %5127 = vmatpush.bf16.msra.mxu1 %v8929_v47  ;;  %v8886_v44 = vld [vmem:[#allocation7 + $0x38] sm:$0xf0]  ;;  %v8860_v5 = vld [vmem:[#allocation7] sm:$0xf]  ;;  %v10211_v47 = vld [vmem:[#allocation7 + $0xc] sm:$0xf0] }
 0x3ee   :  { %5140 = vmatpush.bf16.msra.mxu2 %v8933_v57  ;;  %5153 = vmatpush.bf16.msra.mxu3 %v8937_v61  ;;  %v8877_v61 = vor.u32 %v10215_v3, %v8876_v2  ;;  %v8889_v14 = vor.u32 %v10214_v34, %v8886_v44  ;;  %v9181_v2 = vld [vmem:[#allocation5 + $0x180] sm:$0xf]  ;;  %v10294_v34 = vld [vmem:[#allocation5 + $0x1a4] sm:$0xf0]  ;;  %v10290_v44 = vld [vmem:[#allocation5 + $0x18c] sm:$0xf] }
 0x3ef   :  { %v4383_v17 = vmul.f32 0.5, %v4379_v8  ;;  %v4387_v1 = vmul.f32 0.5, %v4380_v16  ;;  %4874 = vmatmul.bf16.vlgmr.msrb.gmra.mxu0 %v10990_v53  ;;  %4887 = vmatmul.bf16.vlgmr.msrb.gmra.mxu1 %v10990_v53  ;;  %v10210_v8 = vld [vmem:[#allocation7 + $0xc] sm:$0xf]  ;;  %v8870_v16 = vld [vmem:[#allocation7 + $0x18] sm:$0xf0] }
 0x3f0   :  { %4900 = vmatmul.bf16.vlgmr.msrb.gmra.mxu2 %v10990_v53  ;;  %4913 = vmatmul.bf16.vlgmr.msrb.gmra.mxu3 %v10990_v53  ;;  %v10216_v53 = vld [vmem:[#allocation7 + $0x34] sm:$0xf0]  ;;  %v10293_v3 = vld [vmem:[#allocation5 + $0x19c] sm:$0xf0] }
 0x3f1   :  { %10509 = vtanh.f32 %v4383_v17  ;;  %v4358_v13 = vpop.f32.mrf.mxu2  ;;  %v4371_v63 = vpop.f32.mrf.mxu3  ;;  %5115 = vmatpush.bf16.msra.mxu0 %v8909_v15  ;;  %5128 = vmatpush.bf16.msra.mxu1 %v8913_v21  ;;  %v8885_v22 = vor.u32 %v10216_v53, %v8884_v35  ;;  %v9213_v17 = vld [vmem:[#allocation5 + $0x1c0] sm:$0xf] }
 0x3f2   :  { %10511 = vtanh.f32 %v4387_v1  ;;  %v4377_v55 = vadd.f32 %v4358_v13, %v10986_v0  ;;  %v4378_v27 = vadd.f32 %v4371_v63, %v10988_v62  ;;  %v4334_v30 = vpop.f32.mrf.mxu0  ;;  %v4347_v4 = vpop.f32.mrf.mxu1  ;;  %5141 = vmatpush.bf16.msra.mxu2 %v8917_v38  ;;  %5154 = vmatpush.bf16.msra.mxu3 %v8921_v31  ;;  %v8905_v0 = vor.u32 %v10218_v28, %v8902_v9  ;;  %v10213_v62 = vld [vmem:[#allocation7 + $0x24] sm:$0xf]  ;;  %v10301_v1 = vld [vmem:[#allocation5 + $0x1dc] sm:$0xf0]  ;;  %v10298_v28 = vld [vmem:[#allocation5 + $0x1cc] sm:$0xf] }
 0x3f3   :  { %v8881_v43 = vor.u32 %v10213_v62, %v8878_v41  ;;  %v9215_v38 = vld [vmem:[#allocation5 + $0x1e0] sm:$0xf0]  ;;  %v8861_v13 = vor.u32 %v10211_v47, %v8860_v5  ;;  %v8865_v63 = vor.u32 %v10209_v10, %v8862_v42  ;;  %v9223_v9 = vld [vmem:[#allocation5 + $0x1e8] sm:$0xf0]  ;;  %v8873_v30 = vor.u32 %v10210_v8, %v8870_v16  ;;  %v9189_v41 = vld [vmem:[#allocation5 + $0x188] sm:$0xf] }
 0x3f4   :  { %v4381_v36 = vadd.f32 %v4377_v55, %v10829_v20  ;;  %v4382_v26 = vadd.f32 %v4378_v27, %v10831_v51  ;;  %v8869_v27 = vor.u32 %v10212_v6, %v8868_v18  ;;  %v9183_v62 = vld [vmem:[#allocation5 + $0x1a0] sm:$0xf0]  ;;  %v9149_v47 = vld [vmem:[#allocation5 + $0x140] sm:$0xf]  ;;  %v9157_v6 = vld [vmem:[#allocation5 + $0x148] sm:$0xf] }
 0x3f5   :  { %5116 = vmatpush.bf16.msra.mxu0 %v8893_v37  ;;  %5129 = vmatpush.bf16.msra.mxu1 %v8897_v39  ;;  %v9214_v39 = vor.u32 %v10301_v1, %v9213_v17  ;;  %v10285_v10 = vld [vmem:[#allocation5 + $0x15c] sm:$0xf0]  ;;  %v10281_v42 = vld [vmem:[#allocation5 + $0x144] sm:$0xf]  ;;  %v10286_v8 = vld [vmem:[#allocation5 + $0x164] sm:$0xf0] }
 0x3f6   :  { %10513 = vtanh.f32 %v4381_v36  ;;  %v4392_v54 = vmul.f32 0.5, %v4382_v26  ;;  %5142 = vmatpush.bf16.msra.mxu2 %v8901_v40  ;;  %5155 = vmatpush.bf16.msra.mxu3 %v8905_v0  ;;  %v9218_v40 = vor.u32 %v10297_v49, %v9215_v38  ;;  %v9222_v36 = vor.u32 %v10302_v7, %v9221_v56  ;;  %v10289_v0 = vld [vmem:[#allocation5 + $0x184] sm:$0xf]  ;;  %v10282_v16 = vld [vmem:[#allocation5 + $0x14c] sm:$0xf] }
 0x3f7   :  { %v10510_v57 = vpop.eup %10509  ;;  %v9226_v26 = vor.u32 %v10298_v28, %v9223_v9  ;;  %v9186_v5 = vor.u32 %v10289_v0, %v9183_v62  ;;  %v9151_v18 = vld [vmem:[#allocation5 + $0x160] sm:$0xf0]  ;;  %v9158_v17 = vor.u32 %v10286_v8, %v9157_v6  ;;  %v10278_v7 = vld [vmem:[#allocation5 + $0x124] sm:$0xf0]  ;;  %v10266_v0 = vld [vmem:[#allocation5 + $0xcc] sm:$0xf] }
 0x3f8   :  { %v10512_v19 = vpop.eup %10511  ;;  %v4385_v29 = vmul.f32 0.5, %v10510_v57  ;;  %10515 = vtanh.f32 %v4392_v54  ;;  %v9191_v54 = vld [vmem:[#allocation5 + $0x1a8] sm:$0xf0]  ;;  %v10273_v49 = vld [vmem:[#allocation5 + $0x104] sm:$0xf] }
 0x3f9   :  { %v4389_v15 = vmul.f32 0.5, %v10512_v19  ;;  %v4360_v21 = vpop.f32.mrf.mxu2  ;;  %v4373_v52 = vpop.f32.mrf.mxu3  ;;  %5117 = vmatpush.bf16.msra.mxu0 %v8877_v61  ;;  %5130 = vmatpush.bf16.msra.mxu1 %v8881_v43  ;;  %v9190_v61 = vor.u32 %v10294_v34, %v9189_v41  ;;  %v9194_v43 = vor.u32 %v10290_v44, %v9191_v54  ;;  %v9159_v19 = vld [vmem:[#allocation5 + $0x168] sm:$0xf0]  ;;  %v9119_v38 = vld [vmem:[#allocation5 + $0x120] sm:$0xf0] }
 0x3fa   :  { %v4386_v31 = vadd.f32 0.5, %v4385_v29  ;;  %5143 = vmatpush.bf16.msra.mxu2 %v8885_v22  ;;  %5156 = vmatpush.bf16.msra.mxu3 %v8889_v14  ;;  %v9150_v29 = vor.u32 %v10285_v10, %v9149_v47  ;;  %v9154_v22 = vor.u32 %v10281_v42, %v9151_v18  ;;  %v9162_v1 = vor.u32 %v10282_v16, %v9159_v19  ;;  %v10277_v21 = vld [vmem:[#allocation5 + $0x11c] sm:$0xf0]  ;;  %v9095_v62 = vld [vmem:[#allocation5 + $0xe8] sm:$0xf0] }
 0x3fb   :  { %v4390_v60 = vadd.f32 0.5, %v4389_v15  ;;  %v9117_v15 = vld [vmem:[#allocation5 + $0x100] sm:$0xf]  ;;  %v9122_v9 = vor.u32 %v10273_v49, %v9119_v38  ;;  %v9098_v41 = vor.u32 %v10266_v0, %v9095_v62  ;;  %v10257_v44 = vld [vmem:[#allocation5 + $0x84] sm:$0xf] }
 0x3fc   :  { %v10514_v55 = vpop.eup %10513  ;;  %v9118_v28 = vor.u32 %v10277_v21, %v9117_v15  ;;  %v10261_v34 = vld [vmem:[#allocation5 + $0x9c] sm:$0xf0]  ;;  %v10262_v47 = vld [vmem:[#allocation5 + $0xa4] sm:$0xf0]  ;;  %v10249_v8 = vld [vmem:[#allocation5 + $0x44] sm:$0xf] }
 0x3fd   :  { %v4396_v4 = vmul.f32 %v4390_v60, %v10964_v12  ;;  %v4397_v37 = vmul.f32 %v10514_v55, %v4386_v31  ;;  %5118 = vmatpush.bf16.msra.mxu0 %v8861_v13  ;;  %5131 = vmatpush.bf16.msra.mxu1 %v8865_v63  ;;  %v9182_v12 = vor.u32 %v10293_v3, %v9181_v2  ;;  %v9125_v31 = vld [vmem:[#allocation5 + $0x108] sm:$0xf]  ;;  %v10274_v60 = vld [vmem:[#allocation5 + $0x10c] sm:$0xf]  ;;  %v9021_v18 = vld [vmem:[#allocation5 + $0x40] sm:$0xf] }
 0x3fe   :  { %v10516_v35 = vpop.eup %10515  ;;  %5144 = vmatpush.bf16.msra.mxu2 %v8869_v27  ;;  %5157 = vmatpush.bf16.msra.mxu3 %v8873_v30  ;;  %v9127_v13 = vld [vmem:[#allocation5 + $0x128] sm:$0xf0]  ;;  %v9126_v55 = vor.u32 %v10278_v7, %v9125_v31  ;;  %v9085_v30 = vld [vmem:[#allocation5 + $0xc0] sm:$0xf]  ;;  %v9093_v2 = vld [vmem:[#allocation5 + $0xc8] sm:$0xf] }
 0x3ff   :  { %v11009_v53 = vadd.f32 %v4397_v37, %v4396_v4  ;;  %v4394_v57 = vmul.f32 0.5, %v10516_v35  ;;  %v9130_v27 = vor.u32 %v10274_v60, %v9127_v13  ;;  %v10269_v4 = vld [vmem:[#allocation5 + $0xdc] sm:$0xf0]  ;;  %v10265_v37 = vld [vmem:[#allocation5 + $0xc4] sm:$0xf] }
 0x400   :  { %v10270_v3 = vld [vmem:[#allocation5 + $0xe4] sm:$0xf0]  ;;  %v9053_v35 = vld [vmem:[#allocation5 + $0x80] sm:$0xf]  ;;  %v9023_v19 = vld [vmem:[#allocation5 + $0x60] sm:$0xf0] }
 0x401   :  { %10517 = vtanh.f32 %v11009_v53  ;;  %5602 = vmatpush.bf16.msrb.mxu0 %v9214_v39  ;;  %5615 = vmatpush.bf16.msrb.mxu1 %v9218_v40  ;;  %v4395_v14 = vadd.f32 0.5, %v4394_v57  ;;  %v9086_v39 = vor.u32 %v10269_v4, %v9085_v30  ;;  %v9087_v40 = vld [vmem:[#allocation5 + $0xe0] sm:$0xf0]  ;;  %v9054_v54 = vor.u32 %v10261_v34, %v9053_v35  ;;  %v10258_v57 = vld [vmem:[#allocation5 + $0x8c] sm:$0xf] }
 0x402   :  { %5628 = vmatpush.bf16.msrb.mxu2 %v9222_v36  ;;  %5641 = vmatpush.bf16.msrb.mxu3 %v9226_v26  ;;  %v9090_v36 = vor.u32 %v10265_v37, %v9087_v40  ;;  %v9094_v26 = vor.u32 %v10270_v3, %v9093_v2  ;;  %v10253_v6 = vld [vmem:[#allocation5 + $0x5c] sm:$0xf0]  ;;  %v9031_v15 = vld [vmem:[#allocation5 + $0x68] sm:$0xf0]  ;;  %v10241_v38 = vld [vmem:[#allocation5 + $0x4] sm:$0xf] }
 0x403   :  { %v9022_v16 = vor.u32 %v10253_v6, %v9021_v18  ;;  %v10245_v49 = vld [vmem:[#allocation5 + $0x1c] sm:$0xf0]  ;;  %v8997_v7 = vld [vmem:[#allocation5 + $0x8] sm:$0xf]  ;;  %v10303_v30 = vld [vmem:[#allocation5 + $0x1ec] sm:$0xf0] }
 0x404   :  { %v10246_v60 = vld [vmem:[#allocation5 + $0x24] sm:$0xf0]  ;;  %v10299_v4 = vld [vmem:[#allocation5 + $0x1d4] sm:$0xf]  ;;  %v9237_v2 = vld [vmem:[#allocation5 + $0x1d8] sm:$0xf] }
 0x405   :  { %5603 = vmatpush.bf16.msrb.mxu0 %v9182_v12  ;;  %5616 = vmatpush.bf16.msrb.mxu1 %v9186_v5  ;;  %v9055_v12 = vld [vmem:[#allocation5 + $0xa0] sm:$0xf0]  ;;  %v9061_v5 = vld [vmem:[#allocation5 + $0x88] sm:$0xf]  ;;  %v9231_v37 = vld [vmem:[#allocation5 + $0x1f0] sm:$0xf0] }
 0x406   :  { %5629 = vmatpush.bf16.msrb.mxu2 %v9190_v61  ;;  %5642 = vmatpush.bf16.msrb.mxu3 %v9194_v43  ;;  %v9058_v10 = vor.u32 %v10257_v44, %v9055_v12  ;;  %v9062_v42 = vor.u32 %v10262_v47, %v9061_v5  ;;  %v9063_v61 = vld [vmem:[#allocation5 + $0xa8] sm:$0xf0]  ;;  %v9234_v40 = vor.u32 %v10299_v4, %v9231_v37  ;;  %v10304_v3 = vld [vmem:[#allocation5 + $0x1f4] sm:$0xf0]  ;;  %v9239_v0 = vld [vmem:[#allocation5 + $0x1f8] sm:$0xf0] }
 0x407   :  { %v10518_v52 = vpop.eup %10517  ;;  %v9066_v43 = vor.u32 %v10258_v57, %v9063_v61  ;;  %v9197_v62 = vld [vmem:[#allocation5 + $0x190] sm:$0xf]  ;;  %v10291_v44 = vld [vmem:[#allocation5 + $0x194] sm:$0xf]  ;;  %v9205_v12 = vld [vmem:[#allocation5 + $0x198] sm:$0xf]  ;;  %v332_v4 = vadd.f32 %v10782_v32, %v10717_v24  ;;  %v361_v37 = vadd.f32 %v10784_v33, %v10719_v25 }
 0x408   :  { %v4400_v56 = vmul.f32 %v10518_v52, %v4395_v14  ;;  %v9026_v14 = vor.u32 %v10249_v8, %v9023_v19  ;;  %v8989_v52 = vld [vmem:[#allocation5] sm:$0xf]  ;;  %v10296_v47 = vld [vmem:[#allocation5 + $0x1b4] sm:$0xf0]  ;;  %v10287_v18 = vld [vmem:[#allocation5 + $0x16c] sm:$0xf0] }
 0x409   :  { %5604 = vmatpush.bf16.msrb.mxu0 %v9150_v29  ;;  %5617 = vmatpush.bf16.msrb.mxu1 %v9154_v22  ;;  %v9029_v29 = vld [vmem:[#allocation5 + $0x48] sm:$0xf]  ;;  %v8990_v31 = vor.u32 %v10245_v49, %v8989_v52  ;;  %v9206_v57 = vor.u32 %v10296_v47, %v9205_v12  ;;  %v10283_v6 = vld [vmem:[#allocation5 + $0x154] sm:$0xf]  ;;  %v9173_v19 = vld [vmem:[#allocation5 + $0x158] sm:$0xf] }
 0x40a   :  { %8601 = vst [vmem:[%s11105_s6 + $0x20] sm:$0xff] %v4400_v56  ;;  %v4918_v63 = vpack.c.bf16 %v4400_v56, %v4400_v56  ;;  %5630 = vmatpush.bf16.msrb.mxu2 %v9158_v17  ;;  %5643 = vmatpush.bf16.msrb.mxu3 %v9162_v1  ;;  %v10254_v22 = vld [vmem:[#allocation5 + $0x64] sm:$0xf0]  ;;  %v10250_v1 = vld [vmem:[#allocation5 + $0x4c] sm:$0xf] }
 0x40b   :  { %v9030_v17 = vor.u32 %v10254_v22, %v9029_v29  ;;  %v9034_v21 = vor.u32 %v10250_v1, %v9031_v15  ;;  %v8991_v56 = vld [vmem:[#allocation5 + $0x20] sm:$0xf0]  ;;  %v10288_v29 = vld [vmem:[#allocation5 + $0x174] sm:$0xf0]  ;;  %v9175_v1 = vld [vmem:[#allocation5 + $0x178] sm:$0xf0] }
 0x40c   :  { %5119 = vmatmul.bf16.vlgmr.msra.gmra.mxu0 %v4918_v63  ;;  %5132 = vmatmul.bf16.vlgmr.msra.gmra.mxu1 %v4918_v63  ;;  %v8994_v13 = vor.u32 %v10241_v38, %v8991_v56  ;;  %v10279_v52 = vld [vmem:[#allocation5 + $0x12c] sm:$0xf0]  ;;  %v10275_v49 = vld [vmem:[#allocation5 + $0x114] sm:$0xf]  ;;  %v9141_v56 = vld [vmem:[#allocation5 + $0x118] sm:$0xf] }
 0x40d   :  { %5145 = vmatmul.bf16.vlgmr.msra.gmra.mxu2 %v4918_v63  ;;  %5158 = vmatmul.bf16.vlgmr.msra.gmra.mxu3 %v4918_v63  ;;  %v8998_v63 = vor.u32 %v10246_v60, %v8997_v7  ;;  %v10280_v7 = vld [vmem:[#allocation5 + $0x134] sm:$0xf0]  ;;  %v10263_v12 = vld [vmem:[#allocation5 + $0xac] sm:$0xf0]  ;;  %v10259_v33 = vld [vmem:[#allocation5 + $0x94] sm:$0xf] }
 0x40e   :  { %5605 = vmatpush.bf16.msrb.mxu0 %v9118_v28  ;;  %5618 = vmatpush.bf16.msrb.mxu1 %v9122_v9  ;;  %v10242_v28 = vld [vmem:[#allocation5 + $0xc] sm:$0xf]  ;;  %v9077_v47 = vld [vmem:[#allocation5 + $0x98] sm:$0xf] }
 0x40f   :  { %5631 = vmatpush.bf16.msrb.mxu2 %v9126_v55  ;;  %5644 = vmatpush.bf16.msrb.mxu3 %v9130_v27  ;;  %v8999_v9 = vld [vmem:[#allocation5 + $0x28] sm:$0xf0]  ;;  %v9229_v55 = vld [vmem:[#allocation5 + $0x1d0] sm:$0xf] }
 0x410   :  { %v9002_v27 = vor.u32 %v10242_v28, %v8999_v9  ;;  %v9143_v28 = vld [vmem:[#allocation5 + $0x138] sm:$0xf0] }
 0x412   :  { %5606 = vmatpush.bf16.msrb.mxu0 %v9086_v39  ;;  %5619 = vmatpush.bf16.msrb.mxu1 %v9090_v36  ;;  %v9230_v39 = vor.u32 %v10303_v30, %v9229_v55  ;;  %v10300_v36 = vld [vmem:[#allocation5 + $0x1dc] sm:$0xf]  ;;  %v9101_v55 = vld [vmem:[#allocation5 + $0xd0] sm:$0xf]  ;;  %v10267_v30 = vld [vmem:[#allocation5 + $0xd4] sm:$0xf] }
 0x413   :  { %5632 = vmatpush.bf16.msrb.mxu2 %v9094_v26  ;;  %5645 = vmatpush.bf16.msrb.mxu3 %v9098_v41  ;;  %v9238_v26 = vor.u32 %v10304_v3, %v9237_v2  ;;  %v10295_v41 = vld [vmem:[#allocation5 + $0x1ac] sm:$0xf0]  ;;  %v9242_v35 = vor.u32 %v10300_v36, %v9239_v0  ;;  %v9109_v2 = vld [vmem:[#allocation5 + $0xd8] sm:$0xf] }
 0x414   :  { %v9198_v34 = vor.u32 %v10295_v41, %v9197_v62  ;;  %v10272_v3 = vld [vmem:[#allocation5 + $0xf4] sm:$0xf0]  ;;  %v10268_v41 = vld [vmem:[#allocation5 + $0xdc] sm:$0xf] }
 0x415   :  { %v9110_v62 = vor.u32 %v10272_v3, %v9109_v2 }
 0x416   :  { %5607 = vmatpush.bf16.msrb.mxu0 %v9054_v54  ;;  %5620 = vmatpush.bf16.msrb.mxu1 %v9058_v10  ;;  %v9199_v54 = vld [vmem:[#allocation5 + $0x1b0] sm:$0xf0]  ;;  %v10292_v10 = vld [vmem:[#allocation5 + $0x19c] sm:$0xf] }
 0x417   :  { %5633 = vmatpush.bf16.msrb.mxu2 %v9062_v42  ;;  %5646 = vmatpush.bf16.msrb.mxu3 %v9066_v43  ;;  %v9202_v5 = vor.u32 %v10291_v44, %v9199_v54  ;;  %v9207_v42 = vld [vmem:[#allocation5 + $0x1b8] sm:$0xf0]  ;;  %v9165_v43 = vld [vmem:[#allocation5 + $0x150] sm:$0xf] }
 0x418   :  { %v9210_v61 = vor.u32 %v10292_v10, %v9207_v42  ;;  %v9166_v8 = vor.u32 %v10287_v18, %v9165_v43  ;;  %v9069_v54 = vld [vmem:[#allocation5 + $0x90] sm:$0xf]  ;;  %v10264_v10 = vld [vmem:[#allocation5 + $0xb4] sm:$0xf0]  ;;  %v10260_v18 = vld [vmem:[#allocation5 + $0x9c] sm:$0xf] }
 0x41a   :  { %5608 = vmatpush.bf16.msrb.mxu0 %v9022_v16  ;;  %5621 = vmatpush.bf16.msrb.mxu1 %v9026_v14  ;;  %v9167_v16 = vld [vmem:[#allocation5 + $0x170] sm:$0xf0]  ;;  %v9174_v14 = vor.u32 %v10288_v29, %v9173_v19  ;;  %v10255_v19 = vld [vmem:[#allocation5 + $0x6c] sm:$0xf0] }
 0x41b   :  { %5634 = vmatpush.bf16.msrb.mxu2 %v9030_v17  ;;  %5647 = vmatpush.bf16.msrb.mxu3 %v9034_v21  ;;  %v9170_v22 = vor.u32 %v10283_v6, %v9167_v16  ;;  %v10284_v17 = vld [vmem:[#allocation5 + $0x15c] sm:$0xf]  ;;  %v9133_v21 = vld [vmem:[#allocation5 + $0x110] sm:$0xf]  ;;  %v10251_v29 = vld [vmem:[#allocation5 + $0x54] sm:$0xf] }
 0x41c   :  { %v9178_v15 = vor.u32 %v10284_v17, %v9175_v1  ;;  %v9134_v38 = vor.u32 %v10279_v52, %v9133_v21  ;;  %v9079_v6 = vld [vmem:[#allocation5 + $0xb8] sm:$0xf0]  ;;  %v9037_v16 = vld [vmem:[#allocation5 + $0x50] sm:$0xf]  ;;  %v9045_v17 = vld [vmem:[#allocation5 + $0x58] sm:$0xf]  ;;  %v419_v21 = vadd.f32 %v10788_v59, %v10725_v46 }
 0x41d   :  { %v10256_v1 = vld [vmem:[#allocation5 + $0x74] sm:$0xf0]  ;;  %v10252_v52 = vld [vmem:[#allocation5 + $0x5c] sm:$0xf]  ;;  %v9005_v59 = vld [vmem:[#allocation5 + $0x10] sm:$0xf] }
 0x41e   :  { %5609 = vmatpush.bf16.msrb.mxu0 %v8990_v31  ;;  %5622 = vmatpush.bf16.msrb.mxu1 %v8994_v13  ;;  %v9135_v31 = vld [vmem:[#allocation5 + $0x130] sm:$0xf0]  ;;  %v9142_v13 = vor.u32 %v10280_v7, %v9141_v56  ;;  %v9038_v56 = vor.u32 %v10255_v19, %v9037_v16 }
 0x41f   :  { %5635 = vmatpush.bf16.msrb.mxu2 %v8998_v63  ;;  %5648 = vmatpush.bf16.msrb.mxu3 %v9002_v27  ;;  %v9138_v60 = vor.u32 %v10275_v49, %v9135_v31  ;;  %v10276_v63 = vld [vmem:[#allocation5 + $0x11c] sm:$0xf]  ;;  %v10271_v27 = vld [vmem:[#allocation5 + $0xec] sm:$0xf0] }
 0x420   :  { %v9146_v9 = vor.u32 %v10276_v63, %v9143_v28  ;;  %v9047_v49 = vld [vmem:[#allocation5 + $0x78] sm:$0xf0] }
 0x422   :  { %5654 = vmatpush.bf16.msra.mxu0 %v9230_v39  ;;  %5667 = vmatpush.bf16.msra.mxu1 %v9234_v40  ;;  %v9102_v39 = vor.u32 %v10271_v27, %v9101_v55  ;;  %v9103_v40 = vld [vmem:[#allocation5 + $0xf0] sm:$0xf0]  ;;  %v10247_v27 = vld [vmem:[#allocation5 + $0x2c] sm:$0xf0] }
 0x423   :  { %5680 = vmatpush.bf16.msra.mxu2 %v9238_v26  ;;  %5693 = vmatpush.bf16.msra.mxu3 %v9242_v35  ;;  %v9106_v0 = vor.u32 %v10267_v30, %v9103_v40  ;;  %v9111_v35 = vld [vmem:[#allocation5 + $0xf8] sm:$0xf0]  ;;  %v9013_v40 = vld [vmem:[#allocation5 + $0x18] sm:$0xf] }
 0x424   :  { %v9114_v32 = vor.u32 %v10268_v41, %v9111_v35  ;;  %v9015_v35 = vld [vmem:[#allocation5 + $0x38] sm:$0xf0] }
 0x426   :  { %5655 = vmatpush.bf16.msra.mxu0 %v9198_v34  ;;  %5668 = vmatpush.bf16.msra.mxu1 %v9202_v5  ;;  %v9071_v5 = vld [vmem:[#allocation5 + $0xb0] sm:$0xf0] }
 0x427   :  { %5681 = vmatpush.bf16.msra.mxu2 %v9206_v57  ;;  %5694 = vmatpush.bf16.msra.mxu3 %v9210_v61  ;;  %v9070_v61 = vor.u32 %v10263_v12, %v9069_v54  ;;  %v9074_v43 = vor.u32 %v10259_v33, %v9071_v5 }
 0x42a   :  { %5656 = vmatpush.bf16.msra.mxu0 %v9166_v8  ;;  %5669 = vmatpush.bf16.msra.mxu1 %v9170_v22  ;;  %v9078_v8 = vor.u32 %v10264_v10, %v9077_v47  ;;  %v9082_v22 = vor.u32 %v10260_v18, %v9079_v6 }
 0x42b   :  { %5682 = vmatpush.bf16.msra.mxu2 %v9174_v14  ;;  %5695 = vmatpush.bf16.msra.mxu3 %v9178_v15  ;;  %v9039_v14 = vld [vmem:[#allocation5 + $0x70] sm:$0xf0]  ;;  %v390_v15 = vadd.f32 %v10786_v58, %v10723_v45  ;;  %v9050_v58 = vor.u32 %v10252_v52, %v9047_v49  ;;  %v10334_v52 = vld [vmem:[#allocation7 + $0xec] sm:$0xf]  ;;  %v9367_v49 = vld [vmem:[#allocation7 + $0xf8] sm:$0xf0] }
 0x42c   :  { %v9042_v7 = vor.u32 %v10251_v29, %v9039_v14  ;;  %v9357_v29 = vld [vmem:[#allocation7 + $0xe0] sm:$0xf] }
 0x42e   :  { %5657 = vmatpush.bf16.msra.mxu0 %v9134_v38  ;;  %5670 = vmatpush.bf16.msra.mxu1 %v9138_v60 }
 0x42f   :  { %5683 = vmatpush.bf16.msra.mxu2 %v9142_v13  ;;  %5696 = vmatpush.bf16.msra.mxu3 %v9146_v9  ;;  %v9046_v9 = vor.u32 %v10256_v1, %v9045_v17  ;;  %v10333_v17 = vld [vmem:[#allocation7 + $0xe4] sm:$0xf]  ;;  %v9365_v1 = vld [vmem:[#allocation7 + $0xe8] sm:$0xf] }
 0x432   :  { %5658 = vmatpush.bf16.msra.mxu0 %v9102_v39  ;;  %5671 = vmatpush.bf16.msra.mxu1 %v9106_v0  ;;  %v9007_v39 = vld [vmem:[#allocation5 + $0x30] sm:$0xf0]  ;;  %v10244_v0 = vld [vmem:[#allocation5 + $0x1c] sm:$0xf] }
 0x433   :  { %5684 = vmatpush.bf16.msra.mxu2 %v9110_v62  ;;  %5697 = vmatpush.bf16.msra.mxu3 %v9114_v32 }
 0x436   :  { %5659 = vmatpush.bf16.msra.mxu0 %v9070_v61  ;;  %5672 = vmatpush.bf16.msra.mxu1 %v9074_v43 }
 0x437   :  { %5685 = vmatpush.bf16.msra.mxu2 %v9078_v8  ;;  %5698 = vmatpush.bf16.msra.mxu3 %v9082_v22  ;;  %v10335_v22 = vld [vmem:[#allocation7 + $0xec] sm:$0xf0] }
 0x43a   :  { %5660 = vmatpush.bf16.msra.mxu0 %v9038_v56  ;;  %5673 = vmatpush.bf16.msra.mxu1 %v9042_v7  ;;  %v9341_v7 = vld [vmem:[#allocation7 + $0xc0] sm:$0xf] }
 0x43b   :  { %5686 = vmatpush.bf16.msra.mxu2 %v9046_v9  ;;  %5699 = vmatpush.bf16.msra.mxu3 %v9050_v58  ;;  %v9370_v9 = vor.u32 %v10334_v52, %v9367_v49  ;;  %v10329_v58 = vld [vmem:[#allocation7 + $0xc4] sm:$0xf]  ;;  %v9295_v49 = vld [vmem:[#allocation7 + $0x70] sm:$0xf0] }
 0x43c   :  { %v10317_v52 = vld [vmem:[#allocation7 + $0x64] sm:$0xf] }
 0x45c   :  { %v4823_v36 = vpop.f32.mrf.mxu0  ;;  %v4836_v26 = vpop.f32.mrf.mxu1 }
 0x45d   :  { %v5195_v34 = vadd.f32 %v4823_v36, %v332_v4  ;;  %v5196_v44 = vadd.f32 %v4836_v26, %v361_v37  ;;  %v9006_v4 = vor.u32 %v10247_v27, %v9005_v59  ;;  %v10243_v37 = vld [vmem:[#allocation5 + $0x14] sm:$0xf]  ;;  %v10248_v26 = vld [vmem:[#allocation5 + $0x34] sm:$0xf0]  ;;  %v9349_v59 = vld [vmem:[#allocation7 + $0xc8] sm:$0xf] }
 0x45e   :  { %v9010_v36 = vor.u32 %v10243_v37, %v9007_v39  ;;  %v9014_v41 = vor.u32 %v10248_v26, %v9013_v40  ;;  %v10332_v27 = vld [vmem:[#allocation7 + $0xd4] sm:$0xf0]  ;;  %v9325_v40 = vld [vmem:[#allocation7 + $0xa0] sm:$0xf]  ;;  %v10325_v26 = vld [vmem:[#allocation7 + $0xa4] sm:$0xf] }
 0x45f   :  { %v5199_v42 = vmul.f32 0.5, %v5195_v34  ;;  %v5203_v57 = vmul.f32 0.5, %v5196_v44  ;;  %v9018_v44 = vor.u32 %v10244_v0, %v9015_v35  ;;  %5661 = vmatpush.bf16.msra.mxu0 %v9006_v4  ;;  %v9351_v4 = vld [vmem:[#allocation7 + $0xd8] sm:$0xf0]  ;;  %v9327_v0 = vld [vmem:[#allocation7 + $0xb0] sm:$0xf0] }
 0x460   :  { %5674 = vmatpush.bf16.msra.mxu1 %v9010_v36  ;;  %5687 = vmatpush.bf16.msra.mxu2 %v9014_v41  ;;  %v10328_v41 = vld [vmem:[#allocation7 + $0xb4] sm:$0xf0]  ;;  %v10326_v35 = vld [vmem:[#allocation7 + $0xac] sm:$0xf] }
 0x461   :  { %10519 = vtanh.f32 %v5199_v42  ;;  %5700 = vmatpush.bf16.msra.mxu3 %v9018_v44 }
 0x462   :  { %10521 = vtanh.f32 %v5203_v57 }
 0x463   :  { %v4849_v38 = vpop.f32.mrf.mxu2  ;;  %v4862_v31 = vpop.f32.mrf.mxu3 }
 0x464   :  { %v5197_v60 = vadd.f32 %v4849_v38, %v390_v15  ;;  %v5198_v13 = vadd.f32 %v4862_v31, %v419_v21  ;;  %v4825_v63 = vpop.f32.mrf.mxu0  ;;  %v4838_v28 = vpop.f32.mrf.mxu1  ;;  %v10336_v21 = vld [vmem:[#allocation7 + $0xf4] sm:$0xf0]  ;;  %v9358_v31 = vor.u32 %v10335_v22, %v9357_v29 }
 0x465   :  { %v9366_v28 = vor.u32 %v10336_v21, %v9365_v1 }
 0x466   :  { %10523 = vtanh.f32 %v5197_v60  ;;  %v5208_v55 = vmul.f32 0.5, %v5198_v13  ;;  %v10331_v60 = vld [vmem:[#allocation7 + $0xcc] sm:$0xf0] }
 0x467   :  { %v10520_v30 = vpop.eup %10519  ;;  %v9342_v37 = vor.u32 %v10331_v60, %v9341_v7  ;;  %v10320_v60 = vld [vmem:[#allocation7 + $0x74] sm:$0xf0] }
 0x468   :  { %v10522_v2 = vpop.eup %10521  ;;  %v5201_v3 = vmul.f32 0.5, %v10520_v30  ;;  %10525 = vtanh.f32 %v5208_v55  ;;  %v9343_v55 = vld [vmem:[#allocation7 + $0xd0] sm:$0xf0]  ;;  %v10330_v30 = vld [vmem:[#allocation7 + $0xcc] sm:$0xf] }
 0x469   :  { %v5205_v62 = vmul.f32 0.5, %v10522_v2  ;;  %v9346_v39 = vor.u32 %v10329_v58, %v9343_v55  ;;  %v10327_v2 = vld [vmem:[#allocation7 + $0xac] sm:$0xf0]  ;;  %v9354_v36 = vor.u32 %v10330_v30, %v9351_v4  ;;  %v9298_v55 = vor.u32 %v10317_v52, %v9295_v49  ;;  %v10313_v30 = vld [vmem:[#allocation7 + $0x44] sm:$0xf] }
 0x46a   :  { %v5202_v34 = vadd.f32 0.5, %v5201_v3  ;;  %v9350_v3 = vor.u32 %v10332_v27, %v9349_v59  ;;  %v9326_v44 = vor.u32 %v10327_v2, %v9325_v40  ;;  %v9277_v59 = vld [vmem:[#allocation7 + $0x40] sm:$0xf]  ;;  %v10315_v27 = vld [vmem:[#allocation7 + $0x4c] sm:$0xf0] }
 0x46b   :  { %v5206_v32 = vadd.f32 0.5, %v5205_v62  ;;  %v4851_v54 = vpop.f32.mrf.mxu2  ;;  %v4864_v12 = vpop.f32.mrf.mxu3  ;;  %v9333_v62 = vld [vmem:[#allocation7 + $0xa8] sm:$0xf] }
 0x46c   :  { %v10524_v33 = vpop.eup %10523  ;;  %v11023_v5 = vpop.f32.mrf.mxu0  ;;  %v9309_v54 = vld [vmem:[#allocation7 + $0x80] sm:$0xf]  ;;  %v10323_v12 = vld [vmem:[#allocation7 + $0x8c] sm:$0xf0]  ;;  %v9253_v52 = vld [vmem:[#allocation7 + $0x8] sm:$0xf] }
 0x46d   :  { %v11025_v47 = vpop.f32.mrf.mxu1  ;;  %v5212_v10 = vmul.f32 %v5206_v32, %v10983_v11  ;;  %v5213_v42 = vmul.f32 %v10524_v33, %v5202_v34  ;;  %v9359_v11 = vld [vmem:[#allocation7 + $0xf0] sm:$0xf0]  ;;  %v9335_v34 = vld [vmem:[#allocation7 + $0xb8] sm:$0xf0]  ;;  %v9330_v32 = vor.u32 %v10325_v26, %v9327_v0  ;;  %v9334_v33 = vor.u32 %v10328_v41, %v9333_v62 }
 0x46e   :  { %v10526_v57 = vpop.eup %10525  ;;  %v9362_v56 = vor.u32 %v10333_v17, %v9359_v11  ;;  %v9310_v29 = vor.u32 %v10323_v12, %v9309_v54  ;;  %v10319_v17 = vld [vmem:[#allocation7 + $0x6c] sm:$0xf0]  ;;  %v9278_v62 = vor.u32 %v10315_v27, %v9277_v59 }
 0x46f   :  { %v11028_v61 = vadd.f32 %v5213_v42, %v5212_v10  ;;  %v5210_v43 = vmul.f32 0.5, %v10526_v57  ;;  %v9338_v10 = vor.u32 %v10326_v35, %v9335_v34  ;;  %v10321_v42 = vld [vmem:[#allocation7 + $0x84] sm:$0xf]  ;;  %v9311_v57 = vld [vmem:[#allocation7 + $0x90] sm:$0xf0] }
 0x470   :  { %v9314_v22 = vor.u32 %v10321_v42, %v9311_v57  ;;  %v9261_v34 = vld [vmem:[#allocation7 + $0x20] sm:$0xf]  ;;  %v9263_v42 = vld [vmem:[#allocation7 + $0x30] sm:$0xf0]  ;;  %v9269_v57 = vld [vmem:[#allocation7 + $0x28] sm:$0xf] }
 0x471   :  { %10527 = vtanh.f32 %v11028_v61  ;;  %v5211_v19 = vadd.f32 0.5, %v5210_v43  ;;  %v9317_v43 = vld [vmem:[#allocation7 + $0x88] sm:$0xf] }
 0x473   :  { %v11031_v18 = vpop.f32.mrf.mxu2  ;;  %v11033_v6 = vpop.f32.mrf.mxu3 }
 0x474   :  { %v4877_v8 = vpop.f32.mrf.mxu0 }
 0x475   :  { %v4890_v16 = vpop.f32.mrf.mxu1  ;;  %v10324_v8 = vld [vmem:[#allocation7 + $0x94] sm:$0xf0] }
 0x476   :  { %v10322_v16 = vld [vmem:[#allocation7 + $0x8c] sm:$0xf] }
 0x477   :  { %v10528_v14 = vpop.eup %10527 }
 0x478   :  { %v5216_v15 = vmul.f32 %v10528_v14, %v5211_v19  ;;  %v9319_v19 = vld [vmem:[#allocation7 + $0x98] sm:$0xf0]  ;;  %v9293_v14 = vld [vmem:[#allocation7 + $0x60] sm:$0xf] }
 0x479   :  { %v9322_v21 = vor.u32 %v10322_v16, %v9319_v19  ;;  %v9271_v16 = vld [vmem:[#allocation7 + $0x38] sm:$0xf0] }
 0x47a   :  { %v11035_v38 = vpack.c.bf16 %v5216_v15, %v5216_v15  ;;  %v9318_v15 = vor.u32 %v10324_v8, %v9317_v43  ;;  %v10312_v43 = vld [vmem:[#allocation7 + $0x34] sm:$0xf0]  ;;  %v10310_v8 = vld [vmem:[#allocation7 + $0x2c] sm:$0xf] }
 0x47b   :  { %v4903_v13 = vpop.f32.mrf.mxu2  ;;  %v4916_v63 = vpop.f32.mrf.mxu3 }
 0x47c   :  { %5610 = vmatmul.bf16.vlgmr.msrb.gmra.mxu0 %v11035_v38  ;;  %5623 = vmatmul.bf16.vlgmr.msrb.gmra.mxu1 %v11035_v38  ;;  %v10318_v13 = vld [vmem:[#allocation7 + $0x6c] sm:$0xf]  ;;  %v9303_v63 = vld [vmem:[#allocation7 + $0x78] sm:$0xf0] }
 0x47d   :  { %5636 = vmatmul.bf16.vlgmr.msrb.gmra.mxu2 %v11035_v38  ;;  %5649 = vmatmul.bf16.vlgmr.msrb.gmra.mxu3 %v11035_v38 }
 0x47e   :  { %5899 = vmatpush.bf16.msrb.mxu0 %v9358_v31  ;;  %5912 = vmatpush.bf16.msrb.mxu1 %v9362_v56  ;;  %v9301_v31 = vld [vmem:[#allocation7 + $0x68] sm:$0xf] }
 0x47f   :  { %5925 = vmatpush.bf16.msrb.mxu2 %v9366_v28  ;;  %5938 = vmatpush.bf16.msrb.mxu3 %v9370_v9  ;;  %v9294_v28 = vor.u32 %v10319_v17, %v9293_v14  ;;  %v9302_v4 = vor.u32 %v10320_v60, %v9301_v31  ;;  %v10307_v14 = vld [vmem:[#allocation7 + $0xc] sm:$0xf0]  ;;  %v10305_v17 = vld [vmem:[#allocation7 + $0x4] sm:$0xf]  ;;  %v10308_v31 = vld [vmem:[#allocation7 + $0x14] sm:$0xf0] }
 0x480   :  { %v9254_v27 = vor.u32 %v10308_v31, %v9253_v52  ;;  %v9456_v52 = vld [vmem:[#allocation5 + $0x170] sm:$0xf0]  ;;  %v10360_v31 = vld [vmem:[#allocation5 + $0x174] sm:$0xf0] }
 0x482   :  { %5900 = vmatpush.bf16.msrb.mxu0 %v9342_v37  ;;  %5913 = vmatpush.bf16.msrb.mxu1 %v9346_v39  ;;  %v9279_v37 = vld [vmem:[#allocation7 + $0x50] sm:$0xf0]  ;;  %v10316_v39 = vld [vmem:[#allocation7 + $0x54] sm:$0xf0] }
 0x483   :  { %5926 = vmatpush.bf16.msrb.mxu2 %v9350_v3  ;;  %5939 = vmatpush.bf16.msrb.mxu3 %v9354_v36  ;;  %v10314_v3 = vld [vmem:[#allocation7 + $0x4c] sm:$0xf]  ;;  %v9287_v36 = vld [vmem:[#allocation7 + $0x58] sm:$0xf0]  ;;  %v9282_v41 = vor.u32 %v10313_v30, %v9279_v37 }
 0x486   :  { %5901 = vmatpush.bf16.msrb.mxu0 %v9326_v44  ;;  %5914 = vmatpush.bf16.msrb.mxu1 %v9330_v32  ;;  %v10311_v44 = vld [vmem:[#allocation7 + $0x2c] sm:$0xf0] }
 0x487   :  { %5927 = vmatpush.bf16.msrb.mxu2 %v9334_v33  ;;  %5940 = vmatpush.bf16.msrb.mxu3 %v9338_v10  ;;  %v10309_v10 = vld [vmem:[#allocation7 + $0x24] sm:$0xf] }
 0x489   :  { %v5120_v11 = vpop.f32.mrf.mxu0  ;;  %v5133_v1 = vpop.f32.mrf.mxu1 }
 0x48a   :  { %v5163_v56 = vadd.f32 %v5120_v11, %v11023_v5  ;;  %v5164_v7 = vadd.f32 %v5133_v1, %v11025_v47  ;;  %5902 = vmatpush.bf16.msrb.mxu0 %v9310_v29  ;;  %5915 = vmatpush.bf16.msrb.mxu1 %v9314_v22  ;;  %v9306_v5 = vor.u32 %v10318_v13, %v9303_v63  ;;  %v9285_v47 = vld [vmem:[#allocation7 + $0x48] sm:$0xf] }
 0x48b   :  { %5928 = vmatpush.bf16.msrb.mxu2 %v9318_v15  ;;  %5941 = vmatpush.bf16.msrb.mxu3 %v9322_v21  ;;  %v9286_v35 = vor.u32 %v10316_v39, %v9285_v47  ;;  %v9266_v22 = vor.u32 %v10309_v10, %v9263_v42  ;;  %v9270_v1 = vor.u32 %v10312_v43, %v9269_v57  ;;  %v9247_v21 = vld [vmem:[#allocation7 + $0x10] sm:$0xf0]  ;;  %v9470_v42 = vld [vmem:[#allocation5 + $0x190] sm:$0xf] }
 0x48c   :  { %v5167_v9 = vadd.f32 %v5163_v56, %v10817_v48  ;;  %v5168_v58 = vadd.f32 %v5164_v7, %v10821_v50  ;;  %5662 = vmatmul.bf16.vlgmr.msra.gmra.mxu0 %v11035_v38  ;;  %5675 = vmatmul.bf16.vlgmr.msra.gmra.mxu1 %v11035_v38  ;;  %v9274_v15 = vor.u32 %v10310_v8, %v9271_v16  ;;  %v10306_v56 = vld [vmem:[#allocation7 + $0xc] sm:$0xf]  ;;  %v9255_v7 = vld [vmem:[#allocation7 + $0x18] sm:$0xf0]  ;;  %v10363_v57 = vld [vmem:[#allocation5 + $0x1ac] sm:$0xf0] }
 0x48d   :  { %5688 = vmatmul.bf16.vlgmr.msra.gmra.mxu2 %v11035_v38  ;;  %5701 = vmatmul.bf16.vlgmr.msra.gmra.mxu3 %v11035_v38  ;;  %v9290_v38 = vor.u32 %v10314_v3, %v9287_v36  ;;  %v9258_v30 = vor.u32 %v10306_v56, %v9255_v7  ;;  %v10361_v43 = vld [vmem:[#allocation5 + $0x194] sm:$0xf]  ;;  %v9471_v8 = vor.u32 %v10363_v57, %v9470_v42  ;;  %v9414_v42 = vld [vmem:[#allocation5 + $0x98] sm:$0xf] }
 0x48e   :  { %v5171_v40 = vmul.f32 0.5, %v5167_v9  ;;  %v5175_v2 = vmul.f32 0.5, %v5168_v58  ;;  %5903 = vmatpush.bf16.msrb.mxu0 %v9294_v28  ;;  %5916 = vmatpush.bf16.msrb.mxu1 %v9298_v55  ;;  %v9250_v55 = vor.u32 %v10305_v17, %v9247_v21  ;;  %v9472_v16 = vld [vmem:[#allocation5 + $0x1b0] sm:$0xf0]  ;;  %v10348_v57 = vld [vmem:[#allocation5 + $0xb4] sm:$0xf0] }
 0x48f   :  { %5929 = vmatpush.bf16.msrb.mxu2 %v9302_v4  ;;  %5942 = vmatpush.bf16.msrb.mxu3 %v9306_v5 }
 0x490   :  { %10529 = vtanh.f32 %v5171_v40  ;;  %v5146_v26 = vpop.f32.mrf.mxu2  ;;  %v5159_v0 = vpop.f32.mrf.mxu3 }
 0x491   :  { %10531 = vtanh.f32 %v5175_v2  ;;  %v5165_v32 = vadd.f32 %v5146_v26, %v11031_v18  ;;  %v5166_v54 = vadd.f32 %v5159_v0, %v11033_v6  ;;  %v5122_v12 = vpop.f32.mrf.mxu0  ;;  %v5135_v33 = vpop.f32.mrf.mxu1  ;;  %v9262_v18 = vor.u32 %v10311_v44, %v9261_v34  ;;  %v9245_v6 = vld [vmem:[#allocation7] sm:$0xf]  ;;  %v9488_v34 = vld [vmem:[#allocation5 + $0x1f0] sm:$0xf0]  ;;  %v9494_v44 = vld [vmem:[#allocation5 + $0x1d8] sm:$0xf] }
 0x492   :  { %5904 = vmatpush.bf16.msrb.mxu0 %v9278_v62  ;;  %5917 = vmatpush.bf16.msrb.mxu1 %v9282_v41  ;;  %v9246_v58 = vor.u32 %v10307_v14, %v9245_v6  ;;  %v10367_v62 = vld [vmem:[#allocation5 + $0x1ec] sm:$0xf0]  ;;  %v10365_v41 = vld [vmem:[#allocation5 + $0x1d4] sm:$0xf]  ;;  %v10366_v33 = vld [vmem:[#allocation5 + $0x1dc] sm:$0xf] }
 0x493   :  { %v5169_v19 = vadd.f32 %v5165_v32, %v10829_v20  ;;  %v5170_v29 = vadd.f32 %v5166_v54, %v10831_v51  ;;  %5930 = vmatpush.bf16.msrb.mxu2 %v9286_v35  ;;  %5943 = vmatpush.bf16.msrb.mxu3 %v9290_v38  ;;  %v10368_v32 = vld [vmem:[#allocation5 + $0x1f4] sm:$0xf0]  ;;  %v9491_v54 = vor.u32 %v10365_v41, %v9488_v34  ;;  %v9496_v38 = vld [vmem:[#allocation5 + $0x1f8] sm:$0xf0] }
 0x494   :  { %v9495_v12 = vor.u32 %v10368_v32, %v9494_v44  ;;  %v9499_v10 = vor.u32 %v10366_v33, %v9496_v38  ;;  %v10362_v6 = vld [vmem:[#allocation5 + $0x19c] sm:$0xf]  ;;  %v10345_v33 = vld [vmem:[#allocation5 + $0x94] sm:$0xf] }
 0x495   :  { %10533 = vtanh.f32 %v5169_v19  ;;  %v5180_v11 = vmul.f32 0.5, %v5170_v29  ;;  %v9478_v19 = vld [vmem:[#allocation5 + $0x198] sm:$0xf]  ;;  %v9480_v14 = vld [vmem:[#allocation5 + $0x1b8] sm:$0xf0] }
 0x496   :  { %v10530_v49 = vpop.eup %10529  ;;  %5905 = vmatpush.bf16.msrb.mxu0 %v9262_v18  ;;  %5918 = vmatpush.bf16.msrb.mxu1 %v9266_v22  ;;  %v10364_v29 = vld [vmem:[#allocation5 + $0x1b4] sm:$0xf0]  ;;  %v9475_v18 = vor.u32 %v10361_v43, %v9472_v16  ;;  %v9483_v17 = vor.u32 %v10362_v6, %v9480_v14  ;;  %v10350_v34 = vld [vmem:[#allocation5 + $0xdc] sm:$0xf]  ;;  %v10341_v6 = vld [vmem:[#allocation5 + $0x54] sm:$0xf] }
 0x497   :  { %v10532_v60 = vpop.eup %10531  ;;  %v5173_v13 = vmul.f32 0.5, %v10530_v49  ;;  %10535 = vtanh.f32 %v5180_v11  ;;  %5931 = vmatpush.bf16.msrb.mxu2 %v9270_v1  ;;  %5944 = vmatpush.bf16.msrb.mxu3 %v9274_v15  ;;  %v9479_v22 = vor.u32 %v10364_v29, %v9478_v19  ;;  %v9454_v11 = vld [vmem:[#allocation5 + $0x150] sm:$0xf]  ;;  %v10357_v15 = vld [vmem:[#allocation5 + $0x154] sm:$0xf] }
 0x498   :  { %v5177_v63 = vmul.f32 0.5, %v10532_v60  ;;  %v5148_v28 = vpop.f32.mrf.mxu2  ;;  %v5161_v9 = vpop.f32.mrf.mxu3  ;;  %v10359_v1 = vld [vmem:[#allocation5 + $0x16c] sm:$0xf0]  ;;  %v9462_v49 = vld [vmem:[#allocation5 + $0x158] sm:$0xf]  ;;  %v9459_v56 = vor.u32 %v10357_v15, %v9456_v52 }
 0x499   :  { %v5174_v59 = vadd.f32 0.5, %v5173_v13  ;;  %v9455_v21 = vor.u32 %v10359_v1, %v9454_v11  ;;  %v9463_v7 = vor.u32 %v10360_v31, %v9462_v49  ;;  %v10358_v60 = vld [vmem:[#allocation5 + $0x15c] sm:$0xf]  ;;  %v9438_v28 = vld [vmem:[#allocation5 + $0x110] sm:$0xf] }
 0x49a   :  { %v5178_v4 = vadd.f32 0.5, %v5177_v63  ;;  %5906 = vmatpush.bf16.msrb.mxu0 %v9246_v58  ;;  %5919 = vmatpush.bf16.msrb.mxu1 %v9250_v55  ;;  %v9464_v13 = vld [vmem:[#allocation5 + $0x178] sm:$0xf0]  ;;  %v10355_v9 = vld [vmem:[#allocation5 + $0x12c] sm:$0xf0] }
 0x49b   :  { %v10534_v5 = vpop.eup %10533  ;;  %5932 = vmatpush.bf16.msrb.mxu2 %v9254_v27  ;;  %5945 = vmatpush.bf16.msrb.mxu3 %v9258_v30  ;;  %v9467_v63 = vor.u32 %v10358_v60, %v9464_v13  ;;  %v10353_v58 = vld [vmem:[#allocation5 + $0x114] sm:$0xf]  ;;  %v9439_v55 = vor.u32 %v10355_v9, %v9438_v28  ;;  %v9446_v27 = vld [vmem:[#allocation5 + $0x118] sm:$0xf]  ;;  %v9432_v44 = vld [vmem:[#allocation5 + $0xf8] sm:$0xf0] }
 0x49c   :  { %v5184_v37 = vmul.f32 %v5178_v4, %v11009_v53  ;;  %v5185_v47 = vmul.f32 %v10534_v5, %v5174_v59  ;;  %v9486_v53 = vld [vmem:[#allocation5 + $0x1d0] sm:$0xf]  ;;  %v9440_v59 = vld [vmem:[#allocation5 + $0x130] sm:$0xf0]  ;;  %v10356_v30 = vld [vmem:[#allocation5 + $0x134] sm:$0xf0]  ;;  %v9435_v32 = vor.u32 %v10350_v34, %v9432_v44 }
 0x49d   :  { %v10536_v39 = vpop.eup %10535  ;;  %v9487_v35 = vor.u32 %v10367_v62, %v9486_v53  ;;  %v9443_v4 = vor.u32 %v10353_v58, %v9440_v59  ;;  %v9447_v5 = vor.u32 %v10356_v30, %v9446_v27  ;;  %v9430_v53 = vld [vmem:[#allocation5 + $0xd8] sm:$0xf]  ;;  %v10346_v16 = vld [vmem:[#allocation5 + $0x9c] sm:$0xf]  ;;  %v10337_v60 = vld [vmem:[#allocation5 + $0x14] sm:$0xf] }
 0x49e   :  { %v11054_v40 = vadd.f32 %v5185_v47, %v5184_v37  ;;  %v5182_v2 = vmul.f32 0.5, %v10536_v39  ;;  %6211 = vmatpush.bf16.msra.mxu1 %v9491_v54  ;;  %v10354_v37 = vld [vmem:[#allocation5 + $0x11c] sm:$0xf]  ;;  %v10352_v62 = vld [vmem:[#allocation5 + $0xf4] sm:$0xf0] }
 0x49f   :  { %6198 = vmatpush.bf16.msra.mxu0 %v9487_v35  ;;  %6224 = vmatpush.bf16.msra.mxu2 %v9495_v12  ;;  %v9448_v47 = vld [vmem:[#allocation5 + $0x138] sm:$0xf0]  ;;  %v9431_v35 = vor.u32 %v10352_v62, %v9430_v53  ;;  %v9406_v54 = vld [vmem:[#allocation5 + $0x90] sm:$0xf]  ;;  %v9398_v11 = vld [vmem:[#allocation5 + $0x58] sm:$0xf] }
 0x4a0   :  { %10537 = vtanh.f32 %v11054_v40  ;;  %v5183_v3 = vadd.f32 0.5, %v5182_v2  ;;  %6237 = vmatpush.bf16.msra.mxu3 %v9499_v10  ;;  %v9451_v39 = vor.u32 %v10354_v37, %v9448_v47  ;;  %v9422_v2 = vld [vmem:[#allocation5 + $0xd0] sm:$0xf]  ;;  %v9408_v10 = vld [vmem:[#allocation5 + $0xb0] sm:$0xf0] }
 0x4a1   :  { %v10347_v12 = vld [vmem:[#allocation5 + $0xac] sm:$0xf0]  ;;  %v9411_v43 = vor.u32 %v10345_v33, %v9408_v10  ;;  %v9416_v19 = vld [vmem:[#allocation5 + $0xb8] sm:$0xf0]  ;;  %v10344_v1 = vld [vmem:[#allocation5 + $0x74] sm:$0xf0] }
 0x4a2   :  { %6212 = vmatpush.bf16.msra.mxu1 %v9475_v18  ;;  %v9407_v38 = vor.u32 %v10347_v12, %v9406_v54  ;;  %v9419_v29 = vor.u32 %v10346_v16, %v9416_v19  ;;  %v9390_v18 = vld [vmem:[#allocation5 + $0x50] sm:$0xf]  ;;  %v10342_v52 = vld [vmem:[#allocation5 + $0x5c] sm:$0xf]  ;;  %v9382_v28 = vld [vmem:[#allocation5 + $0x18] sm:$0xf] }
 0x4a3   :  { %6199 = vmatpush.bf16.msra.mxu0 %v9471_v8  ;;  %6225 = vmatpush.bf16.msra.mxu2 %v9479_v22  ;;  %v9415_v8 = vor.u32 %v10348_v57, %v9414_v42  ;;  %v10343_v22 = vld [vmem:[#allocation5 + $0x6c] sm:$0xf0]  ;;  %v9400_v49 = vld [vmem:[#allocation5 + $0x78] sm:$0xf0]  ;;  %v10340_v9 = vld [vmem:[#allocation5 + $0x34] sm:$0xf0] }
 0x4a4   :  { %6238 = vmatpush.bf16.msra.mxu3 %v9483_v17  ;;  %v9391_v14 = vor.u32 %v10343_v22, %v9390_v18  ;;  %v9392_v17 = vld [vmem:[#allocation5 + $0x70] sm:$0xf0]  ;;  %v9403_v31 = vor.u32 %v10342_v52, %v9400_v49  ;;  %v10338_v59 = vld [vmem:[#allocation5 + $0x1c] sm:$0xf]  ;;  %v9614_v10 = vld [vmem:[#allocation7 + $0xe0] sm:$0xf] }
 0x4a5   :  { %v9395_v15 = vor.u32 %v10341_v6, %v9392_v17  ;;  %v9384_v27 = vld [vmem:[#allocation5 + $0x38] sm:$0xf0]  ;;  %v11112_v62 = vld [vmem:[#allocation12_spill] sm:$0xff]  ;;  %v9622_v18 = vld [vmem:[#allocation7 + $0xe8] sm:$0xf] }
 0x4a6   :  { %v10538_v36 = vpop.eup %10537  ;;  %6213 = vmatpush.bf16.msra.mxu1 %v9459_v56  ;;  %v9374_v56 = vld [vmem:[#allocation5 + $0x10] sm:$0xf]  ;;  %v9387_v30 = vor.u32 %v10338_v59, %v9384_v27  ;;  %v10400_v22 = vld [vmem:[#allocation7 + $0xf4] sm:$0xf0]  ;;  %v10394_v27 = vld [vmem:[#allocation7 + $0xcc] sm:$0xf] }
 0x4a7   :  { %v5188_v26 = vmul.f32 %v10538_v36, %v5183_v3  ;;  %6200 = vmatpush.bf16.msra.mxu0 %v9455_v21  ;;  %6226 = vmatpush.bf16.msra.mxu2 %v9463_v7  ;;  %v10351_v3 = vld [vmem:[#allocation5 + $0xec] sm:$0xf0]  ;;  %v10349_v36 = vld [vmem:[#allocation5 + $0xd4] sm:$0xf]  ;;  %v9399_v21 = vor.u32 %v10344_v1, %v9398_v11  ;;  %v9623_v11 = vor.u32 %v10400_v22, %v9622_v18  ;;  %v10398_v1 = vld [vmem:[#allocation7 + $0xec] sm:$0xf] }
 0x4a8   :  { %6239 = vmatpush.bf16.msra.mxu3 %v9467_v63  ;;  %v10339_v7 = vld [vmem:[#allocation5 + $0x2c] sm:$0xf0]  ;;  %v9376_v63 = vld [vmem:[#allocation5 + $0x30] sm:$0xf0]  ;;  %v10381_v18 = vld [vmem:[#allocation7 + $0x64] sm:$0xf] }
 0x4a9   :  { %8986 = vst [vmem:[%s11105_s6 + $0x28] sm:$0xff] %v5188_v26  ;;  %v5706_v0 = vpack.c.bf16 %v5188_v26, %v5188_v26  ;;  %v9423_v26 = vor.u32 %v10351_v3, %v9422_v2  ;;  %v9375_v13 = vor.u32 %v10339_v7, %v9374_v56  ;;  %v9379_v58 = vor.u32 %v10337_v60, %v9376_v63  ;;  %v10399_v42 = vld [vmem:[#allocation7 + $0xec] sm:$0xf0]  ;;  %v10393_v7 = vld [vmem:[#allocation7 + $0xc4] sm:$0xf] }
 0x4aa   :  { %6214 = vmatpush.bf16.msra.mxu1 %v9443_v4  ;;  %v334_v4 = vadd.f32 %v10790_v23, %v10717_v24  ;;  %v9615_v57 = vor.u32 %v10399_v42, %v9614_v10  ;;  %v10395_v56 = vld [vmem:[#allocation7 + $0xcc] sm:$0xf0]  ;;  %v9600_v63 = vld [vmem:[#allocation7 + $0xd0] sm:$0xf0]  ;;  %v10388_v10 = vld [vmem:[#allocation7 + $0x94] sm:$0xf0] }
 0x4ab   :  { %5907 = vmatmul.bf16.vlgmr.msrb.gmra.mxu0 %v5706_v0  ;;  %5920 = vmatmul.bf16.vlgmr.msrb.gmra.mxu1 %v5706_v0 }
 0x4ac   :  { %5933 = vmatmul.bf16.vlgmr.msrb.gmra.mxu2 %v5706_v0  ;;  %5946 = vmatmul.bf16.vlgmr.msrb.gmra.mxu3 %v5706_v0  ;;  %v9424_v0 = vld [vmem:[#allocation5 + $0xf0] sm:$0xf0] }
 0x4ad   :  { %6201 = vmatpush.bf16.msra.mxu0 %v9439_v55  ;;  %6227 = vmatpush.bf16.msra.mxu2 %v9447_v5  ;;  %v9427_v41 = vor.u32 %v10349_v36, %v9424_v0  ;;  %v9383_v55 = vor.u32 %v10340_v9, %v9382_v28  ;;  %v11110_v5 = vld [vmem:[#allocation10_spill] sm:$0xff]  ;;  %v11111_v0 = vld [vmem:[#allocation11_spill] sm:$0xff]  ;;  %v10396_v9 = vld [vmem:[#allocation7 + $0xd4] sm:$0xf0] }
 0x4ae   :  { %6240 = vmatpush.bf16.msra.mxu3 %v9451_v39  ;;  %v363_v37 = vadd.f32 %v11110_v5, %v10719_v25  ;;  %v392_v53 = vadd.f32 %v11111_v0, %v10723_v45  ;;  %v9606_v28 = vld [vmem:[#allocation7 + $0xc8] sm:$0xf]  ;;  %v9582_v5 = vld [vmem:[#allocation7 + $0xa0] sm:$0xf] }
 0x4af   :  { %6215 = vmatpush.bf16.msra.mxu1 %v9427_v41  ;;  %v421_v41 = vadd.f32 %v11112_v62, %v10725_v46  ;;  %v9616_v46 = vld [vmem:[#allocation7 + $0xf0] sm:$0xf0]  ;;  %v9607_v59 = vor.u32 %v10396_v9, %v9606_v28  ;;  %v10390_v62 = vld [vmem:[#allocation7 + $0xac] sm:$0xf]  ;;  %v10377_v28 = vld [vmem:[#allocation7 + $0x44] sm:$0xf] }
 0x4b1   :  { %6202 = vmatpush.bf16.msra.mxu0 %v9423_v26  ;;  %6228 = vmatpush.bf16.msra.mxu2 %v9431_v35 }
 0x4b2   :  { %6241 = vmatpush.bf16.msra.mxu3 %v9435_v32 }
 0x4b3   :  { %6216 = vmatpush.bf16.msra.mxu1 %v9411_v43  ;;  %v10397_v43 = vld [vmem:[#allocation7 + $0xe4] sm:$0xf] }
 0x4b5   :  { %6203 = vmatpush.bf16.msra.mxu0 %v9407_v38  ;;  %6229 = vmatpush.bf16.msra.mxu2 %v9415_v8 }
 0x4b6   :  { %6242 = vmatpush.bf16.msra.mxu3 %v9419_v29  ;;  %v9619_v29 = vor.u32 %v10397_v43, %v9616_v46  ;;  %v10386_v43 = vld [vmem:[#allocation7 + $0x8c] sm:$0xf]  ;;  %v9576_v46 = vld [vmem:[#allocation7 + $0x98] sm:$0xf0] }
 0x4b7   :  { %6217 = vmatpush.bf16.msra.mxu1 %v9395_v15  ;;  %v9624_v15 = vld [vmem:[#allocation7 + $0xf8] sm:$0xf0] }
 0x4b8   :  { %v9627_v49 = vor.u32 %v10398_v1, %v9624_v15  ;;  %v9558_v1 = vld [vmem:[#allocation7 + $0x68] sm:$0xf]  ;;  %v10384_v15 = vld [vmem:[#allocation7 + $0x74] sm:$0xf0] }
 0x4b9   :  { %6204 = vmatpush.bf16.msra.mxu0 %v9391_v14  ;;  %6230 = vmatpush.bf16.msra.mxu2 %v9399_v21 }
 0x4ba   :  { %6243 = vmatpush.bf16.msra.mxu3 %v9403_v31  ;;  %v9598_v31 = vld [vmem:[#allocation7 + $0xc0] sm:$0xf] }
 0x4bb   :  { %6218 = vmatpush.bf16.msra.mxu1 %v9379_v58 }
 0x4bd   :  { %6205 = vmatpush.bf16.msra.mxu0 %v9375_v13  ;;  %6231 = vmatpush.bf16.msra.mxu2 %v9383_v55  ;;  %v9599_v13 = vor.u32 %v10395_v56, %v9598_v31  ;;  %v9603_v55 = vor.u32 %v10393_v7, %v9600_v63  ;;  %v9559_v31 = vor.u32 %v10384_v15, %v9558_v1  ;;  %v10382_v56 = vld [vmem:[#allocation7 + $0x6c] sm:$0xf]  ;;  %v9560_v7 = vld [vmem:[#allocation7 + $0x78] sm:$0xf0]  ;;  %v10379_v63 = vld [vmem:[#allocation7 + $0x4c] sm:$0xf0] }
 0x4be   :  { %6244 = vmatpush.bf16.msra.mxu3 %v9387_v30  ;;  %v9608_v30 = vld [vmem:[#allocation7 + $0xd8] sm:$0xf0] }
 0x4bf   :  { %6456 = vmatpush.bf16.msrb.mxu1 %v9619_v29  ;;  %v10383_v29 = vld [vmem:[#allocation7 + $0x6c] sm:$0xf0] }
 0x4c1   :  { %6443 = vmatpush.bf16.msrb.mxu0 %v9615_v57  ;;  %6469 = vmatpush.bf16.msrb.mxu2 %v9623_v11  ;;  %v9552_v11 = vld [vmem:[#allocation7 + $0x70] sm:$0xf0] }
 0x4c2   :  { %6482 = vmatpush.bf16.msrb.mxu3 %v9627_v49  ;;  %v9555_v49 = vor.u32 %v10381_v18, %v9552_v11 }
 0x4c3   :  { %6457 = vmatpush.bf16.msrb.mxu1 %v9603_v55  ;;  %v9542_v55 = vld [vmem:[#allocation7 + $0x48] sm:$0xf] }
 0x4c5   :  { %6444 = vmatpush.bf16.msrb.mxu0 %v9599_v13  ;;  %6470 = vmatpush.bf16.msrb.mxu2 %v9607_v59  ;;  %v9534_v13 = vld [vmem:[#allocation7 + $0x40] sm:$0xf]  ;;  %v10380_v59 = vld [vmem:[#allocation7 + $0x54] sm:$0xf0] }
 0x4c6   :  { %v9535_v9 = vor.u32 %v10379_v63, %v9534_v13 }
 0x4f9   :  { %v5611_v47 = vpop.f32.mrf.mxu0  ;;  %v5624_v39 = vpop.f32.mrf.mxu1 }
 0x4fa   :  { %v5983_v2 = vadd.f32 %v5611_v47, %v334_v4  ;;  %v5984_v3 = vadd.f32 %v5624_v39, %v363_v37  ;;  %v10391_v37 = vld [vmem:[#allocation7 + $0xac] sm:$0xf0]  ;;  %v10389_v39 = vld [vmem:[#allocation7 + $0xa4] sm:$0xf] }
 0x4fb   :  { %v9583_v47 = vor.u32 %v10391_v37, %v9582_v5  ;;  %v9518_v37 = vld [vmem:[#allocation7 + $0x20] sm:$0xf] }
 0x4fc   :  { %v5987_v36 = vmul.f32 0.5, %v5983_v2  ;;  %v5991_v26 = vmul.f32 0.5, %v5984_v3  ;;  %v9584_v2 = vld [vmem:[#allocation7 + $0xb0] sm:$0xf0]  ;;  %v9590_v3 = vld [vmem:[#allocation7 + $0xa8] sm:$0xf] }
 0x4fd   :  { %v9587_v0 = vor.u32 %v10389_v39, %v9584_v2  ;;  %6445 = vmatpush.bf16.msrb.mxu0 %v9583_v47  ;;  %v10375_v47 = vld [vmem:[#allocation7 + $0x2c] sm:$0xf0]  ;;  %v10373_v39 = vld [vmem:[#allocation7 + $0x24] sm:$0xf] }
 0x4fe   :  { %10539 = vtanh.f32 %v5987_v36  ;;  %v9519_v2 = vor.u32 %v10375_v47, %v9518_v37 }
 0x4ff   :  { %10541 = vtanh.f32 %v5991_v26  ;;  %6458 = vmatpush.bf16.msrb.mxu1 %v9587_v0  ;;  %v9526_v0 = vld [vmem:[#allocation7 + $0x28] sm:$0xf] }
 0x500   :  { %v5637_v24 = vpop.f32.mrf.mxu2  ;;  %v5650_v23 = vpop.f32.mrf.mxu3 }
 0x501   :  { %v5985_v25 = vadd.f32 %v5637_v24, %v392_v53  ;;  %v5986_v35 = vadd.f32 %v5650_v23, %v421_v41  ;;  %v5613_v34 = vpop.f32.mrf.mxu0  ;;  %v5626_v44 = vpop.f32.mrf.mxu1  ;;  %v10392_v53 = vld [vmem:[#allocation7 + $0xb4] sm:$0xf0]  ;;  %v9592_v41 = vld [vmem:[#allocation7 + $0xb8] sm:$0xf0] }
 0x502   :  { %v9595_v34 = vor.u32 %v10390_v62, %v9592_v41  ;;  %v9566_v44 = vld [vmem:[#allocation7 + $0x80] sm:$0xf] }
 0x503   :  { %10543 = vtanh.f32 %v5985_v25  ;;  %v5996_v32 = vmul.f32 0.5, %v5986_v35  ;;  %v9591_v35 = vor.u32 %v10392_v53, %v9590_v3  ;;  %v9520_v3 = vld [vmem:[#allocation7 + $0x30] sm:$0xf0]  ;;  %v10376_v53 = vld [vmem:[#allocation7 + $0x34] sm:$0xf0] }
 0x504   :  { %v10540_v54 = vpop.eup %10539  ;;  %v9523_v62 = vor.u32 %v10373_v39, %v9520_v3  ;;  %v9527_v41 = vor.u32 %v10376_v53, %v9526_v0 }
 0x505   :  { %v10542_v12 = vpop.eup %10541  ;;  %v5989_v33 = vmul.f32 0.5, %v10540_v54  ;;  %10545 = vtanh.f32 %v5996_v32  ;;  %v10387_v32 = vld [vmem:[#allocation7 + $0x8c] sm:$0xf0]  ;;  %v10385_v54 = vld [vmem:[#allocation7 + $0x84] sm:$0xf]  ;;  %6471 = vmatpush.bf16.msrb.mxu2 %v9591_v35 }
 0x506   :  { %v5993_v38 = vmul.f32 0.5, %v10542_v12  ;;  %v9567_v12 = vor.u32 %v10387_v32, %v9566_v44  ;;  %v9502_v35 = vld [vmem:[#allocation7] sm:$0xf]  ;;  %v10369_v44 = vld [vmem:[#allocation7 + $0x4] sm:$0xf] }
 0x507   :  { %v5990_v45 = vadd.f32 0.5, %v5989_v33  ;;  %v9568_v33 = vld [vmem:[#allocation7 + $0x90] sm:$0xf0] }
 0x508   :  { %v5994_v8 = vadd.f32 0.5, %v5993_v38  ;;  %v5639_v16 = vpop.f32.mrf.mxu2  ;;  %v5652_v19 = vpop.f32.mrf.mxu3  ;;  %v9574_v38 = vld [vmem:[#allocation7 + $0x88] sm:$0xf]  ;;  %6446 = vmatpush.bf16.msrb.mxu0 %v9567_v12 }
 0x509   :  { %v10544_v6 = vpop.eup %10543  ;;  %v11068_v14 = vpop.f32.mrf.mxu0  ;;  %v9575_v57 = vor.u32 %v10388_v10, %v9574_v38  ;;  %v9579_v16 = vor.u32 %v10386_v43, %v9576_v46  ;;  %v9550_v19 = vld [vmem:[#allocation7 + $0x60] sm:$0xf]  ;;  %v9510_v12 = vld [vmem:[#allocation7 + $0x8] sm:$0xf] }
 0x50a   :  { %v11070_v17 = vpop.f32.mrf.mxu1  ;;  %v6000_v21 = vmul.f32 %v5994_v8, %v11028_v61  ;;  %v6001_v52 = vmul.f32 %v10544_v6, %v5990_v45  ;;  %v9611_v61 = vor.u32 %v10394_v27, %v9608_v30  ;;  %v9571_v45 = vor.u32 %v10385_v54, %v9568_v33  ;;  %v9504_v54 = vld [vmem:[#allocation7 + $0x10] sm:$0xf0]  ;;  %v10372_v33 = vld [vmem:[#allocation7 + $0x14] sm:$0xf0] }
 0x50b   :  { %v10546_v60 = vpop.eup %10545  ;;  %6472 = vmatpush.bf16.msrb.mxu2 %v9575_v57  ;;  %v9551_v6 = vor.u32 %v10383_v29, %v9550_v19  ;;  %v9543_v30 = vor.u32 %v10380_v59, %v9542_v55  ;;  %v9507_v38 = vor.u32 %v10369_v44, %v9504_v54  ;;  %v9511_v10 = vor.u32 %v10372_v33, %v9510_v12 }
 0x50c   :  { %v6002_v58 = vadd.f32 %v6001_v52, %v6000_v21  ;;  %v5998_v4 = vmul.f32 0.5, %v10546_v60  ;;  %6483 = vmatpush.bf16.msrb.mxu3 %v9611_v61  ;;  %6459 = vmatpush.bf16.msrb.mxu1 %v9571_v45  ;;  %v9563_v60 = vor.u32 %v10382_v56, %v9560_v7  ;;  %v9544_v61 = vld [vmem:[#allocation7 + $0x58] sm:$0xf0] }
 0x50d   :  { %6447 = vmatpush.bf16.msrb.mxu0 %v9551_v6  ;;  %v9512_v45 = vld [vmem:[#allocation7 + $0x18] sm:$0xf0] }
 0x50e   :  { %10547 = vtanh.f32 %v6002_v58  ;;  %v5999_v24 = vadd.f32 0.5, %v5998_v4  ;;  %v9536_v58 = vld [vmem:[#allocation7 + $0x50] sm:$0xf0]  ;;  %v10378_v4 = vld [vmem:[#allocation7 + $0x4c] sm:$0xf] }
 0x50f   :  { %6473 = vmatpush.bf16.msrb.mxu2 %v9559_v31  ;;  %v9539_v27 = vor.u32 %v10377_v28, %v9536_v58  ;;  %v9547_v5 = vor.u32 %v10378_v4, %v9544_v61 }
 0x510   :  { %v11073_v36 = vpop.f32.mrf.mxu2  ;;  %v11075_v26 = vpop.f32.mrf.mxu3  ;;  %6484 = vmatpush.bf16.msrb.mxu3 %v9595_v34  ;;  %6460 = vmatpush.bf16.msrb.mxu1 %v9555_v49  ;;  %v10371_v34 = vld [vmem:[#allocation7 + $0xc] sm:$0xf0] }
 0x511   :  { %v5665_v23 = vpop.f32.mrf.mxu0  ;;  %6448 = vmatpush.bf16.msrb.mxu0 %v9535_v9  ;;  %v9503_v32 = vor.u32 %v10371_v34, %v9502_v35 }
 0x512   :  { %v5678_v25 = vpop.f32.mrf.mxu1  ;;  %v9528_v23 = vld [vmem:[#allocation7 + $0x38] sm:$0xf0] }
 0x513   :  { %6474 = vmatpush.bf16.msrb.mxu2 %v9543_v30 }
 0x514   :  { %v10548_v42 = vpop.eup %10547  ;;  %6485 = vmatpush.bf16.msrb.mxu3 %v9579_v16  ;;  %6461 = vmatpush.bf16.msrb.mxu1 %v9539_v27 }
 0x515   :  { %v6004_v8 = vmul.f32 %v10548_v42, %v5999_v24  ;;  %v10374_v24 = vld [vmem:[#allocation7 + $0x2c] sm:$0xf]  ;;  %6449 = vmatpush.bf16.msrb.mxu0 %v9519_v2 }
 0x516   :  { %v9531_v25 = vor.u32 %v10374_v24, %v9528_v23  ;;  %v10370_v42 = vld [vmem:[#allocation7 + $0xc] sm:$0xf] }
 0x517   :  { %v6005_v22 = vpack.c.bf16 %v6004_v8, %v6004_v8  ;;  %6475 = vmatpush.bf16.msrb.mxu2 %v9527_v41  ;;  %v9515_v57 = vor.u32 %v10370_v42, %v9512_v45 }
 0x518   :  { %v5691_v21 = vpop.f32.mrf.mxu2  ;;  %v5704_v52 = vpop.f32.mrf.mxu3  ;;  %6486 = vmatpush.bf16.msrb.mxu3 %v9563_v60  ;;  %6462 = vmatpush.bf16.msrb.mxu1 %v9523_v62 }
 0x519   :  { %6206 = vmatmul.bf16.vlgmr.msra.gmra.mxu0 %v6005_v22  ;;  %6219 = vmatmul.bf16.vlgmr.msra.gmra.mxu1 %v6005_v22 }
 0x51a   :  { %6232 = vmatmul.bf16.vlgmr.msra.gmra.mxu2 %v6005_v22  ;;  %6245 = vmatmul.bf16.vlgmr.msra.gmra.mxu3 %v6005_v22 }
 0x51b   :  { %6450 = vmatpush.bf16.msrb.mxu0 %v9503_v32  ;;  %6476 = vmatpush.bf16.msrb.mxu2 %v9511_v10 }
 0x51c   :  { %6487 = vmatpush.bf16.msrb.mxu3 %v9547_v5  ;;  %6463 = vmatpush.bf16.msrb.mxu1 %v9507_v38 }
 0x520   :  { %6488 = vmatpush.bf16.msrb.mxu3 %v9531_v25 }
 0x524   :  { %6489 = vmatpush.bf16.msrb.mxu3 %v9515_v57 }
 0x528   :  { %v5908_v43 = vpop.f32.mrf.mxu0  ;;  %v5921_v46 = vpop.f32.mrf.mxu1 }
 0x529   :  { %v5951_v8 = vadd.f32 %v5908_v43, %v11068_v14  ;;  %v5952_v16 = vadd.f32 %v5921_v46, %v11070_v17 }
 0x52b   :  { %v5955_v19 = vadd.f32 %v5951_v8, %v10817_v48  ;;  %v5956_v29 = vadd.f32 %v5952_v16, %v10821_v50 }
 0x52d   :  { %v5959_v18 = vmul.f32 0.5, %v5955_v19  ;;  %v5963_v22 = vmul.f32 0.5, %v5956_v29 }
 0x52f   :  { %10549 = vtanh.f32 %v5959_v18  ;;  %v5934_v6 = vpop.f32.mrf.mxu2  ;;  %v5947_v11 = vpop.f32.mrf.mxu3 }
 0x530   :  { %10551 = vtanh.f32 %v5963_v22  ;;  %v5953_v1 = vadd.f32 %v5934_v6, %v11073_v36  ;;  %v5954_v14 = vadd.f32 %v5947_v11, %v11075_v26  ;;  %v5910_v15 = vpop.f32.mrf.mxu0  ;;  %v5923_v17 = vpop.f32.mrf.mxu1 }
 0x532   :  { %v5957_v21 = vadd.f32 %v5953_v1, %v10829_v20  ;;  %v5958_v52 = vadd.f32 %v5954_v14, %v10831_v51 }
 0x534   :  { %10553 = vtanh.f32 %v5957_v21  ;;  %v5968_v49 = vmul.f32 0.5, %v5958_v52 }
 0x535   :  { %v10550_v31 = vpop.eup %10549 }
 0x536   :  { %v10552_v56 = vpop.eup %10551  ;;  %v5961_v7 = vmul.f32 0.5, %v10550_v31  ;;  %10555 = vtanh.f32 %v5968_v49 }
 0x537   :  { %v5965_v60 = vmul.f32 0.5, %v10552_v56  ;;  %v5936_v13 = vpop.f32.mrf.mxu2  ;;  %v5949_v63 = vpop.f32.mrf.mxu3 }
 0x538   :  { %v5962_v28 = vadd.f32 0.5, %v5961_v7 }
 0x539   :  { %v5966_v9 = vadd.f32 0.5, %v5965_v60 }
 0x53a   :  { %v10554_v36 = vpop.eup %10553 }
 0x53b   :  { %v5972_v26 = vmul.f32 %v5966_v9, %v11054_v40  ;;  %v5973_v58 = vmul.f32 %v10554_v36, %v5962_v28 }
 0x53c   :  { %v10556_v55 = vpop.eup %10555 }
 0x53d   :  { %v5974_v59 = vadd.f32 %v5973_v58, %v5972_v26  ;;  %v5970_v27 = vmul.f32 0.5, %v10556_v55 }
 0x53f   :  { %10557 = vtanh.f32 %v5974_v59  ;;  %v5971_v30 = vadd.f32 0.5, %v5970_v27 }
 0x545   :  { %v10558_v4 = vpop.eup %10557 }
 0x546   :  { %v5976_v61 = vmul.f32 %v10558_v4, %v5971_v30 }
 0x548   :  { %9371 = vst [vmem:[%s11105_s6 + $0x30] sm:$0xff] %v5976_v61  ;;  %v6250_v5 = vpack.c.bf16 %v5976_v61, %v5976_v61 }
 0x54a   :  { %6451 = vmatmul.bf16.vlgmr.msrb.gmra.mxu0 %v6250_v5  ;;  %6464 = vmatmul.bf16.vlgmr.msrb.gmra.mxu1 %v6250_v5 }
 0x54b   :  { %6477 = vmatmul.bf16.vlgmr.msrb.gmra.mxu2 %v6250_v5  ;;  %6490 = vmatmul.bf16.vlgmr.msrb.gmra.mxu3 %v6250_v5 }
 0x596   :  { %v6207_v37 = vpop.f32.mrf.mxu0  ;;  %v6220_v47 = vpop.f32.mrf.mxu1 }
 0x59d   :  { %v6233_v40 = vpop.f32.mrf.mxu2  ;;  %v6246_v39 = vpop.f32.mrf.mxu3 }
 0x59e   :  { %v6209_v2 = vpop.f32.mrf.mxu0  ;;  %v6222_v3 = vpop.f32.mrf.mxu1 }
 0x5a5   :  { %v6235_v0 = vpop.f32.mrf.mxu2  ;;  %v6248_v53 = vpop.f32.mrf.mxu3 }
 0x5c7   :  { %v6452_v62 = vpop.f32.mrf.mxu0  ;;  %v6465_v41 = vpop.f32.mrf.mxu1 }
 0x5c8   :  { %v6495_v24 = vadd.f32 %v6452_v62, %v6207_v37  ;;  %v6496_v23 = vadd.f32 %v6465_v41, %v6220_v47 }
 0x5ca   :  { %v6499_v25 = vadd.f32 %v6495_v24, %v10817_v48  ;;  %v6500_v35 = vadd.f32 %v6496_v23, %v10821_v50 }
 0x5cc   :  { %v6503_v34 = vmul.f32 0.5, %v6499_v25  ;;  %v6507_v44 = vmul.f32 0.5, %v6500_v35 }
 0x5ce   :  { %10559 = vtanh.f32 %v6503_v34  ;;  %v6478_v32 = vpop.f32.mrf.mxu2  ;;  %v6491_v54 = vpop.f32.mrf.mxu3 }
 0x5cf   :  { %10561 = vtanh.f32 %v6507_v44  ;;  %v6497_v12 = vadd.f32 %v6478_v32, %v6233_v40  ;;  %v6498_v33 = vadd.f32 %v6491_v54, %v6246_v39  ;;  %v6454_v38 = vpop.f32.mrf.mxu0  ;;  %v6467_v10 = vpop.f32.mrf.mxu1 }
 0x5d1   :  { %v6501_v42 = vadd.f32 %v6497_v12, %v10829_v20  ;;  %v6502_v45 = vadd.f32 %v6498_v33, %v10831_v51 }
 0x5d3   :  { %10563 = vtanh.f32 %v6501_v42  ;;  %v6512_v57 = vmul.f32 0.5, %v6502_v45 }
 0x5d4   :  { %v10560_v43 = vpop.eup %10559 }
 0x5d5   :  { %v10562_v48 = vpop.eup %10561  ;;  %v6505_v46 = vmul.f32 0.5, %v10560_v43  ;;  %10565 = vtanh.f32 %v6512_v57 }
 0x5d6   :  { %v6509_v50 = vmul.f32 0.5, %v10562_v48  ;;  %v6480_v8 = vpop.f32.mrf.mxu2  ;;  %v6493_v16 = vpop.f32.mrf.mxu3 }
 0x5d7   :  { %v6506_v19 = vadd.f32 0.5, %v6505_v46 }
 0x5d8   :  { %v6510_v29 = vadd.f32 0.5, %v6509_v50 }
 0x5d9   :  { %v10564_v18 = vpop.eup %10563 }
 0x5da   :  { %v6516_v22 = vmul.f32 %v6510_v29, %v5974_v59  ;;  %v6517_v6 = vmul.f32 %v10564_v18, %v6506_v19 }
 0x5db   :  { %v10566_v11 = vpop.eup %10565 }
 0x5dc   :  { %v6518_v1 = vadd.f32 %v6517_v6, %v6516_v22  ;;  %v6514_v20 = vmul.f32 0.5, %v10566_v11 }
 0x5de   :  { %10567 = vtanh.f32 %v6518_v1  ;;  %6523 = vst [vmem:[%s11106_s7] sm:$0xff] %v6518_v1  ;;  %v6515_v51 = vadd.f32 0.5, %v6514_v20 }
 0x5e4   :  { %v10568_v14 = vpop.eup %10567 }
 0x5e5   :  { %v6520_v15 = vmul.f32 %v10568_v14, %v6515_v51 }
 0x5e7   :  { %9628 = vst [vmem:[%s11105_s6 + $0x38] sm:$0xff] %v6520_v15 }
 0x5e8   :  { %6532 = vsyncpa [#allocation4], 1 }
 0x5e9   :  { %6533 = vsyncpa [#allocation6], 1 }

</bundles_post_ra>
